<compile_context>
chip_gen: v7x
topology: tpu7x:2x2x1
jax: 0.10.0
libtpu: 0.0.40
codegen_flags: <defaults>
</compile_context>

<pallas_src>
import functools

import jax
import jax.numpy as jnp
from jax import lax
from jax.experimental import pallas as pl
from jax.experimental.pallas import tpu as pltpu

KS = 3       # conv kernel size
STRIDE = 2   # conv stride
PAD = 3      # conv padding
POOL = 3     # max-pool kernel size (stride 1, padding 0)


def _conv_pool_kernel(a_ref, w_ref, b_ref, o_ref, *, Do, Ho, Wo, Cout):
    """Fused Conv3d (im2col matmul + bias) + MaxPool3d(3, stride=1).

    a_ref : (1, Do*Ho*Wo, Kp)   im2col slab for one batch element (bf16)
    w_ref : (Kp, Cout)          conv weight as (27*Cin -> Kp) x Cout (bf16)
    b_ref : (1, Cout)           conv bias (f32)
    o_ref : (1, Dp*Hp*Wp, Cout) pooled output (f32)
    """
    Dp, Hp, Wp = Do - (POOL - 1), Ho - (POOL - 1), Wo - (POOL - 1)

    # Single lane-dense MXU matmul (K = Kp = 128), f32 accumulation.
    conv = jnp.dot(a_ref[0], w_ref[...], preferred_element_type=jnp.float32)
    conv = conv + b_ref[...]                              # (Do*Ho*Wo, Cout)

    # Separable 3x3x3 stride-1 max pool; lane dim (Cout) is untouched, only
    # sublane/major dims are re-split, which keeps relayouts cheap.
    y = conv.reshape(Do, Ho, Wo, Cout)
    y = jnp.maximum(jnp.maximum(y[:, :, 0:Wp, :], y[:, :, 1:Wp + 1, :]),
                    y[:, :, 2:Wp + 2, :])
    y = jnp.maximum(jnp.maximum(y[:, 0:Hp, :, :], y[:, 1:Hp + 1, :, :]),
                    y[:, 2:Hp + 2, :, :])
    y = jnp.maximum(jnp.maximum(y[0:Dp], y[1:Dp + 1]), y[2:Dp + 2])

    o_ref[0] = y.reshape(Dp * Hp * Wp, Cout)


def conv_block_second_forward(x_ncdhw, params):
    """Pallas implementation of conv_block_second.forward (NCDHW in / NCDHW out)."""
    w, b = params["w"], params["b"]                # (Cout, Cin, 3,3,3), (Cout,)
    N, Cin, D, H, W = x_ncdhw.shape
    Cout = w.shape[0]

    Do = (D + 2 * PAD - KS) // STRIDE + 1
    Ho = (H + 2 * PAD - KS) // STRIDE + 1
    Wo = (W + 2 * PAD - KS) // STRIDE + 1
    Dp, Hp, Wp = Do - (POOL - 1), Ho - (POOL - 1), Wo - (POOL - 1)
    Mb, Mout = Do * Ho * Wo, Dp * Hp * Wp

    K = KS * KS * KS * Cin                         # 27 * Cin
    Kp = ((K + 127) // 128) * 128                  # pad contraction dim to 128

    # ---- wrapper-side layout plumbing (im2col), no compute ----
    x = jnp.transpose(x_ncdhw, (0, 2, 3, 4, 1))    # NCDHW -> NDHWC (C on lanes)
    xp = jnp.pad(x, ((0, 0), (PAD, PAD), (PAD, PAD), (PAD, PAD), (0, 0)))
    taps = []
    for kd in range(KS):
        for kh in range(KS):
            for kw in range(KS):
                taps.append(xp[:,
                               kd:kd + STRIDE * Do - 1:STRIDE,
                               kh:kh + STRIDE * Ho - 1:STRIDE,
                               kw:kw + STRIDE * Wo - 1:STRIDE, :])
    a = jnp.stack(taps, axis=4)                    # (N, Do, Ho, Wo, 27, Cin)
    a = a.reshape(N, Mb, K)
    a = jnp.pad(a, ((0, 0), (0, 0), (0, Kp - K))).astype(jnp.bfloat16)

    # Conv weight -> (t*Cin + cin, cout) matrix matching the im2col ordering.
    w2 = jnp.transpose(w, (2, 3, 4, 1, 0)).reshape(K, Cout)
    w2 = jnp.pad(w2, ((0, Kp - K), (0, 0))).astype(jnp.bfloat16)
    b2 = b.reshape(1, Cout).astype(jnp.float32)

    out = pl.pallas_call(
        functools.partial(_conv_pool_kernel, Do=Do, Ho=Ho, Wo=Wo, Cout=Cout),
        out_shape=jax.ShapeDtypeStruct((N, Mout, Cout), jnp.float32),
        grid=(N,),
        in_specs=[
            pl.BlockSpec((1, Mb, Kp), lambda n: (n, 0, 0)),
            pl.BlockSpec((Kp, Cout), lambda n: (0, 0)),
            pl.BlockSpec((1, Cout), lambda n: (0, 0)),
        ],
        out_specs=pl.BlockSpec((1, Mout, Cout), lambda n: (n, 0, 0)),
        compiler_params=pltpu.CompilerParams(
            dimension_semantics=("parallel",)),
    )(a, w2, b2)

    out = out.reshape(N, Dp, Hp, Wp, Cout)
    return jnp.transpose(out, (0, 4, 1, 2, 3))     # NDHWC -> NCDHW


# -------------------- pure-JAX reference (for sanity check) --------------------
def conv_block_second_ref(x_ncdhw, params):
    y = lax.conv_general_dilated(
        x_ncdhw, params["w"], window_strides=(STRIDE, STRIDE, STRIDE),
        padding=((PAD, PAD), (PAD, PAD), (PAD, PAD)),
        dimension_numbers=("NCDHW", "OIDHW", "NCDHW"),
        precision=lax.Precision.HIGHEST)
    y = y + params["b"].reshape(1, -1, 1, 1, 1)
    y = lax.reduce_window(y, -jnp.inf, lax.max,
                          (1, 1, POOL, POOL, POOL),
                          (1, 1, 1, 1, 1), "VALID")
    return y


if __name__ == "__main__":
    ch_in, ch_out = 4, 8
    N, D, H, W = 2, 16, 16, 16

    key = jax.random.PRNGKey(0)
    kx, kw, kb = jax.random.split(key, 3)
    x = jax.random.normal(kx, (N, ch_in, D, H, W), jnp.float32)   # NCDHW
    params = dict(
        w=jax.random.normal(kw, (ch_out, ch_in, KS, KS, KS), jnp.float32) * 0.1,
        b=jax.random.normal(kb, (ch_out,), jnp.float32) * 0.1,
    )

    fwd = jax.jit(conv_block_second_forward)
    ref_fn = jax.jit(conv_block_second_ref)

    out = jax.block_until_ready(fwd(x, params))
    ref = jax.block_until_ready(ref_fn(x, params))

    assert out.shape == ref.shape == (N, ch_out, 8, 8, 8), (out.shape, ref.shape)
    max_err = float(jnp.max(jnp.abs(out - ref)))
    # bf16 MXU inputs with f32 accumulation: errors stay well below 5e-2 here.
    assert max_err < 5e-2, f"mismatch vs reference: {max_err}"

    print("KERNEL_OK")
</pallas_src>

<mosaic_0001>
module attributes {stable_mosaic.version = 11 : i64} {
  func.func @_conv_pool_kernel(%arg0: i32, %arg1: memref<1x1000x128xbf16, #tpu.memory_space<vmem>>, %arg2: memref<128x8xbf16, #tpu.memory_space<vmem>>, %arg3: memref<1x8xf32, #tpu.memory_space<vmem>>, %arg4: memref<1x512x8xf32, #tpu.memory_space<vmem>>) attributes {dimension_semantics = [#tpu.dimension_semantics<parallel>], iteration_bounds = array<i64: 2>, scalar_prefetch = 0 : i64, scratch_operands = 0 : i64, tpu.core_type = #tpu.core_type<tc>, window_params = [{transform_indices = @transform_0, window_bounds = array<i64: 1, 1000, 128>}, {pipeline_mode = #tpu.pipeline_mode<synchronous>, transform_indices = @transform_1, window_bounds = array<i64: 128, 8>}, {pipeline_mode = #tpu.pipeline_mode<synchronous>, transform_indices = @transform_2, window_bounds = array<i64: 1, 8>}, {transform_indices = @transform_3, window_bounds = array<i64: 1, 512, 8>}]} {
    %c0 = arith.constant 0 : index
    %c0_0 = arith.constant 0 : index
    %c0_1 = arith.constant 0 : index
    %0 = vector.load %arg1[%c0, %c0_0, %c0_1] : memref<1x1000x128xbf16, #tpu.memory_space<vmem>>, vector<1x1000x128xbf16>
    %1 = vector.shape_cast %0 : vector<1x1000x128xbf16> to vector<1000x128xbf16>
    %c0_2 = arith.constant 0 : index
    %c0_3 = arith.constant 0 : index
    %2 = vector.load %arg2[%c0_2, %c0_3] : memref<128x8xbf16, #tpu.memory_space<vmem>>, vector<128x8xbf16>
    %cst = arith.constant dense<0.000000e+00> : vector<1000x8xf32>
    %3 = tpu.matmul %1, %2, %cst {dimension_numbers = #tpu.dot_dimension_numbers<[1], [0], [0], [1], [0, 0, 1, 1], [], []>} : vector<1000x128xbf16>, vector<128x8xbf16>, vector<1000x8xf32> -> vector<1000x8xf32>
    %c0_4 = arith.constant 0 : index
    %c0_5 = arith.constant 0 : index
    %4 = vector.load %arg3[%c0_4, %c0_5] : memref<1x8xf32, #tpu.memory_space<vmem>>, vector<1x8xf32>
    %5 = vector.broadcast %4 : vector<1x8xf32> to vector<1000x8xf32>
    %6 = arith.addf %3, %5 : vector<1000x8xf32>
    %7 = vector.shape_cast %6 : vector<1000x8xf32> to vector<10x10x10x8xf32>
    %8 = vector.extract_strided_slice %7 {offsets = [0, 0, 0, 0], sizes = [10, 10, 8, 8], strides = [1, 1, 1, 1]} : vector<10x10x10x8xf32> to vector<10x10x8x8xf32>
    %9 = vector.extract_strided_slice %7 {offsets = [0, 0, 1, 0], sizes = [10, 10, 8, 8], strides = [1, 1, 1, 1]} : vector<10x10x10x8xf32> to vector<10x10x8x8xf32>
    %10 = arith.maximumf %8, %9 : vector<10x10x8x8xf32>
    %11 = vector.extract_strided_slice %7 {offsets = [0, 0, 2, 0], sizes = [10, 10, 8, 8], strides = [1, 1, 1, 1]} : vector<10x10x10x8xf32> to vector<10x10x8x8xf32>
    %12 = arith.maximumf %10, %11 : vector<10x10x8x8xf32>
    %13 = vector.extract_strided_slice %12 {offsets = [0, 0, 0, 0], sizes = [10, 8, 8, 8], strides = [1, 1, 1, 1]} : vector<10x10x8x8xf32> to vector<10x8x8x8xf32>
    %14 = vector.extract_strided_slice %12 {offsets = [0, 1, 0, 0], sizes = [10, 8, 8, 8], strides = [1, 1, 1, 1]} : vector<10x10x8x8xf32> to vector<10x8x8x8xf32>
    %15 = arith.maximumf %13, %14 : vector<10x8x8x8xf32>
    %16 = vector.extract_strided_slice %12 {offsets = [0, 2, 0, 0], sizes = [10, 8, 8, 8], strides = [1, 1, 1, 1]} : vector<10x10x8x8xf32> to vector<10x8x8x8xf32>
    %17 = arith.maximumf %15, %16 : vector<10x8x8x8xf32>
    %18 = vector.extract_strided_slice %17 {offsets = [0, 0, 0, 0], sizes = [8, 8, 8, 8], strides = [1, 1, 1, 1]} : vector<10x8x8x8xf32> to vector<8x8x8x8xf32>
    %19 = vector.extract_strided_slice %17 {offsets = [1, 0, 0, 0], sizes = [8, 8, 8, 8], strides = [1, 1, 1, 1]} : vector<10x8x8x8xf32> to vector<8x8x8x8xf32>
    %20 = arith.maximumf %18, %19 : vector<8x8x8x8xf32>
    %21 = vector.extract_strided_slice %17 {offsets = [2, 0, 0, 0], sizes = [8, 8, 8, 8], strides = [1, 1, 1, 1]} : vector<10x8x8x8xf32> to vector<8x8x8x8xf32>
    %22 = arith.maximumf %20, %21 : vector<8x8x8x8xf32>
    %23 = vector.shape_cast %22 : vector<8x8x8x8xf32> to vector<512x8xf32>
    %c0_6 = arith.constant 0 : index
    %c0_7 = arith.constant 0 : index
    %c0_8 = arith.constant 0 : index
    %24 = vector.load %arg4[%c0_6, %c0_7, %c0_8] : memref<1x512x8xf32, #tpu.memory_space<vmem>>, vector<1x512x8xf32>
    %25 = vector.shape_cast %24 : vector<1x512x8xf32> to vector<512x8xf32>
    %26 = vector.shape_cast %23 : vector<512x8xf32> to vector<1x512x8xf32>
    tpu.vector_store %arg4[%c0_6, %c0_7, %c0_8], %26 {strides = array<i32>} : memref<1x512x8xf32, #tpu.memory_space<vmem>>, vector<1x512x8xf32>,
    return
  }
  func.func @transform_0(%arg0: i32) -> (i32, i32, i32) {
    %c0_i32 = arith.constant 0 : i32
    %c0_i32_0 = arith.constant 0 : i32
    %c0_i32_1 = arith.constant 0 : i32
    return %arg0, %c0_i32, %c0_i32_0 : i32, i32, i32
  }
  func.func @transform_1(%arg0: i32) -> (i32, i32) {
    %c0_i32 = arith.constant 0 : i32
    %c0_i32_0 = arith.constant 0 : i32
    %c0_i32_1 = arith.constant 0 : i32
    return %c0_i32, %c0_i32_0 : i32, i32
  }
  func.func @transform_2(%arg0: i32) -> (i32, i32) {
    %c0_i32 = arith.constant 0 : i32
    %c0_i32_0 = arith.constant 0 : i32
    %c0_i32_1 = arith.constant 0 : i32
    return %c0_i32, %c0_i32_0 : i32, i32
  }
  func.func @transform_3(%arg0: i32) -> (i32, i32, i32) {
    %c0_i32 = arith.constant 0 : i32
    %c0_i32_0 = arith.constant 0 : i32
    %c0_i32_1 = arith.constant 0 : i32
    return %arg0, %c0_i32, %c0_i32_0 : i32, i32, i32
  }
}

</mosaic_0001>

<bundles_post_ra>
// kernel: conv_block_second_forward.1
= control target key start
LH: loop header
LB: loop body
LE: loop exit
PB: predicated region body
PF: predicated region fallthrough
CT: control target
= control target key end

     0   :  { %s9877_s12 = smov 0   ;;  %s16836_s0 = inlined_call_operand.vmem [shape: bf16[2,1000,128], index: 0, kind: input, shape index: {}]   ;;  %s16837_s1 = inlined_call_operand.vmem [shape: bf16[128,8], index: 1, kind: input, shape index: {}]   ;;  %s16838_s2 = inlined_call_operand.vmem [shape: f32[1,8], index: 2, kind: input, shape index: {}]   ;;  %s16839_s3 = inlined_call_operand.vmem [shape: f32[2,512,8], index: 3, kind: output, shape index: {}]  }
   0x1 LB: > { %s9217_s13 = sadd.s32 4294967295, %s9852_s12   ;;  %p9221_p0 = scmp.ge.s32.totalorder %s9852_s12, 1  ;;  %s9852_s12 = sphi %s9877_s12, %s13_s12  }
   0x2   : > { %p137_p1 = scmp.lt.s32.totalorder %s9852_s12, 3 }
   0x4   : > { %p138_p2 = pnand %p9221_p0, %p137_p1 }
   0x6   : > { %141 = sbr.rel (%p138_p2) target bundleno = 1339 (0x53b), region = 32 }
   0xd   : > { %v9767_v0 = vld [vmem:[%s16837_s1] sm:$0xff]   ;;  %v9854_v1 = vmov 0.0   ;;  %v9768_v2 = vld [vmem:[%s16837_s1 + $0x8] sm:$0xff]   ;;  %p161_p3 = scmp.lt.s32.totalorder %s9217_s13, 1  ;;  %vm9855_vm0 = vmmov 0   ;;  %v9769_v3 = vld [vmem:[%s16837_s1 + $0x10] sm:$0xff]   ;;  %v1409_v63 = vlaneseq }
   0xe   : > { %9471 = vmatprep.subr.bf16.mxu0 %v9854_v1  ;;  %9739 = vmatprep.subr.bf16.mxu1 %v9854_v1  ;;  %v9770_v4 = vld [vmem:[%s16837_s1 + $0x18] sm:$0xff]   ;;  %v9771_v5 = vld [vmem:[%s16837_s1 + $0x20] sm:$0xff]   ;;  %v9772_v6 = vld [vmem:[%s16837_s1 + $0x28] sm:$0xff]   ;;  %v9856_v61 = vmov 1983009808   ;;  %vm4030_vm1 = vcmask 1040384  }
   0xf   : > { %9472 = vmatpush3.bf16.msra.mxu0 %v9767_v0  ;;  %9747 = vmatpush3.bf16.msra.mxu1 %v9767_v0  ;;  %s18610_s13 = smov (!%p161_p3, %s9217_s13), 1  ;;  %v9773_v7 = vld [vmem:[%s16837_s1 + $0x30] sm:$0xff]   ;;  %v9774_v8 = vld [vmem:[%s16837_s1 + $0x38] sm:$0xff]   ;;  %v1407_v62 = vunpack.c.l.s4 %v9856_v61  ;;  %vm4031_vm2 = vcmask 1042434   ;;  %vm4033_vm4 = vcmask 1044484   ;;  %vm4035_vm5 = vcmask 1046534  }
  0x10   : > { %9473 = vmatprep.subr.bf16.mxu0 %v9854_v1  ;;  %9740 = vmatprep.subr.bf16.mxu1 %v9854_v1  ;;  %s9755_s20 = smul.u32 500, %s18610_s13  ;;  %vm4032_vm3 = vmor %vm4030_vm1, %vm4031_vm2  ;;  %vm9097_vm8 = vcmask 64512   ;;  %s9399_s17 = sshll.u32 %s18610_s13, 9 }
  0x11   : > { %9487 = vmatprep.mubr.msk.bf16.mxu0 %vm9855_vm0, %v9854_v1  ;;  %9615 = vmatprep.mubr.msk.bf16.mxu1 %vm9855_vm0, %v9854_v1  ;;  %vm4034_vm6 = vmor %vm4032_vm3, %vm4033_vm4  ;;  %s12622_s19 = scalar_lea.vmem %s16839_s3, %s9399_s17 }
  0x12   : > { %s9910_s23 = scalar_lea.vmem %s16836_s0, %s9755_s20  ;;  %vm10121_vm7 = vmor %vm4034_vm6, %vm4035_vm5 }
  0x13   : > { %9474 = vmatpush3.bf16.msra.mxu0 %v9768_v2  ;;  %9748 = vmatpush3.bf16.msra.mxu1 %v9768_v2  ;;  %v9775_v9 = vld [vmem:[%s9910_s23] sm:$0xff]   ;;  %v9777_v11 = vld [vmem:[%s9910_s23 + $0x8] sm:$0xff]   ;;  %v9779_v13 = vld [vmem:[%s9910_s23 + $0x10] sm:$0xff]  }
  0x14   : > { %9475 = vmatprep.subr.bf16.mxu0 %v9854_v1  ;;  %9741 = vmatprep.subr.bf16.mxu1 %v9854_v1  ;;  %v9776_v10 = vld [vmem:[%s9910_s23 + $0x100] sm:$0xff]   ;;  %v9778_v12 = vld [vmem:[%s9910_s23 + $0x108] sm:$0xff]   ;;  %v9780_v14 = vld [vmem:[%s9910_s23 + $0x110] sm:$0xff]  }
  0x15   : > { %v9781_v15 = vld [vmem:[%s9910_s23 + $0x18] sm:$0xff]   ;;  %v9783_v17 = vld [vmem:[%s9910_s23 + $0x20] sm:$0xff]   ;;  %v9785_v19 = vld [vmem:[%s9910_s23 + $0x28] sm:$0xff]  }
  0x16   : > { %v9782_v16 = vld [vmem:[%s9910_s23 + $0x118] sm:$0xff]   ;;  %v9784_v18 = vld [vmem:[%s9910_s23 + $0x120] sm:$0xff]   ;;  %v9786_v20 = vld [vmem:[%s9910_s23 + $0x128] sm:$0xff]  }
  0x17   : > { %9476 = vmatpush3.bf16.msra.mxu0 %v9769_v3  ;;  %9749 = vmatpush3.bf16.msra.mxu1 %v9769_v3  ;;  %v9787_v21 = vld [vmem:[%s9910_s23 + $0x30] sm:$0xff]   ;;  %v9789_v23 = vld [vmem:[%s9910_s23 + $0x38] sm:$0xff]   ;;  %v9791_v25 = vld [vmem:[%s9910_s23 + $0x40] sm:$0xff]   ;;  %v1408_v3 = vunpack.c.0.s8 %v1407_v62 }
  0x18   : > { %9477 = vmatprep.subr.bf16.mxu0 %v9854_v1  ;;  %9742 = vmatprep.subr.bf16.mxu1 %v9854_v1  ;;  %v9788_v22 = vld [vmem:[%s9910_s23 + $0x130] sm:$0xff]   ;;  %v9790_v24 = vld [vmem:[%s9910_s23 + $0x138] sm:$0xff]   ;;  %v9792_v26 = vld [vmem:[%s9910_s23 + $0x140] sm:$0xff]  }
  0x19   : > { %v9793_v27 = vld [vmem:[%s9910_s23 + $0x48] sm:$0xff]   ;;  %v9795_v29 = vld [vmem:[%s9910_s23 + $0x50] sm:$0xff]   ;;  %v9797_v31 = vld [vmem:[%s9910_s23 + $0x58] sm:$0xff]  }
  0x1a   : > { %v9794_v28 = vld [vmem:[%s9910_s23 + $0x148] sm:$0xff]   ;;  %v9796_v30 = vld [vmem:[%s9910_s23 + $0x150] sm:$0xff]   ;;  %v9798_v32 = vld [vmem:[%s9910_s23 + $0x158] sm:$0xff]  }
  0x1b   : > { %9478 = vmatpush3.bf16.msra.mxu0 %v9770_v4  ;;  %9750 = vmatpush3.bf16.msra.mxu1 %v9770_v4  ;;  %v9799_v33 = vld [vmem:[%s9910_s23 + $0x60] sm:$0xff]   ;;  %v9801_v35 = vld [vmem:[%s9910_s23 + $0x68] sm:$0xff]   ;;  %v9803_v37 = vld [vmem:[%s9910_s23 + $0x70] sm:$0xff]   ;;  %v1410_v4 = vshrl.u32 %v1409_v63, 7 }
  0x1c   : > { %9479 = vmatprep.subr.bf16.mxu0 %v9854_v1  ;;  %9743 = vmatprep.subr.bf16.mxu1 %v9854_v1  ;;  %v9800_v34 = vld [vmem:[%s9910_s23 + $0x160] sm:$0xff]   ;;  %v9802_v36 = vld [vmem:[%s9910_s23 + $0x168] sm:$0xff]   ;;  %v9804_v38 = vld [vmem:[%s9910_s23 + $0x170] sm:$0xff]  }
  0x1d   : > { %v9805_v39 = vld [vmem:[%s9910_s23 + $0x78] sm:$0xff]   ;;  %v9807_v41 = vld [vmem:[%s9910_s23 + $0x80] sm:$0xff]   ;;  %v9809_v43 = vld [vmem:[%s9910_s23 + $0x88] sm:$0xff]  }
  0x1e   : > { %v9806_v40 = vld [vmem:[%s9910_s23 + $0x178] sm:$0xff]   ;;  %v9808_v42 = vld [vmem:[%s9910_s23 + $0x180] sm:$0xff]   ;;  %v9810_v44 = vld [vmem:[%s9910_s23 + $0x188] sm:$0xff]  }
  0x1f   : > { %9480 = vmatpush3.bf16.msra.mxu0 %v9771_v5  ;;  %9751 = vmatpush3.bf16.msra.mxu1 %v9771_v5  ;;  %v9811_v45 = vld [vmem:[%s9910_s23 + $0x90] sm:$0xff]   ;;  %v9813_v47 = vld [vmem:[%s9910_s23 + $0x98] sm:$0xff]   ;;  %v9815_v49 = vld [vmem:[%s9910_s23 + $0xa0] sm:$0xff]  }
  0x20   : > { %9481 = vmatprep.subr.bf16.mxu0 %v9854_v1  ;;  %9744 = vmatprep.subr.bf16.mxu1 %v9854_v1  ;;  %v9812_v46 = vld [vmem:[%s9910_s23 + $0x190] sm:$0xff]   ;;  %v9814_v48 = vld [vmem:[%s9910_s23 + $0x198] sm:$0xff]   ;;  %v9816_v50 = vld [vmem:[%s9910_s23 + $0x1a0] sm:$0xff]  }
  0x21   : > { %v9817_v51 = vld [vmem:[%s9910_s23 + $0xa8] sm:$0xff]   ;;  %v9819_v53 = vld [vmem:[%s9910_s23 + $0xb0] sm:$0xff]   ;;  %v9821_v55 = vld [vmem:[%s9910_s23 + $0xb8] sm:$0xff]  }
  0x22   : > { %v9818_v52 = vld [vmem:[%s9910_s23 + $0x1a8] sm:$0xff]   ;;  %v9820_v54 = vld [vmem:[%s9910_s23 + $0x1b0] sm:$0xff]   ;;  %v9822_v56 = vld [vmem:[%s9910_s23 + $0x1b8] sm:$0xff]  }
  0x23   : > { %9482 = vmatpush3.bf16.msra.mxu0 %v9772_v6  ;;  %9752 = vmatpush3.bf16.msra.mxu1 %v9772_v6  ;;  %v9823_v57 = vld [vmem:[%s9910_s23 + $0xc0] sm:$0xff]   ;;  %v9825_v59 = vld [vmem:[%s9910_s23 + $0xc8] sm:$0xff]   ;;  %v9827_v0 = vld [vmem:[%s9910_s23 + $0xd0] sm:$0xff]   ;;  %v10104_v6 = vsub.s32 %v1408_v3, %v1410_v4 }
  0x24   : > { %9483 = vmatprep.subr.bf16.mxu0 %v9854_v1  ;;  %9745 = vmatprep.subr.bf16.mxu1 %v9854_v1  ;;  %v9824_v58 = vld [vmem:[%s9910_s23 + $0x1c0] sm:$0xff]   ;;  %v9826_v60 = vld [vmem:[%s9910_s23 + $0x1c8] sm:$0xff]   ;;  %v9828_v2 = vld [vmem:[%s9910_s23 + $0x1d0] sm:$0xff]  }
  0x25   : > { %v10098_v5 = vld [vmem:[%s16838_s2] ss:$0 sm:$0xff] }
  0x27   : > { %9484 = vmatpush3.bf16.msra.mxu0 %v9773_v7  ;;  %9753 = vmatpush3.bf16.msra.mxu1 %v9773_v7 }
  0x28   : > { %9485 = vmatprep.subr.bf16.mxu0 %v9854_v1  ;;  %9746 = vmatprep.subr.bf16.mxu1 %v9854_v1 }
  0x2b   : > { %9486 = vmatpush3.bf16.msra.mxu0 %v9774_v8  ;;  %9754 = vmatpush3.bf16.msra.mxu1 %v9774_v8 }
  0x2e   : > { %9488 = vmatmul.mubr.bf16.vlgmr.msra.gmra.mrb[0].mxu0 %v9775_v9  ;;  %9616 = vmatmul.mubr.bf16.vlgmr.msra.gmra.mrb[0].mxu1 %v9776_v10 }
  0x2f   : > { %9491 = vmatprep.mubr.msk.bf16.mxu0 %vm9855_vm0, %v9854_v1  ;;  %9619 = vmatprep.mubr.msk.bf16.mxu1 %vm9855_vm0, %v9854_v1 }
  0x36   : > { %9492 = vmatmul.mubr.bf16.gmra.mrb[4].mxu0 %v9777_v11  ;;  %9620 = vmatmul.mubr.bf16.gmra.mrb[4].mxu1 %v9778_v12  ;;  %v9829_v12 = vld [vmem:[%s9910_s23 + $0xd8] sm:$0xff]  }
  0x37   : > { %9495 = vmatprep.mubr.msk.bf16.mxu0 %vm9855_vm0, %v9854_v1  ;;  %9623 = vmatprep.mubr.msk.bf16.mxu1 %vm9855_vm0, %v9854_v1 }
  0x3e   : > { %9496 = vmatmul.mubr.bf16.gmra.mrb[8].mxu0 %v9779_v13  ;;  %9624 = vmatmul.mubr.bf16.gmra.mrb[8].mxu1 %v9780_v14  ;;  %v9830_v14 = vld [vmem:[%s9910_s23 + $0x1d8] sm:$0xff]  }
  0x3f   : > { %9499 = vmatprep.mubr.msk.bf16.mxu0 %vm9855_vm0, %v9854_v1  ;;  %9627 = vmatprep.mubr.msk.bf16.mxu1 %vm9855_vm0, %v9854_v1 }
  0x46   : > { %9500 = vmatmul.mubr.bf16.gmra.mrb[12].mxu0 %v9781_v15  ;;  %9628 = vmatmul.mubr.bf16.gmra.mrb[12].mxu1 %v9782_v16 }
  0x47   : > { %9503 = vmatprep.mubr.msk.bf16.mxu0 %vm9855_vm0, %v9854_v1  ;;  %9631 = vmatprep.mubr.msk.bf16.mxu1 %vm9855_vm0, %v9854_v1 }
  0x4e   : > { %9504 = vmatmul.mubr.bf16.gmra.mrb[16].mxu0 %v9783_v17  ;;  %9632 = vmatmul.mubr.bf16.gmra.mrb[16].mxu1 %v9784_v18 }
  0x4f   : > { %9507 = vmatprep.mubr.msk.bf16.mxu0 %vm9855_vm0, %v9854_v1  ;;  %9635 = vmatprep.mubr.msk.bf16.mxu1 %vm9855_vm0, %v9854_v1 }
  0x56   : > { %9508 = vmatmul.mubr.bf16.gmra.mrb[20].mxu0 %v9785_v19  ;;  %9636 = vmatmul.mubr.bf16.gmra.mrb[20].mxu1 %v9786_v20 }
  0x57   : > { %9511 = vmatprep.mubr.msk.bf16.mxu0 %vm9855_vm0, %v9854_v1  ;;  %9639 = vmatprep.mubr.msk.bf16.mxu1 %vm9855_vm0, %v9854_v1 }
  0x5e   : > { %9512 = vmatmul.mubr.bf16.gmra.mrb[24].mxu0 %v9787_v21  ;;  %9640 = vmatmul.mubr.bf16.gmra.mrb[24].mxu1 %v9788_v22 }
  0x5f   : > { %9515 = vmatprep.mubr.msk.bf16.mxu0 %vm9855_vm0, %v9854_v1  ;;  %9643 = vmatprep.mubr.msk.bf16.mxu1 %vm9855_vm0, %v9854_v1 }
  0x66   : > { %9516 = vmatmul.mubr.bf16.gmra.mrb[28].mxu0 %v9789_v23  ;;  %9644 = vmatmul.mubr.bf16.gmra.mrb[28].mxu1 %v9790_v24 }
  0x67   : > { %9519 = vmatprep.mubr.msk.bf16.mxu0 %vm9855_vm0, %v9854_v1  ;;  %9647 = vmatprep.mubr.msk.bf16.mxu1 %vm9855_vm0, %v9854_v1 }
  0x6e   : > { %9520 = vmatmul.mubr.bf16.gmra.mrb[32].mxu0 %v9791_v25  ;;  %9648 = vmatmul.mubr.bf16.gmra.mrb[32].mxu1 %v9792_v26 }
  0x6f   : > { %9523 = vmatprep.mubr.msk.bf16.mxu0 %vm9855_vm0, %v9854_v1  ;;  %9651 = vmatprep.mubr.msk.bf16.mxu1 %vm9855_vm0, %v9854_v1 }
  0x76   : > { %9524 = vmatmul.mubr.bf16.gmra.mrb[36].mxu0 %v9793_v27  ;;  %9652 = vmatmul.mubr.bf16.gmra.mrb[36].mxu1 %v9794_v28 }
  0x77   : > { %9527 = vmatprep.mubr.msk.bf16.mxu0 %vm9855_vm0, %v9854_v1  ;;  %9655 = vmatprep.mubr.msk.bf16.mxu1 %vm9855_vm0, %v9854_v1 }
  0x7e   : > { %9528 = vmatmul.mubr.bf16.gmra.mrb[40].mxu0 %v9795_v29  ;;  %9656 = vmatmul.mubr.bf16.gmra.mrb[40].mxu1 %v9796_v30 }
  0x7f   : > { %9531 = vmatprep.mubr.msk.bf16.mxu0 %vm9855_vm0, %v9854_v1  ;;  %9659 = vmatprep.mubr.msk.bf16.mxu1 %vm9855_vm0, %v9854_v1 }
  0x86   : > { %9532 = vmatmul.mubr.bf16.gmra.mrb[44].mxu0 %v9797_v31  ;;  %9660 = vmatmul.mubr.bf16.gmra.mrb[44].mxu1 %v9798_v32 }
  0x87   : > { %9535 = vmatprep.mubr.msk.bf16.mxu0 %vm9855_vm0, %v9854_v1  ;;  %9663 = vmatprep.mubr.msk.bf16.mxu1 %vm9855_vm0, %v9854_v1 }
  0x8e   : > { %9536 = vmatmul.mubr.bf16.gmra.mrb[48].mxu0 %v9799_v33  ;;  %9664 = vmatmul.mubr.bf16.gmra.mrb[48].mxu1 %v9800_v34 }
  0x8f   : > { %9539 = vmatprep.mubr.msk.bf16.mxu0 %vm9855_vm0, %v9854_v1  ;;  %9667 = vmatprep.mubr.msk.bf16.mxu1 %vm9855_vm0, %v9854_v1 }
  0x96   : > { %9540 = vmatmul.mubr.bf16.gmra.mrb[52].mxu0 %v9801_v35  ;;  %9668 = vmatmul.mubr.bf16.gmra.mrb[52].mxu1 %v9802_v36 }
  0x97   : > { %9543 = vmatprep.mubr.msk.bf16.mxu0 %vm9855_vm0, %v9854_v1  ;;  %9671 = vmatprep.mubr.msk.bf16.mxu1 %vm9855_vm0, %v9854_v1 }
  0x9e   : > { %9544 = vmatmul.mubr.bf16.gmra.mrb[56].mxu0 %v9803_v37  ;;  %9672 = vmatmul.mubr.bf16.gmra.mrb[56].mxu1 %v9804_v38 }
  0x9f   : > { %9547 = vmatprep.mubr.msk.bf16.mxu0 %vm9855_vm0, %v9854_v1  ;;  %9675 = vmatprep.mubr.msk.bf16.mxu1 %vm9855_vm0, %v9854_v1 }
  0xa6   : > { %9548 = vmatmul.mubr.bf16.gmra.mrb[60].mxu0 %v9805_v39  ;;  %9676 = vmatmul.mubr.bf16.gmra.mrb[60].mxu1 %v9806_v40 }
  0xa7   : > { %9551 = vmatprep.mubr.msk.bf16.mxu0 %vm9855_vm0, %v9854_v1  ;;  %9679 = vmatprep.mubr.msk.bf16.mxu1 %vm9855_vm0, %v9854_v1 }
  0xae   : > { %9552 = vmatmul.mubr.bf16.gmra.mrb[64].mxu0 %v9807_v41  ;;  %9680 = vmatmul.mubr.bf16.gmra.mrb[64].mxu1 %v9808_v42  ;;  %v9831_v42 = vld [vmem:[%s9910_s23 + $0xe0] sm:$0xff]  }
  0xaf   : > { %9555 = vmatprep.mubr.msk.bf16.mxu0 %vm9855_vm0, %v9854_v1  ;;  %9683 = vmatprep.mubr.msk.bf16.mxu1 %vm9855_vm0, %v9854_v1 }
  0xb6   : > { %9556 = vmatmul.mubr.bf16.gmra.mrb[68].mxu0 %v9809_v43  ;;  %9684 = vmatmul.mubr.bf16.gmra.mrb[68].mxu1 %v9810_v44 }
  0xb7   : > { %9559 = vmatprep.mubr.msk.bf16.mxu0 %vm9855_vm0, %v9854_v1  ;;  %9687 = vmatprep.mubr.msk.bf16.mxu1 %vm9855_vm0, %v9854_v1 }
  0xbe   : > { %9560 = vmatmul.mubr.bf16.gmra.mrb[72].mxu0 %v9811_v45  ;;  %9688 = vmatmul.mubr.bf16.gmra.mrb[72].mxu1 %v9812_v46 }
  0xbf   : > { %9563 = vmatprep.mubr.msk.bf16.mxu0 %vm9855_vm0, %v9854_v1  ;;  %9691 = vmatprep.mubr.msk.bf16.mxu1 %vm9855_vm0, %v9854_v1 }
  0xc6   : > { %9564 = vmatmul.mubr.bf16.gmra.mrb[76].mxu0 %v9813_v47  ;;  %9692 = vmatmul.mubr.bf16.gmra.mrb[76].mxu1 %v9814_v48 }
  0xc7   : > { %9567 = vmatprep.mubr.msk.bf16.mxu0 %vm9855_vm0, %v9854_v1  ;;  %9695 = vmatprep.mubr.msk.bf16.mxu1 %vm9855_vm0, %v9854_v1 }
  0xce   : > { %9568 = vmatmul.mubr.bf16.gmra.mrb[80].mxu0 %v9815_v49  ;;  %9696 = vmatmul.mubr.bf16.gmra.mrb[80].mxu1 %v9816_v50  ;;  %v9832_v49 = vld [vmem:[%s9910_s23 + $0x1e0] sm:$0xff]  }
  0xcf   : > { %9571 = vmatprep.mubr.msk.bf16.mxu0 %vm9855_vm0, %v9854_v1  ;;  %9699 = vmatprep.mubr.msk.bf16.mxu1 %vm9855_vm0, %v9854_v1 }
  0xd6   : > { %9572 = vmatmul.mubr.bf16.gmra.mrb[84].mxu0 %v9817_v51  ;;  %9700 = vmatmul.mubr.bf16.gmra.mrb[84].mxu1 %v9818_v52 }
  0xd7   : > { %9575 = vmatprep.mubr.msk.bf16.mxu0 %vm9855_vm0, %v9854_v1  ;;  %9703 = vmatprep.mubr.msk.bf16.mxu1 %vm9855_vm0, %v9854_v1 }
  0xde   : > { %9576 = vmatmul.mubr.bf16.gmra.mrb[88].mxu0 %v9819_v53  ;;  %9704 = vmatmul.mubr.bf16.gmra.mrb[88].mxu1 %v9820_v54 }
  0xdf   : > { %9579 = vmatprep.mubr.msk.bf16.mxu0 %vm9855_vm0, %v9854_v1  ;;  %9707 = vmatprep.mubr.msk.bf16.mxu1 %vm9855_vm0, %v9854_v1 }
  0xe6   : > { %9580 = vmatmul.mubr.bf16.gmra.mrb[92].mxu0 %v9821_v55  ;;  %9708 = vmatmul.mubr.bf16.gmra.mrb[92].mxu1 %v9822_v56 }
  0xe7   : > { %9583 = vmatprep.mubr.msk.bf16.mxu0 %vm9855_vm0, %v9854_v1  ;;  %9711 = vmatprep.mubr.msk.bf16.mxu1 %vm9855_vm0, %v9854_v1 }
  0xee   : > { %9584 = vmatmul.mubr.bf16.gmra.mrb[96].mxu0 %v9823_v57  ;;  %9712 = vmatmul.mubr.bf16.gmra.mrb[96].mxu1 %v9824_v58 }
  0xef   : > { %9587 = vmatprep.mubr.msk.bf16.mxu0 %vm9855_vm0, %v9854_v1  ;;  %9715 = vmatprep.mubr.msk.bf16.mxu1 %vm9855_vm0, %v9854_v1 }
  0xf6   : > { %9588 = vmatmul.mubr.bf16.gmra.mrb[100].mxu0 %v9825_v59  ;;  %9716 = vmatmul.mubr.bf16.gmra.mrb[100].mxu1 %v9826_v60 }
  0xf7   : > { %9591 = vmatprep.mubr.msk.bf16.mxu0 %vm9855_vm0, %v9854_v1  ;;  %9719 = vmatprep.mubr.msk.bf16.mxu1 %vm9855_vm0, %v9854_v1 }
  0xfe   : > { %9592 = vmatmul.mubr.bf16.gmra.mrb[104].mxu0 %v9827_v0  ;;  %9720 = vmatmul.mubr.bf16.gmra.mrb[104].mxu1 %v9828_v2 }
  0xff   : > { %9595 = vmatprep.mubr.msk.bf16.mxu0 %vm9855_vm0, %v9854_v1  ;;  %9723 = vmatprep.mubr.msk.bf16.mxu1 %vm9855_vm0, %v9854_v1 }
 0x101   : > { %v778_v7 = vpop.f32.mrb[0].mxu0  ;;  %v1034_v8 = vpop.f32.mrb[0].mxu1 }
 0x102   : > { %v779_v9 = vadd.f32 %v10098_v5, %v778_v7  ;;  %v9489_v10 = vpop.f32.mrb[1].mxu0  ;;  %v1035_v11 = vadd.f32 %v10098_v5, %v1034_v8  ;;  %v9617_v13 = vpop.f32.mrb[1].mxu1 }
 0x103   : > { %v781_v15 = vpop.f32.mrb[2].mxu0  ;;  %v1037_v16 = vpop.f32.mrb[2].mxu1 }
 0x104   : > { %v1405_v17 = vcombine.high %v779_v9, %v779_v9  ;;  %v1412_v18 = vrot.slane %v779_v9, %v10104_v6  ;;  %v782_v19 = vadd.f32 %v10098_v5, %v781_v15  ;;  %v9490_v20 = vpop.f32.mrb[3].mxu0  ;;  %v2493_v21 = vcombine.high %v1035_v11, %v1035_v11  ;;  %v9618_v22 = vpop.f32.mrb[3].mxu1 }
 0x105   : > { %v10113_v23 = vrot.slane %v1035_v11, %v10104_v6  ;;  %v1038_v2 = vadd.f32 %v10098_v5, %v1037_v16 }
 0x106   : > { %v10116_v24 = vrot.slane %v1405_v17, %v10104_v6  ;;  %v10118_v25 = vcombine.high %v1412_v18, %v1412_v18  ;;  %v9297_v26 = vrot.slane %v1412_v18, 9  ;;  %v1422_v27 = vcombine.high %v782_v19, %v782_v19  ;;  %9596 = vmatmul.mubr.bf16.gmra.mrb[108].mxu0 %v9829_v12  ;;  %9724 = vmatmul.mubr.bf16.gmra.mrb[108].mxu1 %v9830_v14 }
 0x107   : > { %17334 = vst [vmem:[#allocation2_spill] sm:$0xff] %v10113_v23  ;;  %v1429_v29 = vrot.slane %v782_v19, %v10104_v6  ;;  %v10127_v30 = vrot.slane %v2493_v21, %v10104_v6  ;;  %v10131_v31 = vcombine.high %v10113_v23, %v10113_v23  ;;  %v16840_v32 = vrot.slane %v10113_v23, 7  ;;  %9599 = vmatprep.mubr.msk.bf16.mxu0 %vm9855_vm0, %v9854_v1 }
 0x108   : > { %9727 = vmatprep.mubr.msk.bf16.mxu1 %vm9855_vm0, %v9854_v1  ;;  %v10140_v33 = vcombine.high %v10116_v24, %v10116_v24  ;;  %v4039_v34 = vrot.slane %v10118_v25, 7  ;;  %v4042_v35 = vrot.slane %v10116_v24, 7  ;;  %v1436_v36 = vrot.slane %v1422_v27, %v10104_v6 }
 0x109   : > { %v1437_v37 = vcombine.high %v1429_v29, %v1429_v29  ;;  %v4048_v38 = vrot.slane %v1429_v29, 7  ;;  %v4704_v39 = vrot.slane %v16840_v32, 2  ;;  %v10147_v40 = vpop.f32.mrb[4].mxu0  ;;  %v10149_v41 = vpop.f32.mrb[4].mxu1  ;;  %v10166_v58 = vcombine.high %v10127_v30, %v10127_v30 }
 0x10a   : > { %v4040_v43 = vsel %vm10121_vm7, %v9297_v26, %v4039_v34  ;;  %v4041_v44 = vrot.slane %v4039_v34, 2  ;;  %v4044_v45 = vrot.slane %v4042_v35, 2  ;;  %v4045_v46 = vrot.slane %v10140_v33, 7  ;;  %v9493_v47 = vpop.f32.mrb[5].mxu0  ;;  %v9621_v48 = vpop.f32.mrb[5].mxu1 }
 0x10b   : > { %v5737_v50 = vmax.f32 %v1412_v18, %v4040_v43  ;;  %v10156_v51 = vcombine.high %v1436_v36, %v1436_v36  ;;  %v9298_v52 = vrot.slane %v1437_v37, 9  ;;  %v4052_v53 = vrot.slane %v1436_v36, 7  ;;  %v10158_v54 = vpop.f32.mrb[6].mxu0  ;;  %v10160_v55 = vpop.f32.mrb[6].mxu1 }
 0x10c   : > { %v4043_v56 = vsel %vm10121_vm7, %v4041_v44, %v4042_v35  ;;  %v4047_v57 = vrot.slane %v4045_v46, 2  ;;  %v4705_v59 = vrot.slane %v10131_v31, 7  ;;  %v9494_v60 = vpop.f32.mrb[7].mxu0  ;;  %v9622_v61 = vpop.f32.mrb[7].mxu1  ;;  %v10171_v62 = vsel %vm10121_vm7, %v4044_v45, %v4045_v46 }
 0x10d   : > { %v5738_v63 = vmax.f32 %v10118_v25, %v4043_v56  ;;  %v4053_v0 = vsel %vm10121_vm7, %v9298_v52, %v4052_v53  ;;  %v4054_v4 = vrot.slane %v4052_v53, 2  ;;  %v4055_v7 = vrot.slane %v10156_v51, 7 }
 0x10e   : > { %v4049_v3 = vsel %vm10121_vm7, %v4047_v57, %v4048_v38  ;;  %v5741_v8 = vmax.f32 %v1437_v37, %v4053_v0  ;;  %9600 = vmatmul.mubr.bf16.gmra.mrb[112].mxu0 %v9831_v42  ;;  %9728 = vmatmul.mubr.bf16.gmra.mrb[112].mxu1 %v9832_v49  ;;  %v10181_v9 = vmax.f32 %v5737_v50, %v10118_v25  ;;  %v4707_v12 = vrot.slane %v4705_v59, 2  ;;  %v9834_v37 = vld [vmem:[%s9910_s23 + $0x1e8] sm:$0xff]  }
 0x10f   : > { %v5740_v10 = vmax.f32 %v10140_v33, %v4049_v3  ;;  %v4706_v11 = vsel %vm10121_vm7, %v4704_v39, %v4705_v59  ;;  %9603 = vmatprep.mubr.msk.bf16.mxu0 %vm9855_vm0, %v9854_v1  ;;  %9731 = vmatprep.mubr.msk.bf16.mxu1 %vm9855_vm0, %v9854_v1  ;;  %v4056_v13 = vsel %vm10121_vm7, %v4054_v4, %v4055_v7  ;;  %v4708_v15 = vrot.slane %v10127_v30, 7 }
 0x110   : > { %v10192_v14 = vmax.f32 %v5741_v8, %v1436_v36  ;;  %v4711_v16 = vrot.slane %v10166_v58, 7  ;;  %v5742_v17 = vmax.f32 %v1436_v36, %v4056_v13  ;;  %v5942_v19 = vmax.f32 %v10113_v23, %v4706_v11  ;;  %v9833_v36 = vld [vmem:[%s9910_s23 + $0xe8] sm:$0xff]  }
 0x111   : > { %v10196_v18 = vmax.f32 %v5740_v10, %v1429_v29  ;;  %v2510_v20 = vcombine.high %v1038_v2, %v1038_v2  ;;  %v10199_v21 = vpop.f32.mrb[8].mxu0  ;;  %v10201_v22 = vpop.f32.mrb[8].mxu1  ;;  %v4709_v26 = vsel %vm10121_vm7, %v4707_v12, %v4708_v15  ;;  %v4710_v27 = vrot.slane %v4708_v15, 2 }
 0x112   : > { %v6537_v25 = vmax.f32 %v10181_v9, %v10192_v14  ;;  %v10208_v34 = vrot.slane %v1038_v2, %v10104_v6  ;;  %v9497_v35 = vpop.f32.mrb[9].mxu0  ;;  %v9625_v29 = vpop.f32.mrb[9].mxu1  ;;  %v10213_v38 = vmax.f32 %v5738_v63, %v10116_v24  ;;  %v10216_v39 = vmax.f32 %v5742_v17, %v10156_v51 }
 0x113   : > { %v10219_v42 = vrot.slane %v2510_v20, %v10104_v6  ;;  %v10221_v43 = vpop.f32.mrb[10].mxu0  ;;  %v10223_v44 = vpop.f32.mrb[10].mxu1  ;;  %v5739_v45 = vmax.f32 %v10116_v24, %v10171_v62  ;;  %v5943_v46 = vmax.f32 %v10131_v31, %v4709_v26  ;;  %v787_v48 = vadd.f32 %v10098_v5, %v10147_v40  ;;  %v9835_v20 = vld [vmem:[%s9910_s23 + $0xf0] sm:$0xff]  }
 0x114   : > { %v10230_v47 = vcombine.high %v10208_v34, %v10208_v34  ;;  %v9498_v49 = vpop.f32.mrb[11].mxu0  ;;  %v9626_v50 = vpop.f32.mrb[11].mxu1  ;;  %v10238_v53 = vsel %vm10121_vm7, %v4710_v27, %v4711_v16  ;;  %v10241_v24 = vmax.f32 %v5942_v19, %v10131_v31  ;;  %v9349_v61 = vrot.slane %v10208_v34, 9  ;;  %v9836_v26 = vld [vmem:[%s9910_s23 + $0x1f0] ss:$0 sps:$4 sm:$0xff]  }
 0x115   : > { %v10245_v56 = vcombine.high %v10219_v42, %v10219_v42  ;;  %v4718_v40 = vrot.slane %v10219_v42, 7  ;;  %v1439_v59 = vcombine.high %v787_v48, %v787_v48  ;;  %v1446_v60 = vrot.slane %v787_v48, %v10104_v6 }
 0x116   : > { %17337 = vst [vmem:[#allocation3_spill] sm:$0xff] %v10230_v47  ;;  %17338 = vst [vmem:[#allocation4_spill] sm:$0xff] %v10241_v24  ;;  %v4715_v57 = vrot.slane %v10230_v47, 7  ;;  %9604 = vmatmul.mubr.bf16.gmra.mrb[116].mxu0 %v9833_v36  ;;  %9732 = vmatmul.mubr.bf16.gmra.mrb[116].mxu1 %v9834_v37  ;;  %v4057_v63 = vrot.slane %v4055_v7, 2  ;;  %v1043_v31 = vadd.f32 %v10098_v5, %v10149_v41 }
 0x117   : > { %v4721_v62 = vrot.slane %v10245_v56, 7  ;;  %9607 = vmatprep.mubr.msk.bf16.mxu0 %vm9855_vm0, %v9854_v1  ;;  %9735 = vmatprep.mubr.msk.bf16.mxu1 %vm9855_vm0, %v9854_v1  ;;  %v5944_v0 = vmax.f32 %v10127_v30, %v10238_v53  ;;  %v4720_v3 = vrot.slane %v4718_v40, 2  ;;  %v1453_v4 = vrot.slane %v1439_v59, %v10104_v6 }
 0x118   : > { %v4717_v2 = vrot.slane %v4715_v57, 2  ;;  %v10262_v7 = vmax.f32 %v5943_v46, %v10127_v30  ;;  %v1454_v8 = vcombine.high %v1446_v60, %v1446_v60  ;;  %v4058_v41 = vrot.slane %v1446_v60, 7 }
 0x119   : > { %v2527_v10 = vcombine.high %v1043_v31, %v1043_v31  ;;  %v10264_v11 = vpop.f32.mrb[12].mxu0  ;;  %v10266_v12 = vpop.f32.mrb[12].mxu1  ;;  %v4722_v15 = vsel %vm10121_vm7, %v4720_v3, %v4721_v62  ;;  %v10272_v16 = vcombine.high %v1453_v4, %v1453_v4  ;;  %v10275_v17 = vmax.f32 %v5739_v45, %v10140_v33 }
 0x11a   : > { %17339 = vst [vmem:[#allocation5_spill] sm:$0xff] %v10262_v7  ;;  %v4719_v13 = vsel %vm10121_vm7, %v4717_v2, %v4718_v40  ;;  %v9501_v30 = vpop.f32.mrb[13].mxu0  ;;  %v9629_v19 = vpop.f32.mrb[13].mxu1  ;;  %v5947_v35 = vmax.f32 %v10219_v42, %v4722_v15  ;;  %v4059_v29 = vsel %vm10121_vm7, %v4057_v63, %v4058_v41  ;;  %v9299_v36 = vrot.slane %v1453_v4, 9 }
 0x11b   : > { %v5946_v27 = vmax.f32 %v10230_v47, %v4719_v13  ;;  %v10283_v37 = vpop.f32.mrb[14].mxu0  ;;  %v10285_v46 = vpop.f32.mrb[14].mxu1  ;;  %v4060_v48 = vrot.slane %v4058_v41, 2  ;;  %v4061_v49 = vrot.slane %v1454_v8, 7  ;;  %v4065_v33 = vrot.slane %v10272_v16, 7 }
 0x11c   : > { %v5743_v45 = vmax.f32 %v10156_v51, %v4059_v29  ;;  %v9502_v50 = vpop.f32.mrb[15].mxu0  ;;  %v9630_v53 = vpop.f32.mrb[15].mxu1  ;;  %v10291_v40 = vsel %vm10121_vm7, %v9349_v61, %v4715_v57  ;;  %v2534_v63 = vrot.slane %v1043_v31, %v10104_v6  ;;  %v2541_v2 = vrot.slane %v2527_v10, %v10104_v6 }
 0x11d   : > { %v10294_v59 = vmax.f32 %v5946_v27, %v10219_v42  ;;  %v4062_v3 = vsel %vm10121_vm7, %v4060_v48, %v4061_v49  ;;  %v4066_v41 = vsel %vm10121_vm7, %v9299_v36, %v4065_v33  ;;  %v10305_v57 = vmax.f32 %v5947_v35, %v10245_v56  ;;  %v9837_v48 = vld [vmem:[%s9910_s23 + $0xf8] sm:$0xff]  }
 0x11e   : > { %v10302_v51 = vmax.f32 %v5743_v45, %v1446_v60  ;;  %9608 = vmatmul.mubr.bf16.gmra.mrb[120].mxu0 %v9835_v20  ;;  %9736 = vmatmul.mubr.bf16.gmra.mrb[120].mxu1 %v9836_v26  ;;  %v5744_v61 = vmax.f32 %v1446_v60, %v4062_v3  ;;  %v5745_v42 = vmax.f32 %v1453_v4, %v4066_v41  ;;  %v4723_v15 = vrot.slane %v4721_v62, 2 }
 0x11f   : > { %17340 = vst [vmem:[#allocation6_spill] sm:$0xff] %v10294_v59  ;;  %17341 = vst [vmem:[#allocation7_spill] sm:$0xff] %v10305_v57  ;;  %v2542_v13 = vcombine.high %v2534_v63, %v2534_v63  ;;  %9611 = vmatprep.mubr.msk.bf16.mxu0 %vm9855_vm0, %v9854_v1  ;;  %v10311_v10 = vcombine.high %v2541_v2, %v2541_v2  ;;  %v4724_v30 = vrot.slane %v2534_v63, 7  ;;  %v4728_v60 = vrot.slane %v2541_v2, 7 }
 0x120   : > { %v10313_v19 = vmax.f32 %v5744_v61, %v1454_v8  ;;  %v10316_v20 = vmax.f32 %v5745_v42, %v10272_v16  ;;  %v10326_v29 = vmax.f32 %v5944_v0, %v10166_v58  ;;  %v790_v62 = vadd.f32 %v10098_v5, %v10158_v54 }
 0x121   : > { %v9350_v26 = vrot.slane %v2542_v13, 9  ;;  %v10318_v4 = vpop.f32.mrb[16].mxu0  ;;  %v10320_v27 = vpop.f32.mrb[16].mxu1  ;;  %v4725_v1 = vsel %vm10121_vm7, %v4723_v15, %v4724_v30  ;;  %v4731_v35 = vrot.slane %v10311_v10, 7  ;;  %v4730_v53 = vrot.slane %v4728_v60, 2 }
 0x122   : > { %17342 = vst [vmem:[#allocation8_spill] sm:$0xff] %v10326_v29  ;;  %v9505_v8 = vpop.f32.mrb[17].mxu0  ;;  %v9633_v36 = vpop.f32.mrb[17].mxu1  ;;  %v10339_v50 = vmax.f32 %v6537_v25, %v10316_v20  ;;  %v5948_v3 = vmax.f32 %v10245_v56, %v4725_v1  ;;  %v1456_v61 = vcombine.high %v790_v62, %v790_v62  ;;  %v6702_v30 = vmax.f32 %v10241_v24, %v10294_v59 }
 0x123   : > { %v4729_v58 = vsel %vm10121_vm7, %v9350_v26, %v4728_v60  ;;  %v10343_v0 = vpop.f32.mrb[18].mxu0  ;;  %v10345_v54 = vpop.f32.mrb[18].mxu1  ;;  %v4067_v9 = vrot.slane %v4065_v33, 2  ;;  %v1463_v25 = vrot.slane %v790_v62, %v10104_v6  ;;  %v1046_v26 = vadd.f32 %v10098_v5, %v10160_v55 }
 0x124   : > { %17343 = vst [vmem:[#allocation9_spill] sm:$0xff] %v10339_v50  ;;  %v5949_v41 = vmax.f32 %v2542_v13, %v4729_v58  ;;  %v9506_v42 = vpop.f32.mrb[19].mxu0  ;;  %v9634_v15 = vpop.f32.mrb[19].mxu1  ;;  %v4732_v8 = vsel %vm10121_vm7, %v4730_v53, %v4731_v35  ;;  %v10355_v36 = vmax.f32 %v5948_v3, %v2534_v63  ;;  %v1470_v56 = vrot.slane %v1456_v61, %v10104_v6 }
 0x125   : > { %v4733_v13 = vrot.slane %v4731_v35, 2  ;;  %v5950_v60 = vmax.f32 %v2541_v2, %v4732_v8  ;;  %v1471_v1 = vcombine.high %v1463_v25, %v1463_v25  ;;  %v4068_v58 = vrot.slane %v1463_v25, 7 }
 0x126   : > { %17344 = vst [vmem:[#allocation10_spill] sm:$0xff] %v10355_v36  ;;  %9612 = vmatmul.mubr.bf16.gmra.mrb[124].mxu0 %v9837_v48  ;;  %v2544_v42 = vcombine.high %v1046_v26, %v1046_v26  ;;  %v10358_v15 = vmax.f32 %v5949_v41, %v2541_v2  ;;  %v10362_v62 = vcombine.high %v1470_v56, %v1470_v56  ;;  %v4074_v41 = vrot.slane %v1470_v56, 7 }
 0x127   : > { %v10367_v63 = vmax.f32 %v5950_v60, %v10311_v10  ;;  %v4069_v35 = vsel %vm10121_vm7, %v4067_v9, %v4068_v58  ;;  %v4070_v48 = vrot.slane %v4068_v58, 2  ;;  %v4071_v53 = vrot.slane %v1471_v1, 7 }
 0x128   : > { %17345 = vst [vmem:[#allocation11_spill] sm:$0xff] %v10358_v15  ;;  %v5746_v61 = vmax.f32 %v10272_v16, %v4069_v35  ;;  %v2551_v8 = vrot.slane %v1046_v26, %v10104_v6  ;;  %v2558_v32 = vrot.slane %v2544_v42, %v10104_v6  ;;  %v795_v55 = vadd.f32 %v10098_v5, %v10199_v21 }
 0x129   : > { %v10371_v3 = vpop.f32.mrb[20].mxu0  ;;  %v10373_v2 = vpop.f32.mrb[20].mxu1  ;;  %v10379_v60 = vmax.f32 %v6702_v30, %v10367_v63  ;;  %v4072_v9 = vsel %vm10121_vm7, %v4070_v48, %v4071_v53  ;;  %v4073_v58 = vrot.slane %v4071_v53, 2 }
 0x12a   : > { %v9509_v45 = vpop.f32.mrb[21].mxu0  ;;  %v9637_v33 = vpop.f32.mrb[21].mxu1  ;;  %v5747_v16 = vmax.f32 %v1463_v25, %v4072_v9  ;;  %v10389_v26 = vmax.f32 %v5746_v61, %v1463_v25  ;;  %v2559_v42 = vcombine.high %v2551_v8, %v2551_v8  ;;  %v4734_v48 = vrot.slane %v2551_v8, 7 }
 0x12b   : > { %17346 = vst [vmem:[#allocation12_spill] sm:$0xff] %v10379_v60  ;;  %v10385_v49 = vpop.f32.mrb[22].mxu0  ;;  %v10387_v31 = vpop.f32.mrb[22].mxu1  ;;  %v10391_v45 = vcombine.high %v2558_v32, %v2558_v32  ;;  %v4075_v35 = vsel %vm10121_vm7, %v4073_v58, %v4074_v41  ;;  %v9351_v53 = vrot.slane %v2558_v32, 9  ;;  %v1473_v52 = vcombine.high %v795_v55, %v795_v55 }
 0x12c   : > { %v9510_v33 = vpop.f32.mrb[23].mxu0  ;;  %v9638_v30 = vpop.f32.mrb[23].mxu1  ;;  %v5748_v24 = vmax.f32 %v1471_v1, %v4075_v35  ;;  %v10395_v21 = vmax.f32 %v5747_v16, %v1471_v1  ;;  %v17347_v25 = vmax.f32 %v10213_v38, %v10216_v39  ;;  %v4735_v9 = vsel %vm10121_vm7, %v4733_v13, %v4734_v48 }
 0x12d   : > { %v4736_v33 = vrot.slane %v4734_v48, 2  ;;  %v4737_v41 = vrot.slane %v2559_v42, 7  ;;  %v4741_v58 = vrot.slane %v10391_v45, 7  ;;  %v17349_v16 = vmax.f32 %v10275_v17, %v10302_v51 }
 0x12e   : > { %v10403_v61 = vmax.f32 %v17347_v25, %v10389_v26  ;;  %v10408_v30 = vmax.f32 %v5748_v24, %v1470_v56  ;;  %v5951_v38 = vmax.f32 %v10311_v10, %v4735_v9  ;;  %v9300_v25 = vrot.slane %v10362_v62, 9 }
 0x12f   : > { %v10416_v35 = vmax.f32 %v17349_v16, %v10395_v21  ;;  %v4738_v13 = vsel %vm10121_vm7, %v4736_v33, %v4737_v41  ;;  %v4742_v24 = vsel %vm10121_vm7, %v9351_v53, %v4741_v58  ;;  %v1480_v56 = vrot.slane %v795_v55, %v10104_v6 }
 0x130   : > { %17348 = vst [vmem:[#allocation13_spill] sm:$0xff] %v10403_v61  ;;  %v17351_v10 = vmax.f32 %v10196_v18, %v10313_v19  ;;  %v5952_v16 = vmax.f32 %v2551_v8, %v4738_v13  ;;  %v5953_v33 = vmax.f32 %v2558_v32, %v4742_v24  ;;  %v10437_v53 = vmax.f32 %v5951_v38, %v2551_v8 }
 0x131   : > { %17350 = vst [vmem:[#allocation14_spill] sm:$0xff] %v10416_v35  ;;  %v10425_v48 = vpop.f32.mrb[24].mxu0  ;;  %v10427_v1 = vpop.f32.mrb[24].mxu1  ;;  %v1487_v55 = vrot.slane %v1473_v52, %v10104_v6  ;;  %v1488_v60 = vcombine.high %v1480_v56, %v1480_v56  ;;  %v4078_v35 = vrot.slane %v1480_v56, 7  ;;  %v4743_v17 = vrot.slane %v4741_v58, 2 }
 0x132   : > { %v10435_v9 = vmax.f32 %v17351_v10, %v10408_v30  ;;  %v9513_v41 = vpop.f32.mrb[25].mxu0  ;;  %v9641_v23 = vpop.f32.mrb[25].mxu1  ;;  %v10444_v47 = vmax.f32 %v5952_v16, %v2559_v42  ;;  %v10447_v18 = vmax.f32 %v5953_v33, %v10391_v45  ;;  %v1051_v32 = vadd.f32 %v10098_v5, %v10201_v22 }
 0x133   : > { %v10440_v61 = vpop.f32.mrb[26].mxu0  ;;  %v10442_v50 = vpop.f32.mrb[26].mxu1  ;;  %v17354_v52 = vmax.f32 %v10262_v7, %v10305_v57  ;;  %v1489_v13 = vcombine.high %v1487_v55, %v1487_v55  ;;  %v4079_v58 = vsel %vm10121_vm7, %v9300_v25, %v4078_v35  ;;  %v6706_v42 = vmax.f32 %v10294_v59, %v10367_v63 }
 0x134   : > { %17352 = vst [vmem:[#allocation15_spill] sm:$0xff] %v10435_v9  ;;  %17353 = vst [vmem:[#allocation16_spill] sm:$0xff] %v10442_v50  ;;  %v9514_v23 = vpop.f32.mrb[27].mxu0  ;;  %v9642_v8 = vpop.f32.mrb[27].mxu1  ;;  %v17356_v10 = vmax.f32 %v10326_v29, %v10355_v36  ;;  %v4080_v33 = vrot.slane %v4078_v35, 2  ;;  %v4081_v41 = vrot.slane %v1488_v60, 7  ;;  %v5749_v25 = vmax.f32 %v10362_v62, %v4079_v58 }
 0x135   : > { %v10455_v38 = vmax.f32 %v17354_v52, %v10437_v53  ;;  %v4084_v23 = vrot.slane %v1487_v55, 7  ;;  %v4087_v8 = vrot.slane %v1489_v13, 7  ;;  %v2561_v52 = vcombine.high %v1051_v32, %v1051_v32 }
 0x136   : > { %v10469_v16 = vmax.f32 %v17356_v10, %v10444_v47  ;;  %v2568_v59 = vrot.slane %v1051_v32, %v10104_v6  ;;  %v6708_v24 = vmax.f32 %v10355_v36, %v10444_v47  ;;  %v798_v22 = vadd.f32 %v10098_v5, %v10221_v43 }
 0x137   : > { %17355 = vst [vmem:[#allocation17_spill] sm:$0xff] %v10455_v38  ;;  %v4082_v29 = vsel %vm10121_vm7, %v4080_v33, %v4081_v41  ;;  %v4083_v10 = vrot.slane %v4081_v41, 2  ;;  %v4086_v7 = vrot.slane %v4084_v23, 2  ;;  %v10479_v35 = vmax.f32 %v5749_v25, %v1480_v56 }
 0x138   : > { %17357 = vst [vmem:[#allocation18_spill] sm:$0xff] %v10469_v16  ;;  %v5750_v62 = vmax.f32 %v1480_v56, %v4082_v29  ;;  %v2575_v32 = vrot.slane %v2561_v52, %v10104_v6  ;;  %v2576_v58 = vcombine.high %v2568_v59, %v2568_v59  ;;  %v4744_v9 = vrot.slane %v2568_v59, 7 }
 0x139   : > { %v10481_v16 = vpop.f32.mrb[28].mxu0  ;;  %v10483_v38 = vpop.f32.mrb[28].mxu1  ;;  %v4085_v43 = vsel %vm10121_vm7, %v4083_v10, %v4084_v23  ;;  %v4088_v33 = vsel %vm10121_vm7, %v4086_v7, %v4087_v8  ;;  %v17360_v25 = vmax.f32 %v10192_v14, %v10316_v20  ;;  %v1497_v14 = vrot.slane %v798_v22, %v10104_v6 }
 0x13a   : > { %17358 = vst [vmem:[#allocation19_spill] sm:$0xff] %v10481_v16  ;;  %17359 = vst [vmem:[#allocation20_spill] sm:$0xff] %v10483_v38  ;;  %v9517_v36 = vpop.f32.mrb[29].mxu0  ;;  %v9645_v50 = vpop.f32.mrb[29].mxu1  ;;  %v5751_v56 = vmax.f32 %v1488_v60, %v4085_v43  ;;  %v5752_v52 = vmax.f32 %v1487_v55, %v4088_v33  ;;  %v10498_v38 = vmax.f32 %v5750_v62, %v1488_v60  ;;  %v4746_v23 = vrot.slane %v4744_v9, 2 }
 0x13b   : > { %v10496_v29 = vmax.f32 %v17360_v25, %v10479_v35  ;;  %v10500_v50 = vcombine.high %v2575_v32, %v2575_v32  ;;  %v4745_v36 = vsel %vm10121_vm7, %v4743_v17, %v4744_v9  ;;  %v4747_v7 = vrot.slane %v2576_v58, 7  ;;  %v10520_v33 = vpop.f32.mrb[30].mxu0 }
 0x13c   : > { %v4750_v8 = vrot.slane %v2575_v32, 7  ;;  %v10504_v10 = vmax.f32 %v5751_v56, %v1487_v55  ;;  %v10506_v41 = vmax.f32 %v5752_v52, %v1489_v13  ;;  %v17362_v60 = vmax.f32 %v10216_v39, %v10389_v26  ;;  %17364 = vst [vmem:[#allocation23_spill] sm:$0xff] %v10520_v33 }
 0x13d   : > { %17361 = vst [vmem:[#allocation21_spill] sm:$0xff] %v10496_v29  ;;  %v4748_v43 = vsel %vm10121_vm7, %v4746_v23, %v4747_v7  ;;  %v4749_v17 = vrot.slane %v4747_v7, 2  ;;  %v9352_v9 = vrot.slane %v10500_v50, 9  ;;  %v5954_v55 = vmax.f32 %v10391_v45, %v4745_v36  ;;  %v9518_v7 = vpop.f32.mrb[31].mxu0 }
 0x13e   : > { %v10514_v62 = vmax.f32 %v17362_v60, %v10498_v38  ;;  %v6547_v13 = vmax.f32 %v10395_v21, %v10504_v10  ;;  %v17365_v25 = vmax.f32 %v10302_v51, %v10395_v21  ;;  %v17367_v56 = vmax.f32 %v10313_v19, %v10408_v30  ;;  %v10565_v7 = vpop.f32.mrb[30].mxu1 }
 0x13f   : > { %v5955_v23 = vmax.f32 %v2568_v59, %v4748_v43  ;;  %v4751_v45 = vsel %vm10121_vm7, %v4749_v17, %v4750_v8  ;;  %v10538_v36 = vmax.f32 %v5954_v55, %v2568_v59  ;;  %v1490_v60 = vcombine.high %v798_v22, %v798_v22  ;;  %17372 = vst [vmem:[#allocation28_spill] sm:$0xff] %v10565_v7  ;;  %v9646_v22 = vpop.f32.mrb[31].mxu1 }
 0x140   : > { %17363 = vst [vmem:[#allocation22_spill] sm:$0xff] %v10514_v62  ;;  %v10528_v39 = vmax.f32 %v17365_v25, %v10504_v10  ;;  %v10534_v52 = vmax.f32 %v17367_v56, %v10506_v41  ;;  %v5956_v62 = vmax.f32 %v2576_v58, %v4751_v45  ;;  %v1054_v21 = vadd.f32 %v10098_v5, %v10223_v44 }
 0x141   : > { %v10541_v51 = vmax.f32 %v5955_v23, %v2576_v58  ;;  %v803_v19 = vadd.f32 %v10098_v5, %v10264_v11  ;;  %v10550_v25 = vmax.f32 %v6706_v42, %v10538_v36  ;;  %v1504_v59 = vrot.slane %v1490_v60, %v10104_v6 }
 0x142   : > { %17366 = vst [vmem:[#allocation24_spill] sm:$0xff] %v10528_v39  ;;  %17368 = vst [vmem:[#allocation25_spill] sm:$0xff] %v10534_v52  ;;  %v1505_v8 = vcombine.high %v1497_v14, %v1497_v14  ;;  %v10553_v17 = vmax.f32 %v5956_v62, %v2575_v32  ;;  %v17370_v44 = vmax.f32 %v10305_v57, %v10437_v53  ;;  %v9301_v11 = vrot.slane %v1497_v14, 9 }
 0x143   : > { %17369 = vst [vmem:[#allocation26_spill] sm:$0xff] %v10550_v25  ;;  %v10563_v55 = vcombine.high %v1504_v59, %v1504_v59  ;;  %v4094_v42 = vrot.slane %v1504_v59, 7  ;;  %v2578_v23 = vcombine.high %v1054_v21, %v1054_v21  ;;  %v2585_v45 = vrot.slane %v1054_v21, %v10104_v6 }
 0x144   : > { %v10561_v58 = vmax.f32 %v17370_v44, %v10541_v51  ;;  %v4091_v56 = vrot.slane %v1505_v8, 7  ;;  %v6712_v32 = vmax.f32 %v10444_v47, %v10553_v17  ;;  %v10570_v62 = vmax.f32 %v6708_v24, %v10553_v17 }
 0x145   : > { %v1507_v60 = vcombine.high %v803_v19, %v803_v19  ;;  %v4096_v57 = vrot.slane %v4094_v42, 2  ;;  %v2592_v52 = vrot.slane %v2578_v23, %v10104_v6  ;;  %v2593_v39 = vcombine.high %v2585_v45, %v2585_v45 }
 0x146   : > { %17371 = vst [vmem:[#allocation27_spill] sm:$0xff] %v10561_v58  ;;  %17373 = vst [vmem:[#allocation29_spill] sm:$0xff] %v10570_v62  ;;  %v4092_v44 = vsel %vm10121_vm7, %v9301_v11, %v4091_v56  ;;  %v4093_v43 = vrot.slane %v4091_v56, 2  ;;  %v4097_v58 = vrot.slane %v10563_v55, 7  ;;  %v4754_v29 = vrot.slane %v2585_v45, 7 }
 0x147   : > { %v5753_v25 = vmax.f32 %v1497_v14, %v4092_v44  ;;  %v1514_v21 = vrot.slane %v803_v19, %v10104_v6  ;;  %v10583_v22 = vrot.slane %v1507_v60, %v10104_v6  ;;  %v2594_v14 = vcombine.high %v2592_v52, %v2592_v52 }
 0x148   : > { %v4095_v47 = vsel %vm10121_vm7, %v4093_v43, %v4094_v42  ;;  %v4098_v24 = vsel %vm10121_vm7, %v4096_v57, %v4097_v58  ;;  %v4755_v23 = vsel %vm10121_vm7, %v9352_v9, %v4754_v29  ;;  %v4756_v44 = vrot.slane %v4754_v29, 2 }
 0x149   : > { %v5754_v11 = vmax.f32 %v1505_v8, %v4095_v47  ;;  %v5755_v56 = vmax.f32 %v1504_v59, %v4098_v24  ;;  %v10585_v62 = vmax.f32 %v5753_v25, %v1505_v8  ;;  %v4757_v7 = vrot.slane %v2593_v39, 7 }
 0x14a   : > { %v4760_v33 = vrot.slane %v2592_v52, 7  ;;  %v17374_v25 = vmax.f32 %v10316_v20, %v10479_v35  ;;  %v4763_v60 = vrot.slane %v2594_v14, 7  ;;  %v17376_v47 = vmax.f32 %v10389_v26, %v10498_v38 }
 0x14b   : > { %v10589_v43 = vmax.f32 %v5754_v11, %v1504_v59  ;;  %v10592_v57 = vmax.f32 %v5755_v56, %v10563_v55  ;;  %v6549_v19 = vmax.f32 %v10479_v35, %v10585_v62  ;;  %v4758_v9 = vsel %vm10121_vm7, %v4756_v44, %v4757_v7 }
 0x14c   : > { %v10600_v8 = vmax.f32 %v17374_v25, %v10585_v62  ;;  %v4759_v29 = vrot.slane %v4757_v7, 2  ;;  %v4762_v42 = vrot.slane %v4760_v33, 2  ;;  %v5957_v20 = vmax.f32 %v10500_v50, %v4755_v23 }
 0x14d   : > { %v6550_v59 = vmax.f32 %v10498_v38, %v10589_v43  ;;  %v10610_v24 = vmax.f32 %v17376_v47, %v10589_v43  ;;  %v10613_v11 = vmax.f32 %v6547_v13, %v10592_v57  ;;  %v5958_v56 = vmax.f32 %v2585_v45, %v4758_v9  ;;  %v10626_v38 = vpop.f32.mrb[32].mxu0 }
 0x14e   : > { %17375 = vst [vmem:[#allocation30_spill] sm:$0xff] %v10600_v8  ;;  %v4761_v35 = vsel %vm10121_vm7, %v4759_v29, %v4760_v33  ;;  %v4764_v7 = vsel %vm10121_vm7, %v4762_v42, %v4763_v60  ;;  %v1522_v44 = vcombine.high %v1514_v21, %v1514_v21  ;;  %v10620_v16 = vmax.f32 %v5957_v20, %v2585_v45  ;;  %v9521_v29 = vpop.f32.mrb[33].mxu0 }
 0x14f   : > { %17377 = vst [vmem:[#allocation31_spill] sm:$0xff] %v10610_v24  ;;  %17378 = vst [vmem:[#allocation32_spill] sm:$0xff] %v10613_v11  ;;  %v5959_v25 = vmax.f32 %v2593_v39, %v4761_v35  ;;  %v5960_v8 = vmax.f32 %v2592_v52, %v4764_v7  ;;  %v10624_v26 = vcombine.high %v10583_v22, %v10583_v22  ;;  %v4099_v50 = vrot.slane %v4097_v58, 2  ;;  %v10710_v20 = vpop.f32.mrb[34].mxu0 }
 0x150   : > { %v10628_v13 = vmax.f32 %v5958_v56, %v2593_v39  ;;  %v4100_v23 = vrot.slane %v1514_v21, 7  ;;  %v9302_v33 = vrot.slane %v1522_v44, 9  ;;  %v17379_v42 = vmax.f32 %v10358_v15, %v10447_v18  ;;  %17390 = vst [vmem:[#allocation41_spill] sm:$0xff] %v10710_v20 }
 0x151   : > { %v10630_v47 = vmax.f32 %v5959_v25, %v2592_v52  ;;  %v10632_v9 = vmax.f32 %v5960_v8, %v2594_v14  ;;  %v17381_v58 = vmax.f32 %v10367_v63, %v10538_v36  ;;  %v4104_v8 = vrot.slane %v10583_v22, 7 }
 0x152   : > { %v10640_v60 = vmax.f32 %v17379_v42, %v10620_v16  ;;  %v4101_v14 = vsel %vm10121_vm7, %v4099_v50, %v4100_v23  ;;  %v17383_v35 = vmax.f32 %v10437_v53, %v10541_v51  ;;  %v4107_v63 = vrot.slane %v10624_v26, 7  ;;  %v10670_v42 = vpop.f32.mrb[32].mxu1 }
 0x153   : > { %v10648_v52 = vmax.f32 %v17381_v58, %v10628_v13  ;;  %v10662_v56 = vmax.f32 %v6712_v32, %v10632_v9  ;;  %v4105_v25 = vsel %vm10121_vm7, %v9302_v33, %v4104_v8  ;;  %v4106_v50 = vrot.slane %v4104_v8, 2  ;;  %17386 = vst [vmem:[#allocation37_spill] sm:$0xff] %v10670_v42  ;;  %v9649_v39 = vpop.f32.mrb[33].mxu1 }
 0x154   : > { %17380 = vst [vmem:[#allocation33_spill] sm:$0xff] %v10640_v60  ;;  %v10659_v7 = vmax.f32 %v17383_v35, %v10630_v47  ;;  %v5756_v23 = vmax.f32 %v10563_v55, %v4101_v14  ;;  %v6548_v29 = vmax.f32 %v10408_v30, %v10506_v41  ;;  %v5757_v58 = vmax.f32 %v1522_v44, %v4105_v25 }
 0x155   : > { %17382 = vst [vmem:[#allocation34_spill] sm:$0xff] %v10648_v52  ;;  %17385 = vst [vmem:[#allocation36_spill] sm:$0xff] %v10662_v56  ;;  %v1059_v53 = vadd.f32 %v10098_v5, %v10266_v12  ;;  %v806_v32 = vadd.f32 %v10098_v5, %v10283_v37  ;;  %v4109_v35 = vrot.slane %v4107_v63, 2  ;;  %v4108_v33 = vsel %vm10121_vm7, %v4106_v50, %v4107_v63 }
 0x156   : > { %17384 = vst [vmem:[#allocation35_spill] sm:$0xff] %v10659_v7  ;;  %v10678_v8 = vmax.f32 %v5756_v23, %v1514_v21  ;;  %v6551_v55 = vmax.f32 %v10504_v10, %v10592_v57  ;;  %v1062_v30 = vadd.f32 %v10098_v5, %v10285_v46  ;;  %v5758_v44 = vmax.f32 %v10583_v22, %v4108_v33 }
 0x157   : > { %v10686_v12 = vmax.f32 %v5757_v58, %v10583_v22  ;;  %v2595_v14 = vcombine.high %v1059_v53, %v1059_v53  ;;  %v2602_v37 = vrot.slane %v1059_v53, %v10104_v6  ;;  %v1524_v63 = vcombine.high %v806_v32, %v806_v32 }
 0x158   : > { %v6552_v39 = vmax.f32 %v10506_v41, %v10678_v8  ;;  %v10692_v21 = vmax.f32 %v6548_v29, %v10678_v8  ;;  %v1531_v10 = vrot.slane %v806_v32, %v10104_v6  ;;  %v10696_v25 = vmax.f32 %v5758_v44, %v10624_v26 }
 0x159   : > { %v6553_v46 = vmax.f32 %v10585_v62, %v10686_v12  ;;  %v10701_v22 = vmax.f32 %v6549_v19, %v10686_v12  ;;  %v2609_v50 = vrot.slane %v2595_v14, %v10104_v6  ;;  %v2610_v23 = vcombine.high %v2602_v37, %v2602_v37  ;;  %v9522_v14 = vpop.f32.mrb[35].mxu0 }
 0x15a   : > { %17387 = vst [vmem:[#allocation38_spill] sm:$0xff] %v10692_v21  ;;  %v9353_v58 = vrot.slane %v2602_v37, 9  ;;  %v1538_v41 = vrot.slane %v1524_v63, %v10104_v6  ;;  %v1539_v29 = vcombine.high %v1531_v10, %v1531_v10  ;;  %v10706_v53 = vmax.f32 %v6550_v59, %v10696_v25 }
 0x15b   : > { %17388 = vst [vmem:[#allocation39_spill] sm:$0xff] %v10701_v22  ;;  %v10708_v32 = vcombine.high %v2609_v50, %v2609_v50  ;;  %v4770_v33 = vrot.slane %v2609_v50, 7  ;;  %v4110_v44 = vrot.slane %v1531_v10, 7  ;;  %v4767_v62 = vrot.slane %v2610_v23, 7 }
 0x15c   : > { %17389 = vst [vmem:[#allocation40_spill] sm:$0xff] %v10706_v53  ;;  %v10712_v45 = vcombine.high %v1538_v41, %v1538_v41  ;;  %v4113_v19 = vrot.slane %v1539_v29, 7  ;;  %v9303_v52 = vrot.slane %v1538_v41, 9  ;;  %v2612_v15 = vcombine.high %v1062_v30, %v1062_v30 }
 0x15d   : > { %v4772_v22 = vrot.slane %v4770_v33, 2  ;;  %v4773_v56 = vrot.slane %v10708_v32, 7  ;;  %v4111_v63 = vsel %vm10121_vm7, %v4109_v35, %v4110_v44  ;;  %v4112_v59 = vrot.slane %v4110_v44, 2 }
 0x15e   : > { %v4768_v53 = vsel %vm10121_vm7, %v9353_v58, %v4767_v62  ;;  %v4769_v7 = vrot.slane %v4767_v62, 2  ;;  %v4117_v21 = vrot.slane %v10712_v45, 7  ;;  %v5759_v11 = vmax.f32 %v10624_v26, %v4111_v63 }
 0x15f   : > { %v4774_v24 = vsel %vm10121_vm7, %v4772_v22, %v4773_v56  ;;  %v5961_v60 = vmax.f32 %v2602_v37, %v4768_v53  ;;  %v4114_v14 = vsel %vm10121_vm7, %v4112_v59, %v4113_v19  ;;  %v2619_v53 = vrot.slane %v1062_v30, %v10104_v6 }
 0x160   : > { %v4771_v35 = vsel %vm10121_vm7, %v4769_v7, %v4770_v33  ;;  %v5963_v44 = vmax.f32 %v2609_v50, %v4774_v24  ;;  %v4118_v58 = vsel %vm10121_vm7, %v9303_v52, %v4117_v21  ;;  %v4119_v62 = vrot.slane %v4117_v21, 2  ;;  %v10738_v7 = vpop.f32.mrb[34].mxu1 }
 0x161   : > { %v5962_v20 = vmax.f32 %v2610_v23, %v4771_v35  ;;  %v10729_v42 = vmax.f32 %v5961_v60, %v2610_v23  ;;  %v5760_v26 = vmax.f32 %v1531_v10, %v4114_v14  ;;  %v5761_v63 = vmax.f32 %v1538_v41, %v4118_v58 }
 0x162   : > { %v10732_v22 = vmax.f32 %v5963_v44, %v10708_v32  ;;  %v10734_v37 = vmax.f32 %v5759_v11, %v1531_v10  ;;  %v2626_v19 = vrot.slane %v2612_v15, %v10104_v6  ;;  %v17391_v60 = vmax.f32 %v10447_v18, %v10620_v16  ;;  %v9650_v11 = vpop.f32.mrb[35].mxu1 }
 0x163   : > { %v10740_v24 = vmax.f32 %v5962_v20, %v2609_v50  ;;  %v6717_v52 = vmax.f32 %v10620_v16, %v10729_v42  ;;  %v10750_v23 = vmax.f32 %v5760_v26, %v1539_v29  ;;  %v17393_v15 = vmax.f32 %v10541_v51, %v10630_v47 }
 0x164   : > { %v10748_v21 = vmax.f32 %v17391_v60, %v10729_v42  ;;  %v10759_v20 = vmax.f32 %v5761_v63, %v10712_v45  ;;  %v10764_v50 = vmax.f32 %v6551_v55, %v10734_v37  ;;  %v17396_v41 = vmax.f32 %v10538_v36, %v10628_v13 }
 0x165   : > { %v10756_v30 = vmax.f32 %v17393_v15, %v10732_v22  ;;  %v6718_v16 = vmax.f32 %v10628_v13, %v10740_v24  ;;  %v10775_v51 = vmax.f32 %v6552_v39, %v10750_v23  ;;  %v2627_v33 = vcombine.high %v2619_v53, %v2619_v53 }
 0x166   : > { %17392 = vst [vmem:[#allocation42_spill] sm:$0xff] %v10748_v21  ;;  %17395 = vst [vmem:[#allocation44_spill] sm:$0xff] %v10764_v50  ;;  %v10772_v29 = vmax.f32 %v17396_v41, %v10740_v24  ;;  %v10780_v14 = vmax.f32 %v6553_v46, %v10759_v20  ;;  %v10782_v55 = vcombine.high %v2626_v19, %v2626_v19  ;;  %v4775_v35 = vrot.slane %v4773_v56, 2 }
 0x167   : > { %17394 = vst [vmem:[#allocation43_spill] sm:$0xff] %v10756_v30  ;;  %17398 = vst [vmem:[#allocation46_spill] sm:$0xff] %v10775_v51  ;;  %v4776_v44 = vrot.slane %v2619_v53, 7  ;;  %v9354_v58 = vrot.slane %v2627_v33, 9  ;;  %v4780_v26 = vrot.slane %v2626_v19, 7  ;;  %v6716_v36 = vmax.f32 %v10553_v17, %v10632_v9 }
 0x168   : > { %17397 = vst [vmem:[#allocation45_spill] sm:$0xff] %v10772_v29  ;;  %17399 = vst [vmem:[#allocation47_spill] sm:$0xff] %v10780_v14  ;;  %v4783_v13 = vrot.slane %v10782_v55, 7  ;;  %v811_v39 = vadd.f32 %v10098_v5, %v10318_v4  ;;  %v6554_v63 = vmax.f32 %v10589_v43, %v10696_v25  ;;  %v10800_v17 = vld [vmem:[%s16838_s2] ss:$0 sm:$0xff] }
 0x169   : > { %v4777_v56 = vsel %vm10121_vm7, %v4775_v35, %v4776_v44  ;;  %v4781_v60 = vsel %vm10121_vm7, %v9354_v58, %v4780_v26  ;;  %v4782_v11 = vrot.slane %v4780_v26, 2  ;;  %v1067_v5 = vadd.f32 %v10800_v17, %v10320_v27 }
 0x16a   : > { %v5964_v4 = vmax.f32 %v10708_v32, %v4777_v56  ;;  %v5965_v43 = vmax.f32 %v2627_v33, %v4781_v60  ;;  %v1541_v15 = vcombine.high %v811_v39, %v811_v39  ;;  %v1548_v41 = vrot.slane %v811_v39, %v10104_v6 }
 0x16b   : > { %v4784_v35 = vsel %vm10121_vm7, %v4782_v11, %v4783_v13  ;;  %v2629_v44 = vcombine.high %v1067_v5, %v1067_v5  ;;  %v2636_v58 = vrot.slane %v1067_v5, %v10104_v6  ;;  %v4785_v26 = vrot.slane %v4783_v13, 2 }
 0x16c   : > { %v5966_v59 = vmax.f32 %v2626_v19, %v4784_v35  ;;  %v10809_v46 = vmax.f32 %v5964_v4, %v2619_v53  ;;  %v10811_v10 = vmax.f32 %v5965_v43, %v2626_v19  ;;  %v1555_v27 = vrot.slane %v1541_v15, %v10104_v6 }
 0x16d   : > { %v1556_v21 = vcombine.high %v1548_v41, %v1548_v41  ;;  %v4120_v32 = vrot.slane %v1548_v41, 7  ;;  %v2643_v33 = vrot.slane %v2629_v44, %v10104_v6  ;;  %v2644_v56 = vcombine.high %v2636_v58, %v2636_v58 }
 0x16e   : > { %v10816_v39 = vmax.f32 %v5966_v59, %v10782_v55  ;;  %v6720_v60 = vmax.f32 %v10632_v9, %v10809_v46  ;;  %v10821_v13 = vmax.f32 %v6716_v36, %v10809_v46  ;;  %v10824_v53 = vmax.f32 %v6717_v52, %v10811_v10 }
 0x16f   : > { %v10826_v19 = vcombine.high %v1555_v27, %v1555_v27  ;;  %v4121_v11 = vsel %vm10121_vm7, %v4119_v62, %v4120_v32  ;;  %v4122_v5 = vrot.slane %v4120_v32, 2  ;;  %v4123_v4 = vrot.slane %v1556_v21, 7  ;;  %v10841_v62 = vpop.f32.mrb[36].mxu1 }
 0x170   : > { %17400 = vst [vmem:[#allocation48_spill] sm:$0xff] %v10821_v13  ;;  %17401 = vst [vmem:[#allocation49_spill] sm:$0xff] %v10824_v53  ;;  %v10831_v43 = vmax.f32 %v6718_v16, %v10816_v39  ;;  %v4126_v59 = vrot.slane %v1555_v27, 7  ;;  %v5762_v15 = vmax.f32 %v10712_v45, %v4121_v11  ;;  %v10834_v9 = vcombine.high %v2643_v33, %v2643_v33  ;;  %v10839_v13 = vpop.f32.mrb[36].mxu0  ;;  %v9653_v45 = vpop.f32.mrb[37].mxu1 }
 0x171   : > { %v4124_v36 = vsel %vm10121_vm7, %v4122_v5, %v4123_v4  ;;  %v4125_v52 = vrot.slane %v4123_v4, 2  ;;  %v9304_v35 = vrot.slane %v10826_v19, 9  ;;  %v4786_v44 = vrot.slane %v2636_v58, 7  ;;  %v9525_v14 = vpop.f32.mrb[37].mxu0 }
 0x172   : > { %17402 = vst [vmem:[#allocation50_spill] sm:$0xff] %v10831_v43  ;;  %v5763_v32 = vmax.f32 %v1548_v41, %v4124_v36  ;;  %v10843_v53 = vmax.f32 %v5762_v15, %v1548_v41  ;;  %v4789_v16 = vrot.slane %v2644_v56, 7  ;;  %v9355_v43 = vrot.slane %v2643_v33, 9 }
 0x173   : > { %v4127_v11 = vsel %vm10121_vm7, %v4125_v52, %v4126_v59  ;;  %v4787_v5 = vsel %vm10121_vm7, %v4785_v26, %v4786_v44  ;;  %v4788_v4 = vrot.slane %v4786_v44, 2  ;;  %v4793_v30 = vrot.slane %v10834_v9, 7 }
 0x174   : > { %v5764_v29 = vmax.f32 %v1556_v21, %v4127_v11  ;;  %v10850_v51 = vmax.f32 %v5763_v32, %v1556_v21  ;;  %v10855_v15 = vmax.f32 %v6554_v63, %v10843_v53  ;;  %v5967_v26 = vmax.f32 %v10782_v55, %v4787_v5 }
 0x175   : > { %v4790_v14 = vsel %vm10121_vm7, %v4788_v4, %v4789_v16  ;;  %v4794_v59 = vsel %vm10121_vm7, %v9355_v43, %v4793_v30  ;;  %v4795_v36 = vrot.slane %v4793_v30, 2  ;;  %v17404_v44 = vmax.f32 %v10592_v57, %v10734_v37  ;;  %v10906_v4 = vpop.f32.mrb[38].mxu0 }
 0x176   : > { %17403 = vst [vmem:[#allocation51_spill] sm:$0xff] %v10855_v15  ;;  %v10862_v52 = vmax.f32 %v5764_v29, %v1555_v27  ;;  %v5968_v32 = vmax.f32 %v2636_v58, %v4790_v14  ;;  %v5969_v45 = vmax.f32 %v2643_v33, %v4794_v59  ;;  %v10872_v16 = vmax.f32 %v5967_v26, %v2636_v58 }
 0x177   : > { %v10870_v63 = vmax.f32 %v17404_v44, %v10850_v51  ;;  %v6719_v30 = vmax.f32 %v10630_v47, %v10732_v22  ;;  %v6721_v29 = vmax.f32 %v10729_v42, %v10811_v10  ;;  %v17406_v27 = vmax.f32 %v10678_v8, %v10750_v23  ;;  %v9526_v44 = vpop.f32.mrb[39].mxu0 }
 0x178   : > { %v10886_v43 = vmax.f32 %v5968_v32, %v2644_v56  ;;  %v814_v58 = vadd.f32 %v10800_v17, %v10343_v0  ;;  %v10891_v33 = vmax.f32 %v5969_v45, %v10834_v9  ;;  %v1070_v11 = vadd.f32 %v10800_v17, %v10345_v54 }
 0x179   : > { %17405 = vst [vmem:[#allocation52_spill] sm:$0xff] %v10870_v63  ;;  %v10884_v57 = vmax.f32 %v17406_v27, %v10862_v52  ;;  %v10896_v42 = vmax.f32 %v6719_v30, %v10872_v16  ;;  %v6722_v0 = vmax.f32 %v10740_v24, %v10816_v39 }
 0x17a   : > { %v10901_v8 = vmax.f32 %v6720_v60, %v10886_v43  ;;  %v1558_v56 = vcombine.high %v814_v58, %v814_v58  ;;  %v1565_v5 = vrot.slane %v814_v58, %v10104_v6  ;;  %v10911_v59 = vmax.f32 %v6721_v29, %v10891_v33 }
 0x17b   : > { %17407 = vst [vmem:[#allocation53_spill] sm:$0xff] %v10884_v57  ;;  %17408 = vst [vmem:[#allocation54_spill] sm:$0xff] %v10896_v42  ;;  %v2646_v26 = vcombine.high %v1070_v11, %v1070_v11  ;;  %v2653_v54 = vrot.slane %v1070_v11, %v10104_v6  ;;  %v6724_v24 = vmax.f32 %v10809_v46, %v10886_v43  ;;  %v10936_v57 = vpop.f32.mrb[38].mxu1 }
 0x17c   : > { %17409 = vst [vmem:[#allocation55_spill] sm:$0xff] %v10901_v8  ;;  %17410 = vst [vmem:[#allocation56_spill] sm:$0xff] %v10911_v59  ;;  %v10915_v60 = vrot.slane %v1558_v56, %v10104_v6  ;;  %v1573_v32 = vcombine.high %v1565_v5, %v1565_v5  ;;  %v4130_v45 = vrot.slane %v1565_v5, 7  ;;  %v819_v29 = vadd.f32 %v10800_v17, %v10371_v3  ;;  %v9654_v15 = vpop.f32.mrb[39].mxu1 }
 0x17d   : > { %v2660_v30 = vrot.slane %v2646_v26, %v10104_v6  ;;  %v2661_v27 = vcombine.high %v2653_v54, %v2653_v54  ;;  %v4796_v58 = vrot.slane %v2653_v54, 7 }
 0x17e   : > { %v1574_v55 = vcombine.high %v10915_v60, %v10915_v60  ;;  %v4131_v11 = vsel %vm10121_vm7, %v9304_v35, %v4130_v45  ;;  %v4132_v56 = vrot.slane %v4130_v45, 2  ;;  %v4133_v44 = vrot.slane %v1573_v32, 7 }
 0x17f   : > { %v4136_v14 = vrot.slane %v10915_v60, 7  ;;  %v5765_v47 = vmax.f32 %v10826_v19, %v4131_v11  ;;  %v10928_v46 = vcombine.high %v2660_v30, %v2660_v30  ;;  %v4797_v26 = vsel %vm10121_vm7, %v4795_v36, %v4796_v58 }
 0x180   : > { %v4134_v3 = vsel %vm10121_vm7, %v4132_v56, %v4133_v44  ;;  %v4135_v21 = vrot.slane %v4133_v44, 2  ;;  %v4139_v41 = vrot.slane %v1574_v55, 7  ;;  %v4798_v42 = vrot.slane %v4796_v58, 2 }
 0x181   : > { %v4138_v8 = vrot.slane %v4136_v14, 2  ;;  %v5766_v59 = vmax.f32 %v1565_v5, %v4134_v3  ;;  %v10934_v35 = vmax.f32 %v5765_v47, %v1565_v5  ;;  %v4799_v45 = vrot.slane %v2661_v27, 7 }
 0x182   : > { %v4137_v19 = vsel %vm10121_vm7, %v4135_v21, %v4136_v14  ;;  %v4802_v11 = vrot.slane %v2660_v30, 7  ;;  %v5970_v36 = vmax.f32 %v10834_v9, %v4797_v26  ;;  %v17411_v47 = vmax.f32 %v10686_v12, %v10759_v20 }
 0x183   : > { %v4140_v56 = vsel %vm10121_vm7, %v4138_v8, %v4139_v41  ;;  %v5767_v58 = vmax.f32 %v1573_v32, %v4137_v19  ;;  %v10944_v44 = vmax.f32 %v5766_v59, %v1573_v32  ;;  %v4800_v14 = vsel %vm10121_vm7, %v4798_v42, %v4799_v45  ;;  %v11016_v42 = vpop.f32.mrb[40].mxu0 }
 0x184   : > { %v10950_v5 = vmax.f32 %v17411_v47, %v10934_v35  ;;  %v5768_v21 = vmax.f32 %v10915_v60, %v4140_v56  ;;  %v4801_v3 = vrot.slane %v4799_v45, 2  ;;  %v10955_v9 = vmax.f32 %v5970_v36, %v2653_v54 }
 0x185   : > { %v10958_v15 = vmax.f32 %v5767_v58, %v10915_v60  ;;  %v17413_v41 = vmax.f32 %v10696_v25, %v10843_v53  ;;  %v5971_v12 = vmax.f32 %v2653_v54, %v4800_v14  ;;  %v1575_v59 = vcombine.high %v819_v29, %v819_v29 }
 0x186   : > { %17412 = vst [vmem:[#allocation57_spill] sm:$0xff] %v10950_v5  ;;  %v4803_v32 = vsel %vm10121_vm7, %v4801_v3, %v4802_v11  ;;  %v10971_v26 = vmax.f32 %v6722_v0, %v10955_v9  ;;  %v1582_v60 = vrot.slane %v819_v29, %v10104_v6  ;;  %v17416_v25 = vmax.f32 %v10734_v37, %v10850_v51 }
 0x187   : > { %v10964_v8 = vmax.f32 %v17413_v41, %v10944_v44  ;;  %v6563_v45 = vmax.f32 %v10850_v51, %v10958_v15  ;;  %v5972_v19 = vmax.f32 %v2661_v27, %v4803_v32  ;;  %v10982_v36 = vmax.f32 %v5971_v12, %v2661_v27 }
 0x188   : > { %17415 = vst [vmem:[#allocation59_spill] sm:$0xff] %v10971_v26  ;;  %v10980_v54 = vmax.f32 %v17416_v25, %v10958_v15  ;;  %v1589_v11 = vrot.slane %v1575_v59, %v10104_v6  ;;  %v1590_v56 = vcombine.high %v1582_v60, %v1582_v60  ;;  %v9305_v58 = vrot.slane %v1582_v60, 9 }
 0x189   : > { %17414 = vst [vmem:[#allocation58_spill] sm:$0xff] %v10964_v8  ;;  %v6561_v0 = vmax.f32 %v10759_v20, %v10934_v35  ;;  %v10987_v29 = vmax.f32 %v5972_v19, %v2660_v30  ;;  %v17418_v37 = vmax.f32 %v10732_v22, %v10872_v16  ;;  %v6562_v27 = vmax.f32 %v10843_v53, %v10944_v44 }
 0x18a   : > { %17417 = vst [vmem:[#allocation60_spill] sm:$0xff] %v10980_v54  ;;  %v10999_v14 = vcombine.high %v1589_v11, %v1589_v11  ;;  %v4143_v3 = vrot.slane %v1590_v56, 7  ;;  %v4146_v41 = vrot.slane %v1589_v11, 7  ;;  %v1075_v20 = vadd.f32 %v10800_v17, %v10373_v2 }
 0x18b   : > { %v10995_v51 = vmax.f32 %v17418_v37, %v10982_v36  ;;  %v11006_v12 = vmax.f32 %v6724_v24, %v10987_v29  ;;  %v822_v22 = vadd.f32 %v10800_v17, %v10385_v49  ;;  %v11010_v59 = vmax.f32 %v5768_v21, %v1574_v55 }
 0x18c   : > { %v4144_v53 = vsel %vm10121_vm7, %v9305_v58, %v4143_v3  ;;  %v4145_v32 = vrot.slane %v4143_v3, 2  ;;  %v4148_v25 = vrot.slane %v4146_v41, 2  ;;  %v4149_v19 = vrot.slane %v10999_v14, 7  ;;  %v9529_v58 = vpop.f32.mrb[41].mxu0 }
 0x18d   : > { %17419 = vst [vmem:[#allocation61_spill] sm:$0xff] %v10995_v51  ;;  %17420 = vst [vmem:[#allocation62_spill] sm:$0xff] %v11006_v12  ;;  %v5769_v37 = vmax.f32 %v1582_v60, %v4144_v53  ;;  %v2663_v2 = vcombine.high %v1075_v20, %v1075_v20  ;;  %v2670_v47 = vrot.slane %v1075_v20, %v10104_v6 }
 0x18e   : > { %v1592_v30 = vcombine.high %v822_v22, %v822_v22  ;;  %v4147_v24 = vsel %vm10121_vm7, %v4145_v32, %v4146_v41  ;;  %v4150_v49 = vsel %vm10121_vm7, %v4148_v25, %v4149_v19  ;;  %v1599_v55 = vrot.slane %v822_v22, %v10104_v6 }
 0x18f   : > { %v4151_v21 = vrot.slane %v4149_v19, 2  ;;  %v5770_v3 = vmax.f32 %v1590_v56, %v4147_v24  ;;  %v5771_v63 = vmax.f32 %v1589_v11, %v4150_v49  ;;  %v11023_v51 = vmax.f32 %v5769_v37, %v1590_v56 }
 0x190   : > { %v2677_v60 = vrot.slane %v2663_v2, %v10104_v6  ;;  %v2678_v20 = vcombine.high %v2670_v47, %v2670_v47  ;;  %v4806_v53 = vrot.slane %v2670_v47, 7  ;;  %v1606_v26 = vrot.slane %v1592_v30, %v10104_v6  ;;  %v11041_v2 = vpop.f32.mrb[40].mxu1 }
 0x191   : > { %v1607_v12 = vcombine.high %v1599_v55, %v1599_v55  ;;  %v11027_v54 = vmax.f32 %v5770_v3, %v1589_v11  ;;  %v11030_v41 = vmax.f32 %v5771_v63, %v10999_v14  ;;  %v6565_v22 = vmax.f32 %v10934_v35, %v11023_v51 }
 0x192   : > { %v11035_v32 = vmax.f32 %v6561_v0, %v11023_v51  ;;  %v2679_v56 = vcombine.high %v2677_v60, %v2677_v60  ;;  %v17422_v25 = vrot.slane %v10928_v46, 9  ;;  %v4808_v37 = vrot.slane %v4806_v53, 2  ;;  %v9657_v51 = vpop.f32.mrb[41].mxu1 }
 0x193   : > { %v4809_v30 = vrot.slane %v2678_v20, 7  ;;  %v6566_v63 = vmax.f32 %v10944_v44, %v11027_v54  ;;  %v11046_v11 = vmax.f32 %v6562_v27, %v11027_v54  ;;  %v11049_v35 = vmax.f32 %v6563_v45, %v11030_v41 }
 0x194   : > { %17421 = vst [vmem:[#allocation63_spill] sm:$0xff] %v11035_v32  ;;  %v4807_v19 = vsel %vm10121_vm7, %v17422_v25, %v4806_v53  ;;  %v4812_v0 = vrot.slane %v2677_v60, 7  ;;  %v4815_v58 = vrot.slane %v2679_v56, 7  ;;  %v11054_v32 = vcombine.high %v1606_v26, %v1606_v26 }
 0x195   : > { %17423 = vst [vmem:[#allocation64_spill] sm:$0xff] %v11046_v11  ;;  %17424 = vst [vmem:[#allocation65_spill] sm:$0xff] %v11049_v35  ;;  %v4810_v24 = vsel %vm10121_vm7, %v4808_v37, %v4809_v30  ;;  %v4811_v49 = vrot.slane %v4809_v30, 2  ;;  %v5973_v3 = vmax.f32 %v10928_v46, %v4807_v19  ;;  %v4152_v44 = vrot.slane %v1599_v55, 7 }
 0x196   : > { %v4814_v53 = vrot.slane %v4812_v0, 2  ;;  %v5974_v25 = vmax.f32 %v2670_v47, %v4810_v24  ;;  %v9306_v45 = vrot.slane %v1607_v12, 9  ;;  %v4156_v35 = vrot.slane %v1606_v26, 7 }
 0x197   : > { %v4813_v54 = vsel %vm10121_vm7, %v4811_v49, %v4812_v0  ;;  %v6373_v27 = vmax.f32 %v5973_v3, %v2670_v47  ;;  %v4153_v30 = vsel %vm10121_vm7, %v4151_v21, %v4152_v44  ;;  %v17425_v19 = vmax.f32 %v10811_v10, %v10891_v33 }
 0x198   : > { %v4816_v51 = vsel %vm10121_vm7, %v4814_v53, %v4815_v58  ;;  %v5975_v11 = vmax.f32 %v2678_v20, %v4813_v54  ;;  %v6374_v37 = vmax.f32 %v5974_v25, %v2678_v20  ;;  %v4157_v0 = vsel %vm10121_vm7, %v9306_v45, %v4156_v35  ;;  %v11076_v53 = vpop.f32.mrb[42].mxu0 }
 0x199   : > { %v5976_v46 = vmax.f32 %v2677_v60, %v4816_v51  ;;  %v11065_v24 = vmax.f32 %v17425_v19, %v6373_v27  ;;  %v4158_v47 = vrot.slane %v4156_v35, 2  ;;  %v17427_v3 = vmax.f32 %v10816_v39, %v10955_v9  ;;  %17429 = vst [vmem:[#allocation68_spill] sm:$0xff] %v11076_v53  ;;  %v9530_v39 = vpop.f32.mrb[43].mxu0 }
 0x19a   : > { %v6375_v49 = vmax.f32 %v5975_v11, %v2677_v60  ;;  %v4159_v20 = vrot.slane %v11054_v32, 7  ;;  %v5772_v21 = vmax.f32 %v10999_v14, %v4153_v30  ;;  %v5773_v10 = vmax.f32 %v1607_v12, %v4157_v0 }
 0x19b   : > { %17426 = vst [vmem:[#allocation66_spill] sm:$0xff] %v11065_v24  ;;  %v11072_v58 = vmax.f32 %v17427_v3, %v6374_v37  ;;  %v6376_v25 = vmax.f32 %v5976_v46, %v2679_v56  ;;  %v6564_v33 = vmax.f32 %v10862_v52, %v11010_v59  ;;  %v17430_v60 = vmax.f32 %v10750_v23, %v10862_v52 }
 0x19c   : > { %v17432_v9 = vmax.f32 %v10872_v16, %v10982_v36  ;;  %v4160_v14 = vsel %vm10121_vm7, %v4158_v47, %v4159_v20  ;;  %v6172_v56 = vmax.f32 %v5772_v21, %v1599_v55  ;;  %v1078_v12 = vadd.f32 %v10800_v17, %v10387_v31  ;;  %v11114_v47 = vpop.f32.mrb[42].mxu1 }
 0x19d   : > { %17428 = vst [vmem:[#allocation67_spill] sm:$0xff] %v11072_v58  ;;  %v11084_v11 = vmax.f32 %v17430_v60, %v11010_v59  ;;  %v17434_v44 = vmax.f32 %v10886_v43, %v10987_v29  ;;  %v5774_v23 = vmax.f32 %v1606_v26, %v4160_v14  ;;  %v6173_v52 = vmax.f32 %v5773_v10, %v1606_v26 }
 0x19e   : > { %v11089_v35 = vmax.f32 %v17432_v9, %v6375_v49  ;;  %v827_v27 = vadd.f32 %v10800_v17, %v10425_v48  ;;  %v6568_v16 = vmax.f32 %v11010_v59, %v6172_v56  ;;  %v11103_v36 = vmax.f32 %v6564_v33, %v6172_v56  ;;  %17439 = vst [vmem:[#allocation75_spill] sm:$0xff] %v11114_v47 }
 0x19f   : > { %17431 = vst [vmem:[#allocation69_spill] sm:$0xff] %v11084_v11  ;;  %v11098_v54 = vmax.f32 %v17434_v44, %v6376_v25  ;;  %v2680_v45 = vcombine.high %v1078_v12, %v1078_v12  ;;  %v2687_v55 = vrot.slane %v1078_v12, %v10104_v6  ;;  %v6174_v51 = vmax.f32 %v5774_v23, %v11054_v32  ;;  %v9658_v25 = vpop.f32.mrb[43].mxu1 }
 0x1a0   : > { %17433 = vst [vmem:[#allocation70_spill] sm:$0xff] %v11089_v35  ;;  %17436 = vst [vmem:[#allocation72_spill] sm:$0xff] %v11103_v36  ;;  %v11107_v31 = vmax.f32 %v6565_v22, %v6173_v52  ;;  %v1609_v37 = vcombine.high %v827_v27, %v827_v27  ;;  %v1616_v43 = vrot.slane %v827_v27, %v10104_v6  ;;  %v4161_v46 = vrot.slane %v4159_v20, 2 }
 0x1a1   : > { %17435 = vst [vmem:[#allocation71_spill] sm:$0xff] %v11098_v54  ;;  %v2694_v29 = vrot.slane %v2680_v45, %v10104_v6  ;;  %v2695_v26 = vcombine.high %v2687_v55, %v2687_v55  ;;  %v9357_v30 = vrot.slane %v2687_v55, 9  ;;  %v11111_v48 = vmax.f32 %v6566_v63, %v6174_v51 }
 0x1a2   : > { %17437 = vst [vmem:[#allocation73_spill] sm:$0xff] %v11107_v31  ;;  %v1623_v59 = vrot.slane %v1609_v37, %v10104_v6  ;;  %v1624_v19 = vcombine.high %v1616_v43, %v1616_v43  ;;  %v4162_v0 = vrot.slane %v1616_v43, 7  ;;  %v6567_v21 = vmax.f32 %v10958_v15, %v11030_v41 }
 0x1a3   : > { %17438 = vst [vmem:[#allocation74_spill] sm:$0xff] %v11111_v48  ;;  %v11116_v49 = vcombine.high %v2694_v29, %v2694_v29  ;;  %v4819_v22 = vrot.slane %v2695_v26, 7  ;;  %v4822_v3 = vrot.slane %v2694_v29, 7  ;;  %v1083_v25 = vadd.f32 %v10800_v17, %v10427_v1 }
 0x1a4   : > { %v11120_v10 = vcombine.high %v1623_v59, %v1623_v59  ;;  %v4163_v63 = vsel %vm10121_vm7, %v4161_v46, %v4162_v0  ;;  %v4164_v20 = vrot.slane %v4162_v0, 2  ;;  %v4165_v33 = vrot.slane %v1624_v19, 7 }
 0x1a5   : > { %v4820_v60 = vsel %vm10121_vm7, %v9357_v30, %v4819_v22  ;;  %v4821_v39 = vrot.slane %v4819_v22, 2  ;;  %v4824_v9 = vrot.slane %v4822_v3, 2  ;;  %v4825_v14 = vrot.slane %v11116_v49, 7 }
 0x1a6   : > { %v5977_v56 = vmax.f32 %v2687_v55, %v4820_v60  ;;  %v4166_v12 = vsel %vm10121_vm7, %v4164_v20, %v4165_v33  ;;  %v9307_v15 = vrot.slane %v1623_v59, 9  ;;  %v4169_v41 = vrot.slane %v11120_v10, 7  ;;  %v17442_v60 = vld [vmem:[#allocation16_spill] sm:$0xff] }
 0x1a7   : > { %v4823_v44 = vsel %vm10121_vm7, %v4821_v39, %v4822_v3  ;;  %v4826_v23 = vsel %vm10121_vm7, %v4824_v9, %v4825_v14  ;;  %v5775_v52 = vmax.f32 %v11054_v32, %v4163_v63  ;;  %v5776_v27 = vmax.f32 %v1616_v43, %v4166_v12 }
 0x1a8   : > { %v5978_v51 = vmax.f32 %v2695_v26, %v4823_v44  ;;  %v4170_v55 = vsel %vm10121_vm7, %v9307_v15, %v4169_v41  ;;  %v5979_v37 = vmax.f32 %v2694_v29, %v4826_v23  ;;  %v11139_v22 = vmax.f32 %v5977_v56, %v2695_v26  ;;  %v11167_v15 = vpop.f32.mrb[44].mxu0 }
 0x1a9   : > { %v5777_v30 = vmax.f32 %v1623_v59, %v4170_v55  ;;  %v6175_v46 = vmax.f32 %v5775_v52, %v1616_v43  ;;  %v6176_v0 = vmax.f32 %v5776_v27, %v1624_v19  ;;  %v4171_v3 = vrot.slane %v4169_v41, 2  ;;  %17443 = vst [vmem:[#allocation16_spill] sm:$0xff] %v11167_v15  ;;  %v9533_v52 = vpop.f32.mrb[45].mxu0 }
 0x1aa   : > { %v830_v32 = vadd.f32 %v10800_v17, %v10440_v61  ;;  %v4827_v33 = vrot.slane %v4825_v14, 2  ;;  %v1086_v39 = vadd.f32 %v10800_v17, %v17442_v60  ;;  %v2697_v59 = vcombine.high %v1083_v25, %v1083_v25 }
 0x1ab   : > { %v11145_v63 = vmax.f32 %v6567_v21, %v6175_v46  ;;  %v11147_v20 = vmax.f32 %v6568_v16, %v6176_v0  ;;  %v2704_v43 = vrot.slane %v1083_v25, %v10104_v6  ;;  %v11155_v9 = vmax.f32 %v5978_v51, %v2694_v29 }
 0x1ac   : > { %v1626_v26 = vcombine.high %v830_v32, %v830_v32  ;;  %v11153_v19 = vrot.slane %v830_v32, %v10104_v6  ;;  %v11158_v1 = vmax.f32 %v5777_v30, %v11120_v10  ;;  %v2714_v61 = vcombine.high %v1086_v39, %v1086_v39  ;;  %v11187_v32 = vpop.f32.mrb[44].mxu1 }
 0x1ad   : > { %17440 = vst [vmem:[#allocation76_spill] sm:$0xff] %v11145_v63  ;;  %17441 = vst [vmem:[#allocation77_spill] sm:$0xff] %v11147_v20  ;;  %v11161_v16 = vrot.slane %v1086_v39, %v10104_v6  ;;  %v2711_v21 = vrot.slane %v2697_v59, %v10104_v6  ;;  %v2712_v14 = vcombine.high %v2704_v43, %v2704_v43  ;;  %v4828_v56 = vrot.slane %v2704_v43, 7 }
 0x1ae   : > { %v11165_v12 = vmax.f32 %v5979_v37, %v11116_v49  ;;  %v11170_v41 = vrot.slane %v1626_v26, %v10104_v6  ;;  %v11174_v29 = vcombine.high %v11153_v19, %v11153_v19  ;;  %v4172_v44 = vrot.slane %v11153_v19, 7  ;;  %17444 = vst [vmem:[#allocation78_spill] sm:$0xff] %v11187_v32  ;;  %v9661_v26 = vpop.f32.mrb[45].mxu1 }
 0x1af   : > { %v11178_v23 = vrot.slane %v2714_v61, %v10104_v6  ;;  %v2713_v27 = vcombine.high %v2711_v21, %v2711_v21  ;;  %v4829_v51 = vsel %vm10121_vm7, %v4827_v33, %v4828_v56  ;;  %v9358_v55 = vrot.slane %v2712_v14, 9 }
 0x1b0   : > { %v4832_v37 = vrot.slane %v2711_v21, 7  ;;  %v5980_v30 = vmax.f32 %v11116_v49, %v4829_v51  ;;  %v4173_v46 = vsel %vm10121_vm7, %v4171_v3, %v4172_v44  ;;  %v4174_v0 = vrot.slane %v4172_v44, 2 }
 0x1b1   : > { %v2729_v25 = vcombine.high %v11161_v16, %v11161_v16  ;;  %v4835_v59 = vrot.slane %v2713_v27, 7  ;;  %v4175_v33 = vrot.slane %v11174_v29, 7  ;;  %v1642_v49 = vcombine.high %v11170_v41, %v11170_v41 }
 0x1b2   : > { %v4833_v60 = vsel %vm10121_vm7, %v9358_v55, %v4832_v37  ;;  %v4834_v39 = vrot.slane %v4832_v37, 2  ;;  %v11192_v56 = vmax.f32 %v5980_v30, %v2704_v43  ;;  %v4178_v3 = vrot.slane %v11170_v41, 7 }
 0x1b3   : > { %v5981_v61 = vmax.f32 %v2712_v14, %v4833_v60  ;;  %v4176_v52 = vsel %vm10121_vm7, %v4174_v0, %v4175_v33  ;;  %v4177_v51 = vrot.slane %v4175_v33, 2  ;;  %v5778_v55 = vmax.f32 %v11120_v10, %v4173_v46  ;;  %v17445_v14 = vld [vmem:[#allocation19_spill] sm:$0xff] }
 0x1b4   : > { %v4836_v44 = vsel %vm10121_vm7, %v4834_v39, %v4835_v59  ;;  %v11206_v43 = vcombine.high %v11178_v23, %v11178_v23  ;;  %v835_v30 = vadd.f32 %v10800_v17, %v17445_v14  ;;  %v4837_v0 = vrot.slane %v4835_v59, 2 }
 0x1b5   : > { %v5982_v37 = vmax.f32 %v2711_v21, %v4836_v44  ;;  %v11202_v45 = vmax.f32 %v5981_v61, %v2711_v21  ;;  %v11212_v60 = vsel %vm10121_vm7, %v4177_v51, %v4178_v3  ;;  %v11215_v39 = vmax.f32 %v5778_v55, %v11153_v19 }
 0x1b6   : > { %v4838_v10 = vrot.slane %v11161_v16, 7  ;;  %v9308_v33 = vrot.slane %v1642_v49, 9  ;;  %v5779_v26 = vmax.f32 %v11153_v19, %v4176_v52  ;;  %v4841_v3 = vrot.slane %v2729_v25, 7 }
 0x1b7   : > { %v11218_v46 = vmax.f32 %v5982_v37, %v2713_v27  ;;  %v6729_v21 = vmax.f32 %v11139_v22, %v11202_v45  ;;  %v9359_v51 = vrot.slane %v11178_v23, 9  ;;  %v4845_v37 = vrot.slane %v11206_v43, 7 }
 0x1b8   : > { %v4839_v61 = vsel %vm10121_vm7, %v4837_v0, %v4838_v10  ;;  %v4840_v44 = vrot.slane %v4838_v10, 2  ;;  %v1643_v19 = vcombine.high %v835_v30, %v835_v30  ;;  %v1650_v52 = vrot.slane %v835_v30, %v10104_v6  ;;  %v17446_v0 = vld [vmem:[#allocation20_spill] sm:$0xff]  ;;  %v11246_v30 = vpop.f32.mrb[46].mxu0 }
 0x1b9   : > { %v5983_v14 = vmax.f32 %v2713_v27, %v4839_v61  ;;  %v1091_v10 = vadd.f32 %v10800_v17, %v17446_v0  ;;  %v4846_v58 = vsel %vm10121_vm7, %v9359_v51, %v4845_v37  ;;  %v4847_v63 = vrot.slane %v4845_v37, 2  ;;  %17447 = vst [vmem:[#allocation19_spill] sm:$0xff] %v11246_v30  ;;  %v9534_v0 = vpop.f32.mrb[47].mxu0 }
 0x1ba   : > { %v4842_v22 = vsel %vm10121_vm7, %v4840_v44, %v4841_v3  ;;  %v5985_v27 = vmax.f32 %v11178_v23, %v4846_v58  ;;  %v11244_v61 = vrot.slane %v1643_v19, %v10104_v6  ;;  %v1658_v44 = vcombine.high %v1650_v52, %v1650_v52 }
 0x1bb   : > { %v5984_v59 = vmax.f32 %v11161_v16, %v4842_v22  ;;  %v11240_v55 = vmax.f32 %v5983_v14, %v11161_v16  ;;  %v4182_v3 = vrot.slane %v1650_v52, 7  ;;  %v2731_v37 = vcombine.high %v1091_v10, %v1091_v10 }
 0x1bc   : > { %v2738_v22 = vrot.slane %v1091_v10, %v10104_v6  ;;  %v11254_v16 = vmax.f32 %v5985_v27, %v11206_v43  ;;  %v11258_v58 = vcombine.high %v11244_v61, %v11244_v61  ;;  %v4185_v19 = vrot.slane %v1658_v44, 7 }
 0x1bd   : > { %v11248_v20 = vmax.f32 %v5984_v59, %v2729_v25  ;;  %v4183_v23 = vsel %vm10121_vm7, %v9308_v33, %v4182_v3  ;;  %v4184_v14 = vrot.slane %v4182_v3, 2  ;;  %v11262_v25 = vpop.f32.mrb[46].mxu1  ;;  %v4188_v10 = vrot.slane %v11244_v61, 7 }
 0x1be   : > { %17448 = vst [vmem:[#allocation20_spill] sm:$0xff] %v11262_v25  ;;  %v5781_v0 = vmax.f32 %v1642_v49, %v4183_v23  ;;  %v9662_v51 = vpop.f32.mrb[47].mxu1  ;;  %v11270_v48 = vmax.f32 %v6729_v21, %v11254_v16  ;;  %v4191_v31 = vrot.slane %v11258_v58, 7  ;;  %v2745_v33 = vrot.slane %v2731_v37, %v10104_v6  ;;  %v11352_v25 = vpop.f32.mrb[48].mxu0 }
 0x1bf   : > { %v6732_v59 = vmax.f32 %v11192_v56, %v11248_v20  ;;  %v4186_v3 = vsel %vm10121_vm7, %v4184_v14, %v4185_v19  ;;  %v4187_v54 = vrot.slane %v4185_v19, 2  ;;  %v4190_v56 = vrot.slane %v4188_v10, 2  ;;  %17457 = vst [vmem:[#allocation81_spill] sm:$0xff] %v11352_v25  ;;  %v9537_v5 = vpop.f32.mrb[49].mxu0  ;;  %v11362_v50 = vpop.f32.mrb[48].mxu1 }
 0x1c0   : > { %17449 = vst [vmem:[#allocation79_spill] sm:$0xff] %v11270_v48  ;;  %v11276_v35 = vmax.f32 %v5781_v0, %v1650_v52  ;;  %v11279_v49 = vmax.f32 %v5779_v26, %v11174_v29  ;;  %v5782_v51 = vmax.f32 %v1650_v52, %v4186_v3  ;;  %v2746_v23 = vcombine.high %v2738_v22, %v2738_v22 }
 0x1c1   : > { %v4848_v27 = vrot.slane %v2738_v22, 7  ;;  %v4189_v21 = vsel %vm10121_vm7, %v4187_v54, %v4188_v10  ;;  %v11285_v48 = vsel %vm10121_vm7, %v4190_v56, %v4191_v31  ;;  %v11289_v14 = vcombine.high %v2745_v33, %v2745_v33 }
 0x1c2   : > { %v5783_v19 = vmax.f32 %v1658_v44, %v4189_v21  ;;  %v11291_v0 = vmax.f32 %v5782_v51, %v1658_v44  ;;  %v4854_v52 = vrot.slane %v2745_v33, 7  ;;  %v4851_v10 = vrot.slane %v2746_v23, 7  ;;  %v17450_v21 = vld [vmem:[#allocation23_spill] sm:$0xff]  ;;  %v17451_v51 = vld [vmem:[#allocation28_spill] sm:$0xff] }
 0x1c3   : > { %v4849_v26 = vsel %vm10121_vm7, %v4847_v63, %v4848_v27  ;;  %v4850_v54 = vrot.slane %v4848_v27, 2  ;;  %v838_v44 = vadd.f32 %v10800_v17, %v17450_v21  ;;  %v1094_v63 = vadd.f32 %v10800_v17, %v17451_v51 }
 0x1c4   : > { %v5986_v31 = vmax.f32 %v11206_v43, %v4849_v26  ;;  %v11299_v56 = vmax.f32 %v5783_v19, %v11244_v61  ;;  %v4853_v3 = vrot.slane %v4851_v10, 2  ;;  %v9360_v27 = vrot.slane %v11289_v14, 9 }
 0x1c5   : > { %v4852_v36 = vsel %vm10121_vm7, %v4850_v54, %v4851_v10  ;;  %v1660_v26 = vcombine.high %v838_v44, %v838_v44  ;;  %v1667_v37 = vrot.slane %v838_v44, %v10104_v6  ;;  %v17452_v54 = vmax.f32 %v11155_v9, %v11218_v46 }
 0x1c6   : > { %v11310_v24 = vmax.f32 %v5986_v31, %v2738_v22  ;;  %v5987_v19 = vmax.f32 %v2738_v22, %v4852_v36  ;;  %v4855_v21 = vsel %vm10121_vm7, %v4853_v3, %v4854_v52  ;;  %v2748_v31 = vcombine.high %v1094_v63, %v1094_v63 }
 0x1c7   : > { %v5988_v11 = vmax.f32 %v2746_v23, %v4855_v21  ;;  %v1674_v36 = vrot.slane %v1660_v26, %v10104_v6  ;;  %v1675_v22 = vcombine.high %v1667_v37, %v1667_v37  ;;  %v9309_v44 = vrot.slane %v1667_v37, 9 }
 0x1c8   : > { %v11323_v10 = vmax.f32 %v17452_v54, %v11310_v24  ;;  %v11325_v8 = vmax.f32 %v5987_v19, %v2746_v23  ;;  %v2755_v43 = vrot.slane %v1094_v63, %v10104_v6  ;;  %v2762_v52 = vrot.slane %v2748_v31, %v10104_v6 }
 0x1c9   : > { %v11332_v3 = vadd.f32 %v10800_v17, %v10626_v38  ;;  %v11334_v51 = vmax.f32 %v5988_v11, %v2745_v33  ;;  %v17454_v23 = vmax.f32 %v11165_v12, %v11240_v55  ;;  %v11344_v26 = vcombine.high %v1674_v36, %v1674_v36 }
 0x1ca   : > { %17453 = vst [vmem:[#allocation23_spill] sm:$0xff] %v11323_v10  ;;  %v6735_v9 = vmax.f32 %v11240_v55, %v11325_v8  ;;  %v4195_v63 = vrot.slane %v1675_v22, 7  ;;  %v4198_v21 = vrot.slane %v1674_v36, 7  ;;  %v2763_v54 = vcombine.high %v2755_v43, %v2755_v43 }
 0x1cb   : > { %v11342_v19 = vmax.f32 %v17454_v23, %v11325_v8  ;;  %v2764_v31 = vcombine.high %v2762_v52, %v2762_v52  ;;  %v6736_v38 = vmax.f32 %v11248_v20, %v11334_v51  ;;  %v11349_v11 = vmax.f32 %v6732_v59, %v11334_v51 }
 0x1cc   : > { %v4201_v33 = vrot.slane %v11344_v26, 7  ;;  %v4858_v10 = vrot.slane %v2755_v43, 7  ;;  %v4196_v12 = vsel %vm10121_vm7, %v9309_v44, %v4195_v63  ;;  %v4197_v55 = vrot.slane %v4195_v63, 2 }
 0x1cd   : > { %17455 = vst [vmem:[#allocation28_spill] sm:$0xff] %v11342_v19  ;;  %17456 = vst [vmem:[#allocation80_spill] sm:$0xff] %v11349_v11  ;;  %v4200_v23 = vrot.slane %v4198_v21, 2  ;;  %v4861_v19 = vrot.slane %v2763_v54, 7  ;;  %v5785_v30 = vmax.f32 %v1667_v37, %v4196_v12  ;;  %v4864_v15 = vrot.slane %v2762_v52, 7  ;;  %v9665_v37 = vpop.f32.mrb[49].mxu1 }
 0x1ce   : > { %v4859_v32 = vsel %vm10121_vm7, %v9360_v27, %v4858_v10  ;;  %v4860_v20 = vrot.slane %v4858_v10, 2  ;;  %v4199_v59 = vsel %vm10121_vm7, %v4197_v55, %v4198_v21  ;;  %v4867_v47 = vrot.slane %v2764_v31, 7 }
 0x1cf   : > { %v4202_v11 = vsel %vm10121_vm7, %v4200_v23, %v4201_v33  ;;  %v4863_v25 = vrot.slane %v4861_v19, 2  ;;  %v5786_v44 = vmax.f32 %v1675_v22, %v4199_v59  ;;  %v11364_v53 = vmax.f32 %v5785_v30, %v1675_v22 }
 0x1d0   : > { %v5787_v63 = vmax.f32 %v1674_v36, %v4202_v11  ;;  %v4862_v5 = vsel %vm10121_vm7, %v4860_v20, %v4861_v19  ;;  %v4866_v10 = vrot.slane %v4864_v15, 2  ;;  %v5989_v21 = vmax.f32 %v11289_v14, %v4859_v32 }
 0x1d1   : > { %v4865_v27 = vsel %vm10121_vm7, %v4863_v25, %v4864_v15  ;;  %v5990_v12 = vmax.f32 %v2755_v43, %v4862_v5  ;;  %v11371_v55 = vmax.f32 %v5786_v44, %v1674_v36  ;;  %v6573_v30 = vmax.f32 %v11276_v35, %v11364_v53  ;;  %v11390_v36 = vpop.f32.mrb[50].mxu0 }
 0x1d2   : > { %v11374_v23 = vmax.f32 %v5787_v63, %v11344_v26  ;;  %v17458_v22 = vmax.f32 %v11158_v1, %v11276_v35  ;;  %v4868_v15 = vsel %vm10121_vm7, %v4866_v10, %v4867_v47  ;;  %v5991_v25 = vmax.f32 %v2763_v54, %v4865_v27  ;;  %v17481_v35 = vld [vmem:[#allocation11_spill] sm:$0xff] }
 0x1d3   : > { %v11386_v32 = vmax.f32 %v5989_v21, %v2755_v43  ;;  %v11388_v14 = vmax.f32 %v5990_v12, %v2763_v54  ;;  %v6574_v11 = vmax.f32 %v11291_v0, %v11371_v55  ;;  %v17460_v20 = vmax.f32 %v11215_v39, %v11291_v0  ;;  %v9538_v54 = vpop.f32.mrb[51].mxu0  ;;  %v17464_v0 = vld [vmem:[#allocation3_spill] sm:$0xff] }
 0x1d4   : > { %v11382_v19 = vmax.f32 %v17458_v22, %v11364_v53  ;;  %v17462_v47 = vmax.f32 %v11279_v49, %v11299_v56  ;;  %v1677_v43 = vcombine.high %v11332_v3, %v11332_v3  ;;  %v5992_v44 = vmax.f32 %v2762_v52, %v4868_v15 }
 0x1d5   : > { %v11398_v1 = vmax.f32 %v17460_v20, %v11371_v55  ;;  %v11408_v63 = vmax.f32 %v5991_v25, %v2762_v52  ;;  %v17465_v37 = vmax.f32 %v10208_v34, %v10291_v40  ;;  %v17467_v27 = vmax.f32 %v11202_v45, %v11254_v16 }
 0x1d6   : > { %17459 = vst [vmem:[#allocation82_spill] sm:$0xff] %v11382_v19  ;;  %v11404_v59 = vmax.f32 %v17462_v47, %v11374_v23  ;;  %v17469_v52 = vmax.f32 %v11218_v46, %v11310_v24  ;;  %v11432_v12 = vmax.f32 %v5992_v44, %v2764_v31  ;;  %v1684_v40 = vrot.slane %v11332_v3, %v10104_v6  ;;  %v17475_v3 = vld [vmem:[#allocation37_spill] sm:$0xff] }
 0x1d7   : > { %17461 = vst [vmem:[#allocation83_spill] sm:$0xff] %v11398_v1  ;;  %v11418_v49 = vmax.f32 %v17465_v37, %v17464_v0  ;;  %v11424_v10 = vmax.f32 %v17467_v27, %v11386_v32  ;;  %v11437_v34 = vmax.f32 %v6735_v9, %v11408_v63  ;;  %v17472_v45 = vmax.f32 %v11174_v29, %v11212_v60  ;;  %v17476_v60 = vld [vmem:[#allocation41_spill] sm:$0xff] }
 0x1d8   : > { %17463 = vst [vmem:[#allocation84_spill] sm:$0xff] %v11404_v59  ;;  %v11430_v21 = vmax.f32 %v17469_v52, %v11388_v14  ;;  %v1691_v46 = vrot.slane %v1677_v43, %v10104_v6  ;;  %v4203_v25 = vrot.slane %v4201_v33, 2  ;;  %v17473_v31 = vmax.f32 %v11244_v61, %v11285_v48 }
 0x1d9   : > { %17466 = vst [vmem:[#allocation3_spill] sm:$0xff] %v11418_v49  ;;  %17468 = vst [vmem:[#allocation85_spill] sm:$0xff] %v11424_v10  ;;  %v6180_v15 = vmax.f32 %v17472_v45, %v11170_v41  ;;  %v11453_v9 = vmax.f32 %v6736_v38, %v11432_v12  ;;  %v1692_v47 = vcombine.high %v1684_v40, %v1684_v40  ;;  %v4204_v54 = vrot.slane %v1684_v40, 7 }
 0x1da   : > { %17470 = vst [vmem:[#allocation86_spill] sm:$0xff] %v11430_v21  ;;  %17471 = vst [vmem:[#allocation87_spill] sm:$0xff] %v11437_v34  ;;  %v11450_v20 = vmax.f32 %v17473_v31, %v11258_v58  ;;  %v1099_v44 = vadd.f32 %v10800_v17, %v17475_v3  ;;  %v11457_v0 = vcombine.high %v1691_v46, %v1691_v46  ;;  %v4208_v41 = vrot.slane %v1691_v46, 7 }
 0x1db   : > { %17474 = vst [vmem:[#allocation88_spill] sm:$0xff] %v11453_v9  ;;  %v846_v33 = vadd.f32 %v10800_v17, %v17476_v60  ;;  %v4205_v48 = vsel %vm10121_vm7, %v4203_v25, %v4204_v54  ;;  %v9310_v61 = vrot.slane %v1692_v47, 9  ;;  %v11475_v60 = vpop.f32.mrb[50].mxu1 }
 0x1dc   : > { %v6572_v29 = vmax.f32 %v6180_v15, %v11450_v20  ;;  %v2765_v58 = vcombine.high %v1099_v44, %v1099_v44  ;;  %v2772_v38 = vrot.slane %v1099_v44, %v10104_v6  ;;  %v4210_v43 = vrot.slane %v4208_v41, 2 }
 0x1dd   : > { %v4211_v37 = vrot.slane %v11457_v0, 7  ;;  %v5788_v27 = vmax.f32 %v11344_v26, %v4205_v48  ;;  %v1694_v52 = vcombine.high %v846_v33, %v846_v33  ;;  %v4209_v45 = vsel %vm10121_vm7, %v9310_v61, %v4208_v41  ;;  %v9666_v41 = vpop.f32.mrb[51].mxu1 }
 0x1de   : > { %v2779_v15 = vrot.slane %v2765_v58, %v10104_v6  ;;  %v2780_v31 = vcombine.high %v2772_v38, %v2772_v38  ;;  %v9361_v17 = vrot.slane %v2772_v38, 9  ;;  %v5789_v54 = vmax.f32 %v1692_v47, %v4209_v45  ;;  %v11516_v34 = vpop.f32.mrb[52].mxu1 }
 0x1df   : > { %v4212_v25 = vsel %vm10121_vm7, %v4210_v43, %v4211_v37  ;;  %v11472_v3 = vmax.f32 %v5788_v27, %v1684_v40  ;;  %v1701_v44 = vrot.slane %v846_v33, %v10104_v6  ;;  %v1708_v40 = vrot.slane %v1694_v52, %v10104_v6 }
 0x1e0   : > { %v5790_v22 = vmax.f32 %v1691_v46, %v4212_v25  ;;  %v11477_v26 = vcombine.high %v2779_v15, %v2779_v15  ;;  %v4871_v48 = vrot.slane %v2780_v31, 7  ;;  %v4874_v39 = vrot.slane %v2779_v15, 7 }
 0x1e1   : > { %v11479_v61 = vmax.f32 %v5789_v54, %v1691_v46  ;;  %v11484_v43 = vmax.f32 %v6572_v29, %v11472_v3  ;;  %v1709_v54 = vcombine.high %v1701_v44, %v1701_v44  ;;  %v11510_v5 = vcombine.high %v1708_v40, %v1708_v40 }
 0x1e2   : > { %v11488_v47 = vmax.f32 %v5790_v22, %v11457_v0  ;;  %v4872_v33 = vsel %vm10121_vm7, %v9361_v17, %v4871_v48  ;;  %v4873_v27 = vrot.slane %v4871_v48, 2  ;;  %v4876_v45 = vrot.slane %v4874_v39, 2  ;;  %v11506_v48 = vpop.f32.mrb[52].mxu0 }
 0x1e3   : > { %17477 = vst [vmem:[#allocation37_spill] sm:$0xff] %v11484_v43  ;;  %v6577_v46 = vmax.f32 %v11364_v53, %v11479_v61  ;;  %v11498_v25 = vmax.f32 %v6573_v30, %v11479_v61  ;;  %v4877_v29 = vrot.slane %v11477_v26, 7  ;;  %v5993_v17 = vmax.f32 %v2772_v38, %v4872_v33  ;;  %17480 = vst [vmem:[#allocation90_spill] sm:$0xff] %v11506_v48  ;;  %v9541_v53 = vpop.f32.mrb[53].mxu0  ;;  %v9669_v48 = vpop.f32.mrb[53].mxu1 }
 0x1e4   : > { %v11502_v52 = vmax.f32 %v6574_v11, %v11488_v47  ;;  %v4875_v22 = vsel %vm10121_vm7, %v4873_v27, %v4874_v39  ;;  %v6705_v30 = vmax.f32 %v11418_v49, %v17481_v35  ;;  %v4213_v9 = vrot.slane %v4211_v37, 2 }
 0x1e5   : > { %17478 = vst [vmem:[#allocation41_spill] sm:$0xff] %v11498_v25  ;;  %v4878_v41 = vsel %vm10121_vm7, %v4876_v45, %v4877_v29  ;;  %v5994_v58 = vmax.f32 %v2780_v31, %v4875_v22  ;;  %v11514_v11 = vmax.f32 %v5993_v17, %v2780_v31  ;;  %v4214_v38 = vrot.slane %v1701_v44, 7 }
 0x1e6   : > { %17479 = vst [vmem:[#allocation89_spill] sm:$0xff] %v11502_v52  ;;  %v5995_v10 = vmax.f32 %v2779_v15, %v4878_v41  ;;  %v4217_v33 = vrot.slane %v1709_v54, 7  ;;  %v9311_v27 = vrot.slane %v1708_v40, 9  ;;  %v17482_v31 = vmax.f32 %v11254_v16, %v11386_v32 }
 0x1e7   : > { %v11518_v39 = vmax.f32 %v5994_v58, %v2779_v15  ;;  %v4221_v37 = vrot.slane %v11510_v5, 7  ;;  %v17484_v58 = vmax.f32 %v11310_v24, %v11388_v14  ;;  %v4215_v48 = vsel %vm10121_vm7, %v4213_v9, %v4214_v38 }
 0x1e8   : > { %v11521_v45 = vmax.f32 %v5995_v10, %v11477_v26  ;;  %v11529_v17 = vmax.f32 %v17482_v31, %v11514_v11  ;;  %v4216_v41 = vrot.slane %v4214_v38, 2  ;;  %v11543_v53 = vmax.f32 %v6705_v30, %v10447_v18 }
 0x1e9   : > { %v11538_v10 = vmax.f32 %v17484_v58, %v11518_v39  ;;  %v17487_v16 = vmax.f32 %v11325_v8, %v11408_v63  ;;  %v4222_v15 = vsel %vm10121_vm7, %v9311_v27, %v4221_v37  ;;  %v5791_v58 = vmax.f32 %v11457_v0, %v4215_v48  ;;  %v11563_v8 = vld [vmem:[%s16838_s2] ss:$0 sm:$0xff] }
 0x1ea   : > { %17483 = vst [vmem:[#allocation91_spill] sm:$0xff] %v11529_v17  ;;  %17486 = vst [vmem:[#allocation93_spill] sm:$0xff] %v11543_v53  ;;  %v4218_v24 = vsel %vm10121_vm7, %v4216_v41, %v4217_v33  ;;  %v5793_v22 = vmax.f32 %v1708_v40, %v4222_v15  ;;  %v6575_v9 = vmax.f32 %v11299_v56, %v11374_v23 }
 0x1eb   : > { %17485 = vst [vmem:[#allocation92_spill] sm:$0xff] %v11538_v10  ;;  %v11549_v31 = vmax.f32 %v17487_v16, %v11521_v45  ;;  %v5792_v38 = vmax.f32 %v1701_v44, %v4218_v24  ;;  %v1102_v27 = vadd.f32 %v11563_v8, %v10738_v7  ;;  %v6740_v33 = vmax.f32 %v11334_v51, %v11432_v12  ;;  %v11581_v24 = vpop.f32.mrb[54].mxu0 }
 0x1ec   : > { %v11569_v0 = vmax.f32 %v5791_v58, %v1701_v44  ;;  %v11572_v40 = vmax.f32 %v5793_v22, %v11510_v5  ;;  %v851_v56 = vadd.f32 %v11563_v8, %v10839_v13  ;;  %v4879_v7 = vrot.slane %v4877_v29, 2  ;;  %v11611_v44 = vpop.f32.mrb[54].mxu1 }
 0x1ed   : > { %17488 = vst [vmem:[#allocation94_spill] sm:$0xff] %v11549_v31  ;;  %v11578_v48 = vmax.f32 %v5792_v38, %v1709_v54  ;;  %v2782_v41 = vcombine.high %v1102_v27, %v1102_v27  ;;  %v2789_v16 = vrot.slane %v1102_v27, %v10104_v6  ;;  %v9542_v54 = vpop.f32.mrb[55].mxu0  ;;  %v17492_v58 = vmax.f32 %v11450_v20, %v11472_v3  ;;  %v9670_v19 = vpop.f32.mrb[55].mxu1 }
 0x1ee   : > { %v11588_v22 = vmax.f32 %v6575_v9, %v11569_v0  ;;  %v11591_v13 = vmax.f32 %v6577_v46, %v11572_v40  ;;  %v1711_v15 = vcombine.high %v851_v56, %v851_v56  ;;  %v1718_v9 = vrot.slane %v851_v56, %v10104_v6  ;;  %17495 = vst [vmem:[#allocation98_spill] sm:$0xff] %v11611_v44 }
 0x1ef   : > { %v11597_v29 = vmax.f32 %v17492_v58, %v11578_v48  ;;  %v2796_v38 = vrot.slane %v2782_v41, %v10104_v6  ;;  %v2797_v27 = vcombine.high %v2789_v16, %v2789_v16  ;;  %v4880_v30 = vrot.slane %v2789_v16, 7 }
 0x1f0   : > { %17490 = vst [vmem:[#allocation95_spill] sm:$0xff] %v11588_v22  ;;  %17491 = vst [vmem:[#allocation96_spill] sm:$0xff] %v11591_v13  ;;  %v1107_v46 = vadd.f32 %v11563_v8, %v10841_v62  ;;  %v4223_v54 = vrot.slane %v4221_v37, 2  ;;  %v1725_v31 = vrot.slane %v1711_v15, %v10104_v6  ;;  %v1726_v10 = vcombine.high %v1718_v9, %v1718_v9 }
 0x1f1   : > { %17493 = vst [vmem:[#allocation97_spill] sm:$0xff] %v11597_v29  ;;  %v11605_v35 = vcombine.high %v2796_v38, %v2796_v38  ;;  %v4881_v20 = vsel %vm10121_vm7, %v4879_v7, %v4880_v30  ;;  %v9362_v58 = vrot.slane %v2797_v27, 9  ;;  %v4884_v49 = vrot.slane %v2796_v38, 7 }
 0x1f2   : > { %v5996_v41 = vmax.f32 %v11477_v26, %v4881_v20  ;;  %v4224_v37 = vrot.slane %v1718_v9, 7  ;;  %v6580_v51 = vmax.f32 %v11472_v3, %v11578_v48  ;;  %v2799_v15 = vcombine.high %v1107_v46, %v1107_v46 }
 0x1f3   : > { %v4887_v62 = vrot.slane %v11605_v35, 7  ;;  %v4885_v30 = vsel %vm10121_vm7, %v9362_v58, %v4884_v49  ;;  %v4886_v7 = vrot.slane %v4884_v49, 2  ;;  %v4227_v1 = vrot.slane %v1726_v10, 7 }
 0x1f4   : > { %v11620_v26 = vmax.f32 %v5996_v41, %v2789_v16  ;;  %v5997_v20 = vmax.f32 %v2797_v27, %v4885_v30  ;;  %v4225_v18 = vsel %vm10121_vm7, %v4223_v54, %v4224_v37  ;;  %v4226_v44 = vrot.slane %v4224_v37, 2  ;;  %v11712_v54 = vpop.f32.mrb[56].mxu1 }
 0x1f5   : > { %v4888_v59 = vsel %vm10121_vm7, %v4886_v7, %v4887_v62  ;;  %v4230_v58 = vrot.slane %v1725_v31, 7  ;;  %v4229_v41 = vrot.slane %v4227_v1, 2  ;;  %v5794_v56 = vmax.f32 %v11510_v5, %v4225_v18  ;;  %17512 = vst [vmem:[#allocation106_spill] sm:$0xff] %v11712_v54 }
 0x1f6   : > { %v11629_v19 = vmax.f32 %v6740_v33, %v11620_v26  ;;  %v5998_v49 = vmax.f32 %v2796_v38, %v4888_v59  ;;  %v11631_v16 = vmax.f32 %v5997_v20, %v2796_v38  ;;  %v4228_v27 = vsel %vm10121_vm7, %v4226_v44, %v4227_v1 }
 0x1f7   : > { %v5795_v3 = vmax.f32 %v1718_v9, %v4228_v27  ;;  %v17500_v44 = vmax.f32 %v11386_v32, %v11514_v11  ;;  %v4231_v38 = vsel %vm10121_vm7, %v4229_v41, %v4230_v58  ;;  %v11653_v37 = vmax.f32 %v5794_v56, %v1718_v9 }
 0x1f8   : > { %17497 = vst [vmem:[#allocation99_spill] sm:$0xff] %v11629_v19  ;;  %v11641_v33 = vmax.f32 %v5998_v49, %v11605_v35  ;;  %v6745_v59 = vmax.f32 %v11514_v11, %v11631_v16  ;;  %v5796_v20 = vmax.f32 %v1726_v10, %v4231_v38  ;;  %v2806_v18 = vrot.slane %v1107_v46, %v10104_v6 }
 0x1f9   : > { %v11649_v1 = vmax.f32 %v17500_v44, %v11631_v16  ;;  %v11655_v5 = vmax.f32 %v5795_v3, %v1726_v10  ;;  %v17503_v7 = vmax.f32 %v11388_v14, %v11518_v39  ;;  %v2813_v11 = vrot.slane %v2799_v15, %v10104_v6  ;;  %v11710_v10 = vpop.f32.mrb[56].mxu0 }
 0x1fa   : > { %v4889_v44 = vrot.slane %v4887_v62, 2  ;;  %v11667_v58 = vmax.f32 %v5796_v20, %v1725_v31  ;;  %v17505_v46 = vmax.f32 %v11371_v55, %v11488_v47  ;;  %v17507_v14 = vmax.f32 %v11374_v23, %v11569_v0  ;;  %17511 = vst [vmem:[#allocation105_spill] sm:$0xff] %v11710_v10 }
 0x1fb   : > { %17501 = vst [vmem:[#allocation100_spill] sm:$0xff] %v11649_v1  ;;  %v11664_v32 = vmax.f32 %v17503_v7, %v11641_v33  ;;  %v2814_v62 = vcombine.high %v2806_v18, %v2806_v18  ;;  %v11685_v3 = vcombine.high %v2813_v11, %v2813_v11  ;;  %v4890_v41 = vrot.slane %v2806_v18, 7 }
 0x1fc   : > { %v11677_v56 = vmax.f32 %v17505_v46, %v11653_v37  ;;  %v11683_v15 = vmax.f32 %v17507_v14, %v11655_v5  ;;  %v1727_v7 = vcombine.high %v1725_v31, %v1725_v31  ;;  %v11690_v20 = vmax.f32 %v6580_v51, %v11667_v58 }
 0x1fd   : > { %17504 = vst [vmem:[#allocation101_spill] sm:$0xff] %v11664_v32  ;;  %v9363_v55 = vrot.slane %v2813_v11, 9  ;;  %v4891_v23 = vsel %vm10121_vm7, %v4889_v44, %v4890_v41  ;;  %v4892_v14 = vrot.slane %v4890_v41, 2  ;;  %v4893_v9 = vrot.slane %v2814_v62, 7 }
 0x1fe   : > { %17506 = vst [vmem:[#allocation102_spill] sm:$0xff] %v11677_v56  ;;  %17508 = vst [vmem:[#allocation103_spill] sm:$0xff] %v11683_v15  ;;  %v4897_v31 = vrot.slane %v11685_v3, 7  ;;  %v5999_v21 = vmax.f32 %v11605_v35, %v4891_v23  ;;  %v6743_v51 = vmax.f32 %v11408_v63, %v11521_v45  ;;  %v854_v27 = vadd.f32 %v11563_v8, %v10906_v4 }
 0x1ff   : > { %17509 = vst [vmem:[#allocation104_spill] sm:$0xff] %v11690_v20  ;;  %v4894_v38 = vsel %vm10121_vm7, %v4892_v14, %v4893_v9  ;;  %v1110_v44 = vadd.f32 %v11563_v8, %v10936_v57  ;;  %v9312_v35 = vrot.slane %v1727_v7, 9  ;;  %v9545_v9 = vpop.f32.mrb[57].mxu0  ;;  %v9673_v14 = vpop.f32.mrb[57].mxu1 }
 0x200   : > { %v4898_v63 = vsel %vm10121_vm7, %v9363_v55, %v4897_v31  ;;  %v6000_v23 = vmax.f32 %v2806_v18, %v4894_v38  ;;  %v11716_v32 = vmax.f32 %v5999_v21, %v2806_v18  ;;  %v1728_v17 = vcombine.high %v854_v27, %v854_v27 }
 0x201   : > { %v6001_v4 = vmax.f32 %v2813_v11, %v4898_v63  ;;  %v1735_v57 = vrot.slane %v854_v27, %v10104_v6  ;;  %v2816_v53 = vcombine.high %v1110_v44, %v1110_v44  ;;  %v2823_v55 = vrot.slane %v1110_v44, %v10104_v6 }
 0x202   : > { %v11719_v52 = vmax.f32 %v6000_v23, %v2814_v62  ;;  %v11724_v46 = vmax.f32 %v6743_v51, %v11716_v32  ;;  %v1742_v18 = vrot.slane %v1728_v17, %v10104_v6  ;;  %v4899_v62 = vrot.slane %v4897_v31, 2 }
 0x203   : > { %v11728_v21 = vmax.f32 %v6001_v4, %v11685_v3  ;;  %v1743_v11 = vcombine.high %v1735_v57, %v1735_v57  ;;  %v4234_v38 = vrot.slane %v1735_v57, 7  ;;  %v17515_v23 = vmax.f32 %v11432_v12, %v11620_v26 }
 0x204   : > { %17513 = vst [vmem:[#allocation107_spill] sm:$0xff] %v11724_v46  ;;  %v2831_v51 = vcombine.high %v2823_v55, %v2823_v55  ;;  %v1744_v17 = vcombine.high %v1742_v18, %v1742_v18  ;;  %v4240_v31 = vrot.slane %v1742_v18, 7  ;;  %v2830_v22 = vrot.slane %v2816_v53, %v10104_v6 }
 0x205   : > { %v11737_v9 = vmax.f32 %v17515_v23, %v11719_v52  ;;  %v11742_v14 = vmax.f32 %v6745_v59, %v11728_v21  ;;  %v4235_v4 = vsel %vm10121_vm7, %v9312_v35, %v4234_v38  ;;  %v4236_v41 = vrot.slane %v4234_v38, 2 }
 0x206   : > { %v4237_v63 = vrot.slane %v1743_v11, 7  ;;  %v4243_v27 = vrot.slane %v1744_v17, 7  ;;  %v5797_v25 = vmax.f32 %v1727_v7, %v4235_v4  ;;  %v4900_v49 = vrot.slane %v2823_v55, 7 }
 0x207   : > { %17516 = vst [vmem:[#allocation108_spill] sm:$0xff] %v11737_v9  ;;  %17517 = vst [vmem:[#allocation109_spill] sm:$0xff] %v11742_v14  ;;  %v4242_v14 = vrot.slane %v4240_v31, 2  ;;  %v4903_v43 = vrot.slane %v2831_v51, 7  ;;  %v4906_v23 = vrot.slane %v2830_v22, 7 }
 0x208   : > { %v4238_v44 = vsel %vm10121_vm7, %v4236_v41, %v4237_v63  ;;  %v4239_v59 = vrot.slane %v4237_v63, 2  ;;  %v11751_v54 = vmax.f32 %v5797_v25, %v1735_v57  ;;  %v4901_v35 = vsel %vm10121_vm7, %v4899_v62, %v4900_v49  ;;  %v17539_v25 = vld [vmem:[#allocation68_spill] sm:$0xff] }
 0x209   : > { %v5798_v30 = vmax.f32 %v1735_v57, %v4238_v44  ;;  %v4902_v38 = vrot.slane %v4900_v49, 2  ;;  %v4244_v7 = vsel %vm10121_vm7, %v4242_v14, %v4243_v27  ;;  %v4905_v4 = vrot.slane %v4903_v43, 2 }
 0x20a   : > { %v4241_v53 = vsel %vm10121_vm7, %v4239_v59, %v4240_v31  ;;  %v5800_v41 = vmax.f32 %v1742_v18, %v4244_v7  ;;  %v17520_v49 = vmax.f32 %v11479_v61, %v11572_v40  ;;  %v17522_v59 = vmax.f32 %v11488_v47, %v11653_v37 }
 0x20b   : > { %v5799_v13 = vmax.f32 %v1743_v11, %v4241_v53  ;;  %v11759_v63 = vmax.f32 %v5798_v30, %v1743_v11  ;;  %v4904_v27 = vsel %vm10121_vm7, %v4902_v38, %v4903_v43  ;;  %v4907_v14 = vsel %vm10121_vm7, %v4905_v4, %v4906_v23 }
 0x20c   : > { %v11769_v62 = vmax.f32 %v17520_v49, %v11751_v54  ;;  %v11777_v11 = vmax.f32 %v5800_v41, %v1744_v17  ;;  %v6002_v43 = vmax.f32 %v11685_v3, %v4901_v35  ;;  %v6003_v38 = vmax.f32 %v2823_v55, %v4904_v27 }
 0x20d   : > { %v11775_v30 = vmax.f32 %v5799_v13, %v1742_v18  ;;  %v11785_v61 = vmax.f32 %v17522_v59, %v11759_v63  ;;  %v6004_v23 = vmax.f32 %v2831_v51, %v4907_v14  ;;  %v17525_v18 = vmax.f32 %v11569_v0, %v11655_v5 }
 0x20e   : > { %17521 = vst [vmem:[#allocation110_spill] sm:$0xff] %v11769_v62  ;;  %v17527_v47 = vmax.f32 %v11578_v48, %v11667_v58  ;;  %v2832_v41 = vcombine.high %v2830_v22, %v2830_v22  ;;  %v11804_v49 = vmax.f32 %v6002_v43, %v2823_v55  ;;  %v11806_v3 = vmax.f32 %v6003_v38, %v2831_v51 }
 0x20f   : > { %17523 = vst [vmem:[#allocation111_spill] sm:$0xff] %v11785_v61  ;;  %v11796_v17 = vmax.f32 %v17525_v18, %v11775_v30  ;;  %v11808_v35 = vmax.f32 %v6004_v23, %v2830_v22  ;;  %v6748_v27 = vmax.f32 %v11620_v26, %v11719_v52  ;;  %v859_v48 = vadd.f32 %v11563_v8, %v11016_v42 }
 0x210   : > { %v11802_v4 = vmax.f32 %v17527_v47, %v11777_v11  ;;  %v1115_v55 = vadd.f32 %v11563_v8, %v11041_v2  ;;  %v17531_v43 = vmax.f32 %v11518_v39, %v11641_v33  ;;  %v17533_v42 = vmax.f32 %v11521_v45, %v11716_v32 }
 0x211   : > { %17526 = vst [vmem:[#allocation112_spill] sm:$0xff] %v11796_v17  ;;  %v11839_v23 = vmax.f32 %v6748_v27, %v11808_v35  ;;  %v1745_v47 = vcombine.high %v859_v48, %v859_v48  ;;  %v1752_v14 = vrot.slane %v859_v48, %v10104_v6  ;;  %v9364_v44 = vrot.slane %v2832_v41, 9 }
 0x212   : > { %17528 = vst [vmem:[#allocation113_spill] sm:$0xff] %v11802_v4  ;;  %v11830_v38 = vmax.f32 %v17531_v43, %v11804_v49  ;;  %v11836_v2 = vmax.f32 %v17533_v42, %v11806_v3  ;;  %v2833_v26 = vcombine.high %v1115_v55, %v1115_v55  ;;  %v2840_v39 = vrot.slane %v1115_v55, %v10104_v6 }
 0x213   : > { %17535 = vst [vmem:[#allocation116_spill] sm:$0xff] %v11839_v23  ;;  %v1759_v51 = vrot.slane %v1745_v47, %v10104_v6  ;;  %v1760_v27 = vcombine.high %v1752_v14, %v1752_v14  ;;  %v862_v7 = vadd.f32 %v11563_v8, %v17539_v25  ;;  %v9313_v55 = vrot.slane %v1752_v14, 9 }
 0x214   : > { %17532 = vst [vmem:[#allocation114_spill] sm:$0xff] %v11830_v38  ;;  %17534 = vst [vmem:[#allocation115_spill] sm:$0xff] %v11836_v2  ;;  %v11851_v13 = vrot.slane %v2833_v26, %v10104_v6  ;;  %v2848_v48 = vcombine.high %v2840_v39, %v2840_v39  ;;  %v4910_v31 = vrot.slane %v2840_v39, 7 }
 0x215   : > { %v11855_v23 = vcombine.high %v1759_v51, %v1759_v51  ;;  %v4247_v15 = vrot.slane %v1760_v27, 7  ;;  %v4250_v18 = vrot.slane %v1759_v51, 7  ;;  %v1762_v9 = vcombine.high %v862_v7, %v862_v7 }
 0x216   : > { %v4911_v47 = vsel %vm10121_vm7, %v9364_v44, %v4910_v31  ;;  %v4912_v42 = vrot.slane %v4910_v31, 2  ;;  %v4913_v43 = vrot.slane %v2848_v48, 7  ;;  %v4916_v59 = vrot.slane %v11851_v13, 7 }
 0x217   : > { %v4248_v26 = vsel %vm10121_vm7, %v9313_v55, %v4247_v15  ;;  %v4249_v46 = vrot.slane %v4247_v15, 2  ;;  %v4252_v45 = vrot.slane %v4250_v18, 2  ;;  %v4253_v25 = vrot.slane %v11855_v23, 7 }
 0x218   : > { %v5801_v1 = vmax.f32 %v1752_v14, %v4248_v26  ;;  %v4914_v0 = vsel %vm10121_vm7, %v4912_v42, %v4913_v43  ;;  %v4915_v56 = vrot.slane %v4913_v43, 2  ;;  %v6005_v31 = vmax.f32 %v2832_v41, %v4911_v47  ;;  %v11875_v26 = vpop.f32.mrb[58].mxu0 }
 0x219   : > { %v4251_v20 = vsel %vm10121_vm7, %v4249_v46, %v4250_v18  ;;  %v4254_v44 = vsel %vm10121_vm7, %v4252_v45, %v4253_v25  ;;  %17541 = vst [vmem:[#allocation68_spill] sm:$0xff] %v11875_v26  ;;  %v11879_v43 = vcombine.high %v11851_v13, %v11851_v13  ;;  %v6006_v42 = vmax.f32 %v2840_v39, %v4914_v0  ;;  %v9546_v45 = vpop.f32.mrb[59].mxu0 }
 0x21a   : > { %v5802_v55 = vmax.f32 %v1760_v27, %v4251_v20  ;;  %v5803_v15 = vmax.f32 %v1759_v51, %v4254_v44  ;;  %v11871_v22 = vmax.f32 %v5801_v1, %v1760_v27  ;;  %v4917_v14 = vsel %vm10121_vm7, %v4915_v56, %v4916_v59 }
 0x21b   : > { %v6007_v46 = vmax.f32 %v2848_v48, %v4917_v14  ;;  %v11881_v18 = vmax.f32 %v6005_v31, %v2840_v39  ;;  %v17542_v56 = vmax.f32 %v11572_v40, %v11751_v54  ;;  %v11896_v47 = vmax.f32 %v6006_v42, %v2848_v48 }
 0x21c   : > { %v11883_v41 = vmax.f32 %v5802_v55, %v1759_v51  ;;  %v11886_v20 = vmax.f32 %v5803_v15, %v11855_v23  ;;  %v6589_v1 = vmax.f32 %v11751_v54, %v11871_v22  ;;  %v17544_v51 = vmax.f32 %v11631_v16, %v11728_v21 }
 0x21d   : > { %v11894_v27 = vmax.f32 %v17542_v56, %v11871_v22  ;;  %v11899_v0 = vmax.f32 %v6007_v46, %v11851_v13  ;;  %v1769_v44 = vrot.slane %v862_v7, %v10104_v6  ;;  %v17547_v54 = vmax.f32 %v11653_v37, %v11759_v63 }
 0x21e   : > { %v11905_v39 = vmax.f32 %v17544_v51, %v11881_v18  ;;  %v6590_v40 = vmax.f32 %v11759_v63, %v11883_v41  ;;  %v17549_v16 = vmax.f32 %v11655_v5, %v11775_v30  ;;  %v17552_v46 = vmax.f32 %v11641_v33, %v11804_v49  ;;  %v17559_v5 = vld [vmem:[#allocation16_spill] sm:$0xff] }
 0x21f   : > { %17543 = vst [vmem:[#allocation117_spill] sm:$0xff] %v11894_v27  ;;  %v11916_v48 = vmax.f32 %v17547_v54, %v11883_v41  ;;  %v17554_v37 = vmax.f32 %v11716_v32, %v11806_v3  ;;  %v1776_v14 = vrot.slane %v1762_v9, %v10104_v6  ;;  %v4918_v55 = vrot.slane %v4916_v59, 2 }
 0x220   : > { %17545 = vst [vmem:[#allocation118_spill] sm:$0xff] %v11905_v39  ;;  %v11922_v15 = vmax.f32 %v17549_v16, %v11886_v20  ;;  %v11932_v45 = vmax.f32 %v17552_v46, %v11896_v47  ;;  %v4919_v16 = vrot.slane %v11879_v43, 7  ;;  %v1777_v33 = vcombine.high %v1769_v44, %v1769_v44 }
 0x221   : > { %17548 = vst [vmem:[#allocation119_spill] sm:$0xff] %v11916_v48  ;;  %v11938_v63 = vmax.f32 %v17554_v37, %v11899_v0  ;;  %v4255_v46 = vrot.slane %v4253_v25, 2  ;;  %v4256_v42 = vrot.slane %v1769_v44, 7  ;;  %v11946_v61 = vcombine.high %v1776_v14, %v1776_v14  ;;  %v17558_v37 = vld [vmem:[#allocation75_spill] sm:$0xff] }
 0x222   : > { %17550 = vst [vmem:[#allocation120_spill] sm:$0xff] %v11922_v15  ;;  %17553 = vst [vmem:[#allocation121_spill] sm:$0xff] %v11932_v45  ;;  %v4260_v7 = vrot.slane %v1776_v14, 7  ;;  %v6588_v32 = vmax.f32 %v11667_v58, %v11777_v11  ;;  %v1118_v56 = vadd.f32 %v11563_v8, %v17558_v37  ;;  %v6753_v9 = vmax.f32 %v11728_v21, %v11881_v18 }
 0x223   : > { %17555 = vst [vmem:[#allocation122_spill] sm:$0xff] %v11938_v63  ;;  %v4257_v54 = vsel %vm10121_vm7, %v4255_v46, %v4256_v42  ;;  %v9314_v63 = vrot.slane %v1777_v33, 9  ;;  %v6754_v59 = vmax.f32 %v11804_v49, %v11896_v47  ;;  %v4263_v4 = vrot.slane %v11946_v61, 7 }
 0x224   : > { %v4262_v25 = vrot.slane %v4260_v7, 2  ;;  %v5804_v51 = vmax.f32 %v11855_v23, %v4257_v54  ;;  %v2850_v17 = vcombine.high %v1118_v56, %v1118_v56  ;;  %v2857_v37 = vrot.slane %v1118_v56, %v10104_v6 }
 0x225   : > { %v4261_v58 = vsel %vm10121_vm7, %v9314_v63, %v4260_v7  ;;  %v867_v42 = vadd.f32 %v11563_v8, %v17559_v5 }
 0x226   : > { %v4264_v49 = vsel %vm10121_vm7, %v4262_v25, %v4263_v4  ;;  %v5805_v46 = vmax.f32 %v1777_v33, %v4261_v58  ;;  %v11969_v62 = vmax.f32 %v5804_v51, %v1769_v44  ;;  %v2864_v23 = vrot.slane %v2850_v17, %v10104_v6 }
 0x227   : > { %v5806_v54 = vmax.f32 %v1776_v14, %v4264_v49  ;;  %v2865_v31 = vcombine.high %v2857_v37, %v2857_v37  ;;  %v9365_v12 = vrot.slane %v2857_v37, 9  ;;  %v1779_v7 = vcombine.high %v867_v42, %v867_v42  ;;  %v11992_v49 = vpop.f32.mrb[58].mxu1 }
 0x228   : > { %v11972_v63 = vmax.f32 %v5805_v46, %v1776_v14  ;;  %v11977_v56 = vmax.f32 %v6588_v32, %v11969_v62  ;;  %v11979_v21 = vcombine.high %v2864_v23, %v2864_v23  ;;  %v4926_v51 = vrot.slane %v2864_v23, 7  ;;  %17562 = vst [vmem:[#allocation123_spill] sm:$0xff] %v11992_v49  ;;  %v9674_v19 = vpop.f32.mrb[59].mxu1 }
 0x229   : > { %v11982_v33 = vmax.f32 %v5806_v54, %v11946_v61  ;;  %v4923_v44 = vrot.slane %v2865_v31, 7  ;;  %v1786_v17 = vrot.slane %v867_v42, %v10104_v6  ;;  %v4920_v25 = vsel %vm10121_vm7, %v4918_v55, %v4919_v16 }
 0x22a   : > { %17560 = vst [vmem:[#allocation75_spill] sm:$0xff] %v11977_v56  ;;  %v11988_v14 = vmax.f32 %v6589_v1, %v11972_v63  ;;  %v4929_v58 = vrot.slane %v11979_v21, 7  ;;  %v1793_v32 = vrot.slane %v1779_v7, %v10104_v6  ;;  %v4928_v42 = vrot.slane %v4926_v51, 2 }
 0x22b   : > { %v11995_v46 = vmax.f32 %v6590_v40, %v11982_v33  ;;  %v4924_v54 = vsel %vm10121_vm7, %v9365_v12, %v4923_v44  ;;  %v4925_v5 = vrot.slane %v4923_v44, 2  ;;  %v1794_v53 = vcombine.high %v1786_v17, %v1786_v17 }
 0x22c   : > { %17561 = vst [vmem:[#allocation16_spill] sm:$0xff] %v11988_v14  ;;  %v6009_v1 = vmax.f32 %v2857_v37, %v4924_v54  ;;  %v12001_v29 = vcombine.high %v1793_v32, %v1793_v32  ;;  %v6008_v7 = vmax.f32 %v11851_v13, %v4920_v25  ;;  %v4930_v40 = vsel %vm10121_vm7, %v4928_v42, %v4929_v58 }
 0x22d   : > { %17563 = vst [vmem:[#allocation124_spill] sm:$0xff] %v11995_v46  ;;  %v4927_v57 = vsel %vm10121_vm7, %v4925_v5, %v4926_v51  ;;  %v4265_v49 = vrot.slane %v4263_v4, 2  ;;  %v6011_v44 = vmax.f32 %v2864_v23, %v4930_v40  ;;  %v4266_v19 = vrot.slane %v1786_v17, 7  ;;  %v17571_v40 = vld [vmem:[#allocation78_spill] sm:$0xff]  ;;  %v17602_v46 = vld [vmem:[#allocation81_spill] sm:$0xff] }
 0x22e   : > { %v6010_v12 = vmax.f32 %v2865_v31, %v4927_v57  ;;  %v12008_v26 = vmax.f32 %v6009_v1, %v2865_v31  ;;  %v4269_v10 = vrot.slane %v1794_v53, 7  ;;  %v9315_v16 = vrot.slane %v1793_v32, 9 }
 0x22f   : > { %v4273_v37 = vrot.slane %v12001_v29, 7  ;;  %v6593_v54 = vmax.f32 %v11871_v22, %v11972_v63  ;;  %v12016_v5 = vmax.f32 %v6011_v44, %v11979_v21  ;;  %v4267_v25 = vsel %vm10121_vm7, %v4265_v49, %v4266_v19 }
 0x230   : > { %v12013_v13 = vmax.f32 %v6010_v12, %v2864_v23  ;;  %v12021_v57 = vmax.f32 %v6753_v9, %v12008_v26  ;;  %v4268_v42 = vrot.slane %v4266_v19, 2  ;;  %v12029_v23 = vpop.f32.mrb[60].mxu0  ;;  %v17569_v44 = vmax.f32 %v11806_v3, %v11899_v0 }
 0x231   : > { %v4274_v22 = vsel %vm10121_vm7, %v9315_v16, %v4273_v37  ;;  %v9549_v19 = vpop.f32.mrb[61].mxu0  ;;  %v5807_v51 = vmax.f32 %v11946_v61, %v4267_v25  ;;  %v1123_v27 = vadd.f32 %v11563_v8, %v17571_v40  ;;  %v4931_v1 = vrot.slane %v4929_v58, 2 }
 0x232   : > { %17565 = vst [vmem:[#allocation125_spill] sm:$0xff] %v12021_v57  ;;  %v12036_v9 = vmax.f32 %v6754_v59, %v12013_v13  ;;  %v12042_v49 = vmax.f32 %v17569_v44, %v12016_v5  ;;  %v4270_v16 = vsel %vm10121_vm7, %v4268_v42, %v4269_v10  ;;  %v5809_v4 = vmax.f32 %v1793_v32, %v4274_v22 }
 0x233   : > { %v5808_v12 = vmax.f32 %v1786_v17, %v4270_v16  ;;  %v12050_v59 = vmax.f32 %v6008_v7, %v11879_v43  ;;  %v12054_v44 = vmax.f32 %v5807_v51, %v1786_v17  ;;  %v2867_v10 = vcombine.high %v1123_v27, %v1123_v27 }
 0x234   : > { %17568 = vst [vmem:[#allocation126_spill] sm:$0xff] %v12036_v9  ;;  %17570 = vst [vmem:[#allocation127_spill] sm:$0xff] %v12042_v49  ;;  %v17572_v9 = vld [vmem:[#allocation19_spill] sm:$0xff]  ;;  %v12057_v19 = vmax.f32 %v5809_v4, %v12001_v29  ;;  %v2874_v61 = vrot.slane %v1123_v27, %v10104_v6  ;;  %v17573_v43 = vmax.f32 %v11719_v52, %v11808_v35  ;;  %v4275_v4 = vrot.slane %v4273_v37, 2 }
 0x235   : > { %v870_v3 = vadd.f32 %v11563_v8, %v17572_v9  ;;  %v12060_v32 = vmax.f32 %v5808_v12, %v1794_v53  ;;  %v6756_v25 = vmax.f32 %v11808_v35, %v12050_v59  ;;  %v17575_v53 = vmax.f32 %v11775_v30, %v11886_v20  ;;  %v12103_v12 = vpop.f32.mrb[60].mxu1 }
 0x236   : > { %v12068_v58 = vmax.f32 %v17573_v43, %v12050_v59  ;;  %v12081_v51 = vmax.f32 %v6593_v54, %v12057_v19  ;;  %v17578_v52 = vmax.f32 %v11777_v11, %v11969_v62  ;;  %v2881_v42 = vrot.slane %v2867_v10, %v10104_v6  ;;  %v9677_v15 = vpop.f32.mrb[61].mxu1 }
 0x237   : > { %v1796_v7 = vcombine.high %v870_v3, %v870_v3  ;;  %v12078_v27 = vmax.f32 %v17575_v53, %v12054_v44  ;;  %v2882_v22 = vcombine.high %v2874_v61, %v2874_v61  ;;  %v4932_v40 = vrot.slane %v2874_v61, 7 }
 0x238   : > { %17574 = vst [vmem:[#allocation78_spill] sm:$0xff] %v12068_v58  ;;  %17577 = vst [vmem:[#allocation128_spill] sm:$0xff] %v12081_v51  ;;  %v12087_v35 = vmax.f32 %v17578_v52, %v12060_v32  ;;  %v1803_v53 = vrot.slane %v870_v3, %v10104_v6  ;;  %v12097_v17 = vcombine.high %v2881_v42, %v2881_v42  ;;  %v4936_v52 = vrot.slane %v2881_v42, 7 }
 0x239   : > { %17576 = vst [vmem:[#allocation19_spill] sm:$0xff] %v12078_v27  ;;  %v4933_v11 = vsel %vm10121_vm7, %v4931_v1, %v4932_v40  ;;  %v9366_v10 = vrot.slane %v2882_v22, 9  ;;  %v1810_v9 = vrot.slane %v1796_v7, %v10104_v6  ;;  %v6594_v37 = vmax.f32 %v11883_v41, %v11982_v33 }
 0x23a   : > { %17579 = vst [vmem:[#allocation129_spill] sm:$0xff] %v12087_v35  ;;  %v6012_v49 = vmax.f32 %v11979_v21, %v4933_v11  ;;  %v1811_v48 = vcombine.high %v1803_v53, %v1803_v53  ;;  %v4939_v16 = vrot.slane %v12097_v17, 7  ;;  %v4276_v54 = vrot.slane %v1803_v53, 7 }
 0x23b   : > { %v6596_v3 = vmax.f32 %v11969_v62, %v12060_v32  ;;  %v4937_v21 = vsel %vm10121_vm7, %v9366_v10, %v4936_v52  ;;  %v4938_v7 = vrot.slane %v4936_v52, 2  ;;  %v4282_v40 = vrot.slane %v1810_v9, 7 }
 0x23c   : > { %v12114_v11 = vmax.f32 %v6012_v49, %v2874_v61  ;;  %v6013_v30 = vmax.f32 %v2882_v22, %v4937_v21  ;;  %v4277_v39 = vsel %vm10121_vm7, %v4275_v4, %v4276_v54  ;;  %v4278_v43 = vrot.slane %v4276_v54, 2 }
 0x23d   : > { %v4279_v2 = vrot.slane %v1811_v48, 7  ;;  %v4940_v41 = vsel %vm10121_vm7, %v4938_v7, %v4939_v16  ;;  %v5810_v7 = vmax.f32 %v12001_v29, %v4277_v39 }
 0x23e   : > { %v12123_v15 = vmax.f32 %v6756_v25, %v12114_v11  ;;  %v6014_v10 = vmax.f32 %v2881_v42, %v4940_v41  ;;  %v6413_v52 = vmax.f32 %v6013_v30, %v2881_v42  ;;  %v17587_v25 = vmax.f32 %v11881_v18, %v12008_v26 }
 0x23f   : > { %v4280_v49 = vsel %vm10121_vm7, %v4278_v43, %v4279_v2  ;;  %v4281_v61 = vrot.slane %v4279_v2, 2  ;;  %v17589_v2 = vld [vmem:[#allocation20_spill] sm:$0xff]  ;;  %v12142_v43 = vpop.f32.mrb[62].mxu0  ;;  %v12146_v39 = vmax.f32 %v5810_v7, %v1803_v53  ;;  %v17591_v26 = vmax.f32 %v11896_v47, %v12013_v13 }
 0x240   : > { %17584 = vst [vmem:[#allocation130_spill] sm:$0xff] %v12123_v15  ;;  %v5811_v45 = vmax.f32 %v1803_v53, %v4280_v49  ;;  %v6414_v62 = vmax.f32 %v6014_v10, %v12097_v17  ;;  %v12136_v41 = vmax.f32 %v17587_v25, %v6413_v52  ;;  %v1126_v30 = vadd.f32 %v11563_v8, %v17589_v2  ;;  %v9550_v49 = vpop.f32.mrb[63].mxu0 }
 0x241   : > { %v4283_v42 = vsel %vm10121_vm7, %v4281_v61, %v4282_v40  ;;  %v4941_v61 = vrot.slane %v4939_v16, 2  ;;  %v17594_v47 = vmax.f32 %v11886_v20, %v12054_v44  ;;  %v1812_v20 = vcombine.high %v1810_v9, %v1810_v9 }
 0x242   : > { %17588 = vst [vmem:[#allocation131_spill] sm:$0xff] %v12136_v41  ;;  %v5812_v29 = vmax.f32 %v1811_v48, %v4283_v42  ;;  %v12148_v10 = vmax.f32 %v5811_v45, %v1811_v48  ;;  %v12153_v18 = vmax.f32 %v17591_v26, %v6414_v62  ;;  %v2884_v40 = vcombine.high %v1126_v30, %v1126_v30 }
 0x243   : > { %v2891_v52 = vrot.slane %v1126_v30, %v10104_v6  ;;  %v12163_v48 = vmax.f32 %v6594_v37, %v12146_v39  ;;  %v9316_v35 = vrot.slane %v1812_v20, 9 }
 0x244   : > { %17592 = vst [vmem:[#allocation20_spill] sm:$0xff] %v12153_v18  ;;  %v12156_v25 = vmax.f32 %v5812_v29, %v1810_v9  ;;  %v12169_v45 = vmax.f32 %v17594_v47, %v12148_v10  ;;  %v12172_v13 = vrot.slane %v2884_v40, %v10104_v6  ;;  %v6759_v29 = vmax.f32 %v11899_v0, %v12016_v5 }
 0x245   : > { %17593 = vst [vmem:[#allocation132_spill] sm:$0xff] %v12163_v48  ;;  %v2899_v16 = vcombine.high %v2891_v52, %v2891_v52  ;;  %v4942_v62 = vrot.slane %v2891_v52, 7 }
 0x246   : > { %17595 = vst [vmem:[#allocation133_spill] sm:$0xff] %v12169_v45  ;;  %v12179_v37 = vmax.f32 %v6596_v3, %v12156_v25  ;;  %v12185_v49 = vcombine.high %v12172_v13, %v12172_v13  ;;  %v9367_v18 = vrot.slane %v12172_v13, 9 }
 0x247   : > { %v4943_v26 = vsel %vm10121_vm7, %v4941_v61, %v4942_v62  ;;  %v4944_v40 = vrot.slane %v4942_v62, 2  ;;  %v4945_v3 = vrot.slane %v2899_v16, 7  ;;  %v875_v61 = vadd.f32 %v11563_v8, %v17602_v46 }
 0x248   : > { %17597 = vst [vmem:[#allocation134_spill] sm:$0xff] %v12179_v37  ;;  %v6015_v30 = vmax.f32 %v12097_v17, %v4943_v26  ;;  %v4949_v22 = vrot.slane %v12185_v49, 7  ;;  %v1131_v17 = vadd.f32 %v11563_v8, %v11362_v50 }
 0x249   : > { %v4946_v62 = vsel %vm10121_vm7, %v4944_v40, %v4945_v3  ;;  %v1813_v2 = vcombine.high %v875_v61, %v875_v61  ;;  %v1820_v40 = vrot.slane %v875_v61, %v10104_v6 }
 0x24a   : > { %v6415_v53 = vmax.f32 %v6015_v30, %v2891_v52  ;;  %v6016_v0 = vmax.f32 %v2891_v52, %v4946_v62  ;;  %v12217_v50 = vrot.slane %v1131_v17, %v10104_v6  ;;  %v878_v52 = vadd.f32 %v11563_v8, %v11390_v36  ;;  %v12221_v62 = vpop.f32.mrb[62].mxu1 }
 0x24b   : > { %v1827_v3 = vrot.slane %v1813_v2, %v10104_v6  ;;  %v4950_v47 = vsel %vm10121_vm7, %v9367_v18, %v4949_v22  ;;  %v1828_v5 = vcombine.high %v1820_v40, %v1820_v40  ;;  %v4286_v51 = vrot.slane %v1820_v40, 7 }
 0x24c   : > { %v12212_v42 = vmax.f32 %v6759_v29, %v6415_v53  ;;  %v6416_v30 = vmax.f32 %v6016_v0, %v2899_v16  ;;  %v2901_v53 = vcombine.high %v1131_v17, %v1131_v17  ;;  %v9678_v29 = vpop.f32.mrb[63].mxu1  ;;  %v4951_v41 = vrot.slane %v4949_v22, 2 }
 0x24d   : > { %v17607_v16 = vmax.f32 %v12050_v59, %v12114_v11  ;;  %v1829_v0 = vcombine.high %v1827_v3, %v1827_v3  ;;  %v4292_v61 = vrot.slane %v1827_v3, 7  ;;  %v4287_v36 = vsel %vm10121_vm7, %v9316_v35, %v4286_v51 }
 0x24e   : > { %17606 = vst [vmem:[#allocation81_spill] sm:$0xff] %v12212_v42  ;;  %v4288_v27 = vrot.slane %v4286_v51, 2  ;;  %v4289_v48 = vrot.slane %v1828_v5, 7  ;;  %v12234_v18 = vcombine.high %v12217_v50, %v12217_v50  ;;  %v6017_v17 = vmax.f32 %v12172_v13, %v4950_v47  ;;  %v12246_v13 = vpop.f32.mrb[64].mxu0 }
 0x24f   : > { %v12228_v2 = vmax.f32 %v17607_v16, %v6416_v30  ;;  %v4294_v29 = vrot.slane %v4292_v61, 2  ;;  %v4295_v22 = vrot.slane %v1829_v0, 7  ;;  %v5813_v46 = vmax.f32 %v1812_v20, %v4287_v36 }
 0x250   : > { %v4290_v59 = vsel %vm10121_vm7, %v4288_v27, %v4289_v48  ;;  %v4291_v11 = vrot.slane %v4289_v48, 2  ;;  %v12240_v30 = vrot.slane %v2901_v53, %v10104_v6  ;;  %v4952_v35 = vrot.slane %v12217_v50, 7  ;;  %v9553_v53 = vpop.f32.mrb[65].mxu0 }
 0x251   : > { %17608 = vst [vmem:[#allocation135_spill] sm:$0xff] %v12228_v2  ;;  %v4296_v51 = vsel %vm10121_vm7, %v4294_v29, %v4295_v22  ;;  %v5814_v16 = vmax.f32 %v1820_v40, %v4290_v59  ;;  %v6213_v15 = vmax.f32 %v5813_v46, %v1820_v40  ;;  %v4955_v26 = vrot.slane %v12234_v18, 7  ;;  %v12361_v7 = vpop.f32.mrb[66].mxu0 }
 0x252   : > { %v4293_v20 = vsel %vm10121_vm7, %v4291_v11, %v4292_v61  ;;  %v5816_v47 = vmax.f32 %v1827_v3, %v4296_v51  ;;  %v4953_v27 = vsel %vm10121_vm7, %v4951_v41, %v4952_v35  ;;  %v4954_v48 = vrot.slane %v4952_v35, 2  ;;  %17620 = vst [vmem:[#allocation140_spill] sm:$0xff] %v12361_v7 }
 0x253   : > { %v5815_v36 = vmax.f32 %v1828_v5, %v4293_v20  ;;  %v6214_v21 = vmax.f32 %v5814_v16, %v1828_v5  ;;  %v17609_v29 = vmax.f32 %v11972_v63, %v12057_v19  ;;  %v4957_v46 = vrot.slane %v4955_v26, 2 }
 0x254   : > { %v6216_v40 = vmax.f32 %v5816_v47, %v1829_v0  ;;  %v4956_v59 = vsel %vm10121_vm7, %v4954_v48, %v4955_v26  ;;  %v4958_v61 = vrot.slane %v12240_v30, 7  ;;  %v1830_v11 = vcombine.high %v878_v52, %v878_v52 }
 0x255   : > { %v12255_v22 = vmax.f32 %v17609_v29, %v6213_v15  ;;  %v6215_v51 = vmax.f32 %v5815_v36, %v1827_v3  ;;  %v17611_v41 = vmax.f32 %v11982_v33, %v12146_v39  ;;  %v2917_v5 = vcombine.high %v12240_v30, %v12240_v30 }
 0x256   : > { %v6018_v63 = vmax.f32 %v12185_v49, %v4953_v27  ;;  %v17613_v19 = vmax.f32 %v12060_v32, %v12156_v25  ;;  %v12275_v26 = vsel %vm10121_vm7, %v4957_v46, %v4958_v61  ;;  %v1837_v3 = vrot.slane %v878_v52, %v10104_v6  ;;  %v17617_v25 = vld [vmem:[#allocation90_spill] sm:$0xff] }
 0x257   : > { %17610 = vst [vmem:[#allocation136_spill] sm:$0xff] %v12255_v22  ;;  %v12263_v35 = vmax.f32 %v17611_v41, %v6214_v21  ;;  %v1134_v33 = vadd.f32 %v11563_v8, %v11475_v60  ;;  %v17615_v21 = vmax.f32 %v12054_v44, %v12148_v10  ;;  %v6019_v0 = vmax.f32 %v12217_v50, %v4956_v59  ;;  %v12314_v59 = vpop.f32.mrb[64].mxu1 }
 0x258   : > { %v12271_v15 = vmax.f32 %v17613_v19, %v6216_v40  ;;  %v12287_v32 = vmax.f32 %v6018_v63, %v12217_v50  ;;  %v883_v16 = vadd.f32 %v11563_v8, %v17617_v25  ;;  %v12294_v52 = vmax.f32 %v6017_v17, %v12185_v49  ;;  %17619 = vst [vmem:[#allocation90_spill] sm:$0xff] %v12314_v59  ;;  %v9681_v63 = vpop.f32.mrb[65].mxu1 }
 0x259   : > { %17612 = vst [vmem:[#allocation137_spill] sm:$0xff] %v12263_v35  ;;  %v12283_v39 = vmax.f32 %v17615_v21, %v6215_v51  ;;  %v12297_v60 = vrot.slane %v1830_v11, %v10104_v6  ;;  %v1845_v44 = vcombine.high %v1837_v3, %v1837_v3  ;;  %v9368_v10 = vrot.slane %v2917_v5, 9  ;;  %v12338_v63 = vld [vmem:[%s16838_s2] ss:$0 sm:$0xff] }
 0x25a   : > { %17614 = vst [vmem:[#allocation138_spill] sm:$0xff] %v12271_v15  ;;  %v9317_v48 = vrot.slane %v1837_v3, 9  ;;  %v2918_v50 = vcombine.high %v1134_v33, %v1134_v33  ;;  %v2925_v49 = vrot.slane %v1134_v33, %v10104_v6  ;;  %v12308_v17 = vmax.f32 %v6019_v0, %v12234_v18 }
 0x25b   : > { %17616 = vst [vmem:[#allocation139_spill] sm:$0xff] %v12283_v39  ;;  %v12303_v53 = vcombine.high %v12297_v60, %v12297_v60  ;;  %v4299_v8 = vrot.slane %v1845_v44, 7  ;;  %v4302_v36 = vrot.slane %v12297_v60, 7  ;;  %v1847_v46 = vcombine.high %v883_v16, %v883_v16 }
 0x25c   : > { %v12311_v29 = vrot.slane %v2918_v50, %v10104_v6  ;;  %v1854_v40 = vrot.slane %v883_v16, %v10104_v6  ;;  %v2933_v33 = vcombine.high %v2925_v49, %v2925_v49  ;;  %v4962_v0 = vrot.slane %v2925_v49, 7 }
 0x25d   : > { %v4300_v61 = vsel %vm10121_vm7, %v9317_v48, %v4299_v8  ;;  %v4301_v11 = vrot.slane %v4299_v8, 2  ;;  %v4304_v51 = vrot.slane %v4302_v36, 2  ;;  %v4305_v41 = vrot.slane %v12303_v53, 7 }
 0x25e   : > { %v5817_v19 = vmax.f32 %v1837_v3, %v4300_v61  ;;  %v12321_v21 = vcombine.high %v12311_v29, %v12311_v29  ;;  %v4968_v48 = vrot.slane %v12311_v29, 7  ;;  %v1861_v50 = vrot.slane %v1847_v46, %v10104_v6 }
 0x25f   : > { %v4303_v25 = vsel %vm10121_vm7, %v4301_v11, %v4302_v36  ;;  %v12327_v16 = vsel %vm10121_vm7, %v4304_v51, %v4305_v41  ;;  %v4963_v61 = vsel %vm10121_vm7, %v9368_v10, %v4962_v0  ;;  %v1139_v36 = vadd.f32 %v12338_v63, %v11516_v34 }
 0x260   : > { %v5818_v8 = vmax.f32 %v1845_v44, %v4303_v25  ;;  %v4964_v11 = vrot.slane %v4962_v0, 2  ;;  %v4965_v51 = vrot.slane %v2933_v33, 7  ;;  %v4970_v47 = vrot.slane %v4968_v48, 2 }
 0x261   : > { %v4971_v46 = vrot.slane %v12321_v21, 7  ;;  %v12343_v25 = vmax.f32 %v5817_v19, %v1845_v44  ;;  %v6021_v27 = vmax.f32 %v2917_v5, %v4963_v61  ;;  %v1862_v3 = vcombine.high %v1854_v40, %v1854_v40 }
 0x262   : > { %v12345_v45 = vcombine.high %v1861_v50, %v1861_v50  ;;  %v12348_v10 = vmax.f32 %v5818_v8, %v12297_v60  ;;  %v4966_v20 = vsel %vm10121_vm7, %v4964_v11, %v4965_v51  ;;  %v4967_v14 = vrot.slane %v4965_v51, 2 }
 0x263   : > { %v4307_v54 = vrot.slane %v4305_v41, 2  ;;  %v12354_v34 = vsel %vm10121_vm7, %v4970_v47, %v4971_v46  ;;  %v6022_v0 = vmax.f32 %v2925_v49, %v4966_v20  ;;  %v12356_v57 = vmax.f32 %v6021_v27, %v2925_v49  ;;  %v9554_v27 = vpop.f32.mrb[67].mxu0 }
 0x264   : > { %v4308_v44 = vrot.slane %v1854_v40, 7  ;;  %v4969_v5 = vsel %vm10121_vm7, %v4967_v14, %v4968_v48  ;;  %v9318_v19 = vrot.slane %v1862_v3, 9  ;;  %v4312_v61 = vrot.slane %v1861_v50, 7 }
 0x265   : > { %v4315_v8 = vrot.slane %v12345_v45, 7  ;;  %v6023_v11 = vmax.f32 %v2933_v33, %v4969_v5  ;;  %v12363_v51 = vmax.f32 %v6022_v0, %v2933_v33  ;;  %v6761_v47 = vmax.f32 %v12294_v52, %v12356_v57 }
 0x266   : > { %v4309_v20 = vsel %vm10121_vm7, %v4307_v54, %v4308_v44  ;;  %v4313_v49 = vsel %vm10121_vm7, %v9318_v19, %v4312_v61  ;;  %v4314_v14 = vrot.slane %v4312_v61, 2  ;;  %v2935_v48 = vcombine.high %v1139_v36, %v1139_v36 }
 0x267   : > { %v5820_v41 = vmax.f32 %v12303_v53, %v4309_v20  ;;  %v12373_v46 = vmax.f32 %v6023_v11, %v12311_v29  ;;  %v6762_v33 = vmax.f32 %v12287_v32, %v12363_v51  ;;  %v5821_v0 = vmax.f32 %v1862_v3, %v4313_v49 }
 0x268   : > { %v2942_v52 = vrot.slane %v1139_v36, %v10104_v6  ;;  %v4316_v54 = vsel %vm10121_vm7, %v4314_v14, %v4315_v8  ;;  %v2949_v5 = vrot.slane %v2935_v48, %v10104_v6  ;;  %v886_v19 = vadd.f32 %v12338_v63, %v11581_v24 }
 0x269   : > { %v12380_v44 = vmax.f32 %v5820_v41, %v1854_v40  ;;  %v6763_v61 = vmax.f32 %v12308_v17, %v12373_v46  ;;  %v5822_v11 = vmax.f32 %v1861_v50, %v4316_v54  ;;  %v12387_v20 = vmax.f32 %v5821_v0, %v1861_v50 }
 0x26a   : > { %v2950_v32 = vcombine.high %v2942_v52, %v2942_v52  ;;  %v12389_v3 = vcombine.high %v2949_v5, %v2949_v5  ;;  %v9369_v36 = vrot.slane %v2942_v52, 9  ;;  %v4978_v27 = vrot.slane %v2949_v5, 7 }
 0x26b   : > { %v1864_v49 = vcombine.high %v886_v19, %v886_v19  ;;  %v12392_v40 = vmax.f32 %v5822_v11, %v12345_v45  ;;  %v6601_v14 = vmax.f32 %v12343_v25, %v12387_v20  ;;  %v1871_v24 = vrot.slane %v886_v19, %v10104_v6 }
 0x26c   : > { %v4975_v41 = vrot.slane %v2950_v32, 7  ;;  %v4980_v48 = vrot.slane %v4978_v27, 2  ;;  %v4981_v17 = vrot.slane %v12389_v3, 7  ;;  %v4317_v0 = vrot.slane %v4315_v8, 2 }
 0x26d   : > { %v1878_v50 = vrot.slane %v1864_v49, %v10104_v6  ;;  %v1879_v9 = vcombine.high %v1871_v24, %v1871_v24  ;;  %v4318_v19 = vrot.slane %v1871_v24, 7  ;;  %v6024_v1 = vmax.f32 %v12311_v29, %v12354_v34  ;;  %v12420_v34 = vpop.f32.mrb[66].mxu1 }
 0x26e   : > { %v4976_v58 = vsel %vm10121_vm7, %v9369_v36, %v4975_v41  ;;  %v4977_v11 = vrot.slane %v4975_v41, 2  ;;  %v4982_v25 = vsel %vm10121_vm7, %v4980_v48, %v4981_v17  ;;  %17621 = vst [vmem:[#allocation141_spill] sm:$0xff] %v12420_v34  ;;  %v17668_v34 = vld [vmem:[#allocation18_spill] sm:$0xff] }
 0x26f   : > { %v6025_v56 = vmax.f32 %v2942_v52, %v4976_v58  ;;  %v12405_v4 = vcombine.high %v1878_v50, %v1878_v50  ;;  %v6027_v49 = vmax.f32 %v2949_v5, %v4982_v25  ;;  %v4321_v54 = vrot.slane %v1879_v9, 7 }
 0x270   : > { %v4979_v8 = vsel %vm10121_vm7, %v4977_v11, %v4978_v27  ;;  %v4319_v36 = vsel %vm10121_vm7, %v4317_v0, %v4318_v19  ;;  %v4320_v41 = vrot.slane %v4318_v19, 2  ;;  %v9319_v52 = vrot.slane %v1878_v50, 9  ;;  %v9682_v11 = vpop.f32.mrb[67].mxu1 }
 0x271   : > { %v6026_v31 = vmax.f32 %v2950_v32, %v4979_v8  ;;  %v12411_v7 = vmax.f32 %v6025_v56, %v2950_v32  ;;  %v12416_v58 = vmax.f32 %v6027_v49, %v12389_v3  ;;  %v4325_v48 = vrot.slane %v12405_v4, 7  ;;  %v17628_v11 = vld [vmem:[#allocation98_spill] sm:$0xff] }
 0x272   : > { %v5823_v29 = vmax.f32 %v12345_v45, %v4319_v36  ;;  %v4322_v0 = vsel %vm10121_vm7, %v4320_v41, %v4321_v54 }
 0x273   : > { %v12422_v27 = vmax.f32 %v6026_v31, %v2949_v5  ;;  %v12427_v32 = vmax.f32 %v6761_v47, %v12411_v7  ;;  %v12434_v8 = vmax.f32 %v6763_v61, %v12416_v58  ;;  %v4326_v31 = vsel %vm10121_vm7, %v9319_v52, %v4325_v48 }
 0x274   : > { %v5824_v45 = vmax.f32 %v1871_v24, %v4322_v0  ;;  %v17625_v5 = vmax.f32 %v12234_v18, %v12275_v26  ;;  %v5825_v36 = vmax.f32 %v1878_v50, %v4326_v31  ;;  %v17627_v61 = vmax.f32 %v12297_v60, %v12327_v16  ;;  %v17629_v50 = vld [vmem:[#allocation105_spill] sm:$0xff] }
 0x275   : > { %17622 = vst [vmem:[#allocation142_spill] sm:$0xff] %v12427_v32  ;;  %17624 = vst [vmem:[#allocation143_spill] sm:$0xff] %v12434_v8  ;;  %v12445_v54 = vmax.f32 %v6762_v33, %v12422_v27  ;;  %v12453_v52 = vmax.f32 %v5823_v29, %v1871_v24  ;;  %v1142_v18 = vadd.f32 %v12338_v63, %v17628_v11  ;;  %v4983_v26 = vrot.slane %v4981_v17, 2  ;;  %v12472_v24 = vpop.f32.mrb[68].mxu0  ;;  %v17634_v8 = vld [vmem:[#allocation106_spill] sm:$0xff] }
 0x276   : > { %v6420_v47 = vmax.f32 %v17625_v5, %v12240_v30  ;;  %v12451_v41 = vmax.f32 %v17627_v61, %v12303_v53  ;;  %v12455_v0 = vmax.f32 %v5824_v45, %v1879_v9  ;;  %v12460_v30 = vmax.f32 %v5825_v36, %v12405_v4  ;;  %17630 = vst [vmem:[#allocation98_spill] sm:$0xff] %v12472_v24  ;;  %v9557_v45 = vpop.f32.mrb[69].mxu0 }
 0x277   : > { %17626 = vst [vmem:[#allocation144_spill] sm:$0xff] %v12445_v54  ;;  %v12463_v33 = vmax.f32 %v6024_v1, %v12321_v21  ;;  %v891_v31 = vadd.f32 %v12338_v63, %v17629_v50  ;;  %v2952_v53 = vcombine.high %v1142_v18, %v1142_v18  ;;  %v2959_v16 = vrot.slane %v1142_v18, %v10104_v6 }
 0x278   : > { %v12477_v1 = vmax.f32 %v6601_v14, %v12460_v30  ;;  %v4327_v19 = vrot.slane %v4325_v48, 2  ;;  %v1147_v54 = vadd.f32 %v12338_v63, %v17634_v8 }
 0x279   : > { %v6764_v21 = vmax.f32 %v6420_v47, %v12463_v33  ;;  %v1881_v29 = vcombine.high %v891_v31, %v891_v31  ;;  %v2966_v5 = vrot.slane %v2952_v53, %v10104_v6  ;;  %v2967_v36 = vcombine.high %v2959_v16, %v2959_v16 }
 0x27a   : > { %17631 = vst [vmem:[#allocation105_spill] sm:$0xff] %v12477_v1  ;;  %v4984_v61 = vrot.slane %v2959_v16, 7  ;;  %v1888_v11 = vrot.slane %v891_v31, %v10104_v6 }
 0x27b   : > { %v1895_v9 = vrot.slane %v1881_v29, %v10104_v6  ;;  %v12487_v17 = vcombine.high %v2966_v5, %v2966_v5  ;;  %v9370_v45 = vrot.slane %v2967_v36, 9  ;;  %v4988_v53 = vrot.slane %v2966_v5, 7 }
 0x27c   : > { %v4985_v47 = vsel %vm10121_vm7, %v4983_v26, %v4984_v61  ;;  %v1896_v56 = vcombine.high %v1888_v11, %v1888_v11  ;;  %v4328_v50 = vrot.slane %v1888_v11, 7 }
 0x27d   : > { %v6028_v31 = vmax.f32 %v12389_v3, %v4985_v47  ;;  %v4989_v48 = vsel %vm10121_vm7, %v9370_v45, %v4988_v53  ;;  %v4990_v29 = vrot.slane %v4988_v53, 2  ;;  %v4991_v14 = vrot.slane %v12487_v17, 7  ;;  %v12506_v53 = vpop.f32.mrb[68].mxu1 }
 0x27e   : > { %v6029_v37 = vmax.f32 %v2967_v36, %v4989_v48  ;;  %v4329_v61 = vsel %vm10121_vm7, %v4327_v19, %v4328_v50  ;;  %v4330_v49 = vrot.slane %v4328_v50, 2  ;;  %v4331_v47 = vrot.slane %v1896_v56, 7  ;;  %17635 = vst [vmem:[#allocation106_spill] sm:$0xff] %v12506_v53  ;;  %v9685_v19 = vpop.f32.mrb[69].mxu1 }
 0x27f   : > { %v12499_v26 = vmax.f32 %v6028_v31, %v2959_v16  ;;  %v4992_v3 = vsel %vm10121_vm7, %v4990_v29, %v4991_v14  ;;  %v4334_v25 = vrot.slane %v1895_v9, 7  ;;  %v5826_v45 = vmax.f32 %v12405_v4, %v4329_v61 }
 0x280   : > { %v6030_v2 = vmax.f32 %v2966_v5, %v4992_v3  ;;  %v12508_v60 = vmax.f32 %v6029_v37, %v2966_v5  ;;  %v4332_v36 = vsel %vm10121_vm7, %v4330_v49, %v4331_v47  ;;  %v4333_v50 = vrot.slane %v4331_v47, 2 }
 0x281   : > { %v12513_v16 = vmax.f32 %v6764_v21, %v12499_v26  ;;  %v12517_v31 = vmax.f32 %v5826_v45, %v1888_v11  ;;  %v2969_v48 = vcombine.high %v1147_v54, %v1147_v54  ;;  %v17638_v21 = vmax.f32 %v12356_v57, %v12411_v7 }
 0x282   : > { %v12522_v37 = vmax.f32 %v6030_v2, %v12487_v17  ;;  %v4335_v49 = vsel %vm10121_vm7, %v4333_v50, %v4334_v25  ;;  %v5827_v3 = vmax.f32 %v1888_v11, %v4332_v36  ;;  %v17640_v2 = vmax.f32 %v12348_v10, %v12392_v40  ;;  %v17644_v11 = vld [vmem:[#allocation9_spill] sm:$0xff]  ;;  %v17645_v36 = vld [vmem:[#allocation82_spill] sm:$0xff] }
 0x283   : > { %17636 = vst [vmem:[#allocation145_spill] sm:$0xff] %v12513_v16  ;;  %v12530_v61 = vmax.f32 %v17638_v21, %v12508_v60  ;;  %v17642_v19 = vmax.f32 %v12363_v51, %v12422_v27  ;;  %v5828_v21 = vmax.f32 %v1896_v56, %v4335_v49  ;;  %v2976_v29 = vrot.slane %v1147_v54, %v10104_v6  ;;  %v17647_v10 = vld [vmem:[#allocation13_spill] sm:$0xff]  ;;  %v17696_v16 = vld [vmem:[#allocation95_spill] sm:$0xff] }
 0x284   : > { %v12540_v45 = vmax.f32 %v17640_v2, %v12517_v31  ;;  %v2983_v25 = vrot.slane %v2969_v48, %v10104_v6  ;;  %v17646_v50 = vmax.f32 %v17644_v11, %v17645_v36  ;;  %v12554_v5 = vmax.f32 %v5827_v3, %v1896_v56  ;;  %v17648_v2 = vld [vmem:[#allocation83_spill] sm:$0xff] }
 0x285   : > { %17639 = vst [vmem:[#allocation146_spill] sm:$0xff] %v12530_v61  ;;  %v12546_v57 = vmax.f32 %v17642_v19, %v12522_v37  ;;  %v17649_v8 = vmax.f32 %v17647_v10, %v17648_v2  ;;  %v4993_v51 = vrot.slane %v4991_v14, 2  ;;  %v12560_v19 = vcombine.high %v1895_v9, %v1895_v9  ;;  %v17665_v48 = vld [vmem:[#allocation87_spill] sm:$0xff]  ;;  %v17699_v2 = vld [vmem:[#allocation97_spill] sm:$0xff] }
 0x286   : > { %17641 = vst [vmem:[#allocation147_spill] sm:$0xff] %v12540_v45  ;;  %v7433_v47 = vmax.f32 %v17646_v50, %v12477_v1  ;;  %v12562_v49 = vmax.f32 %v5828_v21, %v1895_v9  ;;  %v2984_v54 = vcombine.high %v2976_v29, %v2976_v29  ;;  %v12564_v22 = vcombine.high %v2983_v25, %v2983_v25 }
 0x287   : > { %17643 = vst [vmem:[#allocation148_spill] sm:$0xff] %v12546_v57  ;;  %v7434_v61 = vmax.f32 %v17649_v8, %v12540_v45  ;;  %v17650_v56 = vmax.f32 %v12451_v41, %v12453_v52  ;;  %v4994_v50 = vrot.slane %v2976_v29, 7  ;;  %v17652_v9 = vmax.f32 %v12380_v44, %v12455_v0  ;;  %v17659_v44 = vld [vmem:[#allocation15_spill] sm:$0xff]  ;;  %v12602_v41 = vpop.f32.mrb[70].mxu0  ;;  %v17698_v45 = vld [vmem:[#allocation25_spill] sm:$0xff] }
 0x288   : > { %v4997_v21 = vrot.slane %v2984_v54, 7  ;;  %v9371_v10 = vrot.slane %v2983_v25, 9  ;;  %v5001_v24 = vrot.slane %v12564_v22, 7 }
 0x289   : > { %v12572_v3 = vmax.f32 %v17650_v56, %v12554_v5  ;;  %v7945_v11 = vcombine.low %v7433_v47, %v7434_v61  ;;  %v12580_v8 = vmax.f32 %v17652_v9, %v12562_v49  ;;  %v17656_v61 = vld [vmem:[#allocation14_spill] sm:$0xff]  ;;  %v17657_v47 = vld [vmem:[#allocation84_spill] sm:$0xff]  ;;  %v4995_v4 = vsel %vm10121_vm7, %v4993_v51, %v4994_v50  ;;  %v17660_v9 = vld [vmem:[#allocation37_spill] sm:$0xff] }
 0x28a   : > { %v17658_v1 = vmax.f32 %v17656_v61, %v17657_v47  ;;  %v17661_v42 = vmax.f32 %v17659_v44, %v17660_v9  ;;  %v4996_v53 = vrot.slane %v4994_v50, 2  ;;  %v6031_v36 = vmax.f32 %v12487_v17, %v4995_v4  ;;  %v17662_v61 = vld [vmem:[#allocation68_spill] sm:$0xff]  ;;  %17663 = vst [vmem:[#allocation14_spill] sm:$0xff] %v12602_v41  ;;  %v17664_v44 = vld [vmem:[#allocation123_spill] sm:$0xff]  ;;  %v9558_v4 = vpop.f32.mrb[71].mxu0  ;;  %v17666_v41 = vld [vmem:[#allocation17_spill] sm:$0xff] }
 0x28b   : > { %17651 = vst [vmem:[#allocation9_spill] sm:$0xff] %v12572_v3  ;;  %17653 = vst [vmem:[#allocation13_spill] sm:$0xff] %v12580_v8  ;;  %v9320_v56 = vrot.slane %v12560_v19, 9  ;;  %v7953_v15 = vrot.slane %v7945_v11, %v10104_v6  ;;  %v5002_v50 = vsel %vm10121_vm7, %v9371_v10, %v5001_v24  ;;  %v1150_v17 = vadd.f32 %v12338_v63, %v17664_v44 }
 0x28c   : > { %v7435_v14 = vmax.f32 %v17658_v1, %v12572_v3  ;;  %v7436_v18 = vmax.f32 %v17661_v42, %v12580_v8  ;;  %v894_v1 = vadd.f32 %v12338_v63, %v17662_v61  ;;  %v4998_v42 = vsel %vm10121_vm7, %v4996_v53, %v4997_v21  ;;  %v17762_v3 = vld [vmem:[#allocation38_spill] sm:$0xff] }
 0x28d   : > { %v6032_v9 = vmax.f32 %v2976_v29, %v4998_v42  ;;  %v6033_v11 = vmax.f32 %v2983_v25, %v5002_v50  ;;  %v12611_v8 = vmax.f32 %v6031_v36, %v2976_v29  ;;  %v17669_v10 = vmax.f32 %v12373_v46, %v12416_v58 }
 0x28e   : > { %v7946_v51 = vcombine.low %v7435_v14, %v7436_v18  ;;  %v1898_v35 = vcombine.high %v894_v1, %v894_v1  ;;  %v7343_v18 = vmax.f32 %v17666_v41, %v17665_v48  ;;  %v17667_v14 = vld [vmem:[#allocation88_spill] sm:$0xff]  ;;  %v1905_v21 = vrot.slane %v894_v1, %v10104_v6 }
 0x28f   : > { %v7344_v53 = vmax.f32 %v17668_v34, %v17667_v14  ;;  %v12624_v25 = vmax.f32 %v6032_v9, %v2984_v54  ;;  %v12627_v29 = vmax.f32 %v6033_v11, %v12564_v22  ;;  %v17671_v9 = vmax.f32 %v12463_v33, %v12499_v26  ;;  %v12661_v54 = vpop.f32.mrb[70].mxu1  ;;  %v17770_v14 = vld [vmem:[#allocation110_spill] sm:$0xff] }
 0x290   : > { %v7960_v61 = vrot.slane %v7946_v51, %v10104_v6  ;;  %v12635_v51 = vmax.f32 %v17669_v10, %v12611_v8  ;;  %v1912_v42 = vrot.slane %v1898_v35, %v10104_v6  ;;  %v1913_v50 = vcombine.high %v1905_v21, %v1905_v21  ;;  %17676 = vst [vmem:[#allocation149_spill] sm:$0xff] %v12661_v54  ;;  %v9686_v41 = vpop.f32.mrb[71].mxu1 }
 0x291   : > { %v4338_v44 = vrot.slane %v1905_v21, 7  ;;  %v12644_v4 = vmax.f32 %v17671_v9, %v12624_v25  ;;  %v17673_v46 = vmax.f32 %v12411_v7, %v12508_v60  ;;  %v2986_v34 = vcombine.high %v1150_v17, %v1150_v17 }
 0x292   : > { %17670 = vst [vmem:[#allocation15_spill] sm:$0xff] %v12635_v51  ;;  %v7961_v1 = vcombine.low %v7953_v15, %v7960_v61  ;;  %v12653_v15 = vrot.slane %v1150_v17, %v10104_v6  ;;  %v1914_v10 = vcombine.high %v1912_v42, %v1912_v42  ;;  %v12664_v36 = vmax.f32 %v7343_v18, %v12635_v51 }
 0x293   : > { %17672 = vst [vmem:[#allocation68_spill] sm:$0xff] %v12644_v4  ;;  %v12650_v11 = vmax.f32 %v17673_v46, %v12627_v29  ;;  %v4339_v33 = vsel %vm10121_vm7, %v9320_v56, %v4338_v44  ;;  %v4340_v9 = vrot.slane %v4338_v44, 2  ;;  %v12667_v7 = vmax.f32 %v7344_v53, %v12644_v4 }
 0x294   : > { %9098 = vst.msk [vmem:[%s12622_s19] sm:$0xff] %vm9097_vm8, %v7961_v1  ;;  %17677 = vst [vmem:[#allocation150_spill] sm:$0xff] %v12664_v36  ;;  %v4341_v46 = vrot.slane %v1913_v50, 7  ;;  %v5003_v38 = vrot.slane %v5001_v24, 2  ;;  %v4344_v61 = vrot.slane %v1912_v42, 7  ;;  %v4347_v39 = vrot.slane %v1914_v10, 7 }
 0x295   : > { %17674 = vst [vmem:[#allocation123_spill] sm:$0xff] %v12650_v11  ;;  %17678 = vst [vmem:[#allocation151_spill] sm:$0xff] %v12667_v7  ;;  %v5829_v1 = vmax.f32 %v12560_v19, %v4339_v33  ;;  %v3001_v18 = vcombine.high %v12653_v15, %v12653_v15  ;;  %v3000_v33 = vrot.slane %v2986_v34, %v10104_v6  ;;  %v5004_v56 = vrot.slane %v12653_v15, 7 }
 0x296   : > { %v4342_v44 = vsel %vm10121_vm7, %v4340_v9, %v4341_v46  ;;  %v4343_v35 = vrot.slane %v4341_v46, 2  ;;  %v4346_v17 = vrot.slane %v4344_v61, 2 }
 0x297   : > { %v5830_v41 = vmax.f32 %v1905_v21, %v4342_v44  ;;  %v12678_v24 = vmax.f32 %v5829_v1, %v1905_v21  ;;  %v5007_v7 = vrot.slane %v3001_v18, 7  ;;  %v17680_v21 = vmax.f32 %v12387_v20, %v12460_v30 }
 0x298   : > { %v4345_v19 = vsel %vm10121_vm7, %v4343_v35, %v4344_v61  ;;  %v4348_v9 = vsel %vm10121_vm7, %v4346_v17, %v4347_v39  ;;  %v5005_v34 = vsel %vm10121_vm7, %v5003_v38, %v5004_v56  ;;  %v5006_v61 = vrot.slane %v5004_v56, 2  ;;  %v17686_v38 = vld [vmem:[#allocation41_spill] sm:$0xff] }
 0x299   : > { %v5831_v46 = vmax.f32 %v1913_v50, %v4345_v19  ;;  %v12686_v36 = vmax.f32 %v5830_v41, %v1913_v50  ;;  %v5832_v44 = vmax.f32 %v1912_v42, %v4348_v9  ;;  %v12694_v35 = vmax.f32 %v17680_v21, %v12678_v24  ;;  %v17685_v9 = vld [vmem:[#allocation21_spill] sm:$0xff] }
 0x29a   : > { %v17683_v41 = vmax.f32 %v12392_v40, %v12517_v31  ;;  %v17687_v56 = vmax.f32 %v17685_v9, %v17686_v38  ;;  %v17688_v40 = vmax.f32 %v12453_v52, %v12554_v5  ;;  %v12730_v9 = vcombine.high %v3000_v33, %v3000_v33 }
 0x29b   : > { %17681 = vst [vmem:[#allocation152_spill] sm:$0xff] %v12694_v35  ;;  %v12700_v17 = vmax.f32 %v5831_v46, %v1912_v42  ;;  %v12710_v20 = vmax.f32 %v5832_v44, %v1914_v10  ;;  %v5008_v42 = vsel %vm10121_vm7, %v5006_v61, %v5007_v7  ;;  %v5009_v46 = vrot.slane %v5007_v7, 2  ;;  %v17690_v10 = vld [vmem:[#allocation22_spill] sm:$0xff]  ;;  %v17691_v44 = vld [vmem:[#allocation89_spill] sm:$0xff] }
 0x29c   : > { %v12708_v19 = vmax.f32 %v17683_v41, %v12686_v36  ;;  %v7437_v21 = vmax.f32 %v17687_v56, %v12694_v35  ;;  %v17692_v50 = vmax.f32 %v17690_v10, %v17691_v44  ;;  %v17693_v7 = vmax.f32 %v12455_v0, %v12562_v49 }
 0x29d   : > { %v12724_v41 = vmax.f32 %v17688_v40, %v12700_v17  ;;  %v5010_v39 = vrot.slane %v3000_v33, 7  ;;  %v6034_v52 = vmax.f32 %v12564_v22, %v5005_v34  ;;  %v17695_v40 = vld [vmem:[#allocation24_spill] sm:$0xff]  ;;  %v6035_v32 = vmax.f32 %v12653_v15, %v5008_v42 }
 0x29e   : > { %17684 = vst [vmem:[#allocation153_spill] sm:$0xff] %v12708_v19  ;;  %v7438_v54 = vmax.f32 %v17692_v50, %v12708_v19  ;;  %v12738_v56 = vmax.f32 %v17693_v7, %v12710_v20  ;;  %v17697_v1 = vmax.f32 %v17695_v40, %v17696_v16  ;;  %v6770_v61 = vmax.f32 %v12422_v27, %v12522_v37 }
 0x29f   : > { %17689 = vst [vmem:[#allocation21_spill] sm:$0xff] %v12724_v41  ;;  %v17700_v0 = vmax.f32 %v17698_v45, %v17699_v2  ;;  %v5011_v53 = vsel %vm10121_vm7, %v5009_v46, %v5010_v39  ;;  %v12755_v22 = vmax.f32 %v6034_v52, %v12653_v15  ;;  %v6772_v34 = vmax.f32 %v12499_v26, %v12624_v25  ;;  %v12766_v45 = vpop.f32.mrb[72].mxu0  ;;  %v17706_v26 = vld [vmem:[#allocation92_spill] sm:$0xff]  ;;  %v17707_v46 = vld [vmem:[#allocation26_spill] sm:$0xff] }
 0x2a0   : > { %17694 = vst [vmem:[#allocation22_spill] sm:$0xff] %v12738_v56  ;;  %v7439_v10 = vmax.f32 %v17697_v1, %v12724_v41  ;;  %v7962_v50 = vcombine.low %v7437_v21, %v7438_v54  ;;  %v17701_v54 = vld [vmem:[#allocation93_spill] sm:$0xff]  ;;  %v17702_v1 = vld [vmem:[#allocation91_spill] sm:$0xff]  ;;  %v9372_v27 = vrot.slane %v12730_v9, 9  ;;  %v6036_v40 = vmax.f32 %v3001_v18, %v5011_v53  ;;  %17704 = vst [vmem:[#allocation24_spill] sm:$0xff] %v12766_v45  ;;  %v9561_v2 = vpop.f32.mrb[73].mxu0 }
 0x2a1   : > { %v7440_v7 = vmax.f32 %v17700_v0, %v12738_v56  ;;  %v17703_v21 = vmax.f32 %v17701_v54, %v17702_v1  ;;  %v12764_v16 = vmax.f32 %v6035_v32, %v3001_v18  ;;  %v12771_v39 = vmax.f32 %v6770_v61, %v12755_v22  ;;  %v17715_v41 = vld [vmem:[#allocation99_spill] sm:$0xff] }
 0x2a2   : > { %v7346_v52 = vmax.f32 %v17707_v46, %v17706_v26  ;;  %v12775_v54 = vmax.f32 %v6036_v40, %v3000_v33  ;;  %v17708_v32 = vmax.f32 %v12416_v58, %v12611_v8  ;;  %v7970_v61 = vrot.slane %v7962_v50, %v10104_v6  ;;  %v17711_v40 = vld [vmem:[#allocation94_spill] sm:$0xff] }
 0x2a3   : > { %v7601_v42 = vmax.f32 %v17703_v21, %v12650_v11  ;;  %v7963_v0 = vcombine.low %v7439_v10, %v7440_v7  ;;  %17705 = vst [vmem:[#allocation25_spill] sm:$0xff] %v12771_v39  ;;  %v899_v10 = vadd.f32 %v12338_v63, %v12029_v23  ;;  %v1155_v33 = vadd.f32 %v12338_v63, %v12103_v12  ;;  %v17714_v12 = vld [vmem:[#allocation29_spill] sm:$0xff] }
 0x2a4   : > { %v12783_v18 = vmax.f32 %v17708_v32, %v12764_v16  ;;  %v7602_v2 = vmax.f32 %v7346_v52, %v12771_v39  ;;  %v12795_v58 = vmax.f32 %v6772_v34, %v12775_v54  ;;  %v17712_v32 = vld [vmem:[#allocation27_spill] sm:$0xff]  ;;  %v12800_v52 = vpop.f32.mrb[74].mxu0  ;;  %v17716_v21 = vmax.f32 %v17714_v12, %v17715_v41 }
 0x2a5   : > { %v7977_v7 = vrot.slane %v7963_v0, %v10104_v6  ;;  %v7347_v53 = vmax.f32 %v17712_v32, %v17711_v40  ;;  %v1915_v23 = vcombine.high %v899_v10, %v899_v10  ;;  %v1922_v0 = vrot.slane %v899_v10, %v10104_v6  ;;  %17713 = vst [vmem:[#allocation156_spill] sm:$0xff] %v12800_v52  ;;  %v9562_v32 = vpop.f32.mrb[75].mxu0 }
 0x2a6   : > { %17709 = vst [vmem:[#allocation154_spill] sm:$0xff] %v12783_v18  ;;  %17710 = vst [vmem:[#allocation155_spill] sm:$0xff] %v12795_v58  ;;  %v8659_v50 = vcombine.low %v7601_v42, %v7602_v2  ;;  %v3003_v46 = vcombine.high %v1155_v33, %v1155_v33  ;;  %v7604_v1 = vmax.f32 %v17716_v21, %v12795_v58 }
 0x2a7   : > { %v7978_v15 = vcombine.low %v7970_v61, %v7977_v7  ;;  %v7603_v56 = vmax.f32 %v7347_v53, %v12783_v18  ;;  %v1929_v34 = vrot.slane %v1915_v23, %v10104_v6  ;;  %v3010_v11 = vrot.slane %v1155_v33, %v10104_v6 }
 0x2a8   : > { %v8667_v42 = vrot.slane %v8659_v50, %v10104_v6  ;;  %v1930_v10 = vcombine.high %v1922_v0, %v1922_v0  ;;  %v9321_v61 = vrot.slane %v1922_v0, 9  ;;  %v3017_v7 = vrot.slane %v3003_v46, %v10104_v6 }
 0x2a9   : > { %9099 = vst.msk [vmem:[%s12622_s19 + $0x8] sm:$0xff] %vm9097_vm8, %v7978_v15  ;;  %v8660_v2 = vcombine.low %v7603_v56, %v7604_v1  ;;  %v12813_v53 = vcombine.high %v1929_v34, %v1929_v34  ;;  %v4354_v40 = vrot.slane %v1929_v34, 7  ;;  %v3018_v18 = vcombine.high %v3010_v11, %v3010_v11 }
 0x2aa   : > { %v4351_v12 = vrot.slane %v1930_v10, 7  ;;  %v3019_v21 = vcombine.high %v3017_v7, %v3017_v7  ;;  %v5014_v41 = vrot.slane %v3010_v11, 7  ;;  %v5020_v23 = vrot.slane %v3017_v7, 7 }
 0x2ab   : > { %v8674_v33 = vrot.slane %v8660_v2, %v10104_v6  ;;  %v4356_v32 = vrot.slane %v4354_v40, 2  ;;  %v4357_v15 = vrot.slane %v12813_v53, 7  ;;  %v5017_v50 = vrot.slane %v3018_v18, 7  ;;  %v12823_v2 = vpop.f32.mrb[72].mxu1 }
 0x2ac   : > { %v4352_v58 = vsel %vm10121_vm7, %v9321_v61, %v4351_v12  ;;  %v4353_v46 = vrot.slane %v4351_v12, 2  ;;  %v5015_v56 = vsel %vm10121_vm7, %v9372_v27, %v5014_v41  ;;  %v5016_v1 = vrot.slane %v5014_v41, 2  ;;  %17717 = vst [vmem:[#allocation157_spill] sm:$0xff] %v12823_v2  ;;  %v9689_v44 = vpop.f32.mrb[73].mxu1 }
 0x2ad   : > { %v8675_v52 = vcombine.low %v8667_v42, %v8674_v33  ;;  %v4358_v45 = vsel %vm10121_vm7, %v4356_v32, %v4357_v15  ;;  %v5833_v55 = vmax.f32 %v1922_v0, %v4352_v58  ;;  %v5019_v59 = vrot.slane %v5017_v50, 2  ;;  %v12835_v42 = vpop.f32.mrb[74].mxu1 }
 0x2ae   : > { %v4355_v26 = vsel %vm10121_vm7, %v4353_v46, %v4354_v40  ;;  %v5835_v39 = vmax.f32 %v1929_v34, %v4358_v45  ;;  %v5018_v61 = vsel %vm10121_vm7, %v5016_v1, %v5017_v50  ;;  %v5022_v12 = vrot.slane %v5020_v23, 2  ;;  %17718 = vst [vmem:[#allocation158_spill] sm:$0xff] %v12835_v42  ;;  %v9690_v50 = vpop.f32.mrb[75].mxu1  ;;  %v17725_v1 = vld [vmem:[#allocation30_spill] sm:$0xff]  ;;  %v17748_v46 = vld [vmem:[#allocation100_spill] sm:$0xff] }
 0x2af   : > { %9140 = vst.msk [vmem:[%s12622_s19 + $0x150] sm:$0xff] %vm9097_vm8, %v8675_v52  ;;  %v5834_v41 = vmax.f32 %v1930_v10, %v4355_v26  ;;  %v12831_v27 = vmax.f32 %v5833_v55, %v1930_v10  ;;  %v5021_v58 = vsel %vm10121_vm7, %v5019_v59, %v5020_v23  ;;  %v5023_v0 = vrot.slane %v3019_v21, 7  ;;  %v17740_v50 = vld [vmem:[#allocation86_spill] sm:$0xff] }
 0x2b0   : > { %v12838_v33 = vmax.f32 %v5835_v39, %v12813_v53  ;;  %v6037_v45 = vmax.f32 %v12730_v9, %v5015_v56  ;;  %v6038_v40 = vmax.f32 %v3010_v11, %v5018_v61  ;;  %v6039_v32 = vmax.f32 %v3018_v18, %v5021_v58  ;;  %v17726_v61 = vld [vmem:[#allocation96_spill] sm:$0xff] }
 0x2b1   : > { %v12841_v44 = vmax.f32 %v5834_v41, %v1929_v34  ;;  %v17719_v59 = vmax.f32 %v12460_v30, %v12678_v24  ;;  %v5024_v39 = vsel %vm10121_vm7, %v5022_v12, %v5023_v0  ;;  %v17721_v9 = vmax.f32 %v12554_v5, %v12700_v17  ;;  %v17728_v41 = vld [vmem:[#allocation101_spill] sm:$0xff]  ;;  %v12881_v0 = vpop.f32.mrb[76].mxu1 }
 0x2b2   : > { %v6040_v34 = vmax.f32 %v3017_v7, %v5024_v39  ;;  %v12859_v10 = vmax.f32 %v6037_v45, %v3010_v11  ;;  %v12861_v23 = vmax.f32 %v6038_v40, %v3018_v18  ;;  %v17723_v30 = vmax.f32 %v12517_v31, %v12686_v36  ;;  %v17729_v11 = vld [vmem:[#allocation34_spill] sm:$0xff]  ;;  %v12879_v18 = vpop.f32.mrb[76].mxu0  ;;  %17731 = vst [vmem:[#allocation162_spill] sm:$0xff] %v12881_v0  ;;  %v9693_v39 = vpop.f32.mrb[77].mxu1 }
 0x2b3   : > { %v12849_v26 = vmax.f32 %v17719_v59, %v12831_v27  ;;  %v12857_v52 = vmax.f32 %v17721_v9, %v12838_v33  ;;  %v17727_v5 = vmax.f32 %v17725_v1, %v17726_v61  ;;  %v7350_v58 = vmax.f32 %v17729_v11, %v17728_v41  ;;  %17730 = vst [vmem:[#allocation30_spill] sm:$0xff] %v12879_v18  ;;  %v9565_v59 = vpop.f32.mrb[77].mxu0  ;;  %v17732_v9 = vld [vmem:[#allocation31_spill] sm:$0xff]  ;;  %v17739_v39 = vld [vmem:[#allocation12_spill] sm:$0xff] }
 0x2b4   : > { %v12869_v56 = vmax.f32 %v17723_v30, %v12841_v44  ;;  %v12883_v45 = vmax.f32 %v6039_v32, %v3017_v7  ;;  %v12885_v40 = vmax.f32 %v6040_v34, %v3019_v21  ;;  %v17733_v30 = vld [vmem:[#allocation102_spill] sm:$0xff]  ;;  %v17735_v7 = vmax.f32 %v12508_v60, %v12627_v29 }
 0x2b5   : > { %17720 = vst [vmem:[#allocation159_spill] sm:$0xff] %v12849_v26  ;;  %17722 = vst [vmem:[#allocation160_spill] sm:$0xff] %v12857_v52  ;;  %v12875_v12 = vmax.f32 %v17727_v5, %v12849_v26  ;;  %v17734_v1 = vmax.f32 %v17732_v9, %v17733_v30  ;;  %v17737_v21 = vmax.f32 %v12522_v37, %v12755_v22  ;;  %v4359_v11 = vrot.slane %v4357_v15, 2  ;;  %v17802_v26 = vld [vmem:[#allocation48_spill] sm:$0xff] }
 0x2b6   : > { %17724 = vst [vmem:[#allocation161_spill] sm:$0xff] %v12869_v56  ;;  %v12899_v32 = vmax.f32 %v17735_v7, %v12859_v10  ;;  %v902_v59 = vadd.f32 %v12338_v63, %v12142_v43  ;;  %v17741_v9 = vmax.f32 %v17739_v39, %v17740_v50  ;;  %v17743_v7 = vmax.f32 %v12611_v8, %v12764_v16  ;;  %v12935_v39 = vpop.f32.mrb[78].mxu0  ;;  %v17751_v8 = vld [vmem:[#allocation35_spill] sm:$0xff] }
 0x2b7   : > { %v7442_v5 = vmax.f32 %v17734_v1, %v12869_v56  ;;  %v12905_v34 = vmax.f32 %v17737_v21, %v12861_v23  ;;  %v17745_v37 = vmax.f32 %v12624_v25, %v12775_v54  ;;  %17750 = vst [vmem:[#allocation167_spill] sm:$0xff] %v12935_v39  ;;  %v17754_v25 = vld [vmem:[#allocation36_spill] sm:$0xff] }
 0x2b8   : > { %17736 = vst [vmem:[#allocation31_spill] sm:$0xff] %v12899_v32  ;;  %v12913_v1 = vmax.f32 %v17741_v9, %v12546_v57  ;;  %v12921_v31 = vmax.f32 %v17743_v7, %v12883_v45  ;;  %v17747_v9 = vld [vmem:[#allocation33_spill] sm:$0xff]  ;;  %v17752_v7 = vld [vmem:[#allocation107_spill] sm:$0xff]  ;;  %v1939_v57 = vrot.slane %v902_v59, %v10104_v6 }
 0x2b9   : > { %17738 = vst [vmem:[#allocation163_spill] sm:$0xff] %v12905_v34  ;;  %v12927_v43 = vmax.f32 %v17745_v37, %v12885_v40  ;;  %v7979_v21 = vcombine.low %v12875_v12, %v7442_v5  ;;  %v17749_v55 = vmax.f32 %v17747_v9, %v17748_v46  ;;  %v7606_v60 = vmax.f32 %v7350_v58, %v12905_v34  ;;  %v17755_v37 = vld [vmem:[#allocation108_spill] sm:$0xff]  ;;  %v9566_v9 = vpop.f32.mrb[79].mxu0 }
 0x2ba   : > { %17742 = vst [vmem:[#allocation164_spill] sm:$0xff] %v12913_v1  ;;  %17744 = vst [vmem:[#allocation165_spill] sm:$0xff] %v12921_v31  ;;  %v17753_v30 = vmax.f32 %v17751_v8, %v17752_v7  ;;  %v17756_v50 = vmax.f32 %v17754_v25, %v17755_v37  ;;  %v1932_v5 = vcombine.high %v902_v59, %v902_v59  ;;  %v4360_v25 = vrot.slane %v1939_v57, 7 }
 0x2bb   : > { %17746 = vst [vmem:[#allocation166_spill] sm:$0xff] %v12927_v43  ;;  %v7605_v1 = vmax.f32 %v17749_v55, %v12899_v32  ;;  %v6612_v8 = vmax.f32 %v12562_v49, %v12710_v20  ;;  %v1158_v55 = vadd.f32 %v12338_v63, %v12221_v62 }
 0x2bc   : > { %v7607_v56 = vmax.f32 %v17753_v30, %v12921_v31  ;;  %v7608_v12 = vmax.f32 %v17756_v50, %v12927_v43  ;;  %v1946_v7 = vrot.slane %v1932_v5, %v10104_v6  ;;  %v1947_v31 = vcombine.high %v1939_v57, %v1939_v57  ;;  %v12953_v50 = vpop.f32.mrb[78].mxu1 }
 0x2bd   : > { %v8676_v58 = vcombine.low %v7605_v1, %v7606_v60  ;;  %17757 = vst [vmem:[#allocation168_spill] sm:$0xff] %v12953_v50  ;;  %v907_v1 = vadd.f32 %v12338_v63, %v12246_v13  ;;  %v9694_v60 = vpop.f32.mrb[79].mxu1  ;;  %v3027_v37 = vrot.slane %v1158_v55, %v10104_v6 }
 0x2be   : > { %v8677_v30 = vcombine.low %v7607_v56, %v7608_v12  ;;  %v12963_v56 = vcombine.high %v1946_v7, %v1946_v7  ;;  %v4361_v12 = vsel %vm10121_vm7, %v4359_v11, %v4360_v25  ;;  %v9322_v5 = vrot.slane %v1947_v31, 9 }
 0x2bf   : > { %v8684_v9 = vrot.slane %v8676_v58, %v10104_v6  ;;  %v4364_v15 = vrot.slane %v1946_v7, 7  ;;  %v5836_v59 = vmax.f32 %v12813_v53, %v4361_v12  ;;  %v3020_v58 = vcombine.high %v1158_v55, %v1158_v55 }
 0x2c0   : > { %v8691_v49 = vrot.slane %v8677_v30, %v10104_v6  ;;  %v4367_v43 = vrot.slane %v12963_v56, 7  ;;  %v1949_v13 = vcombine.high %v907_v1, %v907_v1  ;;  %v12971_v60 = vrot.slane %v907_v1, %v10104_v6 }
 0x2c1   : > { %v4365_v30 = vsel %vm10121_vm7, %v9322_v5, %v4364_v15  ;;  %v4366_v46 = vrot.slane %v4364_v15, 2  ;;  %v12975_v32 = vmax.f32 %v5836_v59, %v1939_v57  ;;  %v3034_v11 = vrot.slane %v3020_v58, %v10104_v6 }
 0x2c2   : > { %v8692_v62 = vcombine.low %v8684_v9, %v8691_v49  ;;  %v5837_v53 = vmax.f32 %v1947_v31, %v4365_v30  ;;  %v3035_v25 = vcombine.high %v3027_v37, %v3027_v37  ;;  %v9373_v55 = vrot.slane %v3027_v37, 9  ;;  %v17763_v49 = vld [vmem:[#allocation104_spill] sm:$0xff] }
 0x2c3   : > { %v12981_v9 = vrot.slane %v1949_v13, %v10104_v6  ;;  %v4368_v1 = vsel %vm10121_vm7, %v4366_v46, %v4367_v43  ;;  %v12988_v15 = vmax.f32 %v6612_v8, %v12975_v32  ;;  %v12990_v57 = vcombine.high %v3034_v11, %v3034_v11  ;;  %v17760_v13 = vld [vmem:[#allocation103_spill] sm:$0xff] }
 0x2c4   : > { %9141 = vst.msk [vmem:[%s12622_s19 + $0x158] sm:$0xff] %vm9097_vm8, %v8692_v62  ;;  %v5838_v59 = vmax.f32 %v1946_v7, %v4368_v1  ;;  %v12992_v12 = vmax.f32 %v5837_v53, %v1946_v7  ;;  %v5027_v31 = vrot.slane %v3035_v25, 7  ;;  %v5030_v5 = vrot.slane %v3034_v11, 7  ;;  %v17759_v62 = vld [vmem:[#allocation32_spill] sm:$0xff]  ;;  %v17769_v7 = vld [vmem:[#allocation39_spill] sm:$0xff] }
 0x2c5   : > { %17758 = vst [vmem:[#allocation169_spill] sm:$0xff] %v12988_v15  ;;  %v7987_v58 = vrot.slane %v7979_v21, %v10104_v6  ;;  %v17761_v30 = vmax.f32 %v17759_v62, %v17760_v13  ;;  %v17764_v47 = vmax.f32 %v17762_v3, %v17763_v49  ;;  %v5033_v4 = vrot.slane %v12990_v57, 7 }
 0x2c6   : > { %v13005_v1 = vmax.f32 %v5838_v59, %v12963_v56  ;;  %v17765_v21 = vmax.f32 %v12678_v24, %v12831_v27  ;;  %v5028_v62 = vsel %vm10121_vm7, %v9373_v55, %v5027_v31  ;;  %v5029_v3 = vrot.slane %v5027_v31, 2 }
 0x2c7   : > { %v7443_v46 = vmax.f32 %v17761_v30, %v12857_v52  ;;  %v7444_v8 = vmax.f32 %v17764_v47, %v12988_v15  ;;  %v5032_v47 = vrot.slane %v5030_v5, 2  ;;  %v6041_v13 = vmax.f32 %v3027_v37, %v5028_v62 }
 0x2c8   : > { %v13013_v53 = vmax.f32 %v17765_v21, %v12992_v12  ;;  %v17767_v59 = vmax.f32 %v12686_v36, %v12841_v44  ;;  %v17771_v51 = vmax.f32 %v17769_v7, %v17770_v14  ;;  %v1964_v21 = vcombine.high %v12971_v60, %v12971_v60 }
 0x2c9   : > { %v7980_v30 = vcombine.low %v7443_v46, %v7444_v8  ;;  %v13033_v55 = vcombine.high %v12981_v9, %v12981_v9  ;;  %v5031_v36 = vsel %vm10121_vm7, %v5029_v3, %v5030_v5  ;;  %v5034_v31 = vsel %vm10121_vm7, %v5032_v47, %v5033_v4  ;;  %v17773_v8 = vld [vmem:[#allocation111_spill] sm:$0xff] }
 0x2ca   : > { %17766 = vst [vmem:[#allocation32_spill] sm:$0xff] %v13013_v53  ;;  %v13021_v52 = vmax.f32 %v17767_v59, %v13005_v1  ;;  %v13027_v24 = vmax.f32 %v17771_v51, %v13013_v53  ;;  %v13040_v46 = vmax.f32 %v6041_v13, %v3035_v25  ;;  %v17772_v51 = vld [vmem:[#allocation40_spill] sm:$0xff]  ;;  %v6042_v59 = vmax.f32 %v3035_v25, %v5031_v36 }
 0x2cb   : > { %v7994_v37 = vrot.slane %v7980_v30, %v10104_v6  ;;  %v17774_v7 = vmax.f32 %v17772_v51, %v17773_v8  ;;  %v6043_v48 = vmax.f32 %v3034_v11, %v5034_v31  ;;  %v4369_v50 = vrot.slane %v4367_v43, 2 }
 0x2cc   : > { %17768 = vst [vmem:[#allocation38_spill] sm:$0xff] %v13021_v52  ;;  %v17775_v5 = vmax.f32 %v12627_v29, %v12859_v10  ;;  %v4370_v13 = vrot.slane %v12971_v60, 7  ;;  %v13056_v0 = vmax.f32 %v6042_v59, %v3034_v11  ;;  %v4373_v43 = vrot.slane %v1964_v21, 7 }
 0x2cd   : > { %v7446_v62 = vmax.f32 %v17774_v7, %v13021_v52  ;;  %v7995_v39 = vcombine.low %v7987_v58, %v7994_v37  ;;  %v13059_v25 = vmax.f32 %v6043_v48, %v12990_v57  ;;  %v17780_v7 = vmax.f32 %v12755_v22, %v12861_v23  ;;  %v17786_v58 = vld [vmem:[#allocation42_spill] sm:$0xff] }
 0x2ce   : > { %v13052_v3 = vmax.f32 %v17775_v5, %v13040_v46  ;;  %v4371_v29 = vsel %vm10121_vm7, %v4369_v50, %v4370_v13  ;;  %v4372_v31 = vrot.slane %v4370_v13, 2  ;;  %v9323_v5 = vrot.slane %v12981_v9, 9 }
 0x2cf   : > { %v7996_v47 = vcombine.low %v13027_v24, %v7446_v62  ;;  %9100 = vst.msk [vmem:[%s12622_s19 + $0x10] sm:$0xff] %vm9097_vm8, %v7995_v39  ;;  %v13077_v62 = vmax.f32 %v17780_v7, %v13056_v0  ;;  %v17782_v39 = vmax.f32 %v12764_v16, %v12883_v45  ;;  %v4377_v13 = vrot.slane %v13033_v55, 7  ;;  %v17784_v16 = vld [vmem:[#allocation90_spill] sm:$0xff] }
 0x2d0   : > { %17776 = vst [vmem:[#allocation39_spill] sm:$0xff] %v13052_v3  ;;  %v4374_v50 = vsel %vm10121_vm7, %v4372_v31, %v4373_v43  ;;  %v5839_v11 = vmax.f32 %v12963_v56, %v4371_v29  ;;  %v6615_v36 = vmax.f32 %v12700_v17, %v12838_v33  ;;  %v17785_v31 = vld [vmem:[#allocation109_spill] sm:$0xff]  ;;  %v5035_v30 = vrot.slane %v5033_v4, 2 }
 0x2d1   : > { %17781 = vst [vmem:[#allocation40_spill] sm:$0xff] %v13077_v62  ;;  %v13083_v59 = vmax.f32 %v17782_v39, %v13059_v25  ;;  %v5840_v7 = vmax.f32 %v12971_v60, %v4374_v50  ;;  %v1163_v39 = vadd.f32 %v12338_v63, %v17784_v16  ;;  %v7353_v48 = vmax.f32 %v17786_v58, %v17785_v31 }
 0x2d2   : > { %v4378_v56 = vsel %vm10121_vm7, %v9323_v5, %v4377_v13  ;;  %v13104_v29 = vmax.f32 %v5839_v11, %v12971_v60  ;;  %v6780_v5 = vmax.f32 %v12775_v54, %v12885_v40  ;;  %v17788_v60 = vld [vmem:[#allocation45_spill] sm:$0xff]  ;;  %v17789_v11 = vld [vmem:[#allocation114_spill] sm:$0xff]  ;;  %v17791_v4 = vmax.f32 %v12710_v20, %v12975_v32  ;;  %v17795_v20 = vld [vmem:[#allocation44_spill] sm:$0xff] }
 0x2d3   : > { %17783 = vst [vmem:[#allocation170_spill] sm:$0xff] %v13083_v59  ;;  %v5841_v50 = vmax.f32 %v12981_v9, %v4378_v56  ;;  %v13107_v22 = vmax.f32 %v5840_v7, %v1964_v21  ;;  %v3037_v17 = vcombine.high %v1163_v39, %v1163_v39  ;;  %v3044_v43 = vrot.slane %v1163_v39, %v10104_v6  ;;  %v17798_v39 = vld [vmem:[#allocation46_spill] sm:$0xff] }
 0x2d4   : > { %v13112_v16 = vmax.f32 %v6615_v36, %v13104_v29  ;;  %v17790_v58 = vmax.f32 %v17788_v60, %v17789_v11  ;;  %v7609_v54 = vmax.f32 %v7353_v48, %v13052_v3 }
 0x2d5   : > { %v13122_v21 = vmax.f32 %v5841_v50, %v13033_v55  ;;  %v13128_v7 = vmax.f32 %v17791_v4, %v13107_v22  ;;  %v3051_v36 = vrot.slane %v3037_v17, %v10104_v6  ;;  %v3052_v56 = vcombine.high %v3044_v43, %v3044_v43  ;;  %v17796_v4 = vld [vmem:[#allocation112_spill] sm:$0xff] }
 0x2d6   : > { %17787 = vst [vmem:[#allocation90_spill] sm:$0xff] %v13112_v16  ;;  %v7610_v9 = vmax.f32 %v17790_v58, %v13077_v62  ;;  %v5036_v63 = vrot.slane %v3044_v43, 7  ;;  %v17793_v50 = vmax.f32 %v12831_v27, %v12992_v12  ;;  %v17797_v17 = vmax.f32 %v17795_v20, %v17796_v4  ;;  %v17799_v62 = vld [vmem:[#allocation113_spill] sm:$0xff] }
 0x2d7   : > { %17792 = vst [vmem:[#allocation171_spill] sm:$0xff] %v13128_v7  ;;  %v17800_v48 = vmax.f32 %v17798_v39, %v17799_v62  ;;  %v13150_v52 = vcombine.high %v3051_v36, %v3051_v36  ;;  %v9374_v15 = vrot.slane %v3052_v56, 9  ;;  %v5040_v49 = vrot.slane %v3051_v36, 7  ;;  %v17881_v4 = vld [vmem:[#allocation149_spill] sm:$0xff] }
 0x2d8   : > { %v13140_v60 = vmax.f32 %v17793_v50, %v13122_v21  ;;  %v7447_v11 = vmax.f32 %v17797_v17, %v13112_v16  ;;  %v5037_v58 = vsel %vm10121_vm7, %v5035_v30, %v5036_v63  ;;  %v8004_v27 = vrot.slane %v7996_v47, %v10104_v6 }
 0x2d9   : > { %v7448_v8 = vmax.f32 %v17800_v48, %v13128_v7  ;;  %v8693_v50 = vcombine.low %v7609_v54, %v7610_v9  ;;  %v6044_v41 = vmax.f32 %v12990_v57, %v5037_v58  ;;  %v5041_v20 = vsel %vm10121_vm7, %v9374_v15, %v5040_v49  ;;  %v17801_v48 = vld [vmem:[#allocation116_spill] sm:$0xff] }
 0x2da   : > { %17794 = vst [vmem:[#allocation172_spill] sm:$0xff] %v13140_v60  ;;  %v5042_v17 = vrot.slane %v5040_v49, 2  ;;  %v5043_v39 = vrot.slane %v13150_v52, 7  ;;  %v7356_v61 = vmax.f32 %v17802_v26, %v17801_v48  ;;  %v6045_v30 = vmax.f32 %v3052_v56, %v5041_v20  ;;  %v17803_v57 = vld [vmem:[#allocation140_spill] sm:$0xff] }
 0x2db   : > { %v7997_v34 = vcombine.low %v7447_v11, %v7448_v8  ;;  %v13162_v63 = vmax.f32 %v6044_v41, %v3044_v43  ;;  %v13167_v8 = vld [vmem:[%s16838_s2] ss:$0 sm:$0xff]  ;;  %v6618_v47 = vmax.f32 %v12841_v44, %v13005_v1  ;;  %v17804_v41 = vld [vmem:[#allocation141_spill] sm:$0xff] }
 0x2dc   : > { %v910_v15 = vadd.f32 %v13167_v8, %v17803_v57  ;;  %v5044_v49 = vsel %vm10121_vm7, %v5042_v17, %v5043_v39  ;;  %v1166_v43 = vadd.f32 %v13167_v8, %v17804_v41  ;;  %v13179_v54 = vmax.f32 %v6045_v30, %v3051_v36  ;;  %v13187_v57 = vpop.f32.mrb[80].mxu0  ;;  %v17810_v30 = vld [vmem:[#allocation115_spill] sm:$0xff] }
 0x2dd   : > { %v8011_v51 = vrot.slane %v7997_v34, %v10104_v6  ;;  %v6046_v9 = vmax.f32 %v3051_v36, %v5044_v49  ;;  %v13184_v58 = vmax.f32 %v6780_v5, %v13162_v63  ;;  %17806 = vst [vmem:[#allocation46_spill] sm:$0xff] %v13187_v57  ;;  %v4379_v34 = vrot.slane %v4377_v13, 2  ;;  %v17809_v5 = vld [vmem:[#allocation43_spill] sm:$0xff]  ;;  %v9569_v41 = vpop.f32.mrb[81].mxu0 }
 0x2de   : > { %v1966_v20 = vcombine.high %v910_v15, %v910_v15  ;;  %v1973_v17 = vrot.slane %v910_v15, %v10104_v6  ;;  %v3054_v44 = vcombine.high %v1166_v43, %v1166_v43  ;;  %v17807_v36 = vmax.f32 %v12859_v10, %v13040_v46 }
 0x2df   : > { %v8012_v11 = vcombine.low %v8004_v27, %v8011_v51  ;;  %17805 = vst [vmem:[#allocation44_spill] sm:$0xff] %v13184_v58  ;;  %v13192_v51 = vmax.f32 %v6046_v9, %v13150_v52  ;;  %v17811_v49 = vmax.f32 %v17809_v5, %v17810_v30  ;;  %v7612_v56 = vmax.f32 %v7356_v61, %v13184_v58  ;;  %v17868_v58 = vld [vmem:[#allocation14_spill] sm:$0xff] }
 0x2e0   : > { %v13198_v27 = vmax.f32 %v17807_v36, %v13179_v54  ;;  %v1980_v13 = vrot.slane %v1966_v20, %v10104_v6  ;;  %v3061_v9 = vrot.slane %v1166_v43, %v10104_v6  ;;  %v17812_v10 = vmax.f32 %v12861_v23, %v13056_v0  ;;  %v13219_v43 = vpop.f32.mrb[80].mxu1 }
 0x2e1   : > { %9101 = vst.msk [vmem:[%s12622_s19 + $0x18] sm:$0xff] %vm9097_vm8, %v8012_v11  ;;  %v7611_v15 = vmax.f32 %v17811_v49, %v13083_v59  ;;  %v1981_v11 = vcombine.high %v1973_v17, %v1973_v17  ;;  %v4380_v24 = vrot.slane %v1973_v17, 7  ;;  %v3068_v49 = vrot.slane %v3054_v44, %v10104_v6  ;;  %17814 = vst [vmem:[#allocation173_spill] sm:$0xff] %v13219_v43 }
 0x2e2   : > { %17808 = vst [vmem:[#allocation140_spill] sm:$0xff] %v13198_v27  ;;  %v13213_v36 = vmax.f32 %v17812_v10, %v13192_v51  ;;  %v8701_v20 = vrot.slane %v8693_v50, %v10104_v6  ;;  %v4386_v59 = vrot.slane %v1980_v13, 7  ;;  %v5045_v23 = vrot.slane %v5043_v39, 2  ;;  %v9697_v10 = vpop.f32.mrb[81].mxu1  ;;  %v17815_v50 = vld [vmem:[#allocation47_spill] sm:$0xff] }
 0x2e3   : > { %v8694_v41 = vcombine.low %v7611_v15, %v7612_v56  ;;  %v4383_v5 = vrot.slane %v1981_v11, 7  ;;  %v4381_v26 = vsel %vm10121_vm7, %v4379_v34, %v4380_v24  ;;  %v4382_v30 = vrot.slane %v4380_v24, 2  ;;  %v17816_v56 = vld [vmem:[#allocation117_spill] sm:$0xff] }
 0x2e4   : > { %17813 = vst [vmem:[#allocation141_spill] sm:$0xff] %v13213_v36  ;;  %v5842_v14 = vmax.f32 %v13033_v55, %v4381_v26  ;;  %v3069_v61 = vcombine.high %v3061_v9, %v3061_v9  ;;  %v17817_v15 = vmax.f32 %v17815_v50, %v17816_v56  ;;  %v13231_v34 = vcombine.high %v3068_v49, %v3068_v49  ;;  %v17818_v26 = vld [vmem:[#allocation50_spill] sm:$0xff]  ;;  %v17819_v55 = vld [vmem:[#allocation121_spill] sm:$0xff] }
 0x2e5   : > { %v8708_v53 = vrot.slane %v8694_v41, %v10104_v6  ;;  %v4385_v44 = vrot.slane %v4383_v5, 2  ;;  %v4384_v31 = vsel %vm10121_vm7, %v4382_v30, %v4383_v5  ;;  %v5046_v24 = vrot.slane %v3061_v9, 7 }
 0x2e6   : > { %v7449_v3 = vmax.f32 %v17817_v15, %v13140_v60  ;;  %v5843_v10 = vmax.f32 %v1973_v17, %v4384_v31  ;;  %v13235_v19 = vmax.f32 %v5842_v14, %v1973_v17  ;;  %v17820_v37 = vmax.f32 %v17818_v26, %v17819_v55  ;;  %v17835_v55 = vld [vmem:[#allocation53_spill] sm:$0xff] }
 0x2e7   : > { %v8709_v39 = vcombine.low %v8701_v20, %v8708_v53  ;;  %v4387_v41 = vsel %vm10121_vm7, %v4385_v44, %v4386_v59  ;;  %v5047_v15 = vsel %vm10121_vm7, %v5045_v23, %v5046_v24  ;;  %v5048_v5 = vrot.slane %v5046_v24, 2  ;;  %v17822_v23 = vld [vmem:[#allocation49_spill] sm:$0xff]  ;;  %v17823_v44 = vld [vmem:[#allocation118_spill] sm:$0xff] }
 0x2e8   : > { %v7614_v35 = vmax.f32 %v17820_v37, %v13213_v36  ;;  %v5844_v50 = vmax.f32 %v1981_v11, %v4387_v41  ;;  %v13245_v30 = vmax.f32 %v5843_v10, %v1981_v11  ;;  %v13250_v14 = vmax.f32 %v6618_v47, %v13235_v19  ;;  %v17827_v10 = vld [vmem:[#allocation51_spill] sm:$0xff] }
 0x2e9   : > { %9142 = vst.msk [vmem:[%s12622_s19 + $0x160] sm:$0xff] %vm9097_vm8, %v8709_v39  ;;  %v5049_v59 = vrot.slane %v3069_v61, 7  ;;  %v9375_v17 = vrot.slane %v3068_v49, 9  ;;  %v5053_v37 = vrot.slane %v13231_v34, 7  ;;  %v6047_v20 = vmax.f32 %v13150_v52, %v5047_v15  ;;  %v17836_v36 = vld [vmem:[#allocation75_spill] sm:$0xff] }
 0x2ea   : > { %17821 = vst [vmem:[#allocation47_spill] sm:$0xff] %v13250_v14  ;;  %v13252_v31 = vmax.f32 %v5844_v50, %v1980_v13  ;;  %v17824_v24 = vmax.f32 %v17822_v23, %v17823_v44  ;;  %v17825_v47 = vmax.f32 %v12838_v33, %v13104_v29  ;;  %v17828_v50 = vld [vmem:[#allocation119_spill] sm:$0xff]  ;;  %v17830_v15 = vmax.f32 %v12975_v32, %v13107_v22 }
 0x2eb   : > { %v17829_v53 = vmax.f32 %v17827_v10, %v17828_v50  ;;  %v5050_v39 = vsel %vm10121_vm7, %v5048_v5, %v5049_v59  ;;  %v5054_v33 = vsel %vm10121_vm7, %v9375_v17, %v5053_v37  ;;  %v1982_v23 = vcombine.high %v1980_v13, %v1980_v13  ;;  %v17832_v10 = vld [vmem:[#allocation52_spill] sm:$0xff]  ;;  %v17838_v59 = vld [vmem:[#allocation122_spill] sm:$0xff] }
 0x2ec   : > { %v7613_v11 = vmax.f32 %v17824_v24, %v13198_v27  ;;  %v13266_v41 = vmax.f32 %v17825_v47, %v13245_v30  ;;  %v13278_v24 = vmax.f32 %v17830_v15, %v13252_v31  ;;  %v17837_v32 = vmax.f32 %v17835_v55, %v17836_v36 }
 0x2ed   : > { %v7450_v26 = vmax.f32 %v17829_v53, %v13250_v14  ;;  %v17833_v53 = vld [vmem:[#allocation120_spill] sm:$0xff]  ;;  %v6048_v44 = vmax.f32 %v3061_v9, %v5050_v39  ;;  %v6049_v27 = vmax.f32 %v3068_v49, %v5054_v33  ;;  %v13292_v38 = vmax.f32 %v6047_v20, %v3061_v9  ;;  %v17841_v20 = vld [vmem:[#allocation98_spill] sm:$0xff]  ;;  %v13329_v33 = vpop.f32.mrb[82].mxu0 }
 0x2ee   : > { %17826 = vst [vmem:[#allocation174_spill] sm:$0xff] %v13266_v41  ;;  %17831 = vst [vmem:[#allocation51_spill] sm:$0xff] %v13278_v24  ;;  %v8710_v47 = vcombine.low %v7613_v11, %v7614_v35  ;;  %v17834_v56 = vmax.f32 %v17832_v10, %v17833_v53  ;;  %v7452_v15 = vmax.f32 %v17837_v32, %v13278_v24  ;;  %v17842_v11 = vld [vmem:[#allocation106_spill] sm:$0xff]  ;;  %v5055_v36 = vrot.slane %v5053_v37, 2 }
 0x2ef   : > { %v8013_v52 = vcombine.low %v7449_v3, %v7450_v26  ;;  %v6783_v35 = vmax.f32 %v12883_v45, %v13059_v25  ;;  %v6785_v13 = vmax.f32 %v13040_v46, %v13179_v54  ;;  %v13301_v17 = vmax.f32 %v6048_v44, %v3069_v61  ;;  %17846 = vst [vmem:[#allocation106_spill] sm:$0xff] %v13329_v33 }
 0x2f0   : > { %v7451_v60 = vmax.f32 %v17834_v56, %v13266_v41  ;;  %v17839_v56 = vld [vmem:[#allocation54_spill] sm:$0xff]  ;;  %v13304_v55 = vmax.f32 %v6049_v27, %v13231_v34  ;;  %v915_v45 = vadd.f32 %v13167_v8, %v17841_v20  ;;  %v1171_v46 = vadd.f32 %v13167_v8, %v17842_v11  ;;  %v17847_v11 = vld [vmem:[#allocation55_spill] sm:$0xff] }
 0x2f1   : > { %v8021_v5 = vrot.slane %v8013_v52, %v10104_v6  ;;  %v7359_v3 = vmax.f32 %v17839_v56, %v17838_v59  ;;  %v13309_v49 = vmax.f32 %v6783_v35, %v13292_v38  ;;  %v17843_v44 = vmax.f32 %v12885_v40, %v13162_v63 }
 0x2f2   : > { %v8014_v26 = vcombine.low %v7451_v60, %v7452_v15  ;;  %v13327_v52 = vmax.f32 %v6785_v13, %v13304_v55  ;;  %v1983_v15 = vcombine.high %v915_v45, %v915_v45  ;;  %v1990_v35 = vrot.slane %v915_v45, %v10104_v6 }
 0x2f3   : > { %17840 = vst [vmem:[#allocation52_spill] sm:$0xff] %v13309_v49  ;;  %v13324_v39 = vmax.f32 %v17843_v44, %v13301_v17  ;;  %v7615_v32 = vmax.f32 %v7359_v3, %v13309_v49  ;;  %v17848_v44 = vld [vmem:[#allocation78_spill] sm:$0xff]  ;;  %v9324_v60 = vrot.slane %v1982_v23, 9  ;;  %v8718_v45 = vrot.slane %v8710_v47, %v10104_v6 }
 0x2f4   : > { %v8028_v61 = vrot.slane %v8014_v26, %v10104_v6  ;;  %17845 = vst [vmem:[#allocation98_spill] sm:$0xff] %v13327_v52  ;;  %v9570_v26 = vpop.f32.mrb[83].mxu0  ;;  %v17849_v27 = vmax.f32 %v17847_v11, %v17848_v44  ;;  %v13344_v10 = vrot.slane %v1983_v15, %v10104_v6  ;;  %v1998_v3 = vcombine.high %v1990_v35, %v1990_v35  ;;  %v13356_v11 = vpop.f32.mrb[82].mxu1 }
 0x2f5   : > { %17844 = vst [vmem:[#allocation53_spill] sm:$0xff] %v13324_v39  ;;  %v4390_v56 = vrot.slane %v1990_v35, 7  ;;  %v3078_v40 = vrot.slane %v1171_v46, %v10104_v6  ;;  %17850 = vst [vmem:[#allocation175_spill] sm:$0xff] %v13356_v11 }
 0x2f6   : > { %v8029_v13 = vcombine.low %v8021_v5, %v8028_v61  ;;  %v7616_v9 = vmax.f32 %v17849_v27, %v13324_v39  ;;  %v4393_v20 = vrot.slane %v1998_v3, 7  ;;  %v4396_v61 = vrot.slane %v13344_v10, 7 }
 0x2f7   : > { %v4391_v27 = vsel %vm10121_vm7, %v9324_v60, %v4390_v56  ;;  %v4392_v15 = vrot.slane %v4390_v56, 2  ;;  %v3086_v14 = vcombine.high %v3078_v40, %v3078_v40  ;;  %v13364_v56 = vcombine.high %v13344_v10, %v13344_v10 }
 0x2f8   : > { %9102 = vst.msk [vmem:[%s12622_s19 + $0x20] sm:$0xff] %vm9097_vm8, %v8029_v13  ;;  %v8711_v26 = vcombine.low %v7615_v32, %v7616_v9  ;;  %v5845_v13 = vmax.f32 %v1982_v23, %v4391_v27  ;;  %v3071_v9 = vcombine.high %v1171_v46, %v1171_v46  ;;  %v9698_v32 = vpop.f32.mrb[83].mxu1  ;;  %v4395_v24 = vrot.slane %v4393_v20, 2  ;;  %v17854_v23 = vld [vmem:[#allocation125_spill] sm:$0xff] }
 0x2f9   : > { %v4394_v5 = vsel %vm10121_vm7, %v4392_v15, %v4393_v20  ;;  %v5059_v27 = vrot.slane %v3086_v14, 7  ;;  %v17853_v20 = vld [vmem:[#allocation56_spill] sm:$0xff] }
 0x2fa   : > { %v8725_v47 = vrot.slane %v8711_v26, %v10104_v6  ;;  %v5846_v60 = vmax.f32 %v1990_v35, %v4394_v5  ;;  %v13366_v37 = vmax.f32 %v5845_v13, %v1990_v35  ;;  %v4397_v46 = vsel %vm10121_vm7, %v4395_v24, %v4396_v61 }
 0x2fb   : > { %v5056_v26 = vrot.slane %v3078_v40, 7  ;;  %v17851_v35 = vmax.f32 %v12992_v12, %v13122_v21  ;;  %v5061_v32 = vrot.slane %v5059_v27, 2  ;;  %v17856_v12 = vmax.f32 %v13005_v1, %v13235_v19  ;;  %v17860_v1 = vld [vmem:[#allocation57_spill] sm:$0xff] }
 0x2fc   : > { %v8726_v50 = vcombine.low %v8718_v45, %v8725_v47  ;;  %v5847_v45 = vmax.f32 %v1998_v3, %v4397_v46  ;;  %v13376_v15 = vmax.f32 %v5846_v60, %v1998_v3  ;;  %v3085_v47 = vrot.slane %v3071_v9, %v10104_v6 }
 0x2fd   : > { %v13382_v5 = vmax.f32 %v17851_v35, %v13366_v37  ;;  %v5057_v24 = vsel %vm10121_vm7, %v5055_v36, %v5056_v26  ;;  %v5058_v13 = vrot.slane %v5056_v26, 2  ;;  %v4399_v3 = vrot.slane %v13364_v56, 7 }
 0x2fe   : > { %9143 = vst.msk [vmem:[%s12622_s19 + $0x168] sm:$0xff] %vm9097_vm8, %v8726_v50  ;;  %v17855_v50 = vmax.f32 %v17853_v20, %v17854_v23  ;;  %v13393_v60 = vmax.f32 %v5847_v45, %v13344_v10  ;;  %v13399_v9 = vmax.f32 %v17856_v12, %v13376_v15  ;;  %v4398_v35 = vrot.slane %v4396_v61, 2  ;;  %v17861_v12 = vld [vmem:[#allocation16_spill] sm:$0xff] }
 0x2ff   : > { %17852 = vst [vmem:[#allocation176_spill] sm:$0xff] %v13382_v5  ;;  %v5060_v36 = vsel %vm10121_vm7, %v5058_v13, %v5059_v27  ;;  %v5062_v26 = vrot.slane %v3085_v47, 7  ;;  %v6050_v49 = vmax.f32 %v13231_v34, %v5057_v24  ;;  %v17858_v45 = vmax.f32 %v13104_v29, %v13245_v30  ;;  %v17863_v27 = vld [vmem:[#allocation58_spill] sm:$0xff]  ;;  %v17864_v13 = vld [vmem:[#allocation124_spill] sm:$0xff] }
 0x300   : > { %v7617_v46 = vmax.f32 %v17855_v50, %v13327_v52  ;;  %17857 = vst [vmem:[#allocation177_spill] sm:$0xff] %v13399_v9  ;;  %v17862_v23 = vmax.f32 %v17860_v1, %v17861_v12  ;;  %v17865_v52 = vmax.f32 %v17863_v27, %v17864_v13  ;;  %v6051_v50 = vmax.f32 %v3078_v40, %v5060_v36  ;;  %v17866_v29 = vld [vmem:[#allocation126_spill] sm:$0xff] }
 0x301   : > { %v13410_v20 = vmax.f32 %v17858_v45, %v13393_v60  ;;  %v5063_v24 = vsel %vm10121_vm7, %v5061_v32, %v5062_v26  ;;  %v13426_v59 = vmax.f32 %v6050_v49, %v3078_v40  ;;  %v17867_v45 = vld [vmem:[#allocation59_spill] sm:$0xff]  ;;  %v918_v27 = vadd.f32 %v13167_v8, %v17868_v58 }
 0x302   : > { %v13416_v61 = vmax.f32 %v17862_v23, %v13382_v5  ;;  %v13422_v34 = vmax.f32 %v17865_v52, %v13399_v9  ;;  %v7362_v41 = vmax.f32 %v17867_v45, %v17866_v29  ;;  %v13432_v23 = vcombine.high %v3085_v47, %v3085_v47  ;;  %v13436_v52 = vpop.f32.mrb[84].mxu0  ;;  %v17973_v29 = vld [vmem:[#allocation80_spill] sm:$0xff] }
 0x303   : > { %17859 = vst [vmem:[#allocation178_spill] sm:$0xff] %v13410_v20  ;;  %v6052_v53 = vmax.f32 %v3086_v14, %v5063_v24  ;;  %17869 = vst [vmem:[#allocation57_spill] sm:$0xff] %v13436_v52  ;;  %v13438_v48 = vmax.f32 %v6051_v50, %v3086_v14  ;;  %v17870_v40 = vmax.f32 %v13056_v0, %v13192_v51  ;;  %v9573_v26 = vpop.f32.mrb[85].mxu0 }
 0x304   : > { %v6625_v36 = vmax.f32 %v13122_v21, %v13366_v37  ;;  %v13452_v58 = vsel %vm10121_vm7, %v4398_v35, %v4399_v3  ;;  %v2000_v14 = vcombine.high %v918_v27, %v918_v27  ;;  %v2007_v50 = vrot.slane %v918_v27, %v10104_v6  ;;  %v17874_v21 = vld [vmem:[#allocation127_spill] sm:$0xff]  ;;  %v17875_v26 = vld [vmem:[#allocation61_spill] sm:$0xff] }
 0x305   : > { %v13446_v32 = vmax.f32 %v17870_v40, %v13426_v59  ;;  %v13454_v24 = vmax.f32 %v6052_v53, %v3085_v47  ;;  %v17872_v0 = vmax.f32 %v13059_v25, %v13292_v38  ;;  %v7363_v49 = vmax.f32 %v17875_v26, %v17874_v21  ;;  %v17879_v21 = vld [vmem:[#allocation130_spill] sm:$0xff] }
 0x306   : > { %v17876_v47 = vmax.f32 %v13162_v63, %v13301_v17  ;;  %v2014_v27 = vrot.slane %v2000_v14, %v10104_v6  ;;  %v2015_v1 = vcombine.high %v2007_v50, %v2007_v50  ;;  %v9325_v45 = vrot.slane %v2007_v50, 9 }
 0x307   : > { %17871 = vst [vmem:[#allocation58_spill] sm:$0xff] %v13446_v32  ;;  %v13463_v40 = vmax.f32 %v17872_v0, %v13438_v48  ;;  %v7618_v3 = vmax.f32 %v7362_v41, %v13446_v32  ;;  %v6626_v26 = vmax.f32 %v13235_v19, %v13376_v15  ;;  %v17878_v41 = vld [vmem:[#allocation62_spill] sm:$0xff]  ;;  %v9376_v16 = vrot.slane %v13432_v23, 9 }
 0x308   : > { %v13474_v35 = vmax.f32 %v17876_v47, %v13454_v24  ;;  %v17880_v53 = vmax.f32 %v17878_v41, %v17879_v21  ;;  %v13484_v62 = vcombine.high %v2014_v27, %v2014_v27  ;;  %v4403_v63 = vrot.slane %v2015_v1, 7  ;;  %v13494_v21 = vpop.f32.mrb[84].mxu1 }
 0x309   : > { %17873 = vst [vmem:[#allocation14_spill] sm:$0xff] %v13463_v40  ;;  %v7619_v25 = vmax.f32 %v7363_v49, %v13463_v40  ;;  %v8727_v0 = vcombine.low %v7617_v46, %v7618_v3  ;;  %v4406_v47 = vrot.slane %v2014_v27, 7  ;;  %v1174_v46 = vadd.f32 %v13167_v8, %v17881_v4  ;;  %v17882_v49 = vld [vmem:[#allocation24_spill] sm:$0xff]  ;;  %17883 = vst [vmem:[#allocation149_spill] sm:$0xff] %v13494_v21  ;;  %v9701_v33 = vpop.f32.mrb[85].mxu1 }
 0x30a   : > { %17877 = vst [vmem:[#allocation179_spill] sm:$0xff] %v13474_v35  ;;  %v7620_v7 = vmax.f32 %v17880_v53, %v13474_v35  ;;  %v923_v3 = vadd.f32 %v13167_v8, %v17882_v49  ;;  %v4404_v40 = vsel %vm10121_vm7, %v9325_v45, %v4403_v63  ;;  %v4405_v41 = vrot.slane %v4403_v63, 2 }
 0x30b   : > { %v8735_v14 = vrot.slane %v8727_v0, %v10104_v6  ;;  %v4408_v53 = vrot.slane %v4406_v47, 2  ;;  %v4409_v35 = vrot.slane %v13484_v62, 7  ;;  %v5849_v52 = vmax.f32 %v2007_v50, %v4404_v40 }
 0x30c   : > { %v8728_v19 = vcombine.low %v7619_v25, %v7620_v7  ;;  %v3088_v11 = vcombine.high %v1174_v46, %v1174_v46  ;;  %v3095_v0 = vrot.slane %v1174_v46, %v10104_v6  ;;  %v4407_v7 = vsel %vm10121_vm7, %v4405_v41, %v4406_v47 }
 0x30d   : > { %v2017_v25 = vcombine.high %v923_v3, %v923_v3  ;;  %v13502_v45 = vrot.slane %v923_v3, %v10104_v6  ;;  %v4410_v63 = vsel %vm10121_vm7, %v4408_v53, %v4409_v35  ;;  %v5850_v49 = vmax.f32 %v2015_v1, %v4407_v7  ;;  %v17887_v7 = vld [vmem:[#allocation128_spill] sm:$0xff] }
 0x30e   : > { %v8742_v4 = vrot.slane %v8728_v19, %v10104_v6  ;;  %v13506_v21 = vmax.f32 %v5849_v52, %v2015_v1  ;;  %v3102_v50 = vrot.slane %v3088_v11, %v10104_v6  ;;  %v5851_v33 = vmax.f32 %v2014_v27, %v4410_v63 }
 0x30f   : > { %v3103_v46 = vcombine.high %v3095_v0, %v3095_v0  ;;  %v5066_v19 = vrot.slane %v3095_v0, 7  ;;  %v13509_v43 = vmax.f32 %v5850_v49, %v2014_v27  ;;  %v5848_v27 = vmax.f32 %v13344_v10, %v13452_v58 }
 0x310   : > { %v8743_v40 = vcombine.low %v8735_v14, %v8742_v4  ;;  %v13514_v47 = vmax.f32 %v6625_v36, %v13506_v21  ;;  %v3104_v3 = vcombine.high %v3102_v50, %v3102_v50  ;;  %v13519_v1 = vmax.f32 %v5851_v33, %v13484_v62  ;;  %v17886_v4 = vld [vmem:[#allocation63_spill] sm:$0xff] }
 0x311   : > { %v5067_v11 = vsel %vm10121_vm7, %v9376_v16, %v5066_v19  ;;  %v5068_v52 = vrot.slane %v5066_v19, 2  ;;  %v5069_v14 = vrot.slane %v3103_v46, 7  ;;  %v13528_v36 = vmax.f32 %v6626_v26, %v13509_v43  ;;  %v17891_v26 = vld [vmem:[#allocation64_spill] sm:$0xff] }
 0x312   : > { %17884 = vst [vmem:[#allocation24_spill] sm:$0xff] %v13514_v47  ;;  %9144 = vst.msk [vmem:[%s12622_s19 + $0x170] sm:$0xff] %vm9097_vm8, %v8743_v40  ;;  %v17888_v63 = vmax.f32 %v17886_v4, %v17887_v7  ;;  %v17889_v16 = vmax.f32 %v13245_v30, %v13393_v60  ;;  %v5072_v33 = vrot.slane %v3102_v50, 7  ;;  %v17892_v19 = vld [vmem:[#allocation132_spill] sm:$0xff]  ;;  %v5075_v4 = vrot.slane %v3104_v3, 7 }
 0x313   : > { %17885 = vst [vmem:[#allocation180_spill] sm:$0xff] %v13528_v36  ;;  %v5070_v10 = vsel %vm10121_vm7, %v5068_v52, %v5069_v14  ;;  %v5071_v58 = vrot.slane %v5069_v14, 2  ;;  %v17893_v53 = vmax.f32 %v17891_v26, %v17892_v19  ;;  %v2031_v18 = vrot.slane %v2017_v25, %v10104_v6 }
 0x314   : > { %v13534_v49 = vmax.f32 %v17888_v63, %v13514_v47  ;;  %v13540_v40 = vmax.f32 %v17889_v16, %v13519_v1  ;;  %v6053_v63 = vmax.f32 %v13432_v23, %v5067_v11  ;;  %v6054_v57 = vmax.f32 %v3095_v0, %v5070_v10 }
 0x315   : > { %v13548_v41 = vmax.f32 %v17893_v53, %v13528_v36  ;;  %v5073_v30 = vsel %vm10121_vm7, %v5071_v58, %v5072_v33  ;;  %v5074_v16 = vrot.slane %v5072_v33, 2  ;;  %v2032_v52 = vcombine.high %v13502_v45, %v13502_v45  ;;  %v13563_v58 = vpop.f32.mrb[86].mxu0 }
 0x316   : > { %17890 = vst [vmem:[#allocation63_spill] sm:$0xff] %v13540_v40  ;;  %v6055_v42 = vmax.f32 %v3103_v46, %v5073_v30  ;;  %v6453_v26 = vmax.f32 %v6053_v63, %v3095_v0  ;;  %v6454_v53 = vmax.f32 %v6054_v57, %v3103_v46  ;;  %v13560_v23 = vcombine.high %v2031_v18, %v2031_v18  ;;  %v17896_v30 = vld [vmem:[#allocation20_spill] sm:$0xff]  ;;  %v17897_v0 = vld [vmem:[#allocation67_spill] sm:$0xff]  ;;  %v9574_v46 = vpop.f32.mrb[87].mxu0 }
 0x317   : > { %v5076_v19 = vsel %vm10121_vm7, %v5074_v16, %v5075_v4  ;;  %v4411_v11 = vrot.slane %v4409_v35, 2  ;;  %v4412_v10 = vrot.slane %v13502_v45, 7  ;;  %v17894_v36 = vmax.f32 %v13179_v54, %v13304_v55 }
 0x318   : > { %v6056_v25 = vmax.f32 %v3102_v50, %v5076_v19  ;;  %v6455_v33 = vmax.f32 %v6055_v42, %v3102_v50  ;;  %v7366_v57 = vmax.f32 %v17897_v0, %v17896_v30  ;;  %v17898_v4 = vmax.f32 %v13192_v51, %v13426_v59  ;;  %v17902_v50 = vld [vmem:[#allocation66_spill] sm:$0xff] }
 0x319   : > { %v13568_v2 = vmax.f32 %v17894_v36, %v6453_v26  ;;  %v4413_v35 = vsel %vm10121_vm7, %v4411_v11, %v4412_v10  ;;  %v9326_v16 = vrot.slane %v2032_v52, 9  ;;  %v4416_v19 = vrot.slane %v2031_v18, 7  ;;  %v17903_v36 = vld [vmem:[#allocation131_spill] sm:$0xff]  ;;  %v17907_v10 = vld [vmem:[#allocation70_spill] sm:$0xff] }
 0x31a   : > { %v13575_v63 = vmax.f32 %v17898_v4, %v6454_v53  ;;  %v6456_v42 = vmax.f32 %v6056_v25, %v3104_v3  ;;  %v17900_v54 = vmax.f32 %v13292_v38, %v13438_v48  ;;  %v17904_v26 = vmax.f32 %v17902_v50, %v17903_v36  ;;  %v17908_v25 = vld [vmem:[#allocation81_spill] sm:$0xff] }
 0x31b   : > { %17895 = vst [vmem:[#allocation64_spill] sm:$0xff] %v13568_v2  ;;  %v4419_v51 = vrot.slane %v13560_v23, 7  ;;  %v4417_v3 = vsel %vm10121_vm7, %v9326_v16, %v4416_v19  ;;  %v4418_v11 = vrot.slane %v4416_v19, 2  ;;  %v17905_v38 = vmax.f32 %v13301_v17, %v13454_v24  ;;  %v17910_v17 = vld [vmem:[#allocation71_spill] sm:$0xff] }
 0x31c   : > { %17899 = vst [vmem:[#allocation181_spill] sm:$0xff] %v13575_v63  ;;  %v13582_v55 = vmax.f32 %v17900_v54, %v6455_v33  ;;  %v7621_v46 = vmax.f32 %v17904_v26, %v13568_v2  ;;  %v7622_v53 = vmax.f32 %v7366_v57, %v13575_v63  ;;  %v17909_v33 = vmax.f32 %v17907_v10, %v17908_v25  ;;  %v17911_v24 = vld [vmem:[#allocation135_spill] sm:$0xff]  ;;  %v17932_v57 = vld [vmem:[#allocation134_spill] sm:$0xff] }
 0x31d   : > { %v13597_v48 = vmax.f32 %v17905_v38, %v6456_v42  ;;  %v5852_v54 = vmax.f32 %v13484_v62, %v4413_v35  ;;  %v5853_v26 = vmax.f32 %v2032_v52, %v4417_v3  ;;  %v4420_v16 = vsel %vm10121_vm7, %v4418_v11, %v4419_v51  ;;  %v17913_v52 = vld [vmem:[#allocation60_spill] sm:$0xff]  ;;  %v17914_v35 = vld [vmem:[#allocation19_spill] sm:$0xff] }
 0x31e   : > { %17901 = vst [vmem:[#allocation182_spill] sm:$0xff] %v13582_v55  ;;  %v7623_v4 = vmax.f32 %v17909_v33, %v13582_v55  ;;  %v8744_v59 = vcombine.low %v7621_v46, %v7622_v53  ;;  %v13609_v19 = vmax.f32 %v5848_v27, %v13364_v56  ;;  %v17912_v42 = vmax.f32 %v17910_v17, %v17911_v24  ;;  %v17918_v11 = vld [vmem:[#allocation156_spill] sm:$0xff] }
 0x31f   : > { %17906 = vst [vmem:[#allocation183_spill] sm:$0xff] %v13597_v48  ;;  %v5854_v14 = vmax.f32 %v2031_v18, %v4420_v16  ;;  %v13616_v33 = vmax.f32 %v5852_v54, %v13502_v45  ;;  %v6253_v62 = vmax.f32 %v5853_v26, %v2031_v18  ;;  %v17915_v46 = vmax.f32 %v17913_v52, %v17914_v35  ;;  %v17974_v35 = vld [vmem:[#allocation145_spill] sm:$0xff] }
 0x320   : > { %v7624_v38 = vmax.f32 %v17912_v42, %v13597_v48  ;;  %v6628_v3 = vmax.f32 %v13252_v31, %v13609_v19  ;;  %v17916_v56 = vmax.f32 %v13107_v22, %v13252_v31  ;;  %v926_v16 = vadd.f32 %v13167_v8, %v17918_v11  ;;  %v13651_v11 = vpop.f32.mrb[86].mxu1 }
 0x321   : > { %v7455_v53 = vmax.f32 %v17915_v46, %v13410_v20  ;;  %v6254_v18 = vmax.f32 %v5854_v14, %v13560_v23  ;;  %v17919_v26 = vmax.f32 %v13366_v37, %v13506_v21  ;;  %v17921_v22 = vcombine.low %v13416_v61, %v13422_v34  ;;  %v17928_v34 = vld [vmem:[#allocation65_spill] sm:$0xff] }
 0x322   : > { %v13628_v27 = vmax.f32 %v17916_v56, %v13609_v19  ;;  %v8745_v45 = vcombine.low %v7623_v4, %v7624_v38  ;;  %v13645_v52 = vmax.f32 %v6628_v3, %v13616_v33  ;;  %v17923_v4 = vld [vmem:[#allocation69_spill] sm:$0xff]  ;;  %v2034_v56 = vcombine.high %v926_v16, %v926_v16 }
 0x323   : > { %v13638_v42 = vmax.f32 %v17919_v26, %v6253_v62  ;;  %v8038_v31 = vrot.slane %v17921_v22, %v10104_v6  ;;  %v17924_v38 = vld [vmem:[#allocation129_spill] sm:$0xff]  ;;  %v8752_v37 = vrot.slane %v8744_v59, %v10104_v6  ;;  %v17926_v62 = vmax.f32 %v13376_v15, %v13509_v43 }
 0x324   : > { %17917 = vst [vmem:[#allocation60_spill] sm:$0xff] %v13628_v27  ;;  %17922 = vst [vmem:[#allocation184_spill] sm:$0xff] %v13645_v52  ;;  %v17925_v14 = vmax.f32 %v17923_v4, %v17924_v38  ;;  %v8759_v21 = vrot.slane %v8745_v45, %v10104_v6  ;;  %v17929_v3 = vld [vmem:[#allocation133_spill] sm:$0xff]  ;;  %v9702_v4 = vpop.f32.mrb[87].mxu1  ;;  %v17935_v45 = vld [vmem:[#allocation136_spill] sm:$0xff]  ;;  %v2041_v15 = vrot.slane %v926_v16, %v10104_v6  ;;  %v4421_v24 = vrot.slane %v4419_v51, 2 }
 0x325   : > { %17920 = vst [vmem:[#allocation156_spill] sm:$0xff] %v13638_v42  ;;  %v13658_v61 = vmax.f32 %v17926_v62, %v6254_v18  ;;  %v17930_v26 = vmax.f32 %v17928_v34, %v17929_v3  ;;  %v17934_v59 = vld [vmem:[#allocation73_spill] sm:$0xff]  ;;  %v17937_v62 = vld [vmem:[#allocation74_spill] sm:$0xff]  ;;  %v13678_v4 = vrot.slane %v2034_v56, %v10104_v6  ;;  %v6631_v51 = vmax.f32 %v13393_v60, %v13519_v1 }
 0x326   : > { %v7456_v46 = vmax.f32 %v17925_v14, %v13628_v27  ;;  %v17931_v14 = vld [vmem:[#allocation72_spill] sm:$0xff]  ;;  %v17936_v10 = vmax.f32 %v17934_v59, %v17935_v45  ;;  %v8760_v18 = vcombine.low %v8752_v37, %v8759_v21  ;;  %v17938_v34 = vld [vmem:[#allocation137_spill] sm:$0xff]  ;;  %v2049_v48 = vcombine.high %v2041_v15, %v2041_v15 }
 0x327   : > { %17927 = vst [vmem:[#allocation69_spill] sm:$0xff] %v13658_v61  ;;  %v7459_v22 = vmax.f32 %v17930_v26, %v13540_v40  ;;  %v17933_v54 = vmax.f32 %v17931_v14, %v17932_v57  ;;  %v17939_v50 = vmax.f32 %v17937_v62, %v17938_v34  ;;  %v4422_v25 = vrot.slane %v2041_v15, 7 }
 0x328   : > { %v7461_v0 = vmax.f32 %v17936_v10, %v13638_v42  ;;  %v8031_v43 = vcombine.low %v7455_v53, %v7456_v46  ;;  %v17940_v10 = vcombine.low %v13534_v49, %v13548_v41  ;;  %9145 = vst.msk [vmem:[%s12622_s19 + $0x178] sm:$0xff] %vm9097_vm8, %v8760_v18  ;;  %v4425_v37 = vrot.slane %v2049_v48, 7 }
 0x329   : > { %v7460_v17 = vmax.f32 %v17933_v54, %v13645_v52  ;;  %v7462_v26 = vmax.f32 %v17939_v50, %v13658_v61  ;;  %v13689_v50 = vcombine.high %v13678_v4, %v13678_v4  ;;  %v4423_v56 = vsel %vm10121_vm7, %v4421_v24, %v4422_v25 }
 0x32a   : > { %v8045_v54 = vrot.slane %v8031_v43, %v10104_v6  ;;  %v8055_v53 = vrot.slane %v17940_v10, %v10104_v6  ;;  %v4424_v41 = vrot.slane %v4422_v25, 2  ;;  %v5855_v21 = vmax.f32 %v13560_v23, %v4423_v56  ;;  %v13719_v10 = vpop.f32.mrb[88].mxu0 }
 0x32b   : > { %v8048_v14 = vcombine.low %v7459_v22, %v7460_v17  ;;  %v8064_v16 = vcombine.low %v7461_v0, %v7462_v26  ;;  %v17942_v22 = vld [vmem:[#allocation158_spill] sm:$0xff]  ;;  %v4429_v23 = vrot.slane %v13689_v50, 7  ;;  %v17975_v20 = vmax.f32 %v17973_v29, %v17974_v35 }
 0x32c   : > { %v8046_v46 = vcombine.low %v8038_v31, %v8045_v54  ;;  %v17941_v31 = vld [vmem:[#allocation157_spill] sm:$0xff]  ;;  %v1182_v25 = vadd.f32 %v13167_v8, %v17942_v22  ;;  %v4426_v43 = vsel %vm10121_vm7, %v4424_v41, %v4425_v37  ;;  %v6255_v18 = vmax.f32 %v5855_v21, %v2041_v15  ;;  %v9577_v41 = vpop.f32.mrb[89].mxu0 }
 0x32d   : > { %v8062_v17 = vrot.slane %v8048_v14, %v10104_v6  ;;  %v1179_v24 = vadd.f32 %v13167_v8, %v17941_v31  ;;  %v5856_v26 = vmax.f32 %v2041_v15, %v4426_v43  ;;  %v4431_v7 = vrot.slane %v4429_v23, 2 }
 0x32e   : > { %9103 = vst.msk [vmem:[%s12622_s19 + $0x28] sm:$0xff] %vm9097_vm8, %v8046_v46  ;;  %v13722_v46 = vmax.f32 %v6631_v51, %v6255_v18  ;;  %v3129_v56 = vrot.slane %v1182_v25, %v10104_v6  ;;  %v17947_v18 = vld [vmem:[#allocation76_spill] sm:$0xff] }
 0x32f   : > { %v8063_v1 = vcombine.low %v8055_v53, %v8062_v17  ;;  %v3105_v54 = vcombine.high %v1179_v24, %v1179_v24  ;;  %v3112_v14 = vrot.slane %v1179_v24, %v10104_v6  ;;  %v9327_v53 = vrot.slane %v13678_v4, 9 }
 0x330   : > { %17943 = vst [vmem:[#allocation65_spill] sm:$0xff] %v13722_v46  ;;  %v3122_v17 = vcombine.high %v1182_v25, %v1182_v25  ;;  %v6256_v37 = vmax.f32 %v5856_v26, %v2049_v48  ;;  %v8072_v24 = vrot.slane %v8064_v16, %v10104_v6  ;;  %v17945_v25 = vmax.f32 %v13609_v19, %v13616_v33  ;;  %v17948_v26 = vld [vmem:[#allocation139_spill] sm:$0xff]  ;;  %v17950_v19 = vld [vmem:[#allocation77_spill] sm:$0xff]  ;;  %v17951_v33 = vld [vmem:[#allocation138_spill] sm:$0xff] }
 0x331   : > { %9104 = vst.msk [vmem:[%s12622_s19 + $0x30] sm:$0xff] %vm9097_vm8, %v8063_v1  ;;  %v13726_v21 = vrot.slane %v3105_v54, %v10104_v6  ;;  %v3120_v31 = vcombine.high %v3112_v14, %v3112_v14  ;;  %v17944_v1 = vld [vmem:[#allocation30_spill] sm:$0xff]  ;;  %v13733_v22 = vsel %vm10121_vm7, %v9327_v53, %v4429_v23  ;;  %v9377_v51 = vrot.slane %v3112_v14, 9 }
 0x332   : > { %v931_v15 = vadd.f32 %v13167_v8, %v17944_v1  ;;  %v3136_v43 = vrot.slane %v3122_v17, %v10104_v6  ;;  %v13739_v48 = vmax.f32 %v17945_v25, %v6256_v37  ;;  %v17949_v54 = vmax.f32 %v17947_v18, %v17948_v26 }
 0x333   : > { %v13747_v16 = vcombine.high %v13726_v21, %v13726_v21  ;;  %v5079_v1 = vrot.slane %v3120_v31, 7  ;;  %v5082_v53 = vrot.slane %v13726_v21, 7  ;;  %v3137_v60 = vcombine.high %v3129_v56, %v3129_v56 }
 0x334   : > { %17946 = vst [vmem:[#allocation72_spill] sm:$0xff] %v13739_v48  ;;  %v7463_v41 = vmax.f32 %v17949_v54, %v13722_v46  ;;  %v13750_v59 = vcombine.high %v3136_v43, %v3136_v43  ;;  %v5092_v17 = vrot.slane %v3136_v43, 7  ;;  %v17952_v37 = vmax.f32 %v17950_v19, %v17951_v33 }
 0x335   : > { %v5080_v18 = vsel %vm10121_vm7, %v9377_v51, %v5079_v1  ;;  %v5081_v54 = vrot.slane %v5079_v1, 2  ;;  %v2051_v62 = vcombine.high %v931_v15, %v931_v15  ;;  %v5085_v0 = vrot.slane %v13747_v16, 7 }
 0x336   : > { %v7464_v25 = vmax.f32 %v17952_v37, %v13739_v48  ;;  %v6057_v49 = vmax.f32 %v3112_v14, %v5080_v18  ;;  %v5088_v34 = vrot.slane %v3129_v56, 7  ;;  %v9378_v61 = vrot.slane %v3137_v60, 9 }
 0x337   : > { %v5083_v3 = vsel %vm10121_vm7, %v5081_v54, %v5082_v53  ;;  %v5094_v40 = vrot.slane %v5092_v17, 2  ;;  %v5095_v47 = vrot.slane %v13750_v59, 7  ;;  %v5084_v19 = vrot.slane %v5082_v53, 2 }
 0x338   : > { %v8065_v55 = vcombine.low %v7463_v41, %v7464_v25  ;;  %v6058_v37 = vmax.f32 %v3120_v31, %v5083_v3  ;;  %v5087_v63 = vrot.slane %v5085_v0, 2  ;;  %v13763_v1 = vmax.f32 %v6057_v49, %v3120_v31  ;;  %v13781_v31 = vpop.f32.mrb[88].mxu1 }
 0x339   : > { %v5093_v14 = vsel %vm10121_vm7, %v9378_v61, %v5092_v17  ;;  %v5096_v41 = vsel %vm10121_vm7, %v5094_v40, %v5095_v47  ;;  %v13776_v49 = vrot.slane %v931_v15, %v10104_v6  ;;  %v13779_v61 = vrot.slane %v2051_v62, %v10104_v6 }
 0x33a   : > { %v8079_v51 = vrot.slane %v8065_v55, %v10104_v6  ;;  %v13770_v25 = vmax.f32 %v6058_v37, %v13726_v21  ;;  %v5089_v23 = vsel %vm10121_vm7, %v5087_v63, %v5088_v34  ;;  %v6061_v53 = vmax.f32 %v3137_v60, %v5093_v14  ;;  %v17953_v34 = vld [vmem:[#allocation162_spill] sm:$0xff] }
 0x33b   : > { %v6062_v3 = vmax.f32 %v3136_v43, %v5096_v41  ;;  %v6060_v55 = vmax.f32 %v13747_v16, %v5089_v23  ;;  %v1187_v60 = vadd.f32 %v13167_v8, %v17953_v34  ;;  %v5857_v15 = vmax.f32 %v13678_v4, %v13733_v22  ;;  %v17954_v34 = vld [vmem:[#allocation167_spill] sm:$0xff] }
 0x33c   : > { %v8080_v18 = vcombine.low %v8072_v24, %v8079_v51  ;;  %v13785_v17 = vmax.f32 %v6061_v53, %v3136_v43  ;;  %v9705_v24 = vpop.f32.mrb[89].mxu1  ;;  %v13800_v54 = vcombine.high %v13776_v49, %v13776_v49  ;;  %v4432_v43 = vrot.slane %v13776_v49, 7 }
 0x33d   : > { %v13788_v63 = vmax.f32 %v6062_v3, %v13750_v59  ;;  %v13796_v62 = vmax.f32 %v6060_v55, %v3129_v56  ;;  %v3139_v4 = vcombine.high %v1187_v60, %v1187_v60  ;;  %v5086_v56 = vsel %vm10121_vm7, %v5084_v19, %v5085_v0 }
 0x33e   : > { %9105 = vst.msk [vmem:[%s12622_s19 + $0x38] sm:$0xff] %vm9097_vm8, %v8080_v18  ;;  %v6793_v51 = vmax.f32 %v13763_v1, %v13785_v17  ;;  %v13813_v22 = vcombine.high %v13779_v61, %v13779_v61  ;;  %v4433_v41 = vsel %vm10121_vm7, %v4431_v7, %v4432_v43  ;;  %v4434_v23 = vrot.slane %v4432_v43, 2 }
 0x33f   : > { %v4435_v53 = vrot.slane %v13800_v54, 7  ;;  %v5858_v3 = vmax.f32 %v13689_v50, %v4433_v41  ;;  %v3146_v1 = vrot.slane %v1187_v60, %v10104_v6  ;;  %v3153_v18 = vrot.slane %v3139_v4, %v10104_v6  ;;  %v13834_v60 = vpop.f32.mrb[90].mxu0 }
 0x340   : > { %v13822_v55 = vmax.f32 %v5857_v15, %v13689_v50  ;;  %v5097_v19 = vrot.slane %v5095_v47, 2  ;;  %v934_v24 = vadd.f32 %v13167_v8, %v17954_v34  ;;  %v6059_v7 = vmax.f32 %v13726_v21, %v5086_v56  ;;  %17955 = vst [vmem:[#allocation73_spill] sm:$0xff] %v13834_v60  ;;  %v9578_v0 = vpop.f32.mrb[91].mxu0  ;;  %v18007_v60 = vld [vmem:[#allocation68_spill] sm:$0xff] }
 0x341   : > { %v13830_v43 = vmax.f32 %v5858_v3, %v13776_v49  ;;  %v3154_v41 = vcombine.high %v3146_v1, %v3146_v1  ;;  %v13832_v40 = vcombine.high %v3153_v18, %v3153_v18  ;;  %v4438_v50 = vrot.slane %v13779_v61, 7 }
 0x342   : > { %v5098_v15 = vrot.slane %v3146_v1, 7  ;;  %v9379_v4 = vrot.slane %v3153_v18, 9  ;;  %v2068_v37 = vcombine.high %v934_v24, %v934_v24  ;;  %v4436_v47 = vsel %vm10121_vm7, %v4434_v23, %v4435_v53 }
 0x343   : > { %v9328_v34 = vrot.slane %v13813_v22, 9  ;;  %v5101_v21 = vrot.slane %v3154_v41, 7  ;;  %v5105_v56 = vrot.slane %v13832_v40, 7  ;;  %v2075_v46 = vrot.slane %v934_v24, %v10104_v6 }
 0x344   : > { %v5099_v3 = vsel %vm10121_vm7, %v5097_v19, %v5098_v15  ;;  %v5100_v14 = vrot.slane %v5098_v15, 2  ;;  %v13845_v26 = vrot.slane %v2068_v37, %v10104_v6  ;;  %v4437_v42 = vrot.slane %v4435_v53, 2  ;;  %v17956_v15 = vld [vmem:[#allocation168_spill] sm:$0xff] }
 0x345   : > { %v5106_v0 = vsel %vm10121_vm7, %v9379_v4, %v5105_v56  ;;  %v6063_v23 = vmax.f32 %v13750_v59, %v5099_v3  ;;  %v13851_v45 = vmax.f32 %v6059_v7, %v13747_v16  ;;  %v2083_v19 = vcombine.high %v2075_v46, %v2075_v46 }
 0x346   : > { %v5102_v52 = vsel %vm10121_vm7, %v5100_v14, %v5101_v21  ;;  %v6065_v57 = vmax.f32 %v3153_v18, %v5106_v0  ;;  %v1190_v24 = vadd.f32 %v13167_v8, %v17956_v15  ;;  %v5859_v37 = vmax.f32 %v13776_v49, %v4436_v47 }
 0x347   : > { %v6064_v30 = vmax.f32 %v3146_v1, %v5102_v52  ;;  %v13858_v53 = vmax.f32 %v6063_v23, %v3146_v1  ;;  %v4442_v36 = vrot.slane %v2075_v46, 7  ;;  %v13865_v59 = vcombine.high %v13845_v26, %v13845_v26  ;;  %v13891_v23 = vpop.f32.mrb[90].mxu1 }
 0x348   : > { %v13861_v4 = vmax.f32 %v6065_v57, %v13832_v40  ;;  %v4445_v16 = vrot.slane %v2083_v19, 7  ;;  %v3156_v14 = vcombine.high %v1190_v24, %v1190_v24  ;;  %v4448_v21 = vrot.slane %v13845_v26, 7  ;;  %17958 = vst [vmem:[#allocation157_spill] sm:$0xff] %v13891_v23 }
 0x349   : > { %v13867_v18 = vmax.f32 %v6064_v30, %v3154_v41  ;;  %v6795_v7 = vmax.f32 %v13851_v45, %v13858_v53  ;;  %v4443_v52 = vsel %vm10121_vm7, %v9328_v34, %v4442_v36  ;;  %v4444_v49 = vrot.slane %v4442_v36, 2 }
 0x34a   : > { %v13876_v57 = vmax.f32 %v6793_v51, %v13861_v4  ;;  %v4447_v47 = vrot.slane %v4445_v16, 2  ;;  %v5861_v45 = vmax.f32 %v13813_v22, %v4443_v52  ;;  %v3163_v34 = vrot.slane %v1190_v24, %v10104_v6 }
 0x34b   : > { %v6796_v30 = vmax.f32 %v13796_v62, %v13867_v18  ;;  %v4446_v41 = vsel %vm10121_vm7, %v4444_v49, %v4445_v16  ;;  %v13887_v36 = vsel %vm10121_vm7, %v4437_v42, %v4438_v50  ;;  %v5107_v3 = vrot.slane %v5105_v56, 2  ;;  %v9706_v16 = vpop.f32.mrb[91].mxu1 }
 0x34c   : > { %17957 = vst [vmem:[#allocation74_spill] sm:$0xff] %v13876_v57  ;;  %v4449_v51 = vsel %vm10121_vm7, %v4447_v47, %v4448_v21  ;;  %v5862_v0 = vmax.f32 %v2075_v46, %v4446_v41  ;;  %v4451_v62 = vrot.slane %v13865_v59, 7  ;;  %v13894_v1 = vmax.f32 %v5861_v45, %v2075_v46  ;;  %v13911_v45 = vpop.f32.mrb[92].mxu0 }
 0x34d   : > { %v5863_v15 = vmax.f32 %v2083_v19, %v4449_v51  ;;  %v3170_v22 = vrot.slane %v3156_v14, %v10104_v6  ;;  %v4450_v24 = vrot.slane %v4448_v21, 2  ;;  %v3171_v42 = vcombine.high %v3163_v34, %v3163_v34  ;;  %17959 = vst [vmem:[#allocation158_spill] sm:$0xff] %v13911_v45  ;;  %v17960_v51 = vld [vmem:[#allocation79_spill] sm:$0xff]  ;;  %v9581_v2 = vpop.f32.mrb[93].mxu0 }
 0x34e   : > { %v13897_v52 = vmax.f32 %v5862_v0, %v2083_v19  ;;  %v5108_v50 = vrot.slane %v3163_v34, 7  ;;  %v13900_v56 = vmax.f32 %v5859_v37, %v13800_v54  ;;  %v17961_v0 = vld [vmem:[#allocation142_spill] sm:$0xff]  ;;  %v14050_v45 = vpop.f32.mrb[94].mxu0 }
 0x34f   : > { %v13903_v49 = vmax.f32 %v5863_v15, %v13845_v26  ;;  %v5114_v41 = vrot.slane %v3170_v22, 7  ;;  %v5111_v21 = vrot.slane %v3171_v42, 7  ;;  %v17962_v15 = vmax.f32 %v17960_v51, %v17961_v0  ;;  %v17963_v37 = vld [vmem:[#allocation46_spill] sm:$0xff]  ;;  %v17965_v0 = vld [vmem:[#allocation23_spill] sm:$0xff] }
 0x350   : > { %v5109_v14 = vsel %vm10121_vm7, %v5107_v3, %v5108_v50  ;;  %v5110_v19 = vrot.slane %v5108_v50, 2  ;;  %v13924_v3 = vsel %vm10121_vm7, %v4450_v24, %v4451_v62  ;;  %v939_v44 = vadd.f32 %v13167_v8, %v17963_v37 }
 0x351   : > { %v7625_v16 = vmax.f32 %v17962_v15, %v13876_v57  ;;  %v6066_v46 = vmax.f32 %v13832_v40, %v5109_v14  ;;  %v5113_v39 = vrot.slane %v5111_v21, 2  ;;  %v17964_v15 = vld [vmem:[#allocation144_spill] sm:$0xff]  ;;  %v17966_v57 = vld [vmem:[#allocation173_spill] sm:$0xff]  ;;  %v13936_v40 = vcombine.high %v3170_v22, %v3170_v22 }
 0x352   : > { %v5112_v50 = vsel %vm10121_vm7, %v5110_v19, %v5111_v21  ;;  %v7370_v47 = vmax.f32 %v17965_v0, %v17964_v15  ;;  %v1195_v2 = vadd.f32 %v13167_v8, %v17966_v57  ;;  %v2085_v24 = vcombine.high %v939_v44, %v939_v44  ;;  %v17969_v8 = vld [vmem:[#allocation143_spill] sm:$0xff]  ;;  %v17970_v57 = vld [vmem:[#allocation28_spill] sm:$0xff]  ;;  %17991 = vst [vmem:[#allocation173_spill] sm:$0xff] %v14050_v45 }
 0x353   : > { %v6067_v27 = vmax.f32 %v3163_v34, %v5112_v50  ;;  %v13930_v51 = vmax.f32 %v6066_v46, %v3163_v34  ;;  %v5115_v62 = vsel %vm10121_vm7, %v5113_v39, %v5114_v41  ;;  %v2092_v14 = vrot.slane %v939_v44, %v10104_v6 }
 0x354   : > { %v6068_v19 = vmax.f32 %v3171_v42, %v5115_v62  ;;  %v17967_v46 = vmax.f32 %v13770_v25, %v13788_v63  ;;  %v7371_v50 = vmax.f32 %v17970_v57, %v17969_v8  ;;  %v2099_v39 = vrot.slane %v2085_v24, %v10104_v6  ;;  %v18024_v8 = vld [vmem:[#allocation89_spill] sm:$0xff] }
 0x355   : > { %v13941_v21 = vmax.f32 %v6067_v27, %v3171_v42  ;;  %v2100_v41 = vcombine.high %v2092_v14, %v2092_v14  ;;  %v9329_v0 = vrot.slane %v2092_v14, 9  ;;  %v3173_v62 = vcombine.high %v1195_v2, %v1195_v2 }
 0x356   : > { %v13949_v37 = vmax.f32 %v17967_v46, %v13930_v51  ;;  %v13954_v44 = vmax.f32 %v6068_v19, %v3170_v22  ;;  %v13962_v46 = vcombine.high %v2099_v39, %v2099_v39  ;;  %v4458_v38 = vrot.slane %v2099_v39, 7 }
 0x357   : > { %v13959_v42 = vmax.f32 %v6795_v7, %v13941_v21  ;;  %v4455_v34 = vrot.slane %v2100_v41, 7  ;;  %v9380_v57 = vrot.slane %v13936_v40, 9  ;;  %v3180_v24 = vrot.slane %v1195_v2, %v10104_v6 }
 0x358   : > { %17968 = vst [vmem:[#allocation30_spill] sm:$0xff] %v13949_v37  ;;  %v7626_v25 = vmax.f32 %v7370_v47, %v13949_v37  ;;  %v13968_v22 = vmax.f32 %v6796_v30, %v13954_v44  ;;  %v4460_v47 = vrot.slane %v4458_v38, 2  ;;  %v4461_v12 = vrot.slane %v13962_v46, 7  ;;  %v18025_v37 = vld [vmem:[#allocation153_spill] sm:$0xff] }
 0x359   : > { %17971 = vst [vmem:[#allocation76_spill] sm:$0xff] %v13959_v42  ;;  %v7627_v19 = vmax.f32 %v7371_v50, %v13959_v42  ;;  %v4456_v7 = vsel %vm10121_vm7, %v9329_v0, %v4455_v34  ;;  %v4457_v32 = vrot.slane %v4455_v34, 2  ;;  %v3187_v50 = vrot.slane %v3173_v62, %v10104_v6  ;;  %v13986_v0 = vld [vmem:[%s16838_s2] ss:$0 sm:$0xff] }
 0x35a   : > { %17972 = vst [vmem:[#allocation77_spill] sm:$0xff] %v13968_v22  ;;  %v8761_v27 = vcombine.low %v7625_v16, %v7626_v25  ;;  %v7628_v5 = vmax.f32 %v17975_v20, %v13968_v22  ;;  %v5865_v9 = vmax.f32 %v2092_v14, %v4456_v7  ;;  %v17976_v34 = vld [vmem:[#allocation106_spill] sm:$0xff]  ;;  %v13990_v25 = vpop.f32.mrb[92].mxu1  ;;  %v4462_v2 = vsel %vm10121_vm7, %v4460_v47, %v4461_v12 }
 0x35b   : > { %v4459_v16 = vsel %vm10121_vm7, %v4457_v32, %v4458_v38  ;;  %v942_v20 = vadd.f32 %v13986_v0, %v17976_v34  ;;  %17977 = vst [vmem:[#allocation162_spill] sm:$0xff] %v13990_v25  ;;  %v9709_v32 = vpop.f32.mrb[93].mxu1  ;;  %v5867_v38 = vmax.f32 %v2099_v39, %v4462_v2  ;;  %v3188_v62 = vcombine.high %v3180_v24, %v3180_v24  ;;  %v17990_v25 = vld [vmem:[#allocation86_spill] sm:$0xff] }
 0x35c   : > { %v8769_v30 = vrot.slane %v8761_v27, %v10104_v6  ;;  %v8762_v14 = vcombine.low %v7627_v19, %v7628_v5  ;;  %v5866_v27 = vmax.f32 %v2100_v41, %v4459_v16  ;;  %v13994_v7 = vmax.f32 %v5865_v9, %v2100_v41 }
 0x35d   : > { %v3189_v29 = vcombine.high %v3187_v50, %v3187_v50  ;;  %v5118_v35 = vrot.slane %v3180_v24, 7  ;;  %v17978_v5 = vmax.f32 %v13822_v55, %v13894_v1  ;;  %v14008_v9 = vmax.f32 %v5867_v38, %v13962_v46 }
 0x35e   : > { %v8776_v22 = vrot.slane %v8762_v14, %v10104_v6  ;;  %v13997_v13 = vmax.f32 %v5866_v27, %v2099_v39  ;;  %v5121_v16 = vrot.slane %v3188_v62, 7  ;;  %v17980_v39 = vmax.f32 %v13800_v54, %v13887_v36 }
 0x35f   : > { %v14005_v19 = vmax.f32 %v17978_v5, %v13994_v7  ;;  %v5119_v41 = vsel %vm10121_vm7, %v9380_v57, %v5118_v35  ;;  %v5120_v47 = vrot.slane %v5118_v35, 2  ;;  %v17981_v27 = vmax.f32 %v13830_v43, %v13897_v52 }
 0x360   : > { %v14016_v14 = vmax.f32 %v17980_v39, %v13779_v61  ;;  %v8777_v2 = vcombine.low %v8769_v30, %v8776_v22  ;;  %v5864_v35 = vmax.f32 %v13845_v26, %v13924_v3  ;;  %v17983_v57 = vmax.f32 %v13900_v56, %v13903_v49  ;;  %v17985_v22 = vld [vmem:[#allocation105_spill] sm:$0xff]  ;;  %v17986_v30 = vld [vmem:[#allocation82_spill] sm:$0xff] }
 0x361   : > { %17979 = vst [vmem:[#allocation167_spill] sm:$0xff] %v14005_v19  ;;  %v14024_v32 = vmax.f32 %v17981_v27, %v13997_v13  ;;  %v5122_v61 = vsel %vm10121_vm7, %v5120_v47, %v5121_v16  ;;  %v5123_v36 = vrot.slane %v5121_v16, 2  ;;  %v7209_v43 = vmax.f32 %v17986_v30, %v17985_v22  ;;  %v17987_v3 = vld [vmem:[#allocation146_spill] sm:$0xff]  ;;  %v17988_v27 = vld [vmem:[#allocation85_spill] sm:$0xff] }
 0x362   : > { %v14032_v54 = vmax.f32 %v17983_v57, %v14008_v9  ;;  %9146 = vst.msk [vmem:[%s12622_s19 + $0x180] sm:$0xff] %vm9097_vm8, %v8777_v2  ;;  %v5124_v38 = vrot.slane %v3187_v50, 7  ;;  %v5127_v5 = vrot.slane %v3189_v29, 7  ;;  %v6069_v39 = vmax.f32 %v13936_v40, %v5119_v41  ;;  %v17989_v2 = vld [vmem:[#allocation148_spill] sm:$0xff] }
 0x363   : > { %17982 = vst [vmem:[#allocation168_spill] sm:$0xff] %v14024_v32  ;;  %v6070_v26 = vmax.f32 %v3180_v24, %v5122_v61  ;;  %v7373_v55 = vmax.f32 %v17988_v27, %v17987_v3  ;;  %v2102_v56 = vcombine.high %v942_v20, %v942_v20  ;;  %v2109_v57 = vrot.slane %v942_v20, %v10104_v6  ;;  %v9582_v27 = vpop.f32.mrb[95].mxu0 }
 0x364   : > { %17984 = vst [vmem:[#allocation46_spill] sm:$0xff] %v14032_v54  ;;  %v5125_v47 = vsel %vm10121_vm7, %v5123_v36, %v5124_v38  ;;  %v5126_v16 = vrot.slane %v5124_v38, 2  ;;  %v14046_v34 = vmax.f32 %v6069_v39, %v3180_v24  ;;  %v7374_v30 = vmax.f32 %v17990_v25, %v17989_v2 }
 0x365   : > { %v6071_v23 = vmax.f32 %v3188_v62, %v5125_v47  ;;  %v14052_v40 = vmax.f32 %v6070_v26, %v3188_v62  ;;  %v2116_v41 = vrot.slane %v2102_v56, %v10104_v6  ;;  %v4463_v61 = vrot.slane %v4461_v12, 2  ;;  %v17996_v56 = vld [vmem:[#allocation83_spill] sm:$0xff] }
 0x366   : > { %v5128_v20 = vsel %vm10121_vm7, %v5126_v16, %v5127_v5  ;;  %v17992_v24 = vmax.f32 %v13785_v17, %v13861_v4  ;;  %v2117_v39 = vcombine.high %v2109_v57, %v2109_v57  ;;  %v17994_v5 = vmax.f32 %v13788_v63, %v13930_v51  ;;  %v17997_v17 = vld [vmem:[#allocation147_spill] sm:$0xff] }
 0x367   : > { %v6072_v47 = vmax.f32 %v3187_v50, %v5128_v20  ;;  %v14065_v62 = vmax.f32 %v6071_v23, %v3187_v50  ;;  %v7465_v27 = vmax.f32 %v7209_v43, %v14005_v19  ;;  %v17998_v16 = vmax.f32 %v17996_v56, %v17997_v17  ;;  %v18003_v20 = vld [vmem:[#allocation87_spill] sm:$0xff] }
 0x368   : > { %v14063_v38 = vmax.f32 %v17992_v24, %v14046_v34  ;;  %v14073_v26 = vmax.f32 %v17994_v5, %v14052_v40  ;;  %v14080_v36 = vcombine.high %v2116_v41, %v2116_v41  ;;  %v4464_v23 = vrot.slane %v2109_v57, 7 }
 0x369   : > { %v7466_v24 = vmax.f32 %v17998_v16, %v14024_v32  ;;  %v14082_v50 = vmax.f32 %v6072_v47, %v3189_v29  ;;  %v17999_v63 = vmax.f32 %v13858_v53, %v13941_v21  ;;  %v9330_v16 = vrot.slane %v2117_v39, 9  ;;  %v18004_v53 = vld [vmem:[#allocation15_spill] sm:$0xff] }
 0x36a   : > { %17993 = vst [vmem:[#allocation106_spill] sm:$0xff] %v14063_v38  ;;  %17995 = vst [vmem:[#allocation82_spill] sm:$0xff] %v14073_v26  ;;  %v7629_v43 = vmax.f32 %v7373_v55, %v14063_v38  ;;  %v7630_v12 = vmax.f32 %v7374_v30, %v14073_v26  ;;  %v4465_v56 = vsel %vm10121_vm7, %v4463_v61, %v4464_v23  ;;  %v4468_v25 = vrot.slane %v2116_v41, 7 }
 0x36b   : > { %v14090_v5 = vmax.f32 %v17999_v63, %v14065_v62  ;;  %v18001_v29 = vmax.f32 %v13867_v18, %v13954_v44  ;;  %v18005_v63 = vmax.f32 %v18003_v20, %v18004_v53  ;;  %v4471_v55 = vrot.slane %v14080_v36, 7 }
 0x36c   : > { %v5868_v30 = vmax.f32 %v13962_v46, %v4465_v56  ;;  %v8778_v32 = vcombine.low %v7629_v43, %v7630_v12  ;;  %v4469_v61 = vsel %vm10121_vm7, %v9330_v16, %v4468_v25  ;;  %v4470_v23 = vrot.slane %v4468_v25, 2  ;;  %v14127_v56 = vpop.f32.mrb[94].mxu1 }
 0x36d   : > { %18000 = vst [vmem:[#allocation83_spill] sm:$0xff] %v14090_v5  ;;  %v14100_v47 = vmax.f32 %v18001_v29, %v14082_v50  ;;  %v7631_v17 = vmax.f32 %v18005_v63, %v14090_v5  ;;  %v14111_v45 = vmax.f32 %v5864_v35, %v13865_v59  ;;  %v18006_v29 = vld [vmem:[#allocation88_spill] sm:$0xff]  ;;  %v5869_v53 = vmax.f32 %v2117_v39, %v4469_v61  ;;  %v18009_v59 = vld [vmem:[#allocation13_spill] sm:$0xff]  ;;  %v9710_v39 = vpop.f32.mrb[95].mxu1 }
 0x36e   : > { %v18008_v20 = vmax.f32 %v18006_v29, %v18007_v60  ;;  %v14119_v5 = vmax.f32 %v5868_v30, %v2109_v57  ;;  %v8081_v46 = vcombine.low %v7465_v27, %v7466_v24  ;;  %v4472_v12 = vsel %vm10121_vm7, %v4470_v23, %v4471_v55  ;;  %v18010_v35 = vld [vmem:[#allocation37_spill] sm:$0xff] }
 0x36f   : > { %18002 = vst [vmem:[#allocation185_spill] sm:$0xff] %v14100_v47  ;;  %v6636_v25 = vmax.f32 %v14016_v14, %v14111_v45  ;;  %v7212_v43 = vmax.f32 %v18010_v35, %v18009_v59  ;;  %v5870_v18 = vmax.f32 %v2116_v41, %v4472_v12  ;;  %v14129_v48 = vmax.f32 %v5869_v53, %v2116_v41  ;;  %v18013_v30 = vld [vmem:[#allocation57_spill] sm:$0xff] }
 0x370   : > { %v7632_v63 = vmax.f32 %v18008_v20, %v14100_v47  ;;  %v8786_v27 = vrot.slane %v8778_v32, %v10104_v6  ;;  %v18012_v20 = vld [vmem:[#allocation175_spill] sm:$0xff]  ;;  %v947_v61 = vadd.f32 %v13986_v0, %v18013_v30  ;;  %v18014_v32 = vmax.f32 %v13894_v1, %v13994_v7  ;;  %v18017_v12 = vld [vmem:[#allocation9_spill] sm:$0xff] }
 0x371   : > { %v14135_v24 = vmax.f32 %v6636_v25, %v14119_v5  ;;  %v1198_v14 = vadd.f32 %v13986_v0, %v18012_v20  ;;  %v14143_v41 = vmax.f32 %v5870_v18, %v14080_v36  ;;  %v18019_v1 = vmax.f32 %v13897_v52, %v13997_v13 }
 0x372   : > { %v8779_v16 = vcombine.low %v7631_v17, %v7632_v63  ;;  %v14151_v23 = vmax.f32 %v18014_v32, %v14129_v48  ;;  %v18016_v63 = vld [vmem:[#allocation84_spill] sm:$0xff]  ;;  %v2119_v20 = vcombine.high %v947_v61, %v947_v61  ;;  %v2126_v29 = vrot.slane %v947_v61, %v10104_v6 }
 0x373   : > { %18011 = vst [vmem:[#allocation37_spill] sm:$0xff] %v14135_v24  ;;  %v18018_v25 = vmax.f32 %v18016_v63, %v18017_v12  ;;  %v3190_v39 = vcombine.high %v1198_v14, %v1198_v14  ;;  %v3197_v18 = vrot.slane %v1198_v14, %v10104_v6  ;;  %v14167_v32 = vmax.f32 %v18019_v1, %v14143_v41  ;;  %v14182_v12 = vpop.f32.mrb[96].mxu0 }
 0x374   : > { %v8793_v17 = vrot.slane %v8779_v16, %v10104_v6  ;;  %18015 = vst [vmem:[#allocation175_spill] sm:$0xff] %v14151_v23  ;;  %v7468_v16 = vmax.f32 %v7212_v43, %v14135_v24  ;;  %v8089_v14 = vrot.slane %v8081_v46, %v10104_v6  ;;  %v4473_v30 = vrot.slane %v4471_v55, 2  ;;  %v9585_v42 = vpop.f32.mrb[97].mxu0 }
 0x375   : > { %v7467_v35 = vmax.f32 %v18018_v25, %v14032_v54  ;;  %18020 = vst [vmem:[#allocation57_spill] sm:$0xff] %v14167_v32  ;;  %v3204_v25 = vrot.slane %v3190_v39, %v10104_v6  ;;  %v3205_v43 = vcombine.high %v3197_v18, %v3197_v18  ;;  %v9381_v57 = vrot.slane %v3197_v18, 9 }
 0x376   : > { %v8794_v53 = vcombine.low %v8786_v27, %v8793_v17  ;;  %v2133_v46 = vrot.slane %v2119_v20, %v10104_v6  ;;  %v2134_v47 = vcombine.high %v2126_v29, %v2126_v29  ;;  %v18026_v15 = vmax.f32 %v18024_v8, %v18025_v37 }
 0x377   : > { %v8082_v63 = vcombine.low %v7467_v35, %v7468_v16  ;;  %v14175_v17 = vcombine.high %v3204_v25, %v3204_v25  ;;  %v5131_v52 = vrot.slane %v3205_v43, 7  ;;  %v5134_v1 = vrot.slane %v3204_v25, 7  ;;  %v18021_v35 = vld [vmem:[#allocation41_spill] sm:$0xff]  ;;  %v18022_v16 = vld [vmem:[#allocation152_spill] sm:$0xff] }
 0x378   : > { %9147 = vst.msk [vmem:[%s12622_s19 + $0x188] sm:$0xff] %vm9097_vm8, %v8794_v53  ;;  %v18023_v39 = vmax.f32 %v18021_v35, %v18022_v16  ;;  %v4474_v53 = vrot.slane %v2126_v29, 7  ;;  %v7470_v33 = vmax.f32 %v18026_v15, %v14167_v32  ;;  %v14191_v20 = vcombine.high %v2133_v46, %v2133_v46 }
 0x379   : > { %v8096_v27 = vrot.slane %v8082_v63, %v10104_v6  ;;  %v5132_v55 = vsel %vm10121_vm7, %v9381_v57, %v5131_v52  ;;  %v5133_v63 = vrot.slane %v5131_v52, 2  ;;  %v5136_v54 = vrot.slane %v5134_v1, 2 }
 0x37a   : > { %v7469_v60 = vmax.f32 %v18023_v39, %v14151_v23  ;;  %v5137_v35 = vrot.slane %v14175_v17, 7  ;;  %v6073_v39 = vmax.f32 %v3197_v18, %v5132_v55  ;;  %v4475_v57 = vsel %vm10121_vm7, %v4473_v30, %v4474_v53 }
 0x37b   : > { %v8097_v61 = vcombine.low %v8089_v14, %v8096_v27  ;;  %v5135_v14 = vsel %vm10121_vm7, %v5133_v63, %v5134_v1  ;;  %v4476_v27 = vrot.slane %v4474_v53, 2  ;;  %v4477_v42 = vrot.slane %v2134_v47, 7 }
 0x37c   : > { %v5138_v52 = vsel %vm10121_vm7, %v5136_v54, %v5137_v35  ;;  %v6074_v8 = vmax.f32 %v3205_v43, %v5135_v14  ;;  %v14201_v15 = vmax.f32 %v6073_v39, %v3205_v43  ;;  %v9331_v37 = vrot.slane %v2133_v46, 9  ;;  %v18043_v39 = vld [vmem:[#allocation95_spill] sm:$0xff] }
 0x37d   : > { %9106 = vst.msk [vmem:[%s12622_s19 + $0x40] sm:$0xff] %vm9097_vm8, %v8097_v61  ;;  %v6075_v18 = vmax.f32 %v3204_v25, %v5138_v52  ;;  %v4478_v55 = vsel %vm10121_vm7, %v4476_v27, %v4477_v42  ;;  %v4481_v61 = vrot.slane %v14191_v20, 7  ;;  %v5871_v1 = vmax.f32 %v14080_v36, %v4475_v57 }
 0x37e   : > { %v14207_v63 = vmax.f32 %v6074_v8, %v3204_v25  ;;  %v18027_v54 = vmax.f32 %v13861_v4, %v14046_v34  ;;  %v5872_v53 = vmax.f32 %v2126_v29, %v4478_v55  ;;  %v8098_v27 = vcombine.low %v7469_v60, %v7470_v33  ;;  %v18033_v55 = vld [vmem:[#allocation123_spill] sm:$0xff]  ;;  %v18045_v4 = vld [vmem:[#allocation97_spill] sm:$0xff] }
 0x37f   : > { %v14220_v14 = vmax.f32 %v6075_v18, %v14175_v17  ;;  %v4482_v36 = vsel %vm10121_vm7, %v9331_v37, %v4481_v61  ;;  %v14224_v25 = vmax.f32 %v5871_v1, %v2126_v29  ;;  %v18029_v42 = vmax.f32 %v13930_v51, %v14052_v40  ;;  %v18034_v1 = vld [vmem:[#allocation91_spill] sm:$0xff]  ;;  %v18040_v51 = vld [vmem:[#allocation25_spill] sm:$0xff] }
 0x380   : > { %v14215_v43 = vmax.f32 %v18027_v54, %v14201_v15  ;;  %v18031_v8 = vmax.f32 %v13941_v21, %v14065_v62  ;;  %v5873_v29 = vmax.f32 %v2133_v46, %v4482_v36  ;;  %v14242_v18 = vmax.f32 %v5872_v53, %v2134_v47  ;;  %v18038_v53 = vld [vmem:[#allocation149_spill] sm:$0xff] }
 0x381   : > { %v14234_v52 = vmax.f32 %v18029_v42, %v14207_v63  ;;  %v6639_v33 = vmax.f32 %v13903_v49, %v14008_v9  ;;  %v7377_v54 = vmax.f32 %v18034_v1, %v18033_v55  ;;  %v18036_v49 = vmax.f32 %v14111_v45, %v14119_v5 }
 0x382   : > { %18028 = vst [vmem:[#allocation84_spill] sm:$0xff] %v14215_v43  ;;  %v14240_v37 = vmax.f32 %v18031_v8, %v14220_v14  ;;  %v14255_v42 = vmax.f32 %v5873_v29, %v14191_v20  ;;  %v1203_v36 = vadd.f32 %v13986_v0, %v18038_v53  ;;  %v18039_v8 = vld [vmem:[#allocation92_spill] sm:$0xff]  ;;  %v18042_v29 = vld [vmem:[#allocation21_spill] sm:$0xff]  ;;  %v6804_v45 = vmax.f32 %v13954_v44, %v14082_v50 }
 0x383   : > { %18030 = vst [vmem:[#allocation41_spill] sm:$0xff] %v14234_v52  ;;  %v14258_v47 = vmax.f32 %v6639_v33, %v14224_v25  ;;  %v14264_v46 = vmax.f32 %v18036_v49, %v14242_v18  ;;  %v18041_v60 = vmax.f32 %v18039_v8, %v18040_v51  ;;  %v7215_v21 = vmax.f32 %v18043_v39, %v18042_v29  ;;  %v18044_v33 = vld [vmem:[#allocation22_spill] sm:$0xff] }
 0x384   : > { %18032 = vst [vmem:[#allocation89_spill] sm:$0xff] %v14240_v37  ;;  %v7216_v30 = vmax.f32 %v18045_v4, %v18044_v33  ;;  %v8106_v53 = vrot.slane %v8098_v27, %v10104_v6  ;;  %v7633_v39 = vmax.f32 %v7377_v54, %v14215_v43  ;;  %v3207_v51 = vcombine.high %v1203_v36, %v1203_v36  ;;  %v18049_v49 = vld [vmem:[#allocation94_spill] sm:$0xff] }
 0x385   : > { %18035 = vst [vmem:[#allocation186_spill] sm:$0xff] %v14258_v47  ;;  %18037 = vst [vmem:[#allocation187_spill] sm:$0xff] %v14264_v46  ;;  %v14272_v57 = vmax.f32 %v18041_v60, %v14234_v52  ;;  %v18046_v60 = vmax.f32 %v13994_v7, %v14129_v48  ;;  %v7471_v4 = vmax.f32 %v7215_v21, %v14258_v47  ;;  %v4483_v27 = vrot.slane %v4481_v61, 2  ;;  %v18051_v61 = vld [vmem:[#allocation99_spill] sm:$0xff] }
 0x386   : > { %v7472_v44 = vmax.f32 %v7216_v30, %v14264_v46  ;;  %v3214_v52 = vrot.slane %v1203_v36, %v10104_v6  ;;  %v5139_v1 = vrot.slane %v5137_v35, 2  ;;  %v3221_v7 = vrot.slane %v3207_v51, %v10104_v6 }
 0x387   : > { %v14289_v8 = vmax.f32 %v18046_v60, %v14255_v42  ;;  %v8795_v23 = vcombine.low %v7633_v39, %v14272_v57  ;;  %v950_v54 = vadd.f32 %v13986_v0, %v13563_v58  ;;  %v14301_v60 = vpop.f32.mrb[96].mxu1  ;;  %v6642_v32 = vmax.f32 %v13997_v13, %v14143_v41 }
 0x388   : > { %v8099_v16 = vcombine.low %v7471_v4, %v7472_v44  ;;  %v3222_v21 = vcombine.high %v3214_v52, %v3214_v52  ;;  %v5140_v30 = vrot.slane %v3214_v52, 7  ;;  %v9713_v36 = vpop.f32.mrb[97].mxu1  ;;  %v14308_v57 = vcombine.high %v3221_v7, %v3221_v7  ;;  %v18048_v44 = vld [vmem:[#allocation154_spill] sm:$0xff] }
 0x389   : > { %18047 = vst [vmem:[#allocation149_spill] sm:$0xff] %v14289_v8  ;;  %v5144_v51 = vrot.slane %v3221_v7, 7  ;;  %v2136_v39 = vcombine.high %v950_v54, %v950_v54  ;;  %v7379_v43 = vmax.f32 %v18049_v49, %v18048_v44  ;;  %v2143_v13 = vrot.slane %v950_v54, %v10104_v6  ;;  %v14328_v49 = vpop.f32.mrb[98].mxu0 }
 0x38a   : > { %v8113_v35 = vrot.slane %v8099_v16, %v10104_v6  ;;  %v5141_v58 = vsel %vm10121_vm7, %v5139_v1, %v5140_v30  ;;  %v9382_v4 = vrot.slane %v3222_v21, 9  ;;  %v5147_v36 = vrot.slane %v14308_v57, 7  ;;  %v9586_v29 = vpop.f32.mrb[99].mxu0 }
 0x38b   : > { %v5146_v24 = vrot.slane %v5144_v51, 2  ;;  %v6076_v16 = vmax.f32 %v14175_v17, %v5141_v58  ;;  %v2151_v26 = vcombine.high %v2143_v13, %v2143_v13  ;;  %v4484_v1 = vrot.slane %v2143_v13, 7  ;;  %v18050_v58 = vld [vmem:[#allocation155_spill] sm:$0xff]  ;;  %v18057_v29 = vld [vmem:[#allocation161_spill] sm:$0xff] }
 0x38c   : > { %v8114_v55 = vcombine.low %v8106_v53, %v8113_v35  ;;  %v5145_v59 = vsel %vm10121_vm7, %v9382_v4, %v5144_v51  ;;  %v2150_v35 = vrot.slane %v2136_v39, %v10104_v6  ;;  %v7380_v44 = vmax.f32 %v18051_v61, %v18050_v58 }
 0x38d   : > { %v5148_v30 = vsel %vm10121_vm7, %v5146_v24, %v5147_v36  ;;  %v6077_v54 = vmax.f32 %v3222_v21, %v5145_v59  ;;  %v14325_v53 = vmax.f32 %v6076_v16, %v3214_v52  ;;  %v4485_v51 = vsel %vm10121_vm7, %v4483_v27, %v4484_v1  ;;  %v18058_v59 = vld [vmem:[#allocation102_spill] sm:$0xff] }
 0x38e   : > { %9107 = vst.msk [vmem:[%s12622_s19 + $0x48] sm:$0xff] %vm9097_vm8, %v8114_v55  ;;  %v6078_v17 = vmax.f32 %v3221_v7, %v5148_v30  ;;  %v4486_v4 = vrot.slane %v4484_v1, 2  ;;  %v4487_v52 = vrot.slane %v2151_v26, 7  ;;  %v7635_v16 = vmax.f32 %v7379_v43, %v14240_v37  ;;  %v18065_v37 = vld [vmem:[#allocation160_spill] sm:$0xff] }
 0x38f   : > { %v14334_v55 = vmax.f32 %v6077_v54, %v3221_v7  ;;  %v14339_v24 = vmax.f32 %v6804_v45, %v14325_v53  ;;  %v5874_v27 = vmax.f32 %v14191_v20, %v4485_v51  ;;  %v18053_v7 = vmax.f32 %v14046_v34, %v14201_v15 }
 0x390   : > { %v14344_v39 = vmax.f32 %v6078_v17, %v14308_v57  ;;  %v4490_v30 = vrot.slane %v2150_v35, 7  ;;  %v18055_v54 = vmax.f32 %v14052_v40, %v14207_v63  ;;  %v4488_v20 = vsel %vm10121_vm7, %v4486_v4, %v4487_v52 }
 0x391   : > { %18052 = vst [vmem:[#allocation95_spill] sm:$0xff] %v14339_v24  ;;  %v14354_v45 = vmax.f32 %v18053_v7, %v14334_v55  ;;  %v7636_v1 = vmax.f32 %v7380_v44, %v14339_v24  ;;  %v4489_v43 = vrot.slane %v4487_v52, 2  ;;  %v14365_v51 = vmax.f32 %v5874_v27, %v2143_v13 }
 0x392   : > { %v14361_v17 = vmax.f32 %v18055_v54, %v14344_v39  ;;  %v8803_v21 = vrot.slane %v8795_v23, %v10104_v6  ;;  %v5875_v7 = vmax.f32 %v2143_v13, %v4488_v20  ;;  %v7218_v44 = vmax.f32 %v18058_v59, %v18057_v29  ;;  %v18060_v59 = vld [vmem:[#allocation96_spill] sm:$0xff]  ;;  %v18063_v20 = vld [vmem:[#allocation31_spill] sm:$0xff] }
 0x393   : > { %18054 = vst [vmem:[#allocation97_spill] sm:$0xff] %v14354_v45  ;;  %v8796_v34 = vcombine.low %v7635_v16, %v7636_v1  ;;  %v14370_v61 = vcombine.high %v2150_v35, %v2150_v35  ;;  %v4491_v40 = vsel %vm10121_vm7, %v4489_v43, %v4490_v30  ;;  %v14377_v4 = vmax.f32 %v6642_v32, %v14365_v51  ;;  %v18061_v16 = vld [vmem:[#allocation159_spill] sm:$0xff]  ;;  %v18064_v43 = vld [vmem:[#allocation100_spill] sm:$0xff] }
 0x394   : > { %18056 = vst [vmem:[#allocation188_spill] sm:$0xff] %v14361_v17  ;;  %v5876_v27 = vmax.f32 %v2151_v26, %v4491_v40  ;;  %v14380_v23 = vmax.f32 %v5875_v7, %v2151_v26  ;;  %v1206_v13 = vadd.f32 %v13986_v0, %v13651_v11  ;;  %v18062_v1 = vmax.f32 %v18060_v59, %v18061_v16  ;;  %v18066_v32 = vld [vmem:[#allocation103_spill] sm:$0xff] }
 0x395   : > { %18059 = vst [vmem:[#allocation102_spill] sm:$0xff] %v14377_v4  ;;  %v8810_v52 = vrot.slane %v8796_v34, %v10104_v6  ;;  %v7381_v54 = vmax.f32 %v18064_v43, %v18063_v20  ;;  %v7219_v33 = vmax.f32 %v18066_v32, %v18065_v37  ;;  %v7474_v34 = vmax.f32 %v7218_v44, %v14377_v4 }
 0x396   : > { %v7473_v30 = vmax.f32 %v18062_v1, %v14289_v8  ;;  %v14393_v46 = vmax.f32 %v5876_v27, %v2150_v35  ;;  %v18067_v11 = vmax.f32 %v14008_v9, %v14224_v25  ;;  %v3224_v1 = vcombine.high %v1206_v13, %v1206_v13  ;;  %v14417_v27 = vpop.f32.mrb[98].mxu1 }
 0x397   : > { %v8811_v40 = vcombine.low %v8803_v21, %v8810_v52  ;;  %v3231_v43 = vrot.slane %v1206_v13, %v10104_v6  ;;  %v5149_v16 = vrot.slane %v5147_v36, 2  ;;  %v9332_v35 = vrot.slane %v14370_v61, 9  ;;  %v14419_v13 = vpop.f32.mrb[100].mxu0  ;;  %v18072_v36 = vld [vmem:[#allocation101_spill] sm:$0xff]  ;;  %v9714_v21 = vpop.f32.mrb[99].mxu1 }
 0x398   : > { %v14401_v7 = vmax.f32 %v18067_v11, %v14380_v23  ;;  %v8115_v59 = vcombine.low %v7473_v30, %v7474_v34  ;;  %v18069_v9 = vmax.f32 %v14119_v5, %v14242_v18  ;;  %18071 = vst [vmem:[#allocation189_spill] sm:$0xff] %v14419_v13  ;;  %v18073_v30 = vld [vmem:[#allocation163_spill] sm:$0xff]  ;;  %v9589_v26 = vpop.f32.mrb[101].mxu0  ;;  %v18075_v5 = vld [vmem:[#allocation104_spill] sm:$0xff]  ;;  %v6807_v2 = vmax.f32 %v14065_v62, %v14220_v14 }
 0x399   : > { %9148 = vst.msk [vmem:[%s12622_s19 + $0x190] sm:$0xff] %vm9097_vm8, %v8811_v40  ;;  %v18074_v32 = vmax.f32 %v18072_v36, %v18073_v30  ;;  %v3238_v40 = vrot.slane %v3224_v1, %v10104_v6  ;;  %v3239_v11 = vcombine.high %v3231_v43, %v3231_v43  ;;  %v5150_v44 = vrot.slane %v3231_v43, 7 }
 0x39a   : > { %18068 = vst [vmem:[#allocation96_spill] sm:$0xff] %v14401_v7  ;;  %v14415_v52 = vmax.f32 %v18069_v9, %v14393_v46  ;;  %v7475_v24 = vmax.f32 %v7219_v33, %v14401_v7  ;;  %v18076_v9 = vld [vmem:[#allocation169_spill] sm:$0xff]  ;;  %v8123_v47 = vrot.slane %v8115_v59, %v10104_v6  ;;  %v18151_v7 = vld [vmem:[#allocation75_spill] sm:$0xff] }
 0x39b   : > { %v7638_v34 = vmax.f32 %v18074_v32, %v14361_v17  ;;  %v18077_v58 = vmax.f32 %v18075_v5, %v18076_v9  ;;  %v14434_v36 = vcombine.high %v3238_v40, %v3238_v40  ;;  %v5151_v1 = vsel %vm10121_vm7, %v5149_v16, %v5150_v44  ;;  %v14447_v16 = vpop.f32.mrb[100].mxu1 }
 0x39c   : > { %18070 = vst [vmem:[#allocation103_spill] sm:$0xff] %v14415_v52  ;;  %v5152_v32 = vrot.slane %v5150_v44, 2  ;;  %v5153_v21 = vrot.slane %v3239_v11, 7  ;;  %v9383_v30 = vrot.slane %v3238_v40, 9  ;;  %v6079_v33 = vmax.f32 %v14308_v57, %v5151_v1  ;;  %18078 = vst [vmem:[#allocation104_spill] sm:$0xff] %v14447_v16 }
 0x39d   : > { %v7476_v8 = vmax.f32 %v18077_v58, %v14415_v52  ;;  %v955_v5 = vadd.f32 %v13986_v0, %v13719_v10  ;;  %v7637_v58 = vmax.f32 %v7381_v54, %v14354_v45  ;;  %v5157_v62 = vrot.slane %v14434_v36, 7  ;;  %v9717_v10 = vpop.f32.mrb[101].mxu1 }
 0x39e   : > { %v5154_v59 = vsel %vm10121_vm7, %v5152_v32, %v5153_v21  ;;  %v1211_v9 = vadd.f32 %v13986_v0, %v13781_v31  ;;  %v14450_v44 = vmax.f32 %v6079_v33, %v3231_v43  ;;  %v18079_v32 = vld [vmem:[#allocation165_spill] sm:$0xff]  ;;  %v18080_v21 = vld [vmem:[#allocation107_spill] sm:$0xff] }
 0x39f   : > { %v8116_v26 = vcombine.low %v7475_v24, %v7476_v8  ;;  %v6080_v24 = vmax.f32 %v3231_v43, %v5154_v59  ;;  %v2153_v57 = vcombine.high %v955_v5, %v955_v5  ;;  %v8812_v1 = vcombine.low %v7637_v58, %v7638_v34 }
 0x3a0   : > { %v5158_v54 = vsel %vm10121_vm7, %v9383_v30, %v5157_v62  ;;  %v7383_v52 = vmax.f32 %v18080_v21, %v18079_v32  ;;  %v2160_v17 = vrot.slane %v955_v5, %v10104_v6  ;;  %v14465_v30 = vpop.f32.mrb[102].mxu0  ;;  %v5159_v22 = vrot.slane %v5157_v62, 2 }
 0x3a1   : > { %v8130_v8 = vrot.slane %v8116_v26, %v10104_v6  ;;  %v6081_v38 = vmax.f32 %v3238_v40, %v5158_v54  ;;  %v14457_v3 = vmax.f32 %v6080_v24, %v3239_v11  ;;  %v14462_v26 = vmax.f32 %v6807_v2, %v14450_v44  ;;  %18082 = vst [vmem:[#allocation191_spill] sm:$0xff] %v14465_v30  ;;  %v18085_v11 = vld [vmem:[#allocation166_spill] sm:$0xff]  ;;  %v18086_v2 = vld [vmem:[#allocation108_spill] sm:$0xff]  ;;  %v9590_v24 = vpop.f32.mrb[103].mxu0 }
 0x3a2   : > { %v2167_v34 = vrot.slane %v2153_v57, %v10104_v6  ;;  %v2168_v33 = vcombine.high %v2160_v17, %v2160_v17  ;;  %v4494_v58 = vrot.slane %v2160_v17, 7  ;;  %v7384_v59 = vmax.f32 %v18086_v2, %v18085_v11 }
 0x3a3   : > { %v8131_v31 = vcombine.low %v8123_v47, %v8130_v8  ;;  %18081 = vst [vmem:[#allocation190_spill] sm:$0xff] %v14462_v26  ;;  %v14470_v5 = vmax.f32 %v6081_v38, %v14434_v36  ;;  %v18083_v47 = vmax.f32 %v14082_v50, %v14325_v53  ;;  %v14481_v8 = vrot.slane %v1211_v9, %v10104_v6 }
 0x3a4   : > { %v7639_v57 = vmax.f32 %v7383_v52, %v14462_v26  ;;  %v2169_v10 = vcombine.high %v2167_v34, %v2167_v34  ;;  %v4495_v38 = vsel %vm10121_vm7, %v9332_v35, %v4494_v58  ;;  %v3241_v54 = vcombine.high %v1211_v9, %v1211_v9 }
 0x3a5   : > { %9108 = vst.msk [vmem:[%s12622_s19 + $0x50] sm:$0xff] %vm9097_vm8, %v8131_v31  ;;  %v14476_v40 = vmax.f32 %v18083_v47, %v14457_v3  ;;  %v8820_v31 = vrot.slane %v8812_v1, %v10104_v6  ;;  %v18087_v47 = vmax.f32 %v14201_v15, %v14334_v55  ;;  %v4496_v2 = vrot.slane %v4494_v58, 2 }
 0x3a6   : > { %v4497_v52 = vrot.slane %v2168_v33, 7  ;;  %v4500_v21 = vrot.slane %v2167_v34, 7  ;;  %v4503_v19 = vrot.slane %v2169_v10, 7  ;;  %v5877_v9 = vmax.f32 %v14370_v61, %v4495_v38 }
 0x3a7   : > { %18084 = vst [vmem:[#allocation192_spill] sm:$0xff] %v14476_v40  ;;  %v14493_v43 = vmax.f32 %v18087_v47, %v14470_v5  ;;  %v7640_v24 = vmax.f32 %v7384_v59, %v14476_v40  ;;  %v3256_v1 = vcombine.high %v14481_v8, %v14481_v8  ;;  %v3255_v47 = vrot.slane %v3241_v54, %v10104_v6 }
 0x3a8   : > { %v4498_v50 = vsel %vm10121_vm7, %v4496_v2, %v4497_v52  ;;  %v4499_v30 = vrot.slane %v4497_v52, 2  ;;  %v4502_v15 = vrot.slane %v4500_v21, 2  ;;  %v14503_v16 = vmax.f32 %v5877_v9, %v2160_v17 }
 0x3a9   : > { %18088 = vst [vmem:[#allocation193_spill] sm:$0xff] %v14493_v43  ;;  %v8813_v35 = vcombine.low %v7639_v57, %v7640_v24  ;;  %v5878_v58 = vmax.f32 %v2160_v17, %v4498_v50  ;;  %v5160_v62 = vrot.slane %v14481_v8, 7  ;;  %v5163_v38 = vrot.slane %v3256_v1, 7  ;;  %v14510_v24 = vpop.f32.mrb[102].mxu1  ;;  %v18107_v50 = vld [vmem:[#allocation171_spill] sm:$0xff] }
 0x3aa   : > { %v4501_v61 = vsel %vm10121_vm7, %v4499_v30, %v4500_v21  ;;  %v4504_v57 = vsel %vm10121_vm7, %v4502_v15, %v4503_v19  ;;  %v5166_v2 = vrot.slane %v3255_v47, 7  ;;  %18089 = vst [vmem:[#allocation194_spill] sm:$0xff] %v14510_v24  ;;  %v9718_v17 = vpop.f32.mrb[103].mxu1  ;;  %v18090_v21 = vmax.f32 %v14129_v48, %v14255_v42  ;;  %v18106_v15 = vld [vmem:[#allocation113_spill] sm:$0xff] }
 0x3ab   : > { %v8827_v59 = vrot.slane %v8813_v35, %v10104_v6  ;;  %v5879_v54 = vmax.f32 %v2168_v33, %v4501_v61  ;;  %v5880_v13 = vmax.f32 %v2167_v34, %v4504_v57  ;;  %v14512_v35 = vmax.f32 %v5878_v58, %v2168_v33  ;;  %v18103_v58 = vld [vmem:[#allocation112_spill] sm:$0xff] }
 0x3ac   : > { %v14520_v30 = vmax.f32 %v18090_v21, %v14503_v16  ;;  %v5161_v19 = vsel %vm10121_vm7, %v5159_v22, %v5160_v62  ;;  %v5162_v9 = vrot.slane %v5160_v62, 2  ;;  %v18094_v22 = vld [vmem:[#allocation38_spill] sm:$0xff]  ;;  %v18095_v62 = vld [vmem:[#allocation111_spill] sm:$0xff]  ;;  %v18096_v57 = vmax.f32 %v14224_v25, %v14380_v23 }
 0x3ad   : > { %v8828_v52 = vcombine.low %v8820_v31, %v8827_v59  ;;  %v14526_v31 = vmax.f32 %v5879_v54, %v2167_v34  ;;  %v14528_v33 = vmax.f32 %v5880_v13, %v2169_v10  ;;  %v18092_v59 = vmax.f32 %v14143_v41, %v14365_v51  ;;  %v18100_v21 = vld [vmem:[#allocation110_spill] sm:$0xff] }
 0x3ae   : > { %18091 = vst [vmem:[#allocation195_spill] sm:$0xff] %v14520_v30  ;;  %v7222_v61 = vmax.f32 %v18095_v62, %v18094_v22  ;;  %v5164_v34 = vsel %vm10121_vm7, %v5162_v9, %v5163_v38  ;;  %v5165_v13 = vrot.slane %v5163_v38, 2  ;;  %v14558_v17 = vcombine.high %v3255_v47, %v3255_v47  ;;  %v18101_v38 = vld [vmem:[#allocation32_spill] sm:$0xff]  ;;  %v18104_v10 = vld [vmem:[#allocation90_spill] sm:$0xff] }
 0x3af   : > { %9149 = vst.msk [vmem:[%s12622_s19 + $0x198] sm:$0xff] %vm9097_vm8, %v8828_v52  ;;  %v14536_v48 = vmax.f32 %v18092_v59, %v14512_v35  ;;  %v14550_v41 = vmax.f32 %v18096_v57, %v14526_v31  ;;  %v18098_v52 = vmax.f32 %v14242_v18, %v14393_v46  ;;  %v18102_v9 = vmax.f32 %v18100_v21, %v18101_v38 }
 0x3b0   : > { %v5167_v25 = vsel %vm10121_vm7, %v5165_v13, %v5166_v2  ;;  %v6082_v57 = vmax.f32 %v14434_v36, %v5161_v19  ;;  %v18105_v18 = vmax.f32 %v18103_v58, %v18104_v10  ;;  %v18108_v45 = vmax.f32 %v18106_v15, %v18107_v50  ;;  %v18109_v15 = vld [vmem:[#allocation40_spill] sm:$0xff] }
 0x3b1   : > { %18093 = vst [vmem:[#allocation196_spill] sm:$0xff] %v14536_v48  ;;  %18097 = vst [vmem:[#allocation111_spill] sm:$0xff] %v14550_v41  ;;  %v14556_v54 = vmax.f32 %v18098_v52, %v14528_v33  ;;  %v7477_v59 = vmax.f32 %v18102_v9, %v14520_v30  ;;  %v7478_v62 = vmax.f32 %v7222_v61, %v14536_v48  ;;  %v18146_v30 = vld [vmem:[#allocation119_spill] sm:$0xff] }
 0x3b2   : > { %v7479_v52 = vmax.f32 %v18105_v18, %v14550_v41  ;;  %v6083_v21 = vmax.f32 %v14481_v8, %v5164_v34  ;;  %v6084_v9 = vmax.f32 %v3256_v1, %v5167_v25  ;;  %v14578_v61 = vmax.f32 %v6082_v57, %v14481_v8  ;;  %v18116_v57 = vld [vmem:[#allocation109_spill] sm:$0xff] }
 0x3b3   : > { %18099 = vst [vmem:[#allocation197_spill] sm:$0xff] %v14556_v54  ;;  %v7480_v20 = vmax.f32 %v18108_v45, %v14556_v54  ;;  %v8132_v24 = vcombine.low %v7477_v59, %v7478_v62  ;;  %v6810_v36 = vmax.f32 %v14207_v63, %v14344_v39  ;;  %v6812_v2 = vmax.f32 %v14325_v53, %v14457_v3  ;;  %v18110_v45 = vld [vmem:[#allocation114_spill] sm:$0xff]  ;;  %v18113_v62 = vld [vmem:[#allocation115_spill] sm:$0xff] }
 0x3b4   : > { %v14584_v58 = vmax.f32 %v6083_v21, %v3256_v1  ;;  %v14586_v13 = vmax.f32 %v6084_v9, %v3255_v47  ;;  %v7386_v18 = vmax.f32 %v18110_v45, %v18109_v15  ;;  %v18112_v63 = vld [vmem:[#allocation170_spill] sm:$0xff]  ;;  %v18114_v47 = vmax.f32 %v14220_v14, %v14450_v44  ;;  %v14624_v45 = vpop.f32.mrb[104].mxu0  ;;  %v18125_v14 = vld [vmem:[#allocation157_spill] sm:$0xff] }
 0x3b5   : > { %v8133_v19 = vcombine.low %v7479_v52, %v7480_v20  ;;  %v8140_v34 = vrot.slane %v8132_v24, %v10104_v6  ;;  %v14594_v59 = vmax.f32 %v6810_v36, %v14578_v61  ;;  %v7387_v25 = vmax.f32 %v18113_v62, %v18112_v63  ;;  %v18117_v52 = vld [vmem:[#allocation39_spill] sm:$0xff]  ;;  %v18120_v20 = vld [vmem:[#allocation73_spill] sm:$0xff]  ;;  %v9593_v8 = vpop.f32.mrb[105].mxu0 }
 0x3b6   : > { %v14607_v24 = vmax.f32 %v18114_v47, %v14584_v58  ;;  %v18118_v21 = vmax.f32 %v18116_v57, %v18117_v52  ;;  %v14614_v36 = vmax.f32 %v6812_v2, %v14586_v13  ;;  %v958_v1 = vadd.f32 %v13986_v0, %v18120_v20  ;;  %v18122_v2 = vld [vmem:[#allocation116_spill] sm:$0xff] }
 0x3b7   : > { %18111 = vst [vmem:[#allocation110_spill] sm:$0xff] %v14594_v59  ;;  %v8147_v53 = vrot.slane %v8133_v19, %v10104_v6  ;;  %v7642_v19 = vmax.f32 %v7386_v18, %v14594_v59  ;;  %v18123_v18 = vld [vmem:[#allocation44_spill] sm:$0xff]  ;;  %v14718_v59 = vpop.f32.mrb[106].mxu0 }
 0x3b8   : > { %18115 = vst [vmem:[#allocation112_spill] sm:$0xff] %v14607_v24  ;;  %v7641_v9 = vmax.f32 %v18118_v21, %v14493_v43  ;;  %18119 = vst [vmem:[#allocation113_spill] sm:$0xff] %v14614_v36  ;;  %v7643_v62 = vmax.f32 %v7387_v25, %v14607_v24  ;;  %v14626_v21 = vpop.f32.mrb[104].mxu1  ;;  %v18124_v57 = vmax.f32 %v18122_v2, %v18123_v18 }
 0x3b9   : > { %v8148_v47 = vcombine.low %v8140_v34, %v8147_v53  ;;  %18121 = vst [vmem:[#allocation73_spill] sm:$0xff] %v14626_v21  ;;  %v2170_v20 = vcombine.high %v958_v1, %v958_v1  ;;  %v2177_v10 = vrot.slane %v958_v1, %v10104_v6  ;;  %v9721_v41 = vpop.f32.mrb[105].mxu1  ;;  %v9384_v53 = vrot.slane %v14558_v17, 9  ;;  %v18126_v1 = vld [vmem:[#allocation158_spill] sm:$0xff]  ;;  %18135 = vst [vmem:[#allocation199_spill] sm:$0xff] %v14718_v59 }
 0x3ba   : > { %v7644_v50 = vmax.f32 %v18124_v57, %v14614_v36  ;;  %v8829_v54 = vcombine.low %v7641_v9, %v7642_v19  ;;  %v1214_v2 = vadd.f32 %v13986_v0, %v18125_v14  ;;  %v963_v41 = vadd.f32 %v13986_v0, %v18126_v1 }
 0x3bb   : > { %9109 = vst.msk [vmem:[%s12622_s19 + $0x58] sm:$0xff] %vm9097_vm8, %v8148_v47  ;;  %v2184_v9 = vrot.slane %v2170_v20, %v10104_v6  ;;  %v2185_v19 = vcombine.high %v2177_v10, %v2177_v10  ;;  %v9333_v34 = vrot.slane %v2177_v10, 9 }
 0x3bc   : > { %v8830_v57 = vcombine.low %v7643_v62, %v7644_v50  ;;  %v8837_v8 = vrot.slane %v8829_v54, %v10104_v6  ;;  %v3258_v18 = vcombine.high %v1214_v2, %v1214_v2  ;;  %v3265_v25 = vrot.slane %v1214_v2, %v10104_v6 }
 0x3bd   : > { %v14648_v36 = vcombine.high %v2184_v9, %v2184_v9  ;;  %v4507_v52 = vrot.slane %v2185_v19, 7  ;;  %v4510_v14 = vrot.slane %v2184_v9, 7  ;;  %v2187_v26 = vcombine.high %v963_v41, %v963_v41 }
 0x3be   : > { %v8844_v47 = vrot.slane %v8830_v57, %v10104_v6  ;;  %v14653_v62 = vrot.slane %v3258_v18, %v10104_v6  ;;  %v3273_v20 = vcombine.high %v3265_v25, %v3265_v25  ;;  %v5170_v1 = vrot.slane %v3265_v25, 7 }
 0x3bf   : > { %v4508_v43 = vsel %vm10121_vm7, %v9333_v34, %v4507_v52  ;;  %v4509_v2 = vrot.slane %v4507_v52, 2  ;;  %v4512_v37 = vrot.slane %v4510_v14, 2  ;;  %v4513_v57 = vrot.slane %v14648_v36, 7 }
 0x3c0   : > { %v8845_v54 = vcombine.low %v8837_v8, %v8844_v47  ;;  %v5881_v40 = vmax.f32 %v2177_v10, %v4508_v43  ;;  %v5171_v11 = vsel %vm10121_vm7, %v9384_v53, %v5170_v1  ;;  %v5172_v50 = vrot.slane %v5170_v1, 2 }
 0x3c1   : > { %v4511_v18 = vsel %vm10121_vm7, %v4509_v2, %v4510_v14  ;;  %v5173_v38 = vrot.slane %v3273_v20, 7  ;;  %v2194_v8 = vrot.slane %v963_v41, %v10104_v6  ;;  %v4514_v52 = vsel %vm10121_vm7, %v4512_v37, %v4513_v57 }
 0x3c2   : > { %9150 = vst.msk [vmem:[%s12622_s19 + $0x1a0] sm:$0xff] %vm9097_vm8, %v8845_v54  ;;  %v5882_v34 = vmax.f32 %v2185_v19, %v4511_v18  ;;  %v14667_v47 = vmax.f32 %v5881_v40, %v2185_v19  ;;  %v14671_v43 = vcombine.high %v14653_v62, %v14653_v62  ;;  %v5883_v10 = vmax.f32 %v2184_v9, %v4514_v52  ;;  %v18131_v52 = vld [vmem:[#allocation140_spill] sm:$0xff] }
 0x3c3   : > { %v5174_v53 = vsel %vm10121_vm7, %v5172_v50, %v5173_v38  ;;  %v5175_v54 = vrot.slane %v5173_v38, 2  ;;  %v5176_v14 = vrot.slane %v14653_v62, 7  ;;  %v18127_v37 = vmax.f32 %v14255_v42, %v14503_v16 }
 0x3c4   : > { %v14676_v1 = vmax.f32 %v5882_v34, %v2184_v9  ;;  %v6085_v19 = vmax.f32 %v14558_v17, %v5171_v11  ;;  %v14690_v38 = vmax.f32 %v5883_v10, %v14648_v36  ;;  %v6086_v50 = vmax.f32 %v3265_v25, %v5174_v53  ;;  %v18132_v34 = vld [vmem:[#allocation118_spill] sm:$0xff] }
 0x3c5   : > { %v14684_v40 = vmax.f32 %v18127_v37, %v14667_v47  ;;  %v5177_v9 = vsel %vm10121_vm7, %v5175_v54, %v5176_v14  ;;  %v18129_v11 = vmax.f32 %v14365_v51, %v14512_v35  ;;  %v7389_v10 = vmax.f32 %v18132_v34, %v18131_v52 }
 0x3c6   : > { %v18133_v54 = vmax.f32 %v14380_v23, %v14526_v31  ;;  %v5179_v37 = vrot.slane %v14671_v43, 7  ;;  %v6087_v18 = vmax.f32 %v3273_v20, %v5177_v9  ;;  %v14713_v2 = vmax.f32 %v6085_v19, %v3265_v25  ;;  %v9594_v19 = vpop.f32.mrb[107].mxu0 }
 0x3c7   : > { %18128 = vst [vmem:[#allocation157_spill] sm:$0xff] %v14684_v40  ;;  %v14702_v17 = vmax.f32 %v18129_v11, %v14676_v1  ;;  %v5178_v42 = vrot.slane %v5176_v14, 2  ;;  %v14715_v41 = vmax.f32 %v6086_v50, %v3273_v20  ;;  %v2201_v51 = vrot.slane %v2187_v26, %v10104_v6  ;;  %v18140_v50 = vld [vmem:[#allocation141_spill] sm:$0xff]  ;;  %v14843_v21 = vpop.f32.mrb[108].mxu0 }
 0x3c8   : > { %v14710_v53 = vmax.f32 %v18133_v54, %v14690_v38  ;;  %v2202_v11 = vcombine.high %v2194_v8, %v2194_v8  ;;  %v14721_v34 = vmax.f32 %v6087_v18, %v14653_v62  ;;  %v18136_v23 = vmax.f32 %v14334_v55, %v14470_v5  ;;  %v18141_v18 = vld [vmem:[#allocation121_spill] sm:$0xff] }
 0x3c9   : > { %18130 = vst [vmem:[#allocation158_spill] sm:$0xff] %v14702_v17  ;;  %v4515_v9 = vrot.slane %v4513_v57, 2  ;;  %v4516_v25 = vrot.slane %v2194_v8, 7  ;;  %v18138_v26 = vmax.f32 %v14344_v39, %v14578_v61  ;;  %v7390_v15 = vmax.f32 %v18141_v18, %v18140_v50  ;;  %v18145_v20 = vld [vmem:[#allocation117_spill] sm:$0xff] }
 0x3ca   : > { %18134 = vst [vmem:[#allocation198_spill] sm:$0xff] %v14710_v53  ;;  %v14727_v54 = vmax.f32 %v18136_v23, %v14713_v2  ;;  %v14739_v22 = vcombine.high %v2201_v51, %v2201_v51  ;;  %v18142_v57 = vmax.f32 %v14450_v44, %v14584_v58  ;;  %v9334_v39 = vrot.slane %v2202_v11, 9 }
 0x3cb   : > { %v14735_v14 = vmax.f32 %v18138_v26, %v14715_v41  ;;  %v18144_v26 = vld [vmem:[#allocation172_spill] sm:$0xff]  ;;  %v14756_v18 = vsel %vm10121_vm7, %v5178_v42, %v5179_v37  ;;  %v4517_v55 = vsel %vm10121_vm7, %v4515_v9, %v4516_v25  ;;  %v18147_v42 = vld [vmem:[#allocation47_spill] sm:$0xff]  ;;  %v6652_v9 = vmax.f32 %v14393_v46, %v14528_v33 }
 0x3cc   : > { %18137 = vst [vmem:[#allocation200_spill] sm:$0xff] %v14727_v54  ;;  %v14747_v23 = vmax.f32 %v18142_v57, %v14721_v34  ;;  %v14750_v19 = vmax.f32 %v7389_v10, %v14727_v54  ;;  %v7225_v24 = vmax.f32 %v18145_v20, %v18144_v26  ;;  %v4520_v57 = vrot.slane %v2201_v51, 7 }
 0x3cd   : > { %18139 = vst [vmem:[#allocation201_spill] sm:$0xff] %v14735_v14  ;;  %v14759_v63 = vmax.f32 %v7390_v15, %v14735_v14  ;;  %v4523_v10 = vrot.slane %v14739_v22, 7  ;;  %v5884_v48 = vmax.f32 %v14648_v36, %v4517_v55  ;;  %v18148_v37 = vmax.f32 %v18146_v30, %v18147_v42  ;;  %v18149_v36 = vld [vmem:[#allocation162_spill] sm:$0xff] }
 0x3ce   : > { %18143 = vst [vmem:[#allocation202_spill] sm:$0xff] %v14747_v23  ;;  %v7481_v20 = vmax.f32 %v7225_v24, %v14684_v40  ;;  %v4521_v25 = vsel %vm10121_vm7, %v9334_v39, %v4520_v57  ;;  %v4522_v44 = vrot.slane %v4520_v57, 2  ;;  %v1219_v24 = vadd.f32 %v13986_v0, %v18149_v36  ;;  %v18150_v40 = vld [vmem:[#allocation51_spill] sm:$0xff] }
 0x3cf   : > { %v7482_v32 = vmax.f32 %v18148_v37, %v14702_v17  ;;  %v14778_v26 = vmax.f32 %v5884_v48, %v2194_v8  ;;  %v5885_v55 = vmax.f32 %v2202_v11, %v4521_v25  ;;  %v7228_v30 = vmax.f32 %v18151_v7, %v18150_v40  ;;  %v18154_v25 = vld [vmem:[#allocation174_spill] sm:$0xff] }
 0x3d0   : > { %v6817_v37 = vmax.f32 %v14470_v5, %v14713_v2  ;;  %v4524_v46 = vsel %vm10121_vm7, %v4522_v44, %v4523_v10  ;;  %v3275_v0 = vcombine.high %v1219_v24, %v1219_v24  ;;  %v3282_v7 = vrot.slane %v1219_v24, %v10104_v6  ;;  %v18153_v5 = vld [vmem:[#allocation120_spill] sm:$0xff] }
 0x3d1   : > { %v14793_v8 = vmax.f32 %v6652_v9, %v14778_v26  ;;  %v8149_v11 = vcombine.low %v7481_v20, %v7482_v32  ;;  %v5886_v39 = vmax.f32 %v2201_v51, %v4524_v46  ;;  %v14795_v57 = vmax.f32 %v5885_v55, %v2201_v51  ;;  %v14807_v9 = vld [vmem:[%s16838_s2] ss:$0 sm:$0xff]  ;;  %v18156_v32 = vld [vmem:[#allocation173_spill] sm:$0xff]  ;;  %v14811_v20 = vpop.f32.mrb[106].mxu1  ;;  %18162 = vst [vmem:[#allocation120_spill] sm:$0xff] %v14843_v21 }
 0x3d2   : > { %v18155_v36 = vmax.f32 %v18153_v5, %v18154_v25  ;;  %v3289_v42 = vrot.slane %v3275_v0, %v10104_v6  ;;  %v966_v51 = vadd.f32 %v14807_v9, %v18156_v32  ;;  %18157 = vst [vmem:[#allocation119_spill] sm:$0xff] %v14811_v20  ;;  %v18158_v55 = vmax.f32 %v14503_v16, %v14667_v47  ;;  %v9722_v5 = vpop.f32.mrb[107].mxu1 }
 0x3d3   : > { %18152 = vst [vmem:[#allocation117_spill] sm:$0xff] %v14793_v8  ;;  %v7484_v44 = vmax.f32 %v7228_v30, %v14793_v8  ;;  %v14814_v24 = vmax.f32 %v5886_v39, %v14739_v22  ;;  %v3290_v46 = vcombine.high %v3282_v7, %v3282_v7  ;;  %v9385_v0 = vrot.slane %v3282_v7, 9 }
 0x3d4   : > { %v7483_v15 = vmax.f32 %v18155_v36, %v14710_v53  ;;  %v14820_v30 = vmax.f32 %v18158_v55, %v14795_v57  ;;  %v14822_v48 = vcombine.high %v3289_v42, %v3289_v42  ;;  %v5186_v25 = vrot.slane %v3289_v42, 7 }
 0x3d5   : > { %v2204_v53 = vcombine.high %v966_v51, %v966_v51  ;;  %v8157_v32 = vrot.slane %v8149_v11, %v10104_v6  ;;  %v18160_v17 = vmax.f32 %v14512_v35, %v14676_v1  ;;  %v5183_v55 = vrot.slane %v3290_v46, 7 }
 0x3d6   : > { %18159 = vst [vmem:[#allocation162_spill] sm:$0xff] %v14820_v30  ;;  %v8150_v36 = vcombine.low %v7483_v15, %v7484_v44  ;;  %v5188_v5 = vrot.slane %v5186_v25, 2  ;;  %v5189_v15 = vrot.slane %v14822_v48, 7  ;;  %v2211_v44 = vrot.slane %v966_v51, %v10104_v6 }
 0x3d7   : > { %v14831_v16 = vmax.f32 %v18160_v17, %v14814_v24  ;;  %v5184_v39 = vsel %vm10121_vm7, %v9385_v0, %v5183_v55  ;;  %v5185_v4 = vrot.slane %v5183_v55, 2  ;;  %v2218_v35 = vrot.slane %v2204_v53, %v10104_v6  ;;  %v9597_v0 = vpop.f32.mrb[109].mxu0  ;;  %v18164_v55 = vld [vmem:[#allocation52_spill] sm:$0xff] }
 0x3d8   : > { %v8164_v29 = vrot.slane %v8150_v36, %v10104_v6  ;;  %v5190_v20 = vsel %vm10121_vm7, %v5188_v5, %v5189_v15  ;;  %v6089_v36 = vmax.f32 %v3282_v7, %v5184_v39  ;;  %v2219_v59 = vcombine.high %v2211_v44, %v2211_v44  ;;  %v18163_v39 = vld [vmem:[#allocation122_spill] sm:$0xff] }
 0x3d9   : > { %18161 = vst [vmem:[#allocation75_spill] sm:$0xff] %v14831_v16  ;;  %v5187_v11 = vsel %vm10121_vm7, %v5185_v4, %v5186_v25  ;;  %v6091_v54 = vmax.f32 %v3289_v42, %v5190_v20  ;;  %v14849_v52 = vcombine.high %v2218_v35, %v2218_v35  ;;  %v4526_v7 = vrot.slane %v2211_v44, 7 }
 0x3da   : > { %v8165_v17 = vcombine.low %v8157_v32, %v8164_v29  ;;  %v6090_v29 = vmax.f32 %v3290_v46, %v5187_v11  ;;  %v14853_v53 = vmax.f32 %v6089_v36, %v3290_v46  ;;  %v4525_v32 = vrot.slane %v4523_v10, 2 }
 0x3db   : > { %v18165_v5 = vmax.f32 %v18163_v39, %v18164_v55  ;;  %v14862_v51 = vmax.f32 %v6091_v54, %v14822_v48  ;;  %v4529_v4 = vrot.slane %v2219_v59, 7  ;;  %v9335_v25 = vrot.slane %v2218_v35, 9  ;;  %v18191_v55 = vld [vmem:[#allocation129_spill] sm:$0xff] }
 0x3dc   : > { %9110 = vst.msk [vmem:[%s12622_s19 + $0x60] sm:$0xff] %vm9097_vm8, %v8165_v17  ;;  %v14864_v20 = vmax.f32 %v6090_v29, %v3289_v42  ;;  %v14869_v46 = vmax.f32 %v6817_v37, %v14853_v53  ;;  %v4527_v10 = vsel %vm10121_vm7, %v4525_v32, %v4526_v7  ;;  %v18167_v17 = vmax.f32 %v14584_v58, %v14721_v34  ;;  %v18171_v32 = vld [vmem:[#allocation177_spill] sm:$0xff]  ;;  %v18179_v58 = vld [vmem:[#allocation176_spill] sm:$0xff] }
 0x3dd   : > { %v14859_v21 = vmax.f32 %v18165_v5, %v14747_v23  ;;  %v4528_v54 = vrot.slane %v4526_v7, 2  ;;  %v5887_v42 = vmax.f32 %v14739_v22, %v4527_v10  ;;  %v18169_v29 = vcombine.low %v14750_v19, %v14759_v63  ;;  %v18170_v5 = vld [vmem:[#allocation124_spill] sm:$0xff]  ;;  %v18175_v22 = vld [vmem:[#allocation98_spill] sm:$0xff]  ;;  %v18176_v10 = vld [vmem:[#allocation125_spill] sm:$0xff] }
 0x3de   : > { %18166 = vst [vmem:[#allocation173_spill] sm:$0xff] %v14869_v46  ;;  %v14877_v36 = vmax.f32 %v18167_v17, %v14862_v51  ;;  %v18172_v11 = vmax.f32 %v18170_v5, %v18171_v32  ;;  %v18173_v7 = vmax.f32 %v14578_v61, %v14715_v41  ;;  %v7393_v0 = vmax.f32 %v18176_v10, %v18175_v22  ;;  %v18178_v5 = vld [vmem:[#allocation16_spill] sm:$0xff] }
 0x3df   : > { %v14885_v37 = vrot.slane %v18169_v29, %v10104_v6  ;;  %v4530_v63 = vsel %vm10121_vm7, %v4528_v54, %v4529_v4  ;;  %v18177_v19 = vrot.slane %v14849_v52, 7  ;;  %v14907_v29 = vmax.f32 %v5887_v42, %v2211_v44 }
 0x3e0   : > { %18168 = vst [vmem:[#allocation203_spill] sm:$0xff] %v14877_v36  ;;  %v7486_v39 = vmax.f32 %v18172_v11, %v14831_v16  ;;  %v14897_v17 = vmax.f32 %v18173_v7, %v14864_v20  ;;  %v18180_v32 = vmax.f32 %v18178_v5, %v18179_v58  ;;  %v5888_v7 = vmax.f32 %v2211_v44, %v4530_v63  ;;  %v14968_v58 = vpop.f32.mrb[108].mxu1 }
 0x3e1   : > { %v4534_v11 = vsel %vm10121_vm7, %v9335_v25, %v18177_v19  ;;  %v6655_v10 = vmax.f32 %v14526_v31, %v14690_v38  ;;  %v6657_v54 = vmax.f32 %v14667_v47, %v14795_v57  ;;  %v1222_v42 = vadd.f32 %v14807_v9, %v14127_v56 }
 0x3e2   : > { %18174 = vst [vmem:[#allocation124_spill] sm:$0xff] %v14897_v17  ;;  %v7485_v61 = vmax.f32 %v18180_v32, %v14820_v30  ;;  %v5889_v16 = vmax.f32 %v2218_v35, %v4534_v11  ;;  %v14923_v5 = vmax.f32 %v5888_v7, %v2219_v59  ;;  %v18182_v35 = vld [vmem:[#allocation178_spill] sm:$0xff]  ;;  %v18183_v32 = vld [vmem:[#allocation19_spill] sm:$0xff]  ;;  %v5191_v4 = vrot.slane %v5189_v15, 2 }
 0x3e3   : > { %v14929_v31 = vmax.f32 %v6655_v10, %v14907_v29  ;;  %v7231_v63 = vmax.f32 %v18183_v32, %v18182_v35  ;;  %v3292_v11 = vcombine.high %v1222_v42, %v1222_v42  ;;  %v3299_v47 = vrot.slane %v1222_v42, %v10104_v6  ;;  %v18188_v32 = vld [vmem:[#allocation126_spill] sm:$0xff] }
 0x3e4   : > { %v8166_v19 = vcombine.low %v7485_v61, %v7486_v39  ;;  %v14926_v44 = vmax.f32 %v5889_v16, %v14849_v52  ;;  %v18184_v56 = vmax.f32 %v14528_v33, %v14778_v26  ;;  %v18187_v39 = vmax.f32 %v14653_v62, %v14756_v18  ;;  %v18192_v62 = vld [vmem:[#allocation60_spill] sm:$0xff] }
 0x3e5   : > { %18181 = vst [vmem:[#allocation16_spill] sm:$0xff] %v14929_v31  ;;  %v7487_v61 = vmax.f32 %v7231_v63, %v14929_v31  ;;  %v3306_v7 = vrot.slane %v3292_v11, %v10104_v6  ;;  %v3307_v42 = vcombine.high %v3299_v47, %v3299_v47 }
 0x3e6   : > { %v14940_v59 = vmax.f32 %v18184_v56, %v14923_v5  ;;  %v14943_v16 = vmax.f32 %v6657_v54, %v14926_v44  ;;  %v14949_v10 = vmax.f32 %v18187_v39, %v14671_v43  ;;  %v8174_v33 = vrot.slane %v8166_v19, %v10104_v6  ;;  %v18189_v54 = vld [vmem:[#allocation58_spill] sm:$0xff] }
 0x3e7   : > { %v18190_v56 = vmax.f32 %v18188_v32, %v18189_v54  ;;  %v18193_v43 = vmax.f32 %v18191_v55, %v18192_v62  ;;  %v5192_v39 = vrot.slane %v3299_v47, 7  ;;  %v14964_v23 = vcombine.high %v3306_v7, %v3306_v7  ;;  %v9725_v32 = vpop.f32.mrb[109].mxu1 }
 0x3e8   : > { %18185 = vst [vmem:[#allocation19_spill] sm:$0xff] %v14940_v59  ;;  %18186 = vst [vmem:[#allocation204_spill] sm:$0xff] %v14943_v16  ;;  %v9386_v15 = vrot.slane %v3307_v42, 9  ;;  %v5196_v63 = vrot.slane %v3306_v7, 7  ;;  %v6820_v11 = vmax.f32 %v14586_v13, %v14949_v10  ;;  %v7649_v19 = vmax.f32 %v7393_v0, %v14869_v46  ;;  %v18196_v32 = vld [vmem:[#allocation14_spill] sm:$0xff] }
 0x3e9   : > { %v7650_v25 = vmax.f32 %v18190_v56, %v14897_v17  ;;  %v7488_v18 = vmax.f32 %v18193_v43, %v14940_v59  ;;  %v5193_v56 = vsel %vm10121_vm7, %v5191_v4, %v5192_v39  ;;  %v18194_v55 = vmax.f32 %v14457_v3, %v14586_v13 }
 0x3ea   : > { %v5197_v54 = vsel %vm10121_vm7, %v9386_v15, %v5196_v63  ;;  %v5198_v17 = vrot.slane %v5196_v63, 2  ;;  %v5199_v40 = vrot.slane %v14964_v23, 7  ;;  %v6092_v8 = vmax.f32 %v14822_v48, %v5193_v56  ;;  %v18197_v15 = vld [vmem:[#allocation127_spill] sm:$0xff]  ;;  %v18198_v63 = vld [vmem:[#allocation78_spill] sm:$0xff] }
 0x3eb   : > { %v8167_v30 = vcombine.low %v7487_v61, %v7488_v18  ;;  %v14977_v43 = vmax.f32 %v18194_v55, %v14949_v10  ;;  %v8863_v4 = vcombine.low %v7649_v19, %v7650_v25  ;;  %v6093_v18 = vmax.f32 %v3307_v42, %v5197_v54  ;;  %v18199_v55 = vld [vmem:[#allocation53_spill] sm:$0xff]  ;;  %v18201_v25 = vld [vmem:[#allocation179_spill] sm:$0xff]  ;;  %v18202_v19 = vld [vmem:[#allocation130_spill] sm:$0xff] }
 0x3ec   : > { %v5200_v3 = vsel %vm10121_vm7, %v5198_v17, %v5199_v40  ;;  %v14988_v13 = vmax.f32 %v6092_v8, %v3299_v47  ;;  %v7395_v39 = vmax.f32 %v18197_v15, %v18196_v32  ;;  %v18200_v48 = vmax.f32 %v18198_v63, %v18199_v55  ;;  %v18231_v32 = vld [vmem:[#allocation81_spill] sm:$0xff] }
 0x3ed   : > { %18195 = vst [vmem:[#allocation129_spill] sm:$0xff] %v14977_v43  ;;  %v8181_v61 = vrot.slane %v8167_v30, %v10104_v6  ;;  %v6094_v0 = vmax.f32 %v3306_v7, %v5200_v3  ;;  %v6493_v46 = vmax.f32 %v6093_v18, %v3306_v7  ;;  %v7396_v30 = vmax.f32 %v18202_v19, %v18201_v25  ;;  %v18230_v25 = vld [vmem:[#allocation182_spill] sm:$0xff] }
 0x3ee   : > { %v7648_v56 = vmax.f32 %v18200_v48, %v14977_v43  ;;  %v15001_v8 = vmax.f32 %v6820_v11, %v14988_v13  ;;  %v971_v47 = vadd.f32 %v14807_v9, %v14182_v12  ;;  %v18204_v7 = vmax.f32 %v14713_v2, %v14853_v53 }
 0x3ef   : > { %v8182_v14 = vcombine.low %v8174_v33, %v8181_v61  ;;  %v6494_v33 = vmax.f32 %v6094_v0, %v14964_v23  ;;  %v6658_v61 = vmax.f32 %v14676_v1, %v14814_v24  ;;  %v6660_v11 = vmax.f32 %v14778_v26, %v14923_v5 }
 0x3f0   : > { %18203 = vst [vmem:[#allocation205_spill] sm:$0xff] %v15001_v8  ;;  %v8847_v17 = vcombine.low %v14859_v21, %v7648_v56  ;;  %v15012_v54 = vmax.f32 %v18204_v7, %v6493_v46  ;;  %v7651_v21 = vmax.f32 %v7395_v39, %v14877_v36  ;;  %v7652_v18 = vmax.f32 %v7396_v30, %v15001_v8  ;;  %v18209_v46 = vld [vmem:[#allocation64_spill] sm:$0xff]  ;;  %v18210_v39 = vld [vmem:[#allocation131_spill] sm:$0xff]  ;;  %v18215_v7 = vld [vmem:[#allocation181_spill] sm:$0xff] }
 0x3f1   : > { %9111 = vst.msk [vmem:[%s12622_s19 + $0x68] sm:$0xff] %vm9097_vm8, %v8182_v14  ;;  %v2221_v14 = vcombine.high %v971_v47, %v971_v47  ;;  %v8871_v0 = vrot.slane %v8863_v4, %v10104_v6  ;;  %v18206_v3 = vrot.slane %v14849_v52, 7  ;;  %v18207_v53 = vmax.f32 %v14715_v41, %v14864_v20  ;;  %v15034_v4 = vpop.f32.mrb[110].mxu0 }
 0x3f2   : > { %18205 = vst [vmem:[#allocation206_spill] sm:$0xff] %v15012_v54  ;;  %v8861_v12 = vrot.slane %v8847_v17, %v10104_v6  ;;  %v2228_v26 = vrot.slane %v971_v47, %v10104_v6  ;;  %v7397_v48 = vmax.f32 %v18210_v39, %v18209_v46  ;;  %v8864_v30 = vcombine.low %v7651_v21, %v7652_v18  ;;  %v18213_v21 = vld [vmem:[#allocation132_spill] sm:$0xff] }
 0x3f3   : > { %v4535_v2 = vrot.slane %v18206_v3, 2  ;;  %v15027_v1 = vmax.f32 %v18207_v53, %v6494_v33  ;;  %v2235_v17 = vrot.slane %v2221_v14, %v10104_v6  ;;  %18211 = vst [vmem:[#allocation208_spill] sm:$0xff] %v15034_v4  ;;  %v9598_v3 = vpop.f32.mrb[111].mxu0  ;;  %v18214_v14 = vld [vmem:[#allocation20_spill] sm:$0xff] }
 0x3f4   : > { %v8862_v56 = vcombine.low %v14885_v37, %v8861_v12  ;;  %v2236_v20 = vcombine.high %v2228_v26, %v2228_v26  ;;  %v4536_v33 = vrot.slane %v2228_v26, 7  ;;  %v7653_v47 = vmax.f32 %v7397_v48, %v15012_v54  ;;  %v18212_v37 = vld [vmem:[#allocation180_spill] sm:$0xff] }
 0x3f5   : > { %18208 = vst [vmem:[#allocation207_spill] sm:$0xff] %v15027_v1  ;;  %v8878_v53 = vrot.slane %v8864_v30, %v10104_v6  ;;  %v7234_v18 = vmax.f32 %v18213_v21, %v18212_v37  ;;  %v1227_v12 = vadd.f32 %v14807_v9, %v14301_v60  ;;  %v18216_v41 = vmax.f32 %v18214_v14, %v18215_v7  ;;  %v18292_v46 = vld [vmem:[#allocation168_spill] sm:$0xff] }
 0x3f6   : > { %9151 = vst.msk [vmem:[%s12622_s19 + $0x1a8] sm:$0xff] %vm9097_vm8, %v8862_v56  ;;  %v4537_v3 = vsel %vm10121_vm7, %v4535_v2, %v4536_v33  ;;  %v4538_v48 = vrot.slane %v4536_v33, 2  ;;  %v4539_v39 = vrot.slane %v2236_v20, 7  ;;  %v15054_v19 = vcombine.high %v2235_v17, %v2235_v17 }
 0x3f7   : > { %v7654_v42 = vmax.f32 %v18216_v41, %v15027_v1  ;;  %v8879_v30 = vcombine.low %v8871_v0, %v8878_v53  ;;  %v5890_v56 = vmax.f32 %v14849_v52, %v4537_v3  ;;  %v3309_v15 = vcombine.high %v1227_v12, %v1227_v12 }
 0x3f8   : > { %v4540_v21 = vsel %vm10121_vm7, %v4538_v48, %v4539_v39  ;;  %v4541_v60 = vrot.slane %v4539_v39, 2  ;;  %v4542_v63 = vrot.slane %v2235_v17, 7  ;;  %v3316_v62 = vrot.slane %v1227_v12, %v10104_v6 }
 0x3f9   : > { %9152 = vst.msk [vmem:[%s12622_s19 + $0x1b0] sm:$0xff] %vm9097_vm8, %v8879_v30  ;;  %v5891_v41 = vmax.f32 %v2228_v26, %v4540_v21  ;;  %v15062_v14 = vmax.f32 %v5890_v56, %v2228_v26  ;;  %v15065_v2 = vrot.slane %v3309_v15, %v10104_v6  ;;  %v5201_v0 = vrot.slane %v5199_v40, 2 }
 0x3fa   : > { %v4543_v52 = vsel %vm10121_vm7, %v4541_v60, %v4542_v63  ;;  %v3324_v33 = vcombine.high %v3316_v62, %v3316_v62  ;;  %v5202_v53 = vrot.slane %v3316_v62, 7  ;;  %v6823_v39 = vmax.f32 %v14721_v34, %v14862_v51  ;;  %v18218_v34 = vld [vmem:[#allocation128_spill] sm:$0xff] }
 0x3fb   : > { %v5892_v3 = vmax.f32 %v2236_v20, %v4543_v52  ;;  %v15071_v48 = vmax.f32 %v5891_v41, %v2236_v20  ;;  %v15076_v26 = vmax.f32 %v6658_v61, %v15062_v14  ;;  %v15080_v40 = vcombine.high %v15065_v2, %v15065_v2  ;;  %v18219_v51 = vld [vmem:[#allocation24_spill] sm:$0xff]  ;;  %v18225_v61 = vld [vmem:[#allocation133_spill] sm:$0xff] }
 0x3fc   : > { %v5203_v15 = vsel %vm10121_vm7, %v5201_v0, %v5202_v53  ;;  %v5204_v63 = vrot.slane %v5202_v53, 2  ;;  %v5205_v30 = vrot.slane %v3324_v33, 7  ;;  %v18220_v20 = vmax.f32 %v18218_v34, %v18219_v51 }
 0x3fd   : > { %18217 = vst [vmem:[#allocation132_spill] sm:$0xff] %v15076_v26  ;;  %v15088_v21 = vmax.f32 %v5892_v3, %v2235_v17  ;;  %v18221_v60 = vmax.f32 %v14690_v38, %v14907_v29  ;;  %v8880_v52 = vcombine.low %v7653_v47, %v7654_v42  ;;  %v7490_v0 = vmax.f32 %v7234_v18, %v15076_v26  ;;  %v18228_v17 = vld [vmem:[#allocation184_spill] sm:$0xff] }
 0x3fe   : > { %v7489_v56 = vmax.f32 %v18220_v20, %v14943_v16  ;;  %v5206_v53 = vsel %vm10121_vm7, %v5204_v63, %v5205_v30  ;;  %v9387_v34 = vrot.slane %v15065_v2, 9  ;;  %v18224_v20 = vld [vmem:[#allocation63_spill] sm:$0xff]  ;;  %v5209_v38 = vrot.slane %v15080_v40, 7  ;;  %v15116_v30 = vpop.f32.mrb[110].mxu1  ;;  %v18372_v26 = vld [vmem:[#allocation92_spill] sm:$0xff] }
 0x3ff   : > { %v15096_v41 = vmax.f32 %v18221_v60, %v15071_v48  ;;  %v15105_v3 = vmax.f32 %v6660_v11, %v15088_v21  ;;  %v7235_v12 = vmax.f32 %v18225_v61, %v18224_v20  ;;  %v9336_v18 = vrot.slane %v15054_v19, 9  ;;  %18226 = vst [vmem:[#allocation133_spill] sm:$0xff] %v15116_v30  ;;  %v18227_v60 = vld [vmem:[#allocation134_spill] sm:$0xff]  ;;  %v9726_v51 = vpop.f32.mrb[111].mxu1 }
 0x400   : > { %v6095_v63 = vmax.f32 %v14964_v23, %v5203_v15  ;;  %v18229_v61 = vmax.f32 %v18227_v60, %v18228_v17  ;;  %v8183_v7 = vcombine.low %v7489_v56, %v7490_v0  ;;  %v6096_v1 = vmax.f32 %v3316_v62, %v5206_v53 }
 0x401   : > { %18222 = vst [vmem:[#allocation128_spill] sm:$0xff] %v15096_v41  ;;  %18223 = vst [vmem:[#allocation209_spill] sm:$0xff] %v15105_v3  ;;  %v7491_v11 = vmax.f32 %v7235_v12, %v15096_v41  ;;  %v8888_v42 = vrot.slane %v8880_v52, %v10104_v6  ;;  %v15126_v47 = vsel %vm10121_vm7, %v9387_v34, %v5209_v38  ;;  %v5211_v12 = vrot.slane %v5209_v38, 2  ;;  %v18238_v38 = vld [vmem:[#allocation137_spill] sm:$0xff]  ;;  %v18332_v41 = vld [vmem:[#allocation18_spill] sm:$0xff] }
 0x402   : > { %v7492_v59 = vmax.f32 %v18229_v61, %v15105_v3  ;;  %v6495_v16 = vmax.f32 %v6095_v63, %v3316_v62  ;;  %v974_v23 = vadd.f32 %v14807_v9, %v14328_v49  ;;  %v6496_v8 = vmax.f32 %v6096_v1, %v3324_v33  ;;  %v18235_v1 = vld [vmem:[#allocation183_spill] sm:$0xff] }
 0x403   : > { %v7399_v60 = vmax.f32 %v18231_v32, %v18230_v25  ;;  %v1230_v52 = vadd.f32 %v14807_v9, %v14417_v27  ;;  %v8191_v0 = vrot.slane %v8183_v7, %v10104_v6  ;;  %v18233_v49 = vmax.f32 %v14949_v10, %v14988_v13  ;;  %v18236_v33 = vld [vmem:[#allocation135_spill] sm:$0xff]  ;;  %v18237_v27 = vld [vmem:[#allocation69_spill] sm:$0xff]  ;;  %v18290_v25 = vld [vmem:[#allocation82_spill] sm:$0xff] }
 0x404   : > { %v8184_v15 = vcombine.low %v7491_v11, %v7492_v59  ;;  %v15132_v61 = vmax.f32 %v6823_v39, %v6495_v16  ;;  %v2238_v56 = vcombine.high %v974_v23, %v974_v23  ;;  %v2245_v51 = vrot.slane %v974_v23, %v10104_v6 }
 0x405   : > { %v15142_v59 = vmax.f32 %v18233_v49, %v6496_v8  ;;  %v7400_v16 = vmax.f32 %v18236_v33, %v18235_v1  ;;  %v6097_v39 = vmax.f32 %v15065_v2, %v15126_v47  ;;  %v7238_v7 = vmax.f32 %v18238_v38, %v18237_v27  ;;  %v15153_v33 = vpop.f32.mrb[112].mxu0 }
 0x406   : > { %18232 = vst [vmem:[#allocation134_spill] sm:$0xff] %v15132_v61  ;;  %v8198_v62 = vrot.slane %v8184_v15, %v10104_v6  ;;  %v2252_v53 = vrot.slane %v2238_v56, %v10104_v6  ;;  %v2253_v34 = vcombine.high %v2245_v51, %v2245_v51  ;;  %v7655_v11 = vmax.f32 %v7399_v60, %v15132_v61 }
 0x407   : > { %18234 = vst [vmem:[#allocation210_spill] sm:$0xff] %v15142_v59  ;;  %v7656_v10 = vmax.f32 %v7400_v16, %v15142_v59  ;;  %v4546_v13 = vrot.slane %v2245_v51, 7  ;;  %v3326_v49 = vcombine.high %v1230_v52, %v1230_v52  ;;  %18239 = vst [vmem:[#allocation137_spill] sm:$0xff] %v15153_v33 }
 0x408   : > { %v8199_v63 = vcombine.low %v8191_v0, %v8198_v62  ;;  %v2254_v8 = vcombine.high %v2252_v53, %v2252_v53  ;;  %v4549_v23 = vrot.slane %v2253_v34, 7  ;;  %v4552_v15 = vrot.slane %v2252_v53, 7  ;;  %v9601_v62 = vpop.f32.mrb[113].mxu0 }
 0x409   : > { %v8881_v2 = vcombine.low %v7655_v11, %v7656_v10  ;;  %v4547_v47 = vsel %vm10121_vm7, %v9336_v18, %v4546_v13  ;;  %v4548_v56 = vrot.slane %v4546_v13, 2  ;;  %v3333_v0 = vrot.slane %v1230_v52, %v10104_v6  ;;  %v18240_v62 = vld [vmem:[#allocation189_spill] sm:$0xff] }
 0x40a   : > { %9112 = vst.msk [vmem:[%s12622_s19 + $0x70] sm:$0xff] %vm9097_vm8, %v8199_v63  ;;  %v4551_v60 = vrot.slane %v4549_v23, 2  ;;  %v4554_v38 = vrot.slane %v4552_v15, 2  ;;  %v4555_v16 = vrot.slane %v2254_v8, 7  ;;  %v5893_v32 = vmax.f32 %v15054_v19, %v4547_v47 }
 0x40b   : > { %v8895_v17 = vrot.slane %v8881_v2, %v10104_v6  ;;  %v4550_v3 = vsel %vm10121_vm7, %v4548_v56, %v4549_v23  ;;  %v15165_v63 = vrot.slane %v3326_v49, %v10104_v6  ;;  %v15167_v11 = vcombine.high %v3333_v0, %v3333_v0 }
 0x40c   : > { %v4553_v18 = vsel %vm10121_vm7, %v4551_v60, %v4552_v15  ;;  %v4556_v52 = vsel %vm10121_vm7, %v4554_v38, %v4555_v16  ;;  %v5894_v10 = vmax.f32 %v2245_v51, %v4550_v3  ;;  %v6293_v13 = vmax.f32 %v5893_v32, %v2245_v51 }
 0x40d   : > { %v8896_v19 = vcombine.low %v8888_v42, %v8895_v17  ;;  %v5895_v47 = vmax.f32 %v2253_v34, %v4553_v18  ;;  %v5896_v2 = vmax.f32 %v2252_v53, %v4556_v52  ;;  %v979_v36 = vadd.f32 %v14807_v9, %v18240_v62  ;;  %v18243_v17 = vld [vmem:[#allocation104_spill] sm:$0xff]  ;;  %v18253_v62 = vld [vmem:[#allocation139_spill] sm:$0xff] }
 0x40e   : > { %v6294_v23 = vmax.f32 %v5894_v10, %v2253_v34  ;;  %v18241_v49 = vmax.f32 %v14795_v57, %v14926_v44  ;;  %v5212_v35 = vrot.slane %v3333_v0, 7  ;;  %v5215_v15 = vrot.slane %v15167_v11, 7  ;;  %v18246_v57 = vld [vmem:[#allocation136_spill] sm:$0xff] }
 0x40f   : > { %9153 = vst.msk [vmem:[%s12622_s19 + $0x1b8] sm:$0xff] %vm9097_vm8, %v8896_v19  ;;  %v6295_v60 = vmax.f32 %v5895_v47, %v2252_v53  ;;  %v6296_v3 = vmax.f32 %v5896_v2, %v2254_v8  ;;  %v5218_v32 = vrot.slane %v15165_v63, 7  ;;  %v1235_v42 = vadd.f32 %v14807_v9, %v18243_v17  ;;  %v18247_v44 = vld [vmem:[#allocation156_spill] sm:$0xff] }
 0x410   : > { %v15178_v56 = vmax.f32 %v18241_v49, %v6293_v13  ;;  %v18244_v51 = vmax.f32 %v14814_v24, %v15062_v14  ;;  %v18248_v38 = vmax.f32 %v18246_v57, %v18247_v44  ;;  %v15197_v18 = vcombine.high %v15165_v63, %v15165_v63  ;;  %v18256_v49 = vld [vmem:[#allocation138_spill] sm:$0xff]  ;;  %v18327_v44 = vld [vmem:[#allocation17_spill] sm:$0xff] }
 0x411   : > { %v5213_v53 = vsel %vm10121_vm7, %v5211_v12, %v5212_v35  ;;  %v18249_v8 = vmax.f32 %v14907_v29, %v15071_v48  ;;  %v18251_v24 = vmax.f32 %v14923_v5, %v15088_v21  ;;  %v5214_v10 = vrot.slane %v5212_v35, 2  ;;  %v18254_v29 = vld [vmem:[#allocation65_spill] sm:$0xff]  ;;  %v18257_v5 = vld [vmem:[#allocation72_spill] sm:$0xff] }
 0x412   : > { %18242 = vst [vmem:[#allocation189_spill] sm:$0xff] %v15178_v56  ;;  %v15189_v34 = vmax.f32 %v18244_v51, %v6294_v23  ;;  %v7493_v16 = vmax.f32 %v18248_v38, %v15178_v56  ;;  %v5217_v13 = vrot.slane %v5215_v15, 2  ;;  %v15212_v19 = vmax.f32 %v6097_v39, %v15080_v40  ;;  %v15231_v51 = vpop.f32.mrb[112].mxu1  ;;  %v18328_v56 = vld [vmem:[#allocation21_spill] sm:$0xff] }
 0x413   : > { %v15204_v52 = vmax.f32 %v18249_v8, %v6295_v60  ;;  %v15209_v14 = vmax.f32 %v18251_v24, %v6296_v3  ;;  %v6098_v2 = vmax.f32 %v15080_v40, %v5213_v53  ;;  %v2255_v12 = vcombine.high %v979_v36, %v979_v36  ;;  %18259 = vst [vmem:[#allocation139_spill] sm:$0xff] %v15231_v51  ;;  %v9729_v24 = vpop.f32.mrb[113].mxu1  ;;  %v18265_v51 = vld [vmem:[#allocation142_spill] sm:$0xff] }
 0x414   : > { %18245 = vst [vmem:[#allocation104_spill] sm:$0xff] %v15189_v34  ;;  %v7494_v47 = vmax.f32 %v7238_v7, %v15189_v34  ;;  %v18255_v48 = vmax.f32 %v18253_v62, %v18254_v29  ;;  %v18258_v21 = vmax.f32 %v18256_v49, %v18257_v5  ;;  %v5216_v35 = vsel %vm10121_vm7, %v5214_v10, %v5215_v15  ;;  %v18260_v49 = vld [vmem:[#allocation191_spill] sm:$0xff] }
 0x415   : > { %18250 = vst [vmem:[#allocation136_spill] sm:$0xff] %v15204_v52  ;;  %18252 = vst [vmem:[#allocation211_spill] sm:$0xff] %v15209_v14  ;;  %v5219_v39 = vsel %vm10121_vm7, %v5217_v13, %v5218_v32  ;;  %v9388_v40 = vrot.slane %v15197_v18, 9  ;;  %v6099_v3 = vmax.f32 %v3333_v0, %v5216_v35  ;;  %v15229_v17 = vmax.f32 %v6098_v2, %v3333_v0 }
 0x416   : > { %v7495_v23 = vmax.f32 %v18255_v48, %v15204_v52  ;;  %v7496_v60 = vmax.f32 %v18258_v21, %v15209_v14  ;;  %v8200_v7 = vcombine.low %v7493_v16, %v7494_v47  ;;  %v2262_v38 = vrot.slane %v979_v36, %v10104_v6 }
 0x417   : > { %v15235_v53 = vrot.slane %v2255_v12, %v10104_v6  ;;  %v3343_v8 = vcombine.high %v1235_v42, %v1235_v42  ;;  %v6100_v32 = vmax.f32 %v15167_v11, %v5219_v39  ;;  %v15240_v16 = vmax.f32 %v6099_v3, %v15167_v11 }
 0x418   : > { %v8201_v57 = vcombine.low %v7495_v23, %v7496_v60  ;;  %v8208_v15 = vrot.slane %v8200_v7, %v10104_v6  ;;  %v3350_v0 = vrot.slane %v1235_v42, %v10104_v6  ;;  %v2270_v13 = vcombine.high %v2262_v38, %v2262_v38 }
 0x419   : > { %v15246_v36 = vcombine.high %v15235_v53, %v15235_v53  ;;  %v9337_v47 = vrot.slane %v2262_v38, 9  ;;  %v4562_v2 = vrot.slane %v15235_v53, 7  ;;  %v15250_v12 = vrot.slane %v3343_v8, %v10104_v6 }
 0x41a   : > { %v8215_v10 = vrot.slane %v8201_v57, %v10104_v6  ;;  %v3358_v62 = vcombine.high %v3350_v0, %v3350_v0  ;;  %v5222_v48 = vrot.slane %v3350_v0, 7  ;;  %v4559_v23 = vrot.slane %v2270_v13, 7 }
 0x41b   : > { %v4565_v42 = vrot.slane %v15246_v36, 7  ;;  %v982_v21 = vadd.f32 %v14807_v9, %v18260_v49  ;;  %v4564_v60 = vrot.slane %v4562_v2, 2  ;;  %v15257_v35 = vcombine.high %v15250_v12, %v15250_v12 }
 0x41c   : > { %v8216_v11 = vcombine.low %v8208_v15, %v8215_v10  ;;  %v5223_v39 = vsel %vm10121_vm7, %v9388_v40, %v5222_v48  ;;  %v5224_v7 = vrot.slane %v5222_v48, 2  ;;  %v4560_v3 = vsel %vm10121_vm7, %v9337_v47, %v4559_v23 }
 0x41d   : > { %v4561_v57 = vrot.slane %v4559_v23, 2  ;;  %v5225_v8 = vrot.slane %v3358_v62, 7  ;;  %v5228_v24 = vrot.slane %v15250_v12, 7  ;;  %v15267_v15 = vmax.f32 %v6100_v32, %v15165_v63 }
 0x41e   : > { %9113 = vst.msk [vmem:[%s12622_s19 + $0x78] sm:$0xff] %vm9097_vm8, %v8216_v11  ;;  %v15271_v10 = vsel %vm10121_vm7, %v4564_v60, %v4565_v42  ;;  %v5897_v49 = vmax.f32 %v2262_v38, %v4560_v3  ;;  %v6101_v40 = vmax.f32 %v15197_v18, %v5223_v39  ;;  %v5231_v23 = vrot.slane %v15257_v35, 7 }
 0x41f   : > { %v4563_v48 = vsel %vm10121_vm7, %v4561_v57, %v4562_v2  ;;  %v5226_v47 = vsel %vm10121_vm7, %v5224_v7, %v5225_v8  ;;  %v5227_v11 = vrot.slane %v5225_v8, 2  ;;  %v5230_v32 = vrot.slane %v5228_v24, 2  ;;  %v15293_v8 = vpop.f32.mrb[114].mxu0 }
 0x420   : > { %v5898_v5 = vmax.f32 %v2270_v13, %v4563_v48  ;;  %v6102_v14 = vmax.f32 %v3350_v0, %v5226_v47  ;;  %v15283_v60 = vmax.f32 %v6101_v40, %v3350_v0  ;;  %v2272_v18 = vcombine.high %v982_v21, %v982_v21  ;;  %18261 = vst [vmem:[#allocation138_spill] sm:$0xff] %v15293_v8  ;;  %v18264_v8 = vld [vmem:[#allocation74_spill] sm:$0xff] }
 0x421   : > { %v5229_v38 = vsel %vm10121_vm7, %v5227_v11, %v5228_v24  ;;  %v2279_v2 = vrot.slane %v982_v21, %v10104_v6  ;;  %v15286_v39 = vmax.f32 %v5897_v49, %v2270_v13  ;;  %v15297_v48 = vsel %vm10121_vm7, %v5230_v32, %v5231_v23  ;;  %v9602_v13 = vpop.f32.mrb[115].mxu0  ;;  %v18262_v23 = vld [vmem:[#allocation194_spill] sm:$0xff] }
 0x422   : > { %v15289_v7 = vmax.f32 %v5898_v5, %v15235_v53  ;;  %v6103_v3 = vmax.f32 %v3358_v62, %v5229_v38  ;;  %v15291_v57 = vmax.f32 %v6102_v14, %v3358_v62  ;;  %v2286_v24 = vrot.slane %v2272_v18, %v10104_v6 }
 0x423   : > { %v2287_v21 = vcombine.high %v2279_v2, %v2279_v2  ;;  %v4567_v5 = vrot.slane %v4565_v42, 2  ;;  %v4568_v62 = vrot.slane %v2279_v2, 7  ;;  %v1238_v32 = vadd.f32 %v14807_v9, %v18262_v23 }
 0x424   : > { %v15303_v49 = vmax.f32 %v6103_v3, %v15250_v12  ;;  %v15307_v40 = vcombine.high %v2286_v24, %v2286_v24  ;;  %v4572_v11 = vrot.slane %v2286_v24, 7  ;;  %v987_v42 = vadd.f32 %v14807_v9, %v14624_v45 }
 0x425   : > { %v9338_v47 = vrot.slane %v2287_v21, 9  ;;  %v4569_v3 = vsel %vm10121_vm7, %v4567_v5, %v4568_v62  ;;  %v3360_v29 = vcombine.high %v1238_v32, %v1238_v32  ;;  %v3367_v38 = vrot.slane %v1238_v32, %v10104_v6 }
 0x426   : > { %v4574_v14 = vrot.slane %v4572_v11, 2  ;;  %v4575_v0 = vrot.slane %v15307_v40, 7  ;;  %v5900_v23 = vmax.f32 %v15246_v36, %v4569_v3  ;;  %v2289_v52 = vcombine.high %v987_v42, %v987_v42 }
 0x427   : > { %v4573_v13 = vsel %vm10121_vm7, %v9338_v47, %v4572_v11  ;;  %v2296_v45 = vrot.slane %v987_v42, %v10104_v6  ;;  %v3374_v11 = vrot.slane %v3360_v29, %v10104_v6  ;;  %v3375_v22 = vcombine.high %v3367_v38, %v3367_v38 }
 0x428   : > { %v5901_v63 = vmax.f32 %v2287_v21, %v4573_v13  ;;  %v4576_v18 = vsel %vm10121_vm7, %v4574_v14, %v4575_v0  ;;  %v15326_v5 = vmax.f32 %v5900_v23, %v2279_v2  ;;  %v4577_v62 = vrot.slane %v4575_v0, 2 }
 0x429   : > { %v5902_v31 = vmax.f32 %v2286_v24, %v4576_v18  ;;  %v9389_v3 = vrot.slane %v3367_v38, 9  ;;  %v2303_v21 = vrot.slane %v2289_v52, %v10104_v6  ;;  %v2304_v13 = vcombine.high %v2296_v45, %v2296_v45 }
 0x42a   : > { %v15329_v47 = vmax.f32 %v5901_v63, %v2286_v24  ;;  %v4578_v32 = vrot.slane %v2296_v45, 7  ;;  %v15338_v14 = vcombine.high %v3374_v11, %v3374_v11  ;;  %v5235_v0 = vrot.slane %v3375_v22, 7 }
 0x42b   : > { %v15334_v43 = vmax.f32 %v5902_v31, %v15307_v40  ;;  %v5238_v18 = vrot.slane %v3374_v11, 7  ;;  %v15340_v63 = vcombine.high %v2303_v21, %v2303_v21  ;;  %v7401_v33 = vmax.f32 %v18265_v51, %v18264_v8 }
 0x42c   : > { %v6665_v2 = vmax.f32 %v15286_v39, %v15329_v47  ;;  %v4579_v29 = vsel %vm10121_vm7, %v4577_v62, %v4578_v32  ;;  %v4580_v24 = vrot.slane %v4578_v32, 2  ;;  %v5236_v31 = vsel %vm10121_vm7, %v9389_v3, %v5235_v0  ;;  %v15349_v39 = vpop.f32.mrb[114].mxu1 }
 0x42d   : > { %v5237_v42 = vrot.slane %v5235_v0, 2  ;;  %v5241_v23 = vrot.slane %v15338_v14, 7  ;;  %18263 = vst [vmem:[#allocation191_spill] sm:$0xff] %v15349_v39  ;;  %v5240_v55 = vrot.slane %v5238_v18, 2  ;;  %v6105_v50 = vmax.f32 %v3367_v38, %v5236_v31  ;;  %v9730_v4 = vpop.f32.mrb[115].mxu1 }
 0x42e   : > { %v4581_v30 = vrot.slane %v2304_v13, 7  ;;  %v9339_v32 = vrot.slane %v2303_v21, 9  ;;  %v4585_v52 = vrot.slane %v15340_v63, 7  ;;  %v5903_v3 = vmax.f32 %v15307_v40, %v4579_v29 }
 0x42f   : > { %v5239_v62 = vsel %vm10121_vm7, %v5237_v42, %v5238_v18  ;;  %v5242_v0 = vsel %vm10121_vm7, %v5240_v55, %v5241_v23  ;;  %v15359_v39 = vmax.f32 %v6105_v50, %v3375_v22  ;;  %v18266_v18 = vmax.f32 %v15235_v53, %v15271_v10  ;;  %v18268_v53 = vld [vmem:[#allocation73_spill] sm:$0xff] }
 0x430   : > { %v6106_v27 = vmax.f32 %v3375_v22, %v5239_v62  ;;  %v4582_v38 = vsel %vm10121_vm7, %v4580_v24, %v4581_v30  ;;  %v6107_v8 = vmax.f32 %v3374_v11, %v5242_v0  ;;  %v4586_v4 = vsel %vm10121_vm7, %v9339_v32, %v4585_v52  ;;  %v18271_v0 = vld [vmem:[#allocation144_spill] sm:$0xff] }
 0x431   : > { %v5904_v31 = vmax.f32 %v2296_v45, %v4582_v38  ;;  %v15369_v42 = vmax.f32 %v18266_v18, %v15246_v36  ;;  %v6829_v50 = vmax.f32 %v15283_v60, %v15359_v39  ;;  %v18267_v22 = vmax.f32 %v15212_v19, %v15283_v60  ;;  %v18272_v38 = vld [vmem:[#allocation30_spill] sm:$0xff] }
 0x432   : > { %v15371_v40 = vmax.f32 %v6106_v27, %v3374_v11  ;;  %v5905_v30 = vmax.f32 %v2303_v21, %v4586_v4  ;;  %v15380_v29 = vmax.f32 %v6107_v8, %v15338_v14  ;;  %v15382_v24 = vmax.f32 %v5903_v3, %v2296_v45 }
 0x433   : > { %v7145_v55 = vmax.f32 %v18267_v22, %v15359_v39  ;;  %v15384_v62 = vmax.f32 %v5904_v31, %v2304_v13  ;;  %v1243_v27 = vadd.f32 %v14807_v9, %v18268_v53  ;;  %v18269_v10 = vmax.f32 %v15229_v17, %v15291_v57 }
 0x434   : > { %v6830_v36 = vmax.f32 %v15291_v57, %v15371_v40  ;;  %v15395_v11 = vmax.f32 %v5905_v30, %v15340_v63  ;;  %v18270_v45 = vmax.f32 %v15240_v16, %v15303_v49  ;;  %v18273_v17 = vmax.f32 %v18271_v0, %v18272_v38  ;;  %v18276_v38 = vld [vmem:[#allocation143_spill] sm:$0xff] }
 0x435   : > { %v7146_v19 = vmax.f32 %v18269_v10, %v15371_v40  ;;  %v7657_v60 = vmax.f32 %v7401_v33, %v7145_v55  ;;  %v3377_v3 = vcombine.high %v1243_v27, %v1243_v27  ;;  %v3384_v16 = vrot.slane %v1243_v27, %v10104_v6  ;;  %v15427_v10 = vpop.f32.mrb[116].mxu0  ;;  %v18284_v0 = vld [vmem:[#allocation167_spill] sm:$0xff] }
 0x436   : > { %v7147_v21 = vmax.f32 %v18270_v45, %v15380_v29  ;;  %v15411_v8 = vmax.f32 %v6665_v2, %v15395_v11  ;;  %v5243_v18 = vrot.slane %v5241_v23, 2  ;;  %v18275_v22 = vmax.f32 %v15250_v12, %v15297_v48  ;;  %v9605_v12 = vpop.f32.mrb[117].mxu0 }
 0x437   : > { %v7658_v57 = vmax.f32 %v18273_v17, %v7146_v19  ;;  %v3391_v31 = vrot.slane %v3377_v3, %v10104_v6  ;;  %v3392_v27 = vcombine.high %v3384_v16, %v3384_v16  ;;  %v5244_v45 = vrot.slane %v3384_v16, 7  ;;  %v18277_v17 = vld [vmem:[#allocation76_spill] sm:$0xff] }
 0x438   : > { %18274 = vst [vmem:[#allocation194_spill] sm:$0xff] %v15411_v8  ;;  %v15421_v55 = vmax.f32 %v18275_v22, %v15257_v35  ;;  %v18278_v22 = vmax.f32 %v18276_v38, %v18277_v17  ;;  %v4587_v4 = vrot.slane %v4585_v52, 2  ;;  %v18281_v52 = vld [vmem:[#allocation145_spill] sm:$0xff]  ;;  %v18282_v38 = vld [vmem:[#allocation119_spill] sm:$0xff] }
 0x439   : > { %v8897_v53 = vcombine.low %v7657_v60, %v7658_v57  ;;  %v15429_v19 = vcombine.high %v3391_v31, %v3391_v31  ;;  %v5248_v23 = vrot.slane %v3391_v31, 7  ;;  %v9390_v48 = vrot.slane %v3392_v27, 9  ;;  %v18279_v60 = vld [vmem:[#allocation199_spill] sm:$0xff] }
 0x43a   : > { %v6828_v3 = vmax.f32 %v15267_v15, %v15421_v55  ;;  %v7659_v2 = vmax.f32 %v18278_v22, %v7147_v21  ;;  %v990_v57 = vadd.f32 %v14807_v9, %v18279_v60  ;;  %v5245_v30 = vsel %vm10121_vm7, %v5243_v18, %v5244_v45  ;;  %v18280_v22 = vld [vmem:[#allocation77_spill] sm:$0xff] }
 0x43b   : > { %v5250_v33 = vrot.slane %v5248_v23, 2  ;;  %v5251_v32 = vrot.slane %v15429_v19, 7  ;;  %v5249_v15 = vsel %vm10121_vm7, %v9390_v48, %v5248_v23  ;;  %v6108_v12 = vmax.f32 %v15338_v14, %v5245_v30  ;;  %v18283_v45 = vld [vmem:[#allocation105_spill] sm:$0xff] }
 0x43c   : > { %v2306_v35 = vcombine.high %v990_v57, %v990_v57  ;;  %v2313_v13 = vrot.slane %v990_v57, %v10104_v6  ;;  %v6109_v17 = vmax.f32 %v3392_v27, %v5249_v15  ;;  %v7404_v60 = vmax.f32 %v18281_v52, %v18280_v22 }
 0x43d   : > { %v5252_v21 = vsel %vm10121_vm7, %v5250_v33, %v5251_v32  ;;  %v1246_v18 = vadd.f32 %v14807_v9, %v18282_v38  ;;  %v18285_v51 = vmax.f32 %v18283_v45, %v18284_v0  ;;  %v15459_v30 = vmax.f32 %v6108_v12, %v3384_v16  ;;  %v18286_v9 = vld [vmem:[#allocation146_spill] sm:$0xff] }
 0x43e   : > { %v6110_v14 = vmax.f32 %v3391_v31, %v5252_v21  ;;  %v2321_v48 = vcombine.high %v2313_v13, %v2313_v13  ;;  %v15461_v57 = vmax.f32 %v6109_v17, %v3391_v31  ;;  %v2320_v33 = vrot.slane %v2306_v35, %v10104_v6 }
 0x43f   : > { %v15457_v23 = vmax.f32 %v18285_v51, %v15411_v8  ;;  %v4588_v27 = vrot.slane %v2313_v13, 7  ;;  %v3394_v15 = vcombine.high %v1246_v18, %v1246_v18  ;;  %v7148_v38 = vmax.f32 %v6828_v3, %v15459_v30  ;;  %v18287_v3 = vld [vmem:[#allocation106_spill] sm:$0xff] }
 0x440   : > { %v15465_v22 = vmax.f32 %v6110_v14, %v15429_v19  ;;  %v15471_v51 = vrot.slane %v1246_v18, %v10104_v6  ;;  %v7149_v31 = vmax.f32 %v6829_v50, %v15461_v57  ;;  %v8905_v21 = vrot.slane %v8897_v53, %v10104_v6  ;;  %v18289_v50 = vld [vmem:[#allocation148_spill] sm:$0xff] }
 0x441   : > { %v4589_v35 = vsel %vm10121_vm7, %v4587_v4, %v4588_v27  ;;  %v4590_v12 = vrot.slane %v4588_v27, 2  ;;  %v7660_v45 = vmax.f32 %v7404_v60, %v7148_v38  ;;  %v4591_v14 = vrot.slane %v2321_v48, 7 }
 0x442   : > { %v7150_v17 = vmax.f32 %v6830_v36, %v15465_v22  ;;  %v18288_v52 = vmax.f32 %v18286_v9, %v18287_v3  ;;  %v4594_v20 = vrot.slane %v2320_v33, 7  ;;  %v5906_v61 = vmax.f32 %v15340_v63, %v4589_v35  ;;  %v18293_v3 = vld [vmem:[#allocation147_spill] sm:$0xff] }
 0x443   : > { %v3408_v16 = vrot.slane %v3394_v15, %v10104_v6  ;;  %v18291_v54 = vmax.f32 %v18289_v50, %v18290_v25  ;;  %v8898_v27 = vcombine.low %v7659_v2, %v7660_v45  ;;  %v4592_v53 = vsel %vm10121_vm7, %v4590_v12, %v4591_v14  ;;  %v15499_v2 = vpop.f32.mrb[116].mxu1 }
 0x444   : > { %v7661_v18 = vmax.f32 %v18288_v52, %v7149_v31  ;;  %v4593_v36 = vrot.slane %v4591_v14, 2  ;;  %v5907_v60 = vmax.f32 %v2313_v13, %v4592_v53  ;;  %v15490_v38 = vmax.f32 %v5906_v61, %v2313_v13  ;;  %v9733_v45 = vpop.f32.mrb[117].mxu1 }
 0x445   : > { %v7662_v4 = vmax.f32 %v18291_v54, %v7150_v17  ;;  %v7242_v52 = vmax.f32 %v18293_v3, %v18292_v46  ;;  %v3409_v63 = vcombine.high %v15471_v51, %v15471_v51  ;;  %v8912_v15 = vrot.slane %v8898_v27, %v10104_v6 }
 0x446   : > { %v4595_v25 = vsel %vm10121_vm7, %v4593_v36, %v4594_v20  ;;  %v5253_v54 = vrot.slane %v5251_v32, 2  ;;  %v15501_v12 = vmax.f32 %v5907_v60, %v2321_v48  ;;  %v18294_v13 = vmax.f32 %v15289_v7, %v15334_v43 }
 0x447   : > { %v8914_v31 = vcombine.low %v7661_v18, %v7662_v4  ;;  %v5908_v35 = vmax.f32 %v2321_v48, %v4595_v25  ;;  %v8913_v14 = vcombine.low %v8905_v21, %v8912_v15  ;;  %v15511_v18 = vcombine.high %v3408_v16, %v3408_v16  ;;  %v18299_v25 = vld [vmem:[#allocation46_spill] sm:$0xff]  ;;  %v18305_v4 = vld [vmem:[#allocation15_spill] sm:$0xff] }
 0x448   : > { %v15509_v17 = vmax.f32 %v18294_v13, %v15490_v38  ;;  %v5254_v20 = vrot.slane %v15471_v51, 7  ;;  %v5257_v32 = vrot.slane %v3409_v63, 7  ;;  %v15514_v50 = vcombine.high %v2320_v33, %v2320_v33 }
 0x449   : > { %v15516_v48 = vmax.f32 %v5908_v35, %v2320_v33  ;;  %v18295_v7 = vmax.f32 %v15369_v42, %v15382_v24  ;;  %9154 = vst.msk [vmem:[%s12622_s19 + $0x1c0] sm:$0xff] %vm9097_vm8, %v8913_v14  ;;  %v9391_v60 = vrot.slane %v3408_v16, 9  ;;  %v18297_v42 = vmax.f32 %v15326_v5, %v15384_v62  ;;  %v18300_v35 = vld [vmem:[#allocation9_spill] sm:$0xff] }
 0x44a   : > { %v7498_v21 = vmax.f32 %v7242_v52, %v15509_v17  ;;  %v5255_v53 = vsel %vm10121_vm7, %v5253_v54, %v5254_v20  ;;  %v5256_v36 = vrot.slane %v5254_v20, 2  ;;  %v7243_v52 = vmax.f32 %v18300_v35, %v18299_v25  ;;  %v18302_v33 = vld [vmem:[#allocation37_spill] sm:$0xff] }
 0x44b   : > { %v15524_v27 = vmax.f32 %v18295_v7, %v15501_v12  ;;  %v15539_v15 = vmax.f32 %v18297_v42, %v15516_v48  ;;  %v5261_v45 = vrot.slane %v15511_v18, 7  ;;  %v6111_v14 = vmax.f32 %v15429_v19, %v5255_v53  ;;  %v18301_v7 = vld [vmem:[#allocation13_spill] sm:$0xff] }
 0x44c   : > { %v8217_v13 = vcombine.low %v15457_v23, %v7498_v21  ;;  %v5258_v54 = vsel %vm10121_vm7, %v5256_v36, %v5257_v32  ;;  %v18303_v5 = vmax.f32 %v18301_v7, %v18302_v33  ;;  %v6831_v35 = vmax.f32 %v15303_v49, %v15380_v29 }
 0x44d   : > { %18296 = vst [vmem:[#allocation74_spill] sm:$0xff] %v15524_v27  ;;  %18298 = vst [vmem:[#allocation73_spill] sm:$0xff] %v15539_v15  ;;  %v7499_v20 = vmax.f32 %v7243_v52, %v15524_v27  ;;  %v6112_v3 = vmax.f32 %v15471_v51, %v5258_v54  ;;  %v8922_v23 = vrot.slane %v8914_v31, %v10104_v6  ;;  %v9340_v32 = vrot.slane %v15514_v50, 9  ;;  %v15566_v54 = vpop.f32.mrb[118].mxu0 }
 0x44e   : > { %v7500_v42 = vmax.f32 %v18303_v5, %v15539_v15  ;;  %v5262_v21 = vsel %vm10121_vm7, %v9391_v60, %v5261_v45  ;;  %v15561_v19 = vmax.f32 %v6111_v14, %v15471_v51  ;;  %v8225_v36 = vrot.slane %v8217_v13, %v10104_v6  ;;  %v18304_v5 = vld [vmem:[#allocation83_spill] sm:$0xff]  ;;  %v15576_v51 = vld [vmem:[%s16838_s2] ss:$0 sm:$0xff]  ;;  %v18306_v60 = vld [vmem:[#allocation120_spill] sm:$0xff] }
 0x44f   : > { %v6113_v52 = vmax.f32 %v3408_v16, %v5262_v21  ;;  %v15564_v7 = vmax.f32 %v6112_v3, %v3409_v63  ;;  %v7407_v61 = vmax.f32 %v18305_v4, %v18304_v5  ;;  %v995_v16 = vadd.f32 %v15576_v51, %v18306_v60  ;;  %v9606_v63 = vpop.f32.mrb[119].mxu0 }
 0x450   : > { %v8218_v53 = vcombine.low %v7499_v20, %v7500_v42  ;;  %v7151_v31 = vmax.f32 %v6831_v35, %v15561_v19  ;;  %v18307_v14 = vmax.f32 %v15421_v55, %v15459_v30  ;;  %v18308_v20 = vld [vmem:[#allocation185_spill] sm:$0xff]  ;;  %v18309_v42 = vld [vmem:[#allocation68_spill] sm:$0xff]  ;;  %v1251_v60 = vadd.f32 %v15576_v51, %v14968_v58 }
 0x451   : > { %v15582_v13 = vmax.f32 %v6113_v52, %v15511_v18  ;;  %v7408_v35 = vmax.f32 %v18309_v42, %v18308_v20  ;;  %v2323_v5 = vcombine.high %v995_v16, %v995_v16  ;;  %v2330_v49 = vrot.slane %v995_v16, %v10104_v6  ;;  %v18311_v16 = vld [vmem:[#allocation123_spill] sm:$0xff]  ;;  %v18312_v42 = vld [vmem:[#allocation84_spill] sm:$0xff] }
 0x452   : > { %v8232_v3 = vrot.slane %v8218_v53, %v10104_v6  ;;  %v7152_v4 = vmax.f32 %v18307_v14, %v15564_v7  ;;  %v7663_v21 = vmax.f32 %v7407_v61, %v7151_v31  ;;  %v18310_v63 = vmax.f32 %v15359_v39, %v15461_v57 }
 0x453   : > { %v2337_v9 = vrot.slane %v2323_v5, %v10104_v6  ;;  %v2338_v20 = vcombine.high %v2330_v49, %v2330_v49  ;;  %v4598_v61 = vrot.slane %v2330_v49, 7  ;;  %v3411_v31 = vcombine.high %v1251_v60, %v1251_v60 }
 0x454   : > { %v8233_v53 = vcombine.low %v8225_v36, %v8232_v3  ;;  %v7153_v55 = vmax.f32 %v18310_v63, %v15582_v13  ;;  %v7664_v14 = vmax.f32 %v7408_v35, %v7152_v4  ;;  %v18313_v58 = vmax.f32 %v18311_v16, %v18312_v42 }
 0x455   : > { %v15608_v52 = vrot.slane %v1251_v60, %v10104_v6  ;;  %v2339_v4 = vcombine.high %v2337_v9, %v2337_v9  ;;  %v4599_v35 = vsel %vm10121_vm7, %v9340_v32, %v4598_v61  ;;  %v4600_v5 = vrot.slane %v4598_v61, 2 }
 0x456   : > { %9114 = vst.msk [vmem:[%s12622_s19 + $0x80] sm:$0xff] %vm9097_vm8, %v8233_v53  ;;  %v15605_v36 = vmax.f32 %v18313_v58, %v7153_v55  ;;  %v8915_v3 = vcombine.low %v7663_v21, %v7664_v14  ;;  %v4601_v63 = vrot.slane %v2338_v20, 7  ;;  %v5263_v33 = vrot.slane %v5261_v45, 2 }
 0x457   : > { %v4604_v16 = vrot.slane %v2337_v9, 7  ;;  %v5909_v55 = vmax.f32 %v15514_v50, %v4599_v35  ;;  %v4607_v14 = vrot.slane %v2339_v4, 7  ;;  %v15620_v42 = vcombine.high %v15608_v52, %v15608_v52 }
 0x458   : > { %v8929_v53 = vrot.slane %v8915_v3, %v10104_v6  ;;  %v4602_v21 = vsel %vm10121_vm7, %v4600_v5, %v4601_v63  ;;  %v4603_v60 = vrot.slane %v4601_v63, 2  ;;  %v3425_v3 = vrot.slane %v3411_v31, %v10104_v6 }
 0x459   : > { %v4606_v32 = vrot.slane %v4604_v16, 2  ;;  %v5910_v61 = vmax.f32 %v2330_v49, %v4602_v21  ;;  %v15622_v39 = vmax.f32 %v5909_v55, %v2330_v49  ;;  %v5264_v50 = vrot.slane %v15608_v52, 7  ;;  %v18321_v49 = vld [vmem:[#allocation12_spill] sm:$0xff] }
 0x45a   : > { %v8930_v58 = vcombine.low %v8922_v23, %v8929_v53  ;;  %v4605_v45 = vsel %vm10121_vm7, %v4603_v60, %v4604_v16  ;;  %v5267_v35 = vrot.slane %v15620_v42, 7  ;;  %v18314_v31 = vmax.f32 %v15329_v47, %v15395_v11  ;;  %v15647_v60 = vpop.f32.mrb[118].mxu1  ;;  %v18319_v47 = vld [vmem:[#allocation153_spill] sm:$0xff] }
 0x45b   : > { %v4608_v5 = vsel %vm10121_vm7, %v4606_v32, %v4607_v14  ;;  %v5911_v63 = vmax.f32 %v2338_v20, %v4605_v45  ;;  %v15633_v23 = vmax.f32 %v5910_v61, %v2338_v20  ;;  %v5265_v21 = vsel %vm10121_vm7, %v5263_v33, %v5264_v50  ;;  %v18318_v61 = vld [vmem:[#allocation57_spill] sm:$0xff] }
 0x45c   : > { %9155 = vst.msk [vmem:[%s12622_s19 + $0x1c8] sm:$0xff] %vm9097_vm8, %v8930_v58  ;;  %v5912_v16 = vmax.f32 %v2337_v9, %v4608_v5  ;;  %v15643_v55 = vmax.f32 %v18314_v31, %v15622_v39  ;;  %v18316_v58 = vmax.f32 %v15334_v43, %v15490_v38  ;;  %v7246_v45 = vmax.f32 %v18319_v47, %v18318_v61  ;;  %v9734_v5 = vpop.f32.mrb[119].mxu1 }
 0x45d   : > { %v15649_v20 = vmax.f32 %v5911_v63, %v2337_v9  ;;  %v15663_v33 = vcombine.high %v3425_v3, %v3425_v3  ;;  %v5266_v53 = vrot.slane %v5264_v50, 2  ;;  %v5269_v9 = vrot.slane %v5267_v35, 2  ;;  %v18324_v5 = vld [vmem:[#allocation175_spill] sm:$0xff] }
 0x45e   : > { %18315 = vst [vmem:[#allocation30_spill] sm:$0xff] %v15643_v55  ;;  %v15657_v32 = vmax.f32 %v18316_v58, %v15633_v23  ;;  %v15661_v31 = vmax.f32 %v5912_v16, %v2339_v4  ;;  %v18320_v14 = vmax.f32 %v15382_v24, %v15501_v12  ;;  %v18322_v4 = vmax.f32 %v15384_v62, %v15516_v48  ;;  %v18323_v16 = vld [vmem:[#allocation152_spill] sm:$0xff]  ;;  %v18331_v62 = vld [vmem:[#allocation187_spill] sm:$0xff] }
 0x45f   : > { %v18325_v63 = vmax.f32 %v18323_v16, %v18324_v5  ;;  %v5270_v24 = vrot.slane %v3425_v3, 7  ;;  %v18333_v16 = vld [vmem:[#allocation22_spill] sm:$0xff] }
 0x460   : > { %18317 = vst [vmem:[#allocation76_spill] sm:$0xff] %v15657_v32  ;;  %v6991_v43 = vmax.f32 %v18320_v14, %v15649_v20  ;;  %v7278_v58 = vmax.f32 %v18318_v61, %v15657_v32  ;;  %v6992_v50 = vmax.f32 %v18322_v4, %v15661_v31  ;;  %v7502_v25 = vmax.f32 %v7246_v45, %v15657_v32  ;;  %v18326_v14 = vld [vmem:[#allocation186_spill] sm:$0xff] }
 0x461   : > { %v7501_v15 = vmax.f32 %v18325_v63, %v15643_v55  ;;  %v18329_v47 = vmax.f32 %v18328_v56, %v18326_v14  ;;  %v18334_v63 = vmax.f32 %v18333_v16, %v18331_v62  ;;  %v5268_v32 = vsel %vm10121_vm7, %v5266_v53, %v5267_v35  ;;  %v18336_v55 = vld [vmem:[#allocation87_spill] sm:$0xff]  ;;  %v18344_v16 = vld [vmem:[#allocation25_spill] sm:$0xff] }
 0x462   : > { %v7279_v27 = vmax.f32 %v18326_v14, %v6991_v43  ;;  %v7311_v61 = vmax.f32 %v6991_v43, %v18327_v44  ;;  %v15690_v1 = vmax.f32 %v7278_v58, %v18321_v49  ;;  %v7280_v4 = vmax.f32 %v18331_v62, %v6992_v50  ;;  %v18339_v14 = vld [vmem:[#allocation88_spill] sm:$0xff] }
 0x463   : > { %v7503_v59 = vmax.f32 %v18329_v47, %v6991_v43  ;;  %v7312_v37 = vmax.f32 %v6992_v50, %v18332_v41  ;;  %v7504_v45 = vmax.f32 %v18334_v63, %v6992_v50  ;;  %v8234_v43 = vcombine.low %v7501_v15, %v7502_v25  ;;  %v15719_v25 = vpop.f32.mrb[120].mxu0  ;;  %v18345_v63 = vld [vmem:[#allocation89_spill] sm:$0xff] }
 0x464   : > { %18330 = vst [vmem:[#allocation199_spill] sm:$0xff] %v15690_v1  ;;  %v15700_v5 = vmax.f32 %v7279_v27, %v18327_v44  ;;  %v15703_v56 = vmax.f32 %v7311_v61, %v18336_v55  ;;  %v5271_v58 = vsel %vm10121_vm7, %v5269_v9, %v5270_v24  ;;  %v15708_v47 = vmax.f32 %v7280_v4, %v18332_v41  ;;  %v9609_v53 = vpop.f32.mrb[121].mxu0  ;;  %v18343_v4 = vld [vmem:[#allocation41_spill] sm:$0xff] }
 0x465   : > { %v15711_v1 = vmax.f32 %v7312_v37, %v18339_v14  ;;  %v8235_v50 = vcombine.low %v7503_v59, %v7504_v45  ;;  %v6114_v62 = vmax.f32 %v15511_v18, %v5265_v21  ;;  %v8242_v35 = vrot.slane %v8234_v43, %v10104_v6  ;;  %18341 = vst [vmem:[#allocation148_spill] sm:$0xff] %v15719_v25  ;;  %v18346_v45 = vld [vmem:[#allocation154_spill] sm:$0xff]  ;;  %v18350_v53 = vld [vmem:[#allocation133_spill] sm:$0xff]  ;;  %v15851_v55 = vpop.f32.mrb[122].mxu0 }
 0x466   : > { %18335 = vst [vmem:[#allocation77_spill] sm:$0xff] %v15700_v5  ;;  %18337 = vst [vmem:[#allocation119_spill] sm:$0xff] %v15703_v56  ;;  %v6115_v44 = vmax.f32 %v15608_v52, %v5268_v32  ;;  %v6116_v27 = vmax.f32 %v15620_v42, %v5271_v58  ;;  %v6836_v15 = vmax.f32 %v15459_v30, %v15564_v7  ;;  %v18353_v30 = vld [vmem:[#allocation137_spill] sm:$0xff] }
 0x467   : > { %18338 = vst [vmem:[#allocation105_spill] sm:$0xff] %v15708_v47  ;;  %18340 = vst [vmem:[#allocation106_spill] sm:$0xff] %v15711_v1  ;;  %v8249_v41 = vrot.slane %v8235_v50, %v10104_v6  ;;  %v15727_v18 = vmax.f32 %v6114_v62, %v15608_v52  ;;  %v7410_v52 = vmax.f32 %v18344_v16, %v18343_v4  ;;  %v15793_v47 = vpop.f32.mrb[120].mxu1 }
 0x468   : > { %v15734_v32 = vmax.f32 %v6115_v44, %v15620_v42  ;;  %v15736_v9 = vmax.f32 %v6116_v27, %v3425_v3  ;;  %v7411_v43 = vmax.f32 %v18346_v45, %v18345_v63  ;;  %v18347_v42 = vmax.f32 %v15371_v40, %v15465_v22  ;;  %v18349_v27 = vld [vmem:[#allocation208_spill] sm:$0xff]  ;;  %v18351_v63 = vld [vmem:[#allocation149_spill] sm:$0xff]  ;;  %v18352_v45 = vld [vmem:[#allocation159_spill] sm:$0xff]  ;;  %18359 = vst [vmem:[#allocation82_spill] sm:$0xff] %v15793_v47 }
 0x469   : > { %v8250_v24 = vcombine.low %v8242_v35, %v8249_v41  ;;  %v18348_v50 = vmax.f32 %v15380_v29, %v15561_v19  ;;  %v9392_v35 = vrot.slane %v15663_v33, 9  ;;  %v998_v41 = vadd.f32 %v15576_v51, %v18349_v27  ;;  %18369 = vst [vmem:[#allocation168_spill] sm:$0xff] %v15851_v55  ;;  %v18410_v47 = vld [vmem:[#allocation100_spill] sm:$0xff] }
 0x46a   : > { %v7154_v3 = vmax.f32 %v18347_v42, %v15727_v18  ;;  %v7156_v44 = vmax.f32 %v6836_v15, %v15736_v9  ;;  %v1254_v4 = vadd.f32 %v15576_v51, %v18350_v53  ;;  %v15768_v29 = vadd.f32 %v15576_v51, %v18353_v30 }
 0x46b   : > { %v7155_v62 = vmax.f32 %v18348_v50, %v15734_v32  ;;  %9115 = vst.msk [vmem:[%s12622_s19 + $0x88] sm:$0xff] %vm9097_vm8, %v8250_v24  ;;  %v18354_v24 = vld [vmem:[#allocation155_spill] sm:$0xff]  ;;  %v2340_v15 = vcombine.high %v998_v41, %v998_v41  ;;  %v2347_v21 = vrot.slane %v998_v41, %v10104_v6 }
 0x46c   : > { %v7666_v16 = vmax.f32 %v7410_v52, %v7154_v3  ;;  %v18355_v50 = vld [vmem:[#allocation95_spill] sm:$0xff]  ;;  %v3428_v27 = vcombine.high %v1254_v4, %v1254_v4  ;;  %v3435_v52 = vrot.slane %v1254_v4, %v10104_v6 }
 0x46d   : > { %v7667_v40 = vmax.f32 %v7411_v43, %v7155_v62  ;;  %v18356_v59 = vmax.f32 %v18354_v24, %v18355_v50  ;;  %v18357_v43 = vld [vmem:[#allocation188_spill] sm:$0xff]  ;;  %v18358_v3 = vld [vmem:[#allocation163_spill] sm:$0xff]  ;;  %v2354_v58 = vrot.slane %v2340_v15, %v10104_v6  ;;  %v2355_v61 = vcombine.high %v2347_v21, %v2347_v21 }
 0x46e   : > { %v8931_v14 = vcombine.low %v15605_v36, %v7666_v16  ;;  %v9341_v24 = vrot.slane %v2347_v21, 9  ;;  %v3443_v41 = vcombine.high %v3435_v52, %v3435_v52  ;;  %v5274_v50 = vrot.slane %v3435_v52, 7 }
 0x46f   : > { %v7668_v37 = vmax.f32 %v18356_v59, %v7156_v44  ;;  %v3442_v44 = vrot.slane %v3428_v27, %v10104_v6  ;;  %v15784_v4 = vcombine.high %v2354_v58, %v2354_v58  ;;  %v4611_v16 = vrot.slane %v2355_v61, 7 }
 0x470   : > { %v8939_v59 = vrot.slane %v8931_v14, %v10104_v6  ;;  %v4614_v62 = vrot.slane %v2354_v58, 7  ;;  %v5277_v15 = vrot.slane %v3443_v41, 7 }
 0x471   : > { %v8932_v30 = vcombine.low %v7667_v40, %v7668_v37  ;;  %v3444_v42 = vcombine.high %v3442_v44, %v3442_v44  ;;  %v5275_v37 = vsel %vm10121_vm7, %v9392_v35, %v5274_v50  ;;  %v5276_v40 = vrot.slane %v5274_v50, 2 }
 0x472   : > { %v4612_v14 = vsel %vm10121_vm7, %v9341_v24, %v4611_v16  ;;  %v4613_v27 = vrot.slane %v4611_v16, 2  ;;  %v4616_v0 = vrot.slane %v4614_v62, 2  ;;  %v17325_v8 = vrot.slane %v15784_v4, 7 }
 0x473   : > { %v8946_v36 = vrot.slane %v8932_v30, %v10104_v6  ;;  %v5913_v30 = vmax.f32 %v2347_v21, %v4612_v14  ;;  %v5278_v1 = vsel %vm10121_vm7, %v5276_v40, %v5277_v15  ;;  %v5279_v56 = vrot.slane %v5277_v15, 2 }
 0x474   : > { %v4615_v35 = vsel %vm10121_vm7, %v4613_v27, %v4614_v62  ;;  %v5283_v50 = vrot.slane %v3444_v42, 7  ;;  %v6117_v24 = vmax.f32 %v15663_v33, %v5275_v37  ;;  %v4618_v21 = vsel %vm10121_vm7, %v4616_v0, %v17325_v8 }
 0x475   : > { %v8947_v53 = vcombine.low %v8939_v59, %v8946_v36  ;;  %v5280_v59 = vrot.slane %v3442_v44, 7  ;;  %v9737_v36 = vpop.f32.mrb[121].mxu1  ;;  %v5914_v16 = vmax.f32 %v2355_v61, %v4615_v35  ;;  %v15804_v40 = vmax.f32 %v5913_v30, %v2355_v61 }
 0x476   : > { %v6118_v15 = vmax.f32 %v3435_v52, %v5278_v1  ;;  %v1277_v14 = vpop.f32.mrb[122].mxu1  ;;  %v5915_v5 = vmax.f32 %v2354_v58, %v4618_v21  ;;  %v15808_v27 = vmax.f32 %v6117_v24, %v3435_v52  ;;  %v18360_v0 = vmax.f32 %v15395_v11, %v15622_v39  ;;  %v18367_v52 = vld [vmem:[#allocation161_spill] sm:$0xff] }
 0x477   : > { %9156 = vst.msk [vmem:[%s12622_s19 + $0x1d0] sm:$0xff] %vm9097_vm8, %v8947_v53  ;;  %v5281_v53 = vsel %vm10121_vm7, %v5279_v56, %v5280_v59  ;;  %v5282_v62 = vrot.slane %v5280_v59, 2  ;;  %v9738_v49 = vpop.f32.mrb[123].mxu1  ;;  %v15810_v33 = vmax.f32 %v5914_v16, %v2354_v58  ;;  %v2364_v58 = vrot.slane %v15768_v29, %v10104_v6  ;;  %v18362_v59 = vld [vmem:[#allocation93_spill] sm:$0xff] }
 0x478   : > { %v6993_v61 = vmax.f32 %v18360_v0, %v15804_v40  ;;  %v6119_v1 = vmax.f32 %v3443_v41, %v5281_v53  ;;  %v15819_v30 = vmax.f32 %v5915_v5, %v15784_v4  ;;  %v18361_v11 = vmax.f32 %v15490_v38, %v15633_v23  ;;  %v18364_v53 = vld [vmem:[#allocation102_spill] sm:$0xff] }
 0x479   : > { %v5284_v56 = vsel %vm10121_vm7, %v5282_v62, %v5283_v50  ;;  %v18363_v50 = vmax.f32 %v15501_v12, %v15649_v20  ;;  %v15839_v16 = vmax.f32 %v6118_v15, %v3443_v41  ;;  %v18365_v0 = vld [vmem:[#allocation26_spill] sm:$0xff]  ;;  %v18366_v38 = vmax.f32 %v18352_v45, %v18351_v63  ;;  %v18370_v12 = vld [vmem:[#allocation96_spill] sm:$0xff] }
 0x47a   : > { %v6994_v35 = vmax.f32 %v18361_v11, %v15810_v33  ;;  %v7281_v5 = vmax.f32 %v18351_v63, %v6993_v61  ;;  %v7313_v24 = vmax.f32 %v6993_v61, %v18362_v59  ;;  %v6120_v21 = vmax.f32 %v3442_v44, %v5284_v56 }
 0x47b   : > { %v6995_v36 = vmax.f32 %v18363_v50, %v15819_v30  ;;  %v15841_v14 = vmax.f32 %v6119_v1, %v3442_v44  ;;  %v7505_v11 = vmax.f32 %v18366_v38, %v6993_v61  ;;  %v18368_v37 = vmax.f32 %v18367_v52, %v18364_v53  ;;  %v18371_v44 = vld [vmem:[#allocation91_spill] sm:$0xff]  ;;  %v9610_v50 = vpop.f32.mrb[123].mxu0  ;;  %v18407_v61 = vld [vmem:[#allocation34_spill] sm:$0xff] }
 0x47c   : > { %v7282_v62 = vmax.f32 %v18364_v53, %v6994_v35  ;;  %v7314_v49 = vmax.f32 %v6994_v35, %v18365_v0  ;;  %v7537_v41 = vmax.f32 %v7281_v5, %v18362_v59  ;;  %v7569_v15 = vmax.f32 %v7313_v24, %v18371_v44  ;;  %v18383_v50 = vld [vmem:[#allocation190_spill] sm:$0xff] }
 0x47d   : > { %v7506_v8 = vmax.f32 %v18368_v37, %v6994_v35  ;;  %v7283_v56 = vmax.f32 %v18370_v12, %v6995_v36  ;;  %v15856_v1 = vmax.f32 %v6120_v21, %v3444_v42  ;;  %v18373_v37 = vld [vmem:[#allocation27_spill] sm:$0xff]  ;;  %v18374_v35 = vmax.f32 %v15461_v57, %v15582_v13 }
 0x47e   : > { %v7538_v34 = vmax.f32 %v7282_v62, %v18365_v0  ;;  %v7570_v63 = vmax.f32 %v7314_v49, %v18372_v26  ;;  %v7315_v52 = vmax.f32 %v6995_v36, %v18373_v37  ;;  %v18375_v42 = vmax.f32 %v15465_v22, %v15727_v18  ;;  %v18378_v62 = vld [vmem:[#allocation31_spill] sm:$0xff]  ;;  %v18379_v0 = vld [vmem:[#allocation97_spill] sm:$0xff] }
 0x47f   : > { %v8251_v45 = vcombine.low %v7505_v11, %v7506_v8  ;;  %v7157_v5 = vmax.f32 %v18374_v35, %v15808_v27  ;;  %v18376_v26 = vmax.f32 %v15561_v19, %v15734_v32  ;;  %v18377_v57 = vmax.f32 %v15564_v7, %v15736_v9  ;;  %v18382_v19 = vld [vmem:[#allocation165_spill] sm:$0xff] }
 0x480   : > { %v7158_v59 = vmax.f32 %v18375_v42, %v15839_v16  ;;  %v8387_v49 = vcombine.low %v7537_v41, %v7538_v34  ;;  %v8523_v24 = vcombine.low %v7569_v15, %v7570_v63  ;;  %v18380_v38 = vmax.f32 %v18378_v62, %v18379_v0  ;;  %v18387_v42 = vld [vmem:[#allocation192_spill] sm:$0xff] }
 0x481   : > { %v7159_v8 = vmax.f32 %v18376_v26, %v15841_v14  ;;  %v7160_v53 = vmax.f32 %v18377_v57, %v15856_v1  ;;  %v18381_v11 = vmax.f32 %v18358_v3, %v18357_v43  ;;  %v18384_v34 = vmax.f32 %v18382_v19, %v18383_v50 }
 0x482   : > { %v7669_v22 = vmax.f32 %v18380_v38, %v7157_v5  ;;  %v18385_v15 = vcombine.high %v15768_v29, %v15768_v29  ;;  %v15895_v7 = vrot.slane %v8251_v45, %v10104_v6  ;;  %v15898_v35 = vrot.slane %v8387_v49, %v10104_v6  ;;  %v18386_v5 = vld [vmem:[#allocation166_spill] sm:$0xff] }
 0x483   : > { %v7670_v44 = vmax.f32 %v18381_v11, %v7158_v59  ;;  %v7671_v41 = vmax.f32 %v18384_v34, %v7159_v8  ;;  %v18388_v26 = vmax.f32 %v18386_v5, %v18387_v42  ;;  %v2372_v3 = vcombine.high %v2364_v58, %v2364_v58  ;;  %v18392_v42 = vld [vmem:[#allocation160_spill] sm:$0xff] }
 0x484   : > { %v2371_v63 = vrot.slane %v18385_v15, %v10104_v6  ;;  %v18389_v8 = vrot.slane %v15784_v4, 7  ;;  %v4620_v0 = vrot.slane %v2364_v58, 7  ;;  %v6676_v45 = vmax.f32 %v15516_v48, %v15661_v31  ;;  %v18390_v15 = vld [vmem:[#allocation103_spill] sm:$0xff] }
 0x485   : > { %v7672_v43 = vmax.f32 %v18388_v26, %v7160_v53  ;;  %v8948_v59 = vcombine.low %v7669_v22, %v7670_v44  ;;  %v9342_v38 = vrot.slane %v2372_v3, 9  ;;  %v15910_v49 = vrot.slane %v8523_v24, %v10104_v6  ;;  %v18391_v24 = vld [vmem:[#allocation169_spill] sm:$0xff] }
 0x486   : > { %v15903_v57 = vcombine.high %v2371_v63, %v2371_v63  ;;  %v4619_v62 = vrot.slane %v18389_v8, 2  ;;  %v4624_v11 = vrot.slane %v2371_v63, 7  ;;  %v7252_v5 = vmax.f32 %v18391_v24, %v18390_v15  ;;  %v18399_v24 = vld [vmem:[#allocation29_spill] sm:$0xff] }
 0x487   : > { %v8949_v29 = vcombine.low %v7671_v41, %v7672_v43  ;;  %v8956_v19 = vrot.slane %v8948_v59, %v10104_v6  ;;  %v18393_v26 = vmax.f32 %v18392_v42, %v18370_v12  ;;  %v7539_v59 = vmax.f32 %v7283_v56, %v18373_v37  ;;  %v18396_v12 = vld [vmem:[#allocation138_spill] sm:$0xff] }
 0x488   : > { %v4621_v53 = vsel %vm10121_vm7, %v4619_v62, %v4620_v0  ;;  %v17330_v22 = vrot.slane %v15903_v57, 7  ;;  %v4625_v50 = vsel %vm10121_vm7, %v9342_v38, %v4624_v11  ;;  %v4626_v34 = vrot.slane %v4624_v11, 2  ;;  %v18395_v11 = vld [vmem:[#allocation94_spill] sm:$0xff] }
 0x489   : > { %v8963_v44 = vrot.slane %v8949_v29, %v10104_v6  ;;  %v5916_v41 = vmax.f32 %v15784_v4, %v4621_v53  ;;  %v5917_v48 = vmax.f32 %v2372_v3, %v4625_v50  ;;  %v7507_v43 = vmax.f32 %v18393_v26, %v6995_v36  ;;  %v18394_v29 = vld [vmem:[#allocation139_spill] sm:$0xff] }
 0x48a   : > { %v4628_v62 = vsel %vm10121_vm7, %v4626_v34, %v17330_v22  ;;  %v1259_v4 = vadd.f32 %v15576_v51, %v18394_v29  ;;  %v7571_v53 = vmax.f32 %v7315_v52, %v18395_v11  ;;  %v1006_v36 = vadd.f32 %v15576_v51, %v18396_v12  ;;  %v18402_v11 = vld [vmem:[#allocation33_spill] sm:$0xff]  ;;  %v18405_v52 = vld [vmem:[#allocation99_spill] sm:$0xff] }
 0x48b   : > { %v8964_v8 = vcombine.low %v8956_v19, %v8963_v44  ;;  %v15930_v0 = vmax.f32 %v5916_v41, %v2364_v58  ;;  %v5918_v3 = vmax.f32 %v2371_v63, %v4628_v62  ;;  %v15934_v38 = vmax.f32 %v5917_v48, %v2371_v63  ;;  %v15945_v44 = vpop.f32.mrb[124].mxu0 }
 0x48c   : > { %v3445_v58 = vcombine.high %v1259_v4, %v1259_v4  ;;  %v3452_v19 = vrot.slane %v1259_v4, %v10104_v6  ;;  %18397 = vst [vmem:[#allocation147_spill] sm:$0xff] %v15945_v44  ;;  %v18398_v50 = vmax.f32 %v15622_v39, %v15804_v40  ;;  %v2374_v41 = vcombine.high %v1006_v36, %v1006_v36  ;;  %v9613_v48 = vpop.f32.mrb[125].mxu0  ;;  %v18401_v4 = vld [vmem:[#allocation195_spill] sm:$0xff]  ;;  %v18403_v39 = vld [vmem:[#allocation32_spill] sm:$0xff] }
 0x48d   : > { %9157 = vst.msk [vmem:[%s12622_s19 + $0x1d8] sm:$0xff] %vm9097_vm8, %v8964_v8  ;;  %v6996_v37 = vmax.f32 %v6676_v45, %v15930_v0  ;;  %v15948_v63 = vmax.f32 %v5918_v3, %v15903_v57  ;;  %v18400_v62 = vmax.f32 %v15633_v23, %v15810_v33  ;;  %v18408_v23 = vld [vmem:[#allocation38_spill] sm:$0xff] }
 0x48e   : > { %v6997_v34 = vmax.f32 %v18398_v50, %v15934_v38  ;;  %v3459_v8 = vrot.slane %v3445_v58, %v10104_v6  ;;  %v18404_v50 = vmax.f32 %v18403_v39, %v18401_v4  ;;  %v18406_v58 = vld [vmem:[#allocation196_spill] sm:$0xff] }
 0x48f   : > { %v7284_v45 = vmax.f32 %v18390_v15, %v6996_v37  ;;  %v7316_v42 = vmax.f32 %v6996_v37, %v18399_v24  ;;  %v7508_v26 = vmax.f32 %v7252_v5, %v6996_v37  ;;  %v6998_v29 = vmax.f32 %v18400_v62, %v15948_v63 }
 0x490   : > { %v7285_v3 = vmax.f32 %v18401_v4, %v6997_v34  ;;  %v7317_v12 = vmax.f32 %v6997_v34, %v18402_v11  ;;  %v7509_v48 = vmax.f32 %v18404_v50, %v6997_v34  ;;  %v3460_v37 = vcombine.high %v3452_v19, %v3452_v19 }
 0x491   : > { %v7540_v15 = vmax.f32 %v7284_v45, %v18399_v24  ;;  %v7572_v56 = vmax.f32 %v7316_v42, %v18405_v52  ;;  %v8252_v5 = vcombine.low %v7507_v43, %v7508_v26  ;;  %v7286_v21 = vmax.f32 %v18406_v58, %v6998_v29  ;;  %v18411_v52 = vld [vmem:[#allocation101_spill] sm:$0xff] }
 0x492   : > { %v7318_v22 = vmax.f32 %v6998_v29, %v18407_v61  ;;  %v18409_v62 = vmax.f32 %v18408_v23, %v18406_v58  ;;  %v7541_v55 = vmax.f32 %v7285_v3, %v18402_v11  ;;  %v7573_v25 = vmax.f32 %v7317_v12, %v18410_v47 }
 0x493   : > { %v8266_v34 = vrot.slane %v8252_v5, %v10104_v6  ;;  %v8388_v4 = vcombine.low %v7539_v59, %v7540_v15  ;;  %v8524_v45 = vcombine.low %v7571_v53, %v7572_v56  ;;  %v7542_v43 = vmax.f32 %v7286_v21, %v18407_v61  ;;  %v18412_v53 = vld [vmem:[#allocation193_spill] sm:$0xff]  ;;  %v18413_v56 = vld [vmem:[#allocation39_spill] sm:$0xff] }
 0x494   : > { %v7510_v44 = vmax.f32 %v18409_v62, %v6998_v29  ;;  %v7574_v24 = vmax.f32 %v7318_v22, %v18411_v52  ;;  %v15980_v26 = vcombine.high %v3459_v8, %v3459_v8  ;;  %v9393_v47 = vrot.slane %v3452_v19, 9 }
 0x495   : > { %v8267_v39 = vcombine.low %v15895_v7, %v8266_v34  ;;  %v8402_v29 = vrot.slane %v8388_v4, %v10104_v6  ;;  %v8538_v3 = vrot.slane %v8524_v45, %v10104_v6  ;;  %v8404_v11 = vcombine.low %v7541_v55, %v7542_v43 }
 0x496   : > { %v8268_v42 = vcombine.low %v7509_v48, %v7510_v44  ;;  %v8540_v59 = vcombine.low %v7573_v25, %v7574_v24  ;;  %v5287_v12 = vrot.slane %v3460_v37, 7  ;;  %v7417_v61 = vmax.f32 %v18413_v56, %v18412_v53 }
 0x497   : > { %v8403_v21 = vcombine.low %v15898_v35, %v8402_v29  ;;  %v8539_v22 = vcombine.low %v15910_v49, %v8538_v3  ;;  %9116 = vst.msk [vmem:[%s12622_s19 + $0x90] sm:$0xff] %vm9097_vm8, %v8267_v39  ;;  %v5290_v7 = vrot.slane %v3459_v8, 7  ;;  %v5293_v44 = vrot.slane %v15980_v26, 7 }
 0x498   : > { %v15993_v50 = vrot.slane %v8268_v42, %v10104_v6  ;;  %v15996_v48 = vrot.slane %v8404_v11, %v10104_v6  ;;  %v5288_v25 = vsel %vm10121_vm7, %v9393_v47, %v5287_v12  ;;  %v5289_v55 = vrot.slane %v5287_v12, 2 }
 0x499   : > { %9124 = vst.msk [vmem:[%s12622_s19 + $0xd0] sm:$0xff] %vm9097_vm8, %v8403_v21  ;;  %9132 = vst.msk [vmem:[%s12622_s19 + $0x110] sm:$0xff] %vm9097_vm8, %v8539_v22  ;;  %v5292_v35 = vrot.slane %v5290_v7, 2  ;;  %v6121_v49 = vmax.f32 %v3452_v19, %v5288_v25  ;;  %v2381_v15 = vrot.slane %v1006_v36, %v10104_v6  ;;  %v2388_v5 = vrot.slane %v2374_v41, %v10104_v6  ;;  %v18417_v21 = vld [vmem:[#allocation111_spill] sm:$0xff]  ;;  %v18418_v22 = vld [vmem:[#allocation90_spill] sm:$0xff] }
 0x49a   : > { %v16007_v58 = vrot.slane %v8540_v59, %v10104_v6  ;;  %v5291_v23 = vsel %vm10121_vm7, %v5289_v55, %v5290_v7  ;;  %v18414_v62 = vrot.slane %v15903_v57, 7  ;;  %v6679_v4 = vmax.f32 %v15649_v20, %v15819_v30 }
 0x49b   : > { %v5294_v45 = vsel %vm10121_vm7, %v5292_v35, %v5293_v44  ;;  %v6122_v19 = vmax.f32 %v3460_v37, %v5291_v23  ;;  %v16017_v43 = vmax.f32 %v6121_v49, %v3460_v37  ;;  %v2389_v36 = vcombine.high %v2381_v15, %v2381_v15 }
 0x49c   : > { %v4629_v34 = vrot.slane %v18414_v62, 2  ;;  %v6123_v41 = vmax.f32 %v3459_v8, %v5294_v45  ;;  %v16019_v52 = vcombine.high %v2388_v5, %v2388_v5  ;;  %v4630_v24 = vrot.slane %v2381_v15, 7  ;;  %v18420_v62 = vld [vmem:[#allocation40_spill] sm:$0xff] }
 0x49d   : > { %v9343_v42 = vrot.slane %v2388_v5, 9  ;;  %v16021_v39 = vmax.f32 %v6122_v19, %v3459_v8  ;;  %v18415_v20 = vmax.f32 %v15582_v13, %v15808_v27  ;;  %v4633_v47 = vrot.slane %v2389_v36, 7  ;;  %v18437_v8 = vld [vmem:[#allocation172_spill] sm:$0xff] }
 0x49e   : > { %v16030_v37 = vmax.f32 %v6123_v41, %v15980_v26  ;;  %v4631_v11 = vsel %vm10121_vm7, %v4629_v34, %v4630_v24  ;;  %v4632_v59 = vrot.slane %v4630_v24, 2  ;;  %v4637_v12 = vrot.slane %v16019_v52, 7 }
 0x49f   : > { %v7161_v3 = vmax.f32 %v18415_v20, %v16017_v43  ;;  %v18416_v53 = vmax.f32 %v15727_v18, %v15839_v16  ;;  %v5919_v13 = vmax.f32 %v15903_v57, %v4631_v11  ;;  %v7255_v7 = vmax.f32 %v18418_v22, %v18417_v21  ;;  %v18421_v18 = vld [vmem:[#allocation110_spill] sm:$0xff]  ;;  %v18423_v20 = vld [vmem:[#allocation197_spill] sm:$0xff] }
 0x4a0   : > { %v18419_v25 = vmax.f32 %v15734_v32, %v15841_v14  ;;  %v4634_v49 = vsel %vm10121_vm7, %v4632_v59, %v4633_v47  ;;  %v4638_v23 = vsel %vm10121_vm7, %v9343_v42, %v4637_v12  ;;  %v18422_v34 = vmax.f32 %v18420_v62, %v18421_v18  ;;  %v18424_v32 = vld [vmem:[#allocation171_spill] sm:$0xff]  ;;  %v16065_v42 = vpop.f32.mrb[126].mxu0  ;;  %v18430_v18 = vld [vmem:[#allocation113_spill] sm:$0xff] }
 0x4a1   : > { %v7162_v56 = vmax.f32 %v18416_v53, %v16021_v39  ;;  %v7673_v35 = vmax.f32 %v7417_v61, %v7161_v3  ;;  %v5920_v57 = vmax.f32 %v2381_v15, %v4634_v49  ;;  %v5921_v19 = vmax.f32 %v2388_v5, %v4638_v23  ;;  %v18425_v61 = vld [vmem:[#allocation191_spill] sm:$0xff]  ;;  %18426 = vst [vmem:[#allocation9_spill] sm:$0xff] %v16065_v42 }
 0x4a2   : > { %v7163_v55 = vmax.f32 %v18419_v25, %v16030_v37  ;;  %v16055_v41 = vmax.f32 %v5919_v13, %v2381_v15  ;;  %v16057_v24 = vrot.slane %v4637_v12, 2  ;;  %v7256_v11 = vmax.f32 %v18424_v32, %v18423_v20  ;;  %v9614_v12 = vpop.f32.mrb[127].mxu0 }
 0x4a3   : > { %v7674_v45 = vmax.f32 %v18422_v34, %v7162_v56  ;;  %v1262_v3 = vadd.f32 %v15576_v51, %v18425_v61  ;;  %v16067_v53 = vmax.f32 %v5920_v57, %v2389_v36  ;;  %v16070_v5 = vmax.f32 %v5921_v19, %v16019_v52  ;;  %v18431_v34 = vld [vmem:[#allocation44_spill] sm:$0xff]  ;;  %v18432_v57 = vld [vmem:[#allocation35_spill] sm:$0xff] }
 0x4a4   : > { %v6999_v56 = vmax.f32 %v6679_v4, %v16055_v41  ;;  %v5295_v25 = vrot.slane %v5293_v44, 2  ;;  %v18428_v36 = vmax.f32 %v15661_v31, %v15930_v0  ;;  %v18429_v23 = vmax.f32 %v15804_v40, %v15934_v38 }
 0x4a5   : > { %v8965_v59 = vcombine.low %v7673_v35, %v7674_v45  ;;  %18427 = vst [vmem:[#allocation13_spill] sm:$0xff] %v16070_v5  ;;  %v3462_v13 = vcombine.high %v1262_v3, %v1262_v3  ;;  %v3469_v22 = vrot.slane %v1262_v3, %v10104_v6  ;;  %v7420_v4 = vmax.f32 %v18431_v34, %v18430_v18  ;;  %v18433_v3 = vld [vmem:[#allocation157_spill] sm:$0xff] }
 0x4a6   : > { %v7000_v35 = vmax.f32 %v18428_v36, %v16067_v53  ;;  %v7001_v62 = vmax.f32 %v18429_v23, %v16070_v5  ;;  %v7287_v45 = vmax.f32 %v18417_v21, %v6999_v56  ;;  %v7319_v44 = vmax.f32 %v6999_v56, %v18432_v57  ;;  %v18434_v36 = vld [vmem:[#allocation36_spill] sm:$0xff]  ;;  %v18435_v23 = vld [vmem:[#allocation42_spill] sm:$0xff]  ;;  %v18436_v21 = vld [vmem:[#allocation107_spill] sm:$0xff] }
 0x4a7   : > { %v7511_v19 = vmax.f32 %v7255_v7, %v6999_v56  ;;  %v3476_v32 = vrot.slane %v3462_v13, %v10104_v6  ;;  %v16092_v61 = vrot.slane %v8965_v59, %v10104_v6  ;;  %v18438_v7 = vmax.f32 %v18437_v8, %v18433_v3  ;;  %v18439_v13 = vld [vmem:[#allocation108_spill] sm:$0xff] }
 0x4a8   : > { %v7288_v31 = vmax.f32 %v18423_v20, %v7000_v35  ;;  %v7289_v12 = vmax.f32 %v18433_v3, %v7001_v62  ;;  %v7320_v40 = vmax.f32 %v7000_v35, %v18434_v36  ;;  %v7321_v49 = vmax.f32 %v7001_v62, %v18435_v23 }
 0x4a9   : > { %v7512_v15 = vmax.f32 %v7256_v11, %v7000_v35  ;;  %v7543_v18 = vmax.f32 %v7287_v45, %v18432_v57  ;;  %v7575_v34 = vmax.f32 %v7319_v44, %v18436_v21  ;;  %v16103_v56 = vmax.f32 %v18438_v7, %v7001_v62  ;;  %v18440_v44 = vld [vmem:[#allocation170_spill] sm:$0xff]  ;;  %v18441_v21 = vld [vmem:[#allocation112_spill] sm:$0xff] }
 0x4aa   : > { %v7544_v59 = vmax.f32 %v7288_v31, %v18434_v36  ;;  %v16107_v20 = vmax.f32 %v7289_v12, %v18435_v23  ;;  %v7576_v29 = vmax.f32 %v7320_v40, %v18439_v13  ;;  %v3477_v42 = vcombine.high %v3469_v22, %v3469_v22 }
 0x4ab   : > { %v8269_v47 = vcombine.low %v7511_v19, %v7512_v15  ;;  %v16110_v5 = vcombine.high %v3476_v32, %v3476_v32  ;;  %v5296_v11 = vrot.slane %v3469_v22, 7  ;;  %v5300_v57 = vrot.slane %v3476_v32, 7 }
 0x4ac   : > { %v8405_v35 = vcombine.low %v7543_v18, %v7544_v59  ;;  %v8541_v45 = vcombine.low %v7575_v34, %v7576_v29  ;;  %v18442_v8 = vmax.f32 %v18440_v44, %v18441_v21  ;;  %v9394_v12 = vrot.slane %v3477_v42, 9 }
 0x4ad   : > { %v8283_v3 = vrot.slane %v8269_v47, %v10104_v6  ;;  %v5297_v31 = vsel %vm10121_vm7, %v5295_v25, %v5296_v11  ;;  %v5303_v15 = vrot.slane %v16110_v5, 7  ;;  %v5302_v40 = vrot.slane %v5300_v57, 2 }
 0x4ae   : > { %v7675_v62 = vmax.f32 %v18442_v8, %v7163_v55  ;;  %v8419_v19 = vrot.slane %v8405_v35, %v10104_v6  ;;  %v8555_v36 = vrot.slane %v8541_v45, %v10104_v6  ;;  %v6124_v29 = vmax.f32 %v15980_v26, %v5297_v31 }
 0x4af   : > { %v8284_v55 = vcombine.low %v15993_v50, %v8283_v3  ;;  %v5301_v47 = vsel %vm10121_vm7, %v9394_v12, %v5300_v57  ;;  %v1011_v25 = vadd.f32 %v15576_v51, %v15427_v10  ;;  %v6682_v23 = vmax.f32 %v15810_v33, %v15948_v63  ;;  %v18443_v10 = vld [vmem:[#allocation109_spill] sm:$0xff] }
 0x4b0   : > { %v8420_v18 = vcombine.low %v15996_v48, %v8419_v19  ;;  %v8556_v34 = vcombine.low %v16007_v58, %v8555_v36  ;;  %v5304_v7 = vsel %vm10121_vm7, %v5302_v40, %v5303_v15  ;;  %v6125_v26 = vmax.f32 %v3477_v42, %v5301_v47  ;;  %v18444_v58 = vld [vmem:[#allocation158_spill] sm:$0xff]  ;;  %v18445_v42 = vld [vmem:[#allocation47_spill] sm:$0xff]  ;;  %v18451_v47 = vld [vmem:[#allocation140_spill] sm:$0xff] }
 0x4b1   : > { %9117 = vst.msk [vmem:[%s12622_s19 + $0x98] sm:$0xff] %vm9097_vm8, %v8284_v55  ;;  %v6126_v50 = vmax.f32 %v3476_v32, %v5304_v7  ;;  %v16135_v59 = vmax.f32 %v6124_v29, %v3469_v22  ;;  %v2391_v13 = vcombine.high %v1011_v25, %v1011_v25  ;;  %v2398_v11 = vrot.slane %v1011_v25, %v10104_v6  ;;  %v18449_v40 = vld [vmem:[#allocation198_spill] sm:$0xff]  ;;  %v18452_v25 = vld [vmem:[#allocation200_spill] sm:$0xff] }
 0x4b2   : > { %v16139_v35 = vmax.f32 %v7321_v49, %v18443_v10  ;;  %9125 = vst.msk [vmem:[%s12622_s19 + $0xd8] sm:$0xff] %vm9097_vm8, %v8420_v18  ;;  %9133 = vst.msk [vmem:[%s12622_s19 + $0x118] sm:$0xff] %vm9097_vm8, %v8556_v34  ;;  %v16145_v33 = vmax.f32 %v6125_v26, %v3476_v32  ;;  %v6684_v48 = vmax.f32 %v15930_v0, %v16067_v53  ;;  %v18450_v29 = vld [vmem:[#allocation174_spill] sm:$0xff]  ;;  %v18454_v26 = vld [vmem:[#allocation141_spill] sm:$0xff] }
 0x4b3   : > { %v7258_v45 = vmax.f32 %v18445_v42, %v18444_v58  ;;  %v16152_v22 = vmax.f32 %v6126_v50, %v16110_v5  ;;  %v6848_v57 = vmax.f32 %v15856_v1, %v16135_v59  ;;  %v18446_v49 = vmax.f32 %v15736_v9, %v15856_v1  ;;  %v18455_v50 = vld [vmem:[#allocation201_spill] sm:$0xff] }
 0x4b4   : > { %v2405_v32 = vrot.slane %v2391_v13, %v10104_v6  ;;  %v18447_v0 = vmax.f32 %v15808_v27, %v16017_v43  ;;  %v2406_v8 = vcombine.high %v2398_v11, %v2398_v11  ;;  %v4640_v3 = vrot.slane %v2398_v11, 7  ;;  %v18470_v1 = vld [vmem:[#allocation129_spill] sm:$0xff] }
 0x4b5   : > { %v7164_v44 = vmax.f32 %v18446_v49, %v16135_v59  ;;  %v1267_v31 = vadd.f32 %v15576_v51, %v15499_v2  ;;  %v18448_v12 = vmax.f32 %v15839_v16, %v16021_v39  ;;  %v7259_v55 = vmax.f32 %v18450_v29, %v18449_v40 }
 0x4b6   : > { %v7165_v21 = vmax.f32 %v18447_v0, %v16145_v33  ;;  %v16171_v9 = vcombine.high %v2405_v32, %v2405_v32  ;;  %v18453_v27 = vmax.f32 %v18451_v47, %v18452_v25  ;;  %v4641_v34 = vsel %vm10121_vm7, %v16057_v24, %v4640_v3 }
 0x4b7   : > { %v7166_v19 = vmax.f32 %v18448_v12, %v16152_v22  ;;  %v7676_v36 = vmax.f32 %v7420_v4, %v7164_v44  ;;  %v4642_v2 = vrot.slane %v4640_v3, 2  ;;  %v4643_v7 = vrot.slane %v2406_v8, 7 }
 0x4b8   : > { %v7677_v18 = vmax.f32 %v18453_v27, %v7165_v21  ;;  %v18456_v16 = vmax.f32 %v18454_v26, %v18455_v50  ;;  %v4646_v10 = vrot.slane %v2405_v32, 7  ;;  %v5922_v42 = vmax.f32 %v16019_v52, %v4641_v34  ;;  %v18458_v50 = vld [vmem:[#allocation45_spill] sm:$0xff] }
 0x4b9   : > { %v8966_v4 = vcombine.low %v7675_v62, %v7676_v36  ;;  %v4644_v49 = vsel %vm10121_vm7, %v4642_v2, %v4643_v7  ;;  %v4645_v44 = vrot.slane %v4643_v7, 2  ;;  %v3479_v0 = vcombine.high %v1267_v31, %v1267_v31 }
 0x4ba   : > { %v7678_v13 = vmax.f32 %v18456_v16, %v7166_v19  ;;  %v16188_v21 = vrot.slane %v1267_v31, %v10104_v6  ;;  %v5923_v12 = vmax.f32 %v2398_v11, %v4644_v49  ;;  %v16191_v29 = vmax.f32 %v5922_v42, %v2398_v11  ;;  %v18459_v42 = vld [vmem:[#allocation43_spill] sm:$0xff] }
 0x4bb   : > { %v8980_v24 = vrot.slane %v8966_v4, %v10104_v6  ;;  %v4647_v62 = vsel %vm10121_vm7, %v4645_v44, %v4646_v10  ;;  %v9344_v52 = vrot.slane %v16171_v9, 9  ;;  %v16197_v19 = vrot.slane %v3479_v0, %v10104_v6  ;;  %v18460_v0 = vld [vmem:[#allocation114_spill] sm:$0xff] }
 0x4bc   : > { %v8982_v3 = vcombine.low %v7677_v18, %v7678_v13  ;;  %v5305_v36 = vrot.slane %v5303_v15, 2  ;;  %v5924_v31 = vmax.f32 %v2406_v8, %v4647_v62  ;;  %v16200_v25 = vmax.f32 %v5923_v12, %v2406_v8  ;;  %v18462_v62 = vld [vmem:[#allocation48_spill] sm:$0xff] }
 0x4bd   : > { %v8981_v47 = vcombine.low %v16092_v61, %v8980_v24  ;;  %v3494_v27 = vcombine.high %v16188_v21, %v16188_v21  ;;  %v6686_v18 = vmax.f32 %v15948_v63, %v16191_v29  ;;  %v7002_v34 = vmax.f32 %v6682_v23, %v16191_v29 }
 0x4be   : > { %v16205_v11 = vrot.slane %v8982_v3, %v10104_v6  ;;  %v5306_v2 = vrot.slane %v16188_v21, 7  ;;  %v16213_v15 = vmax.f32 %v5924_v31, %v2405_v32  ;;  %v18457_v8 = vmax.f32 %v15819_v30, %v16055_v41  ;;  %v18463_v31 = vld [vmem:[#allocation51_spill] sm:$0xff] }
 0x4bf   : > { %9158 = vst.msk [vmem:[%s12622_s19 + $0x1e0] sm:$0xff] %vm9097_vm8, %v8981_v47  ;;  %v16223_v26 = vcombine.high %v16197_v19, %v16197_v19  ;;  %v7290_v23 = vmax.f32 %v18444_v58, %v7002_v34  ;;  %v7322_v16 = vmax.f32 %v7002_v34, %v18458_v50  ;;  %v7514_v13 = vmax.f32 %v7258_v45, %v7002_v34  ;;  %v18461_v45 = vld [vmem:[#allocation117_spill] sm:$0xff] }
 0x4c0   : > { %v7003_v7 = vmax.f32 %v18457_v8, %v16200_v25  ;;  %v5307_v32 = vsel %vm10121_vm7, %v5305_v36, %v5306_v2  ;;  %v7004_v10 = vmax.f32 %v6684_v48, %v16213_v15  ;;  %v5309_v3 = vrot.slane %v3494_v27, 7  ;;  %v18465_v8 = vld [vmem:[#allocation115_spill] sm:$0xff] }
 0x4c1   : > { %v7546_v44 = vmax.f32 %v7290_v23, %v18458_v50  ;;  %v7578_v24 = vmax.f32 %v7322_v16, %v18460_v0  ;;  %v8285_v58 = vcombine.low %v16103_v56, %v7514_v13  ;;  %v18464_v34 = vmax.f32 %v18463_v31, %v18461_v45  ;;  %v18466_v16 = vld [vmem:[#allocation116_spill] sm:$0xff] }
 0x4c2   : > { %v7291_v30 = vmax.f32 %v18449_v40, %v7003_v7  ;;  %v7323_v49 = vmax.f32 %v7003_v7, %v18459_v42  ;;  %v7292_v12 = vmax.f32 %v18461_v45, %v7004_v10  ;;  %v7324_v36 = vmax.f32 %v7004_v10, %v18462_v62 }
 0x4c3   : > { %v7515_v47 = vmax.f32 %v7259_v55, %v7003_v7  ;;  %v7516_v48 = vmax.f32 %v18464_v34, %v7004_v10  ;;  %v8421_v23 = vcombine.low %v16107_v20, %v7546_v44  ;;  %v8557_v50 = vcombine.low %v16139_v35, %v7578_v24  ;;  %v18467_v34 = vld [vmem:[#allocation202_spill] sm:$0xff] }
 0x4c4   : > { %v7547_v40 = vmax.f32 %v7291_v30, %v18459_v42  ;;  %v7579_v4 = vmax.f32 %v7323_v49, %v18465_v8  ;;  %v7548_v56 = vmax.f32 %v7292_v12, %v18462_v62  ;;  %v7580_v13 = vmax.f32 %v7324_v36, %v18466_v16  ;;  %v18469_v16 = vld [vmem:[#allocation53_spill] sm:$0xff] }
 0x4c5   : > { %v8286_v0 = vcombine.low %v7515_v47, %v7516_v48  ;;  %v5308_v61 = vrot.slane %v5306_v2, 2  ;;  %v8293_v55 = vrot.slane %v8285_v58, %v10104_v6  ;;  %v8429_v7 = vrot.slane %v8421_v23, %v10104_v6 }
 0x4c6   : > { %v9395_v10 = vrot.slane %v16197_v19, 9  ;;  %v5313_v30 = vrot.slane %v16223_v26, 7  ;;  %v8422_v49 = vcombine.low %v7547_v40, %v7548_v56  ;;  %v8558_v20 = vcombine.low %v7579_v4, %v7580_v13 }
 0x4c7   : > { %v8300_v42 = vrot.slane %v8286_v0, %v10104_v6  ;;  %v5310_v35 = vsel %vm10121_vm7, %v5308_v61, %v5309_v3  ;;  %v8565_v44 = vrot.slane %v8557_v50, %v10104_v6  ;;  %v6127_v24 = vmax.f32 %v16110_v5, %v5307_v32 }
 0x4c8   : > { %v5314_v2 = vsel %vm10121_vm7, %v9395_v10, %v5313_v30  ;;  %v6128_v58 = vmax.f32 %v16188_v21, %v5310_v35  ;;  %v8436_v12 = vrot.slane %v8422_v49, %v10104_v6  ;;  %v8572_v62 = vrot.slane %v8558_v20, %v10104_v6 }
 0x4c9   : > { %v8301_v45 = vcombine.low %v8293_v55, %v8300_v42  ;;  %v6129_v4 = vmax.f32 %v16197_v19, %v5314_v2  ;;  %v16264_v61 = vmax.f32 %v6127_v24, %v16188_v21  ;;  %v6847_v36 = vmax.f32 %v15841_v14, %v16030_v37  ;;  %v18468_v19 = vld [vmem:[#allocation52_spill] sm:$0xff]  ;;  %v18472_v55 = vld [vmem:[#allocation98_spill] sm:$0xff] }
 0x4ca   : > { %v16266_v3 = vmax.f32 %v6128_v58, %v3494_v27  ;;  %v6849_v5 = vmax.f32 %v16017_v43, %v16145_v33  ;;  %v8437_v32 = vcombine.low %v8429_v7, %v8436_v12  ;;  %v8573_v47 = vcombine.low %v8565_v44, %v8572_v62  ;;  %v18473_v7 = vld [vmem:[#allocation173_spill] sm:$0xff] }
 0x4cb   : > { %9118 = vst.msk [vmem:[%s12622_s19 + $0xa0] sm:$0xff] %vm9097_vm8, %v8301_v45  ;;  %v16275_v31 = vmax.f32 %v6129_v4, %v16223_v26  ;;  %v7423_v48 = vmax.f32 %v18468_v19, %v18467_v34  ;;  %v6851_v21 = vmax.f32 %v16030_v37, %v16264_v61  ;;  %v7167_v27 = vmax.f32 %v6847_v36, %v16264_v61  ;;  %v16433_v37 = vld [vmem:[%s16838_s2] ss:$0 sm:$0xff] }
 0x4cc   : > { %v7168_v14 = vmax.f32 %v6848_v57, %v16266_v3  ;;  %v1014_v43 = vadd.f32 %v15576_v51, %v15566_v54  ;;  %9126 = vst.msk [vmem:[%s12622_s19 + $0xe0] sm:$0xff] %vm9097_vm8, %v8437_v32  ;;  %9134 = vst.msk [vmem:[%s12622_s19 + $0x120] sm:$0xff] %vm9097_vm8, %v8573_v47  ;;  %v5315_v40 = vrot.slane %v5313_v30, 2  ;;  %v1270_v50 = vadd.f32 %v15576_v51, %v15647_v60 }
 0x4cd   : > { %v6853_v8 = vmax.f32 %v16145_v33, %v16275_v31  ;;  %v7169_v23 = vmax.f32 %v6849_v5, %v16275_v31  ;;  %v7679_v56 = vmax.f32 %v7423_v48, %v7167_v27  ;;  %v18471_v57 = vmax.f32 %v18469_v16, %v18470_v1  ;;  %v18476_v16 = vld [vmem:[#allocation177_spill] sm:$0xff]  ;;  %v18516_v31 = vld [vmem:[#allocation128_spill] sm:$0xff] }
 0x4ce   : > { %v2408_v0 = vcombine.high %v1014_v43, %v1014_v43  ;;  %v2415_v54 = vrot.slane %v1014_v43, %v10104_v6  ;;  %v18474_v10 = vmax.f32 %v18472_v55, %v18473_v7  ;;  %v3496_v42 = vcombine.high %v1270_v50, %v1270_v50 }
 0x4cf   : > { %v7680_v13 = vmax.f32 %v18471_v57, %v7168_v14  ;;  %v3503_v49 = vrot.slane %v1270_v50, %v10104_v6  ;;  %v6850_v20 = vmax.f32 %v16021_v39, %v16152_v22  ;;  %v6852_v45 = vmax.f32 %v16135_v59, %v16266_v3 }
 0x4d0   : > { %v16304_v30 = vmax.f32 %v18474_v10, %v7169_v23  ;;  %v16310_v60 = vrot.slane %v2408_v0, %v10104_v6  ;;  %v2423_v35 = vcombine.high %v2415_v54, %v2415_v54  ;;  %v4650_v44 = vrot.slane %v2415_v54, 7 }
 0x4d1   : > { %v8983_v51 = vcombine.low %v7679_v56, %v7680_v13  ;;  %v3510_v2 = vrot.slane %v3496_v42, %v10104_v6  ;;  %v3511_v24 = vcombine.high %v3503_v49, %v3503_v49  ;;  %v5316_v58 = vrot.slane %v3503_v49, 7  ;;  %v18477_v13 = vld [vmem:[#allocation13_spill] sm:$0xff] }
 0x4d2   : > { %v16318_v62 = vcombine.high %v16310_v60, %v16310_v60  ;;  %v4651_v4 = vsel %vm10121_vm7, %v9344_v52, %v4650_v44  ;;  %v4652_v36 = vrot.slane %v4650_v44, 2  ;;  %v4653_v5 = vrot.slane %v2423_v35, 7 }
 0x4d3   : > { %v8997_v12 = vrot.slane %v8983_v51, %v10104_v6  ;;  %v4656_v32 = vrot.slane %v16310_v60, 7  ;;  %v5925_v47 = vmax.f32 %v16171_v9, %v4651_v4  ;;  %v16326_v34 = vcombine.high %v3510_v2, %v3510_v2 }
 0x4d4   : > { %v4659_v48 = vrot.slane %v16318_v62, 7  ;;  %v5317_v27 = vsel %vm10121_vm7, %v5315_v40, %v5316_v58  ;;  %v5318_v14 = vrot.slane %v5316_v58, 2  ;;  %v4654_v43 = vsel %vm10121_vm7, %v4652_v36, %v4653_v5  ;;  %v18480_v36 = vld [vmem:[#allocation49_spill] sm:$0xff] }
 0x4d5   : > { %v8998_v19 = vcombine.low %v16205_v11, %v8997_v12  ;;  %v4655_v52 = vrot.slane %v4653_v5, 2  ;;  %v4658_v23 = vrot.slane %v4656_v32, 2  ;;  %v16334_v50 = vmax.f32 %v5925_v47, %v2415_v54  ;;  %v18475_v11 = vld [vmem:[#allocation75_spill] sm:$0xff]  ;;  %v18479_v12 = vld [vmem:[#allocation162_spill] sm:$0xff] }
 0x4d6   : > { %v5926_v56 = vmax.f32 %v2415_v54, %v4654_v43  ;;  %v7262_v1 = vmax.f32 %v18476_v16, %v18475_v11  ;;  %v5319_v57 = vrot.slane %v3511_v24, 7  ;;  %v18478_v0 = vmax.f32 %v15934_v38, %v18477_v13  ;;  %v18483_v43 = vld [vmem:[#allocation118_spill] sm:$0xff] }
 0x4d7   : > { %9159 = vst.msk [vmem:[%s12622_s19 + $0x1e8] sm:$0xff] %vm9097_vm8, %v8998_v19  ;;  %v4657_v40 = vsel %vm10121_vm7, %v4655_v52, %v4656_v32  ;;  %v5322_v7 = vrot.slane %v3510_v2, 7  ;;  %v6130_v10 = vmax.f32 %v16223_v26, %v5317_v27  ;;  %v9396_v44 = vrot.slane %v16326_v34, 9  ;;  %v18481_v19 = vld [vmem:[#allocation176_spill] sm:$0xff]  ;;  %v18485_v16 = vld [vmem:[#allocation50_spill] sm:$0xff] }
 0x4d8   : > { %v7005_v55 = vmax.f32 %v18478_v0, %v16334_v50  ;;  %v5927_v42 = vmax.f32 %v2423_v35, %v4657_v40  ;;  %v16349_v51 = vmax.f32 %v5926_v56, %v2423_v35  ;;  %v5320_v54 = vsel %vm10121_vm7, %v5318_v14, %v5319_v57 }
 0x4d9   : > { %v16356_v58 = vsel %vm10121_vm7, %v4658_v23, %v4659_v48  ;;  %v5321_v5 = vrot.slane %v5319_v57, 2  ;;  %v6131_v35 = vmax.f32 %v3503_v49, %v5320_v54  ;;  %v16367_v47 = vmax.f32 %v6130_v10, %v3503_v49 }
 0x4da   : > { %v7293_v4 = vmax.f32 %v18479_v12, %v7005_v55  ;;  %v7325_v38 = vmax.f32 %v7005_v55, %v18480_v36  ;;  %v16361_v32 = vmax.f32 %v5927_v42, %v16310_v60  ;;  %v7006_v26 = vmax.f32 %v6686_v18, %v16349_v51  ;;  %v18486_v42 = vld [vmem:[#allocation16_spill] sm:$0xff] }
 0x4db   : > { %v18482_v48 = vmax.f32 %v18481_v19, %v18479_v12  ;;  %v5323_v23 = vsel %vm10121_vm7, %v5321_v5, %v5322_v7  ;;  %v18484_v63 = vmax.f32 %v16055_v41, %v16200_v25  ;;  %v5928_v7 = vmax.f32 %v16310_v60, %v16356_v58  ;;  %v18487_v12 = vld [vmem:[#allocation54_spill] sm:$0xff]  ;;  %v18491_v19 = vld [vmem:[#allocation124_spill] sm:$0xff] }
 0x4dc   : > { %v7549_v14 = vmax.f32 %v7293_v4, %v18480_v36  ;;  %v7581_v52 = vmax.f32 %v7325_v38, %v18483_v43  ;;  %v6691_v56 = vmax.f32 %v16200_v25, %v16361_v32  ;;  %v7294_v49 = vmax.f32 %v18475_v11, %v7006_v26  ;;  %v18488_v36 = vld [vmem:[#allocation121_spill] sm:$0xff] }
 0x4dd   : > { %v7517_v27 = vmax.f32 %v18482_v48, %v7005_v55  ;;  %v7007_v18 = vmax.f32 %v18484_v63, %v16361_v32  ;;  %v7326_v57 = vmax.f32 %v7006_v26, %v18485_v16  ;;  %v7518_v40 = vmax.f32 %v7262_v1, %v7006_v26  ;;  %v18489_v1 = vld [vmem:[#allocation178_spill] sm:$0xff] }
 0x4de   : > { %v6132_v0 = vmax.f32 %v3511_v24, %v5323_v23  ;;  %v16384_v55 = vmax.f32 %v6131_v35, %v3511_v24  ;;  %v7550_v41 = vmax.f32 %v7294_v49, %v18485_v16  ;;  %v18490_v26 = vmax.f32 %v18489_v1, %v18486_v42  ;;  %v18492_v48 = vld [vmem:[#allocation58_spill] sm:$0xff] }
 0x4df   : > { %v7295_v54 = vmax.f32 %v18486_v42, %v7007_v18  ;;  %v7327_v4 = vmax.f32 %v7007_v18, %v18487_v12  ;;  %v7582_v11 = vmax.f32 %v7326_v57, %v18488_v36  ;;  %v8302_v38 = vcombine.low %v7517_v27, %v7518_v40  ;;  %v18493_v63 = vld [vmem:[#allocation122_spill] sm:$0xff] }
 0x4e0   : > { %v16394_v5 = vmax.f32 %v6132_v0, %v3510_v2  ;;  %v16401_v35 = vmax.f32 %v18490_v26, %v7007_v18  ;;  %v8438_v60 = vcombine.low %v7549_v14, %v7550_v41  ;;  %v7170_v58 = vmax.f32 %v6850_v20, %v16367_v47  ;;  %v18494_v20 = vld [vmem:[#allocation203_spill] sm:$0xff]  ;;  %v18495_v49 = vld [vmem:[#allocation14_spill] sm:$0xff] }
 0x4e1   : > { %v7426_v43 = vmax.f32 %v18492_v48, %v18491_v19  ;;  %v16410_v2 = vmax.f32 %v7295_v54, %v18487_v12  ;;  %v8574_v27 = vcombine.low %v7581_v52, %v7582_v11  ;;  %v7171_v14 = vmax.f32 %v6851_v21, %v16384_v55  ;;  %v18496_v21 = vld [vmem:[#allocation148_spill] sm:$0xff]  ;;  %v18497_v54 = vld [vmem:[#allocation179_spill] sm:$0xff]  ;;  %v18498_v12 = vld [vmem:[#allocation205_spill] sm:$0xff] }
 0x4e2   : > { %v16419_v18 = vmax.f32 %v7327_v4, %v18493_v63  ;;  %v7172_v39 = vmax.f32 %v6852_v45, %v16394_v5  ;;  %v7427_v16 = vmax.f32 %v18495_v49, %v18494_v20  ;;  %v16428_v57 = vrot.slane %v8302_v38, %v10104_v6  ;;  %v18502_v19 = vld [vmem:[#allocation24_spill] sm:$0xff]  ;;  %v18505_v20 = vld [vmem:[#allocation181_spill] sm:$0xff] }
 0x4e3   : > { %v7682_v52 = vmax.f32 %v7426_v43, %v7170_v58  ;;  %v1019_v40 = vadd.f32 %v16433_v37, %v18496_v21  ;;  %v6689_v0 = vmax.f32 %v18477_v13, %v16334_v50  ;;  %v6690_v59 = vmax.f32 %v16191_v29, %v16349_v51  ;;  %v18500_v13 = vld [vmem:[#allocation82_spill] sm:$0xff]  ;;  %v18501_v58 = vld [vmem:[#allocation204_spill] sm:$0xff] }
 0x4e4   : > { %v16442_v45 = vrot.slane %v8438_v60, %v10104_v6  ;;  %v7683_v42 = vmax.f32 %v7427_v16, %v7171_v14  ;;  %v18499_v4 = vmax.f32 %v18497_v54, %v18498_v12  ;;  %v16449_v11 = vrot.slane %v8574_v27, %v10104_v6  ;;  %v18503_v43 = vld [vmem:[#allocation168_spill] sm:$0xff] }
 0x4e5   : > { %v8999_v36 = vcombine.low %v16304_v30, %v7682_v52  ;;  %v2425_v38 = vcombine.high %v1019_v40, %v1019_v40  ;;  %v2432_v1 = vrot.slane %v1019_v40, %v10104_v6  ;;  %v1275_v26 = vadd.f32 %v16433_v37, %v18500_v13 }
 0x4e6   : > { %v7684_v41 = vmax.f32 %v18499_v4, %v7172_v39  ;;  %v7265_v48 = vmax.f32 %v18502_v19, %v18501_v58  ;;  %v1022_v14 = vadd.f32 %v16433_v37, %v18503_v43  ;;  %v18504_v39 = vld [vmem:[#allocation207_spill] sm:$0xff]  ;;  %v16465_v40 = vmax.f32 %v5928_v7, %v16318_v62 }
 0x4e7   : > { %v9007_v60 = vrot.slane %v8999_v36, %v10104_v6  ;;  %v2439_v30 = vrot.slane %v2425_v38, %v10104_v6  ;;  %v2440_v63 = vcombine.high %v2432_v1, %v2432_v1  ;;  %v3513_v27 = vcombine.high %v1275_v26, %v1275_v26 }
 0x4e8   : > { %v9000_v29 = vcombine.low %v7683_v42, %v7684_v41  ;;  %v9345_v52 = vrot.slane %v2432_v1, 9  ;;  %v3520_v21 = vrot.slane %v1275_v26, %v10104_v6  ;;  %v2442_v13 = vcombine.high %v1022_v14, %v1022_v14 }
 0x4e9   : > { %v16467_v42 = vcombine.high %v2439_v30, %v2439_v30  ;;  %v4663_v54 = vrot.slane %v2440_v63, 7  ;;  %v4666_v12 = vrot.slane %v2439_v30, 7  ;;  %v3527_v4 = vrot.slane %v3513_v27, %v10104_v6 }
 0x4ea   : > { %v9014_v16 = vrot.slane %v9000_v29, %v10104_v6  ;;  %v3528_v36 = vcombine.high %v3520_v21, %v3520_v21  ;;  %v5326_v38 = vrot.slane %v3520_v21, 7 }
 0x4eb   : > { %v4664_v29 = vsel %vm10121_vm7, %v9345_v52, %v4663_v54  ;;  %v4665_v19 = vrot.slane %v4663_v54, 2  ;;  %v4668_v43 = vrot.slane %v4666_v12, 2  ;;  %v17333_v26 = vrot.slane %v16467_v42, 7 }
 0x4ec   : > { %v9015_v41 = vcombine.low %v9007_v60, %v9014_v16  ;;  %v5929_v62 = vmax.f32 %v2432_v1, %v4664_v29  ;;  %v3529_v7 = vcombine.high %v3527_v4, %v3527_v4  ;;  %v5327_v27 = vsel %vm10121_vm7, %v9396_v44, %v5326_v38 }
 0x4ed   : > { %v5328_v60 = vrot.slane %v5326_v38, 2  ;;  %v4667_v16 = vsel %vm10121_vm7, %v4665_v19, %v4666_v12  ;;  %v4670_v52 = vsel %vm10121_vm7, %v4668_v43, %v17333_v26  ;;  %v5329_v54 = vrot.slane %v3528_v36, 7 }
 0x4ee   : > { %9160 = vst.msk [vmem:[%s12622_s19 + $0x1f0] sm:$0xff] %vm9097_vm8, %v9015_v41  ;;  %v5332_v9 = vrot.slane %v3527_v4, 7  ;;  %v5930_v49 = vmax.f32 %v2440_v63, %v4667_v16  ;;  %v5931_v41 = vmax.f32 %v2439_v30, %v4670_v52  ;;  %v16485_v1 = vmax.f32 %v5929_v62, %v2440_v63 }
 0x4ef   : > { %v5335_v29 = vrot.slane %v3529_v7, 7  ;;  %v5330_v23 = vsel %vm10121_vm7, %v5328_v60, %v5329_v54  ;;  %v5331_v44 = vrot.slane %v5329_v54, 2  ;;  %v6133_v24 = vmax.f32 %v16326_v34, %v5327_v27  ;;  %v18506_v27 = vld [vmem:[#allocation56_spill] sm:$0xff] }
 0x4f0   : > { %v5334_v38 = vrot.slane %v5332_v9, 2  ;;  %v16490_v12 = vmax.f32 %v5930_v49, %v2439_v30  ;;  %v16493_v19 = vmax.f32 %v5931_v41, %v16467_v42  ;;  %v7009_v16 = vmax.f32 %v6689_v0, %v16485_v1  ;;  %v18509_v34 = vld [vmem:[#allocation180_spill] sm:$0xff] }
 0x4f1   : > { %v5333_v63 = vsel %vm10121_vm7, %v5331_v44, %v5332_v9  ;;  %v6134_v60 = vmax.f32 %v3520_v21, %v5330_v23  ;;  %v6533_v52 = vmax.f32 %v6133_v24, %v3520_v21  ;;  %v2449_v23 = vrot.slane %v1022_v14, %v10104_v6  ;;  %v18507_v24 = vld [vmem:[#allocation132_spill] sm:$0xff] }
 0x4f2   : > { %v5336_v62 = vsel %vm10121_vm7, %v5334_v38, %v5335_v29  ;;  %v7010_v30 = vmax.f32 %v6690_v59, %v16490_v12  ;;  %v16509_v49 = vmax.f32 %v6691_v56, %v16493_v19  ;;  %v7297_v0 = vmax.f32 %v18501_v58, %v7009_v16  ;;  %v18508_v29 = vld [vmem:[#allocation59_spill] sm:$0xff]  ;;  %v18511_v58 = vld [vmem:[#allocation125_spill] sm:$0xff] }
 0x4f3   : > { %v7329_v9 = vmax.f32 %v7009_v16, %v18506_v27  ;;  %v6135_v54 = vmax.f32 %v3528_v36, %v5333_v63  ;;  %v6136_v41 = vmax.f32 %v3527_v4, %v5336_v62  ;;  %v7521_v38 = vmax.f32 %v7265_v48, %v7009_v16  ;;  %v18512_v62 = vld [vmem:[#allocation126_spill] sm:$0xff] }
 0x4f4   : > { %v7298_v21 = vmax.f32 %v18507_v24, %v7010_v30  ;;  %v7330_v44 = vmax.f32 %v7010_v30, %v18508_v29  ;;  %v2456_v59 = vrot.slane %v2442_v13, %v10104_v6  ;;  %v18510_v25 = vmax.f32 %v18509_v34, %v18507_v24 }
 0x4f5   : > { %v16521_v43 = vmax.f32 %v7297_v0, %v18506_v27  ;;  %v16524_v26 = vmax.f32 %v7329_v9, %v18511_v58  ;;  %v6534_v63 = vmax.f32 %v6134_v60, %v3528_v36  ;;  %v6535_v48 = vmax.f32 %v6135_v54, %v3527_v4 }
 0x4f6   : > { %v7522_v56 = vmax.f32 %v18510_v25, %v7010_v30  ;;  %v16527_v14 = vmax.f32 %v7298_v21, %v18508_v29  ;;  %v16530_v10 = vmax.f32 %v7330_v44, %v18512_v62  ;;  %v6536_v16 = vmax.f32 %v6136_v41, %v3529_v7  ;;  %v18521_v29 = vld [vmem:[#allocation61_spill] sm:$0xff]  ;;  %v18525_v25 = vld [vmem:[#allocation183_spill] sm:$0xff] }
 0x4f7   : > { %v7173_v34 = vmax.f32 %v6853_v8, %v6533_v52  ;;  %v18513_v30 = vmax.f32 %v16152_v22, %v16367_v47  ;;  %v2457_v27 = vcombine.high %v2449_v23, %v2449_v23  ;;  %v18514_v4 = vmax.f32 %v16264_v61, %v16384_v55  ;;  %v18517_v22 = vld [vmem:[#allocation64_spill] sm:$0xff]  ;;  %v18518_v47 = vld [vmem:[#allocation206_spill] sm:$0xff] }
 0x4f8   : > { %v8319_v13 = vcombine.low %v7521_v38, %v7522_v56  ;;  %v8455_v36 = vcombine.low %v16521_v43, %v16527_v14  ;;  %v8591_v60 = vcombine.low %v16524_v26, %v16530_v10  ;;  %v18515_v9 = vmax.f32 %v16266_v3, %v16394_v5  ;;  %v18522_v3 = vld [vmem:[#allocation182_spill] sm:$0xff]  ;;  %v18554_v43 = vld [vmem:[#allocation147_spill] sm:$0xff] }
 0x4f9   : > { %v7174_v0 = vmax.f32 %v18513_v30, %v6534_v63  ;;  %v7175_v7 = vmax.f32 %v18514_v4, %v6535_v48  ;;  %v7299_v8 = vmax.f32 %v18516_v31, %v16509_v49  ;;  %v18519_v52 = vmax.f32 %v18517_v22, %v18518_v47  ;;  %v18523_v5 = vld [vmem:[#allocation134_spill] sm:$0xff]  ;;  %v18530_v22 = vld [vmem:[#allocation209_spill] sm:$0xff]  ;;  %v18531_v47 = vld [vmem:[#allocation184_spill] sm:$0xff] }
 0x4fa   : > { %v7176_v33 = vmax.f32 %v18515_v9, %v6536_v16  ;;  %v18520_v41 = vmax.f32 %v18505_v20, %v18504_v39  ;;  %v16556_v21 = vcombine.high %v2456_v59, %v2456_v59  ;;  %v7331_v61 = vmax.f32 %v16509_v49, %v18521_v29  ;;  %v18526_v56 = vld [vmem:[#allocation210_spill] sm:$0xff] }
 0x4fb   : > { %v7685_v54 = vmax.f32 %v18519_v52, %v7173_v34  ;;  %v16561_v55 = vrot.slane %v8319_v13, %v10104_v6  ;;  %v18524_v44 = vmax.f32 %v18522_v3, %v18523_v5  ;;  %v18527_v58 = vmax.f32 %v18525_v25, %v18526_v56  ;;  %v18533_v25 = vld [vmem:[#allocation55_spill] sm:$0xff] }
 0x4fc   : > { %v7686_v24 = vmax.f32 %v18520_v41, %v7174_v0  ;;  %v18528_v39 = vrot.slane %v16467_v42, 7  ;;  %v4672_v48 = vrot.slane %v2449_v23, 7  ;;  %v9346_v16 = vrot.slane %v2457_v27, 9 }
 0x4fd   : > { %v7687_v38 = vmax.f32 %v18524_v44, %v7175_v7  ;;  %v7688_v63 = vmax.f32 %v18527_v58, %v7176_v33  ;;  %v4676_v30 = vrot.slane %v2456_v59, 7  ;;  %v4679_v0 = vrot.slane %v16556_v21, 7  ;;  %v18532_v44 = vld [vmem:[#allocation19_spill] sm:$0xff]  ;;  %v18534_v58 = vld [vmem:[#allocation60_spill] sm:$0xff] }
 0x4fe   : > { %v9016_v62 = vcombine.low %v7685_v54, %v7686_v24  ;;  %v4671_v20 = vrot.slane %v18528_v39, 2  ;;  %v6692_v13 = vmax.f32 %v16213_v15, %v16465_v40  ;;  %v18529_v9 = vmax.f32 %v16067_v53, %v16213_v15 }
 0x4ff   : > { %v9017_v34 = vcombine.low %v7687_v38, %v7688_v63  ;;  %v7268_v52 = vmax.f32 %v18531_v47, %v18530_v22  ;;  %v4677_v41 = vsel %vm10121_vm7, %v9346_v16, %v4676_v30  ;;  %v4678_v24 = vrot.slane %v4676_v30, 2 }
 0x500   : > { %v9024_v4 = vrot.slane %v9016_v62, %v10104_v6  ;;  %v4673_v7 = vsel %vm10121_vm7, %v4671_v20, %v4672_v48  ;;  %v7008_v33 = vmax.f32 %v18529_v9, %v16465_v40  ;;  %v5933_v5 = vmax.f32 %v2457_v27, %v4677_v41  ;;  %v18536_v20 = vld [vmem:[#allocation63_spill] sm:$0xff]  ;;  %v18541_v41 = vld [vmem:[#allocation62_spill] sm:$0xff] }
 0x501   : > { %v9031_v54 = vrot.slane %v9017_v34, %v10104_v6  ;;  %v5932_v3 = vmax.f32 %v16467_v42, %v4673_v7  ;;  %v18535_v53 = vmax.f32 %v18534_v58, %v18532_v44  ;;  %v4680_v62 = vsel %vm10121_vm7, %v4678_v24, %v4679_v0 }
 0x502   : > { %v7296_v38 = vmax.f32 %v18532_v44, %v7008_v33  ;;  %v7328_v56 = vmax.f32 %v7008_v33, %v18533_v25  ;;  %v18537_v42 = vmax.f32 %v18536_v20, %v18516_v31  ;;  %v5934_v48 = vmax.f32 %v2456_v59, %v4680_v62  ;;  %v18543_v44 = vld [vmem:[#allocation189_spill] sm:$0xff] }
 0x503   : > { %v7520_v15 = vmax.f32 %v18535_v53, %v7008_v33  ;;  %v9032_v63 = vcombine.low %v9024_v4, %v9031_v54  ;;  %v16596_v39 = vmax.f32 %v5932_v3, %v2449_v23  ;;  %v6333_v16 = vmax.f32 %v5933_v5, %v2456_v59  ;;  %v18538_v23 = vld [vmem:[#allocation78_spill] sm:$0xff]  ;;  %v18539_v33 = vld [vmem:[#allocation127_spill] sm:$0xff] }
 0x504   : > { %v7523_v27 = vmax.f32 %v18537_v42, %v16509_v49  ;;  %v7552_v34 = vmax.f32 %v7296_v38, %v18533_v25  ;;  %v7555_v30 = vmax.f32 %v7299_v8, %v18521_v29  ;;  %v7584_v9 = vmax.f32 %v7328_v56, %v18538_v23  ;;  %v18544_v25 = vld [vmem:[#allocation66_spill] sm:$0xff] }
 0x505   : > { %9161 = vst.msk [vmem:[%s12622_s19 + $0x1f8] sm:$0xff] %vm9097_vm8, %v9032_v63  ;;  %v6696_v4 = vmax.f32 %v16465_v40, %v16596_v39  ;;  %v7012_v7 = vmax.f32 %v6692_v13, %v16596_v39  ;;  %v7587_v47 = vmax.f32 %v7331_v61, %v18539_v33  ;;  %v6334_v31 = vmax.f32 %v5934_v48, %v16556_v21  ;;  %v18549_v63 = vld [vmem:[#allocation67_spill] sm:$0xff] }
 0x506   : > { %v18540_v49 = vmax.f32 %v16334_v50, %v16485_v1  ;;  %v8303_v54 = vcombine.low %v16401_v35, %v7520_v15  ;;  %v8439_v8 = vcombine.low %v16410_v2, %v7552_v34  ;;  %v8575_v13 = vcombine.low %v16419_v18, %v7584_v9  ;;  %v18545_v1 = vld [vmem:[#allocation156_spill] sm:$0xff]  ;;  %v18552_v48 = vld [vmem:[#allocation131_spill] sm:$0xff] }
 0x507   : > { %v7300_v29 = vmax.f32 %v18530_v22, %v7012_v7  ;;  %v7332_v24 = vmax.f32 %v7012_v7, %v18541_v41  ;;  %v7524_v3 = vmax.f32 %v7268_v52, %v7012_v7  ;;  %v18542_v61 = vmax.f32 %v16349_v51, %v16490_v12  ;;  %v18547_v22 = vld [vmem:[#allocation130_spill] sm:$0xff]  ;;  %v18548_v18 = vld [vmem:[#allocation104_spill] sm:$0xff]  ;;  %v18550_v12 = vld [vmem:[#allocation69_spill] sm:$0xff] }
 0x508   : > { %v7013_v59 = vmax.f32 %v18540_v49, %v6333_v16  ;;  %v18546_v35 = vmax.f32 %v18545_v1, %v18543_v44  ;;  %v8317_v52 = vrot.slane %v8303_v54, %v10104_v6  ;;  %v18551_v62 = vmax.f32 %v18550_v12, %v18548_v18  ;;  %v18553_v9 = vld [vmem:[#allocation20_spill] sm:$0xff]  ;;  %v18560_v1 = vld [vmem:[#allocation175_spill] sm:$0xff] }
 0x509   : > { %v7014_v5 = vmax.f32 %v18542_v61, %v6334_v31  ;;  %v7556_v2 = vmax.f32 %v7300_v29, %v18541_v41  ;;  %v7588_v58 = vmax.f32 %v7332_v24, %v18547_v22  ;;  %v8320_v53 = vcombine.low %v7523_v27, %v7524_v3  ;;  %v18557_v61 = vld [vmem:[#allocation73_spill] sm:$0xff]  ;;  %v18563_v22 = vld [vmem:[#allocation12_spill] sm:$0xff]  ;;  %v18579_v39 = vld [vmem:[#allocation71_spill] sm:$0xff] }
 0x50a   : > { %v7301_v38 = vmax.f32 %v18543_v44, %v7013_v59  ;;  %v7333_v50 = vmax.f32 %v7013_v59, %v18544_v25  ;;  %v7525_v56 = vmax.f32 %v18546_v35, %v7013_v59  ;;  %v8318_v34 = vcombine.low %v16428_v57, %v8317_v52 }
 0x50b   : > { %v7302_v15 = vmax.f32 %v18548_v18, %v7014_v5  ;;  %v7334_v51 = vmax.f32 %v7014_v5, %v18549_v63  ;;  %v7526_v20 = vmax.f32 %v18551_v62, %v7014_v5  ;;  %v8334_v7 = vrot.slane %v8320_v53, %v10104_v6  ;;  %v18558_v5 = vld [vmem:[#allocation37_spill] sm:$0xff] }
 0x50c   : > { %v7557_v42 = vmax.f32 %v7301_v38, %v18544_v25  ;;  %v7589_v16 = vmax.f32 %v7333_v50, %v18552_v48  ;;  %v8453_v23 = vrot.slane %v8439_v8, %v10104_v6  ;;  %v8456_v49 = vcombine.low %v7555_v30, %v7556_v2  ;;  %9119 = vst.msk [vmem:[%s12622_s19 + $0xa8] sm:$0xff] %vm9097_vm8, %v8318_v34  ;;  %v18559_v50 = vld [vmem:[#allocation30_spill] sm:$0xff]  ;;  %v18562_v2 = vld [vmem:[#allocation76_spill] sm:$0xff] }
 0x50d   : > { %v7558_v27 = vmax.f32 %v7302_v15, %v18549_v63  ;;  %v7590_v33 = vmax.f32 %v7334_v51, %v18553_v9  ;;  %v8336_v31 = vcombine.low %v7525_v56, %v7526_v20  ;;  %v8335_v59 = vcombine.low %v16561_v55, %v8334_v7  ;;  %v18561_v56 = vld [vmem:[#allocation86_spill] sm:$0xff]  ;;  %v18568_v15 = vld [vmem:[#allocation9_spill] sm:$0xff]  ;;  %v18569_v63 = vld [vmem:[#allocation119_spill] sm:$0xff] }
 0x50e   : > { %v8454_v54 = vcombine.low %v16442_v45, %v8453_v23  ;;  %v8589_v29 = vrot.slane %v8575_v13, %v10104_v6  ;;  %v8592_v41 = vcombine.low %v7587_v47, %v7588_v58  ;;  %v8463_v57 = vrot.slane %v8455_v36, %v10104_v6  ;;  %v18555_v36 = vld [vmem:[#allocation74_spill] sm:$0xff] }
 0x50f   : > { %v8470_v8 = vrot.slane %v8456_v49, %v10104_v6  ;;  %v8472_v24 = vcombine.low %v7557_v42, %v7558_v27  ;;  %v8608_v3 = vcombine.low %v7589_v16, %v7590_v33  ;;  %v8599_v45 = vrot.slane %v8591_v60, %v10104_v6  ;;  %9120 = vst.msk [vmem:[%s12622_s19 + $0xb0] sm:$0xff] %vm9097_vm8, %v8335_v59  ;;  %v18556_v47 = vld [vmem:[#allocation46_spill] sm:$0xff] }
 0x510   : > { %v8590_v55 = vcombine.low %v16449_v11, %v8589_v29  ;;  %v8606_v30 = vrot.slane %v8592_v41, %v10104_v6  ;;  %9127 = vst.msk [vmem:[%s12622_s19 + $0xe8] sm:$0xff] %vm9097_vm8, %v8454_v54  ;;  %v1027_v14 = vadd.f32 %v16433_v37, %v18554_v43  ;;  %v7275_v13 = vmax.f32 %v18556_v47, %v18555_v36  ;;  %v18570_v51 = vld [vmem:[#allocation106_spill] sm:$0xff] }
 0x511   : > { %v7276_v10 = vmax.f32 %v18558_v5, %v18557_v61  ;;  %v8471_v26 = vcombine.low %v8463_v57, %v8470_v8  ;;  %v6695_v11 = vmax.f32 %v16361_v32, %v16493_v19  ;;  %v4681_v25 = vrot.slane %v4679_v0, 2  ;;  %v18565_v32 = vld [vmem:[#allocation77_spill] sm:$0xff] }
 0x512   : > { %v8607_v60 = vcombine.low %v8599_v45, %v8606_v30  ;;  %9135 = vst.msk [vmem:[%s12622_s19 + $0x128] sm:$0xff] %vm9097_vm8, %v8590_v55  ;;  %v2459_v44 = vcombine.high %v1027_v14, %v1027_v14  ;;  %v2466_v38 = vrot.slane %v1027_v14, %v10104_v6  ;;  %v7277_v35 = vmax.f32 %v18560_v1, %v18559_v50  ;;  %v18566_v19 = vld [vmem:[#allocation105_spill] sm:$0xff]  ;;  %v18572_v14 = vld [vmem:[#allocation136_spill] sm:$0xff] }
 0x513   : > { %v18564_v58 = vmax.f32 %v18562_v2, %v18563_v22  ;;  %v18567_v53 = vcombine.low %v18565_v32, %v18566_v19  ;;  %9128 = vst.msk [vmem:[%s12622_s19 + $0xf0] sm:$0xff] %vm9097_vm8, %v8471_v26  ;;  %v1030_v0 = vadd.f32 %v16433_v37, %v18568_v15  ;;  %v18571_v12 = vcombine.low %v18569_v63, %v18570_v51  ;;  %v18573_v26 = vld [vmem:[#allocation65_spill] sm:$0xff]  ;;  %v18575_v2 = vld [vmem:[#allocation72_spill] sm:$0xff]  ;;  %v18576_v63 = vld [vmem:[#allocation70_spill] sm:$0xff] }
 0x514   : > { %9136 = vst.msk [vmem:[%s12622_s19 + $0x130] sm:$0xff] %vm9097_vm8, %v8607_v60  ;;  %v2473_v20 = vrot.slane %v2459_v44, %v10104_v6  ;;  %v2474_v42 = vcombine.high %v2466_v38, %v2466_v38  ;;  %v4682_v48 = vrot.slane %v2466_v38, 7  ;;  %v16704_v16 = vrot.slane %v8336_v31, %v10104_v6 }
 0x515   : > { %v16682_v52 = vmax.f32 %v18564_v58, %v18561_v56  ;;  %v16688_v18 = vrot.slane %v18567_v53, %v10104_v6  ;;  %v16698_v62 = vrot.slane %v18571_v12, %v10104_v6  ;;  %v16707_v34 = vrot.slane %v8472_v24, %v10104_v6  ;;  %v18574_v56 = vld [vmem:[#allocation211_spill] sm:$0xff] }
 0x516   : > { %v2476_v7 = vcombine.high %v1030_v0, %v1030_v0  ;;  %v2483_v37 = vrot.slane %v1030_v0, %v10104_v6  ;;  %v2475_v23 = vcombine.high %v2473_v20, %v2473_v20  ;;  %v4683_v27 = vsel %vm10121_vm7, %v4681_v25, %v4682_v48 }
 0x517   : > { %v4684_v9 = vrot.slane %v4682_v48, 2  ;;  %v4685_v33 = vrot.slane %v2474_v42, 7  ;;  %v16713_v49 = vrot.slane %v8608_v3, %v10104_v6  ;;  %v5935_v59 = vmax.f32 %v16556_v21, %v4683_v27 }
 0x518   : > { %v2490_v31 = vrot.slane %v2476_v7, %v10104_v6  ;;  %v2491_v54 = vcombine.high %v2483_v37, %v2483_v37  ;;  %v9347_v41 = vrot.slane %v2473_v20, 9  ;;  %v4689_v57 = vrot.slane %v2475_v23, 7 }
 0x519   : > { %v4686_v29 = vsel %vm10121_vm7, %v4684_v9, %v4685_v33  ;;  %v4692_v8 = vrot.slane %v2483_v37, 7  ;;  %v6335_v45 = vmax.f32 %v5935_v59, %v2466_v38  ;;  %v7271_v21 = vmax.f32 %v18573_v26, %v18572_v14  ;;  %v18580_v59 = vld [vmem:[#allocation81_spill] sm:$0xff] }
 0x51a   : > { %v5936_v24 = vmax.f32 %v2466_v38, %v4686_v29  ;;  %v2492_v55 = vcombine.high %v2490_v31, %v2490_v31  ;;  %v4695_v30 = vrot.slane %v2491_v54, 7  ;;  %v4690_v43 = vsel %vm10121_vm7, %v9347_v41, %v4689_v57 }
 0x51b   : > { %v4691_v3 = vrot.slane %v4689_v57, 2  ;;  %v4694_v60 = vrot.slane %v4692_v8, 2  ;;  %v7015_v25 = vmax.f32 %v6695_v11, %v6335_v45  ;;  %v7272_v22 = vmax.f32 %v18575_v2, %v18574_v56  ;;  %v18581_v45 = vld [vmem:[#allocation135_spill] sm:$0xff] }
 0x51c   : > { %v6336_v44 = vmax.f32 %v5936_v24, %v2474_v42  ;;  %v4697_v58 = vrot.slane %v4695_v30, 2  ;;  %v5937_v32 = vmax.f32 %v2473_v20, %v4690_v43  ;;  %v4698_v19 = vrot.slane %v2490_v31, 7  ;;  %v18577_v42 = vld [vmem:[#allocation2_spill] sm:$0xff] }
 0x51d   : > { %v4693_v38 = vsel %vm10121_vm7, %v4691_v3, %v4692_v8  ;;  %v9348_v53 = vrot.slane %v2492_v55, 9  ;;  %v7303_v0 = vmax.f32 %v18572_v14, %v7015_v25  ;;  %v7335_v51 = vmax.f32 %v7015_v25, %v18576_v63 }
 0x51e   : > { %v7016_v15 = vmax.f32 %v6696_v4, %v6336_v44  ;;  %v4696_v11 = vsel %vm10121_vm7, %v4694_v60, %v4695_v30  ;;  %v7527_v12 = vmax.f32 %v7271_v21, %v7015_v25  ;;  %v4699_v20 = vsel %vm10121_vm7, %v4697_v58, %v4698_v19 }
 0x51f   : > { %v18578_v48 = vrot.slane %v18577_v42, 7  ;;  %v5938_v27 = vmax.f32 %v2475_v23, %v4693_v38  ;;  %v7559_v33 = vmax.f32 %v7303_v0, %v18576_v63  ;;  %v7591_v29 = vmax.f32 %v7335_v51, %v18580_v59  ;;  %v18584_v38 = vld [vmem:[#allocation8_spill] sm:$0xff]  ;;  %v18587_v63 = vld [vmem:[#allocation7_spill] sm:$0xff] }
 0x520   : > { %v7304_v40 = vmax.f32 %v18574_v56, %v7016_v15  ;;  %v7336_v4 = vmax.f32 %v7016_v15, %v18579_v39  ;;  %v7528_v9 = vmax.f32 %v7272_v22, %v7016_v15  ;;  %v5939_v41 = vmax.f32 %v2483_v37, %v4696_v11  ;;  %v18582_v56 = vld [vmem:[#allocation4_spill] sm:$0xff]  ;;  %v18588_v11 = vld [vmem:[#allocation10_spill] sm:$0xff] }
 0x521   : > { %v4703_v7 = vsel %vm10121_vm7, %v9348_v53, %v18578_v48  ;;  %v5940_v57 = vmax.f32 %v2491_v54, %v4699_v20  ;;  %v6338_v28 = vmax.f32 %v5938_v27, %v2483_v37  ;;  %v6337_v3 = vmax.f32 %v5937_v32, %v2475_v23  ;;  %v18585_v53 = vld [vmem:[#allocation3_spill] sm:$0xff] }
 0x522   : > { %v5941_v8 = vmax.f32 %v2492_v55, %v4703_v7  ;;  %v7560_v24 = vmax.f32 %v7304_v40, %v18579_v39  ;;  %v7592_v30 = vmax.f32 %v7336_v4, %v18581_v45  ;;  %v8337_v43 = vcombine.low %v7527_v12, %v7528_v9  ;;  %v18583_v55 = vld [vmem:[#allocation5_spill] sm:$0xff]  ;;  %v18589_v20 = vld [vmem:[#allocation11_spill] sm:$0xff]  ;;  %v18591_v39 = vld [vmem:[#allocation194_spill] sm:$0xff] }
 0x523   : > { %v6339_v14 = vmax.f32 %v5939_v41, %v2491_v54  ;;  %v6340_v26 = vmax.f32 %v5940_v57, %v2490_v31  ;;  %v6698_v2 = vmax.f32 %v6338_v28, %v18582_v56  ;;  %v18586_v54 = vld [vmem:[#allocation6_spill] sm:$0xff]  ;;  %v18590_v27 = vld [vmem:[#allocation23_spill] sm:$0xff]  ;;  %v18594_v57 = vld [vmem:[#allocation80_spill] sm:$0xff] }
 0x524   : > { %v6341_v21 = vmax.f32 %v5941_v8, %v18577_v42  ;;  %v8351_v60 = vrot.slane %v8337_v43, %v10104_v6  ;;  %v8473_v44 = vcombine.low %v7559_v33, %v7560_v24  ;;  %v8609_v25 = vcombine.low %v7591_v29, %v7592_v30  ;;  %v18593_v29 = vld [vmem:[#allocation28_spill] sm:$0xff]  ;;  %v18595_v24 = vld [vmem:[#allocation85_spill] sm:$0xff]  ;;  %v18596_v30 = vld [vmem:[#allocation167_spill] sm:$0xff] }
 0x525   : > { %v6699_v58 = vmax.f32 %v6339_v14, %v18583_v55  ;;  %v6700_v19 = vmax.f32 %v6340_v26, %v18584_v38  ;;  %v7018_v32 = vmax.f32 %v6698_v2, %v18586_v54  ;;  %v18597_v43 = vmax.f32 %v18596_v30, %v18591_v39 }
 0x526   : > { %v6697_v22 = vmax.f32 %v6337_v3, %v6341_v21  ;;  %v6701_v15 = vmax.f32 %v6341_v21, %v18585_v53  ;;  %v8352_v37 = vcombine.low %v16704_v16, %v8351_v60  ;;  %v8487_v23 = vrot.slane %v8473_v44, %v10104_v6 }
 0x527   : > { %v8623_v31 = vrot.slane %v8609_v25, %v10104_v6  ;;  %v7019_v51 = vmax.f32 %v6699_v58, %v18587_v63  ;;  %v7020_v12 = vmax.f32 %v6700_v19, %v18588_v11  ;;  %v7306_v7 = vmax.f32 %v15509_v17, %v7018_v32  ;;  %v18604_v58 = vld [vmem:[#allocation199_spill] sm:$0xff] }
 0x528   : > { %v7017_v0 = vmax.f32 %v6697_v22, %v18585_v53  ;;  %v7021_v42 = vmax.f32 %v6701_v15, %v18589_v20  ;;  %v8488_v48 = vcombine.low %v16707_v34, %v8487_v23  ;;  %9121 = vst.msk [vmem:[%s12622_s19 + $0xb8] sm:$0xff] %vm9097_vm8, %v8352_v37  ;;  %v7338_v40 = vmax.f32 %v7018_v32, %v18590_v27  ;;  %v18592_v34 = vld [vmem:[#allocation79_spill] sm:$0xff] }
 0x529   : > { %v8624_v16 = vcombine.low %v16713_v49, %v8623_v31  ;;  %v7307_v9 = vmax.f32 %v18555_v36, %v7019_v51  ;;  %v7308_v33 = vmax.f32 %v18557_v61, %v7020_v12  ;;  %v7339_v41 = vmax.f32 %v7019_v51, %v18593_v29  ;;  %v18599_v36 = vld [vmem:[#allocation142_spill] sm:$0xff]  ;;  %v18601_v61 = vld [vmem:[#allocation143_spill] sm:$0xff] }
 0x52a   : > { %v7305_v4 = vmax.f32 %v18591_v39, %v7017_v0  ;;  %v7309_v59 = vmax.f32 %v18559_v50, %v7021_v42  ;;  %9129 = vst.msk [vmem:[%s12622_s19 + $0xf8] sm:$0xff] %vm9097_vm8, %v8488_v48  ;;  %v7337_v49 = vmax.f32 %v7017_v0, %v18592_v34  ;;  %v7340_v8 = vmax.f32 %v7020_v12, %v18594_v57  ;;  %v18603_v50 = vld [vmem:[#allocation146_spill] sm:$0xff] }
 0x52b   : > { %9137 = vst.msk [vmem:[%s12622_s19 + $0x138] sm:$0xff] %vm9097_vm8, %v8624_v16  ;;  %v7341_v45 = vmax.f32 %v7021_v42, %v18595_v24  ;;  %v7529_v28 = vmax.f32 %v18597_v43, %v7017_v0  ;;  %v18598_v3 = vmax.f32 %v18292_v46, %v15509_v17  ;;  %v7531_v26 = vmax.f32 %v7275_v13, %v7019_v51  ;;  %v18600_v13 = vld [vmem:[#allocation144_spill] sm:$0xff] }
 0x52c   : > { %v7532_v21 = vmax.f32 %v7276_v10, %v7020_v12  ;;  %v7533_v60 = vmax.f32 %v7277_v35, %v7021_v42  ;;  %v7561_v44 = vmax.f32 %v7305_v4, %v18592_v34  ;;  %v7562_v25 = vmax.f32 %v7306_v7, %v18590_v27  ;;  %v18602_v10 = vld [vmem:[#allocation145_spill] sm:$0xff]  ;;  %v18605_v12 = vld [vmem:[#allocation164_spill] sm:$0xff]  ;;  %v18606_v7 = vld [vmem:[#allocation150_spill] sm:$0xff] }
 0x52d   : > { %v7530_v14 = vmax.f32 %v18598_v3, %v7018_v32  ;;  %v7563_v56 = vmax.f32 %v7307_v9, %v18593_v29  ;;  %v7564_v46 = vmax.f32 %v7308_v33, %v18594_v57  ;;  %v7565_v17 = vmax.f32 %v7309_v59, %v18595_v24  ;;  %v18607_v27 = vld [vmem:[#allocation151_spill] sm:$0xff] }
 0x52e   : > { %v7593_v47 = vmax.f32 %v7337_v49, %v18599_v36  ;;  %v7594_v2 = vmax.f32 %v7338_v40, %v18600_v13  ;;  %v7595_v5 = vmax.f32 %v7339_v41, %v18601_v61  ;;  %v7596_v22 = vmax.f32 %v7340_v8, %v18602_v10 }
 0x52f   : > { %v7597_v1 = vmax.f32 %v7341_v45, %v18603_v50  ;;  %v8353_v35 = vcombine.low %v7529_v28, %v7530_v14  ;;  %v8354_v55 = vcombine.low %v7531_v26, %v7532_v21  ;;  %v8370_v38 = vcombine.low %v7533_v60, %v18604_v58 }
 0x530   : > { %v8489_v19 = vcombine.low %v7561_v44, %v7562_v25  ;;  %v8490_v53 = vcombine.low %v7563_v56, %v7564_v46  ;;  %v8506_v37 = vcombine.low %v7565_v17, %v16682_v52  ;;  %v8625_v23 = vcombine.low %v7593_v47, %v7594_v2 }
 0x531   : > { %v8361_v15 = vrot.slane %v8353_v35, %v10104_v6  ;;  %v8626_v31 = vcombine.low %v7595_v5, %v7596_v22  ;;  %v8368_v54 = vrot.slane %v8354_v55, %v10104_v6  ;;  %v8378_v32 = vrot.slane %v8370_v38, %v10104_v6 }
 0x532   : > { %v8497_v0 = vrot.slane %v8489_v19, %v10104_v6  ;;  %v8504_v63 = vrot.slane %v8490_v53, %v10104_v6  ;;  %v8514_v51 = vrot.slane %v8506_v37, %v10104_v6  ;;  %v8633_v11 = vrot.slane %v8625_v23, %v10104_v6 }
 0x533   : > { %v8640_v52 = vrot.slane %v8626_v31, %v10104_v6  ;;  %v8642_v20 = vcombine.low %v7597_v1, %v18605_v12  ;;  %v8369_v42 = vcombine.low %v8361_v15, %v8368_v54  ;;  %v8386_v48 = vcombine.low %v8378_v32, %v16688_v18 }
 0x534   : > { %v8505_v16 = vcombine.low %v8497_v0, %v8504_v63  ;;  %v18608_v40 = vcombine.low %v18606_v7, %v18607_v27  ;;  %v8522_v4 = vcombine.low %v8514_v51, %v16698_v62 }
 0x535   : > { %v8641_v9 = vcombine.low %v8633_v11, %v8640_v52  ;;  %v8650_v33 = vrot.slane %v8642_v20, %v10104_v6  ;;  %9122 = vst.msk [vmem:[%s12622_s19 + $0xc0] sm:$0xff] %vm9097_vm8, %v8369_v42  ;;  %9123 = vst.msk [vmem:[%s12622_s19 + $0xc8] sm:$0xff] %vm9097_vm8, %v8386_v48 }
 0x536   : > { %v8657_v39 = vrot.slane %v18608_v40, %v10104_v6  ;;  %9130 = vst.msk [vmem:[%s12622_s19 + $0x100] sm:$0xff] %vm9097_vm8, %v8505_v16  ;;  %9131 = vst.msk [vmem:[%s12622_s19 + $0x108] sm:$0xff] %vm9097_vm8, %v8522_v4 }
 0x537   : > { %9138 = vst.msk [vmem:[%s12622_s19 + $0x140] sm:$0xff] %vm9097_vm8, %v8641_v9 }
 0x538   : > { %v8658_v59 = vcombine.low %v8650_v33, %v8657_v39 }
 0x53a   : > { %9139 = vst.msk [vmem:[%s12622_s19 + $0x148] sm:$0xff] %vm9097_vm8, %v8658_v59 }
 0x53b PF: > { %s13_s12 = sadd.s32 1, %s9852_s12  }
 0x53c   : > { %p10_p4 = scmp.ge.s32.totalorder %s13_s12, 4  }
 0x53e   :  { %12 = sbr.rel (!%p10_p4) target bundleno = 1 (0x1), region = 62 }

</bundles_post_ra>
